<compile_context>
chip_gen: v6e
topology: v6e:2x2x1
jax: 0.10.0
libtpu: 0.0.40
codegen_flags: <defaults>
</compile_context>

<pallas_src>
import functools

import jax
import jax.numpy as jnp
from jax import lax
from jax.experimental import pallas as pl
from jax.experimental.pallas import tpu as pltpu


# ----------------------------- hyper params ---------------------------------
N_ATOMS = 32          # total atoms across all structures
N_STRUCT = 2          # number of structures (systems)
K = 8                 # max neighbors per atom
D = 32                # model width (TRANSFORMER_D_MODEL analogue)
DFF = 64              # feed-forward width
DH = 32               # readout head hidden width
N_SPECIES = 4         # number of atomic types
TAK = 128             # token rows per attention tile (16 atoms x 8 neighbors)
TA_HALF = TAK // K    # atoms per 128-row attention tile

_NEG = -1e9


def _detect_grid_steps():
    """2 grid steps (one per TensorCore) on v7x; 1 on single-TC v5e/v6e."""
    try:
        kind = jax.devices()[0].device_kind.lower()
    except Exception:
        return 1
    return 2 if ("v7" in kind or "7x" in kind) else 1


N_GRID = max(1, min(_detect_grid_steps(), (N_ATOMS * K) // TAK))
APS = N_ATOMS // N_GRID          # atoms processed per grid step
N_HALVES = (APS * K) // TAK      # 128-row attention tiles per grid step


def _mm(a, b):
    """MXU matmul: bf16 operands, f32 accumulation."""
    return jnp.dot(a.astype(jnp.bfloat16), b.astype(jnp.bfloat16),
                   preferred_element_type=jnp.float32)


# --------------------------- Pallas kernel -----------------------------------
def pet_kernel(packed_ref, maskf_ref, bias_ref, pool_ref,
               emb_ref, wpos_ref, bpos_ref,
               wq_ref, wk_ref, wv_ref, wo_ref,
               w1_ref, b1_ref, w2_ref, b2_ref,
               wr1_ref, br1_ref, wr2_ref, br2_ref,
               out_ref, *, n_halves):
    f32 = jnp.float32
    bf16 = jnp.bfloat16
    inv_sqrt_d = 1.0 / float(D) ** 0.5

    bias = bias_ref[...]          # (TAK,TAK) block-diagonal additive bias 0/-1e9
    pool = pool_ref[...]          # (TA_HALF,TAK) neighbor->atom pooling matrix
    emb = emb_ref[...]            # (N_SPECIES, D)
    wpos = wpos_ref[...]          # (3, D)
    bpos = bpos_ref[...]          # (1, D)

    energies = []
    for h in range(n_halves):                       # static loop over 128-row tiles
        x = packed_ref[pl.ds(h * TAK, TAK), :]      # (TAK, 8) packed token data
        maskf = maskf_ref[:, pl.ds(h * TAK, TAK)]   # (1, TAK) key/pool validity

        # ---- edge-token embedding: 3 VPU FMAs for positions, combined selects
        tok = (x[:, 0:1] * wpos[0:1, :]
               + x[:, 1:2] * wpos[1:2, :]
               + x[:, 2:3] * wpos[2:3, :]
               + bpos)
        nsp = x[:, 3:4]                             # neighbor species id (float)
        csp = x[:, 4:5]                             # central species id (float)
        for s in range(N_SPECIES):                  # tiny & static species count
            sf = float(s)
            sel = (nsp == sf).astype(f32) + (csp == sf).astype(f32)
            tok = tok + sel * emb[s:s + 1, :]

        # ---- block-diagonal neighbor self-attention (single 128x128 matmul)
        q = _mm(tok, wq_ref[...]) * inv_sqrt_d      # scale folded into q (4 vregs)
        k = _mm(tok, wk_ref[...])
        v = _mm(tok, wv_ref[...])
        scores = lax.dot_general(q.astype(bf16), k.astype(bf16),
                                 (((1,), (1,)), ((), ())),
                                 preferred_element_type=f32)
        scores = scores + bias + (maskf - 1.0) * 1e9      # additive masking
        m = jnp.max(scores, axis=-1, keepdims=True)
        p = jnp.exp(scores - m)
        p = p * pl.reciprocal(jnp.sum(p, axis=-1, keepdims=True), approx=True)
        attn = _mm(p, v)                            # (TAK, D)
        tok = tok + _mm(attn, wo_ref[...])

        # ---- position-wise MLP with residual
        hmid = jax.nn.gelu(_mm(tok, w1_ref[...]) + b1_ref[...], approximate=True)
        tok = tok + _mm(hmid, w2_ref[...]) + b2_ref[...]

        # ---- masked mean-pool over valid neighbors (exact divide)
        sel_pool = pool * maskf                     # (TA_HALF, TAK)
        denom = jnp.sum(sel_pool, axis=-1, keepdims=True)
        pooled = _mm(sel_pool, tok) / (denom + 1e-9)

        # ---- readout head -> lane-dense (1, TA_HALF) per-atom energies
        h2 = jax.nn.gelu(_mm(pooled, wr1_ref[...]) + br1_ref[...],
                         approximate=True)
        e = lax.dot_general(wr2_ref[...].astype(bf16), h2.astype(bf16),
                            (((1,), (1,)), ((), ())),
                            preferred_element_type=f32) + br2_ref[...]
        energies.append(e)

    e_all = energies[0] if n_halves == 1 else jnp.concatenate(energies, axis=1)
    out_ref[...] = e_all.reshape(out_ref.shape).astype(out_ref.dtype)


# ------------------------------ wrappers -------------------------------------
def _w_spec(arr):
    zeros = (0,) * arr.ndim
    return pl.BlockSpec(arr.shape, lambda i, z=zeros: z)


@functools.partial(jax.jit, static_argnames=("per_atom",))
def pet_forward(positions, nbr_species, cen_species, nbr_mask, structure_index,
                params, per_atom=False):
    """Mimics PET.forward for a single 'energy' output."""
    f32 = jnp.float32
    A = N_ATOMS

    # systems_to_batch_dict analogue: pack (x, y, z, nbr_species, cen_species,
    # pad, pad, pad) into ONE lane-aligned (A*K, 8) block -> one DMA per step.
    # NOTE: species ids must be in-range (0..N_SPECIES-1); padded neighbor
    # slots are excluded from attention/pooling via the mask, not via ids.
    pos_flat = positions.reshape(A * K, 3).astype(f32)
    nsp_f = nbr_species.reshape(A * K, 1).astype(f32)
    csp_f = jnp.repeat(cen_species, K).reshape(A * K, 1).astype(f32)
    packed = jnp.concatenate(
        [pos_flat, nsp_f, csp_f, jnp.zeros((A * K, 3), f32)], axis=1)   # (A*K,8)
    maskf = nbr_mask.reshape(1, A * K).astype(f32)

    # Trace-time constants, DMA'd once (constant index_map): block-diagonal
    # attention bias and the neighbor->atom pooling matrix (replace the old
    # in-kernel 128x128 int32 iota / divide / compare chain).
    col_atom = jnp.arange(TAK, dtype=jnp.int32) // K
    bias = jnp.where(col_atom[:, None] == col_atom[None, :], 0.0, _NEG
                     ).astype(f32)                                      # (128,128)
    pool = (jnp.arange(TA_HALF, dtype=jnp.int32)[:, None] == col_atom[None, :]
            ).astype(f32)                                               # (16,128)

    weights = (
        params["species_emb"], params["w_pos"], params["b_pos"],
        params["wq"], params["wk"], params["wv"], params["wo"],
        params["w1"], params["b1"], params["w2"], params["b2"],
        params["wr1"], params["br1"], params["wr2"], params["br2"],
    )

    in_specs = [
        pl.BlockSpec((APS * K, 8), lambda i: (i, 0)),    # packed token data
        pl.BlockSpec((1, APS * K), lambda i: (0, i)),    # neighbor validity mask
        pl.BlockSpec((TAK, TAK), lambda i: (0, 0)),      # block-diag attn bias
        pl.BlockSpec((TA_HALF, TAK), lambda i: (0, 0)),  # pooling matrix
    ] + [_w_spec(w) for w in weights]
    # TODO(synk): pipeline_mode=pl.Buffered(1) on the constant-index weight
    # specs would drop their second VMEM buffer; omitted here (weights are ~KB
    # and VMEM use is negligible on all generations incl. v7x's 64 MiB).

    if N_GRID == 1:
        # single grid step (v5e/v6e): fully lane-dense 2-D output, full block
        out_shape = jax.ShapeDtypeStruct((1, A), f32)
        out_spec = pl.BlockSpec((1, A), lambda i: (0, 0))
    else:
        # v7x: one atom block per TensorCore; last two block dims = full dims
        out_shape = jax.ShapeDtypeStruct((N_GRID, 1, APS), f32)
        out_spec = pl.BlockSpec((1, 1, APS), lambda i: (i, 0, 0))

    kernel = functools.partial(pet_kernel, n_halves=N_HALVES)
    out = pl.pallas_call(
        kernel,
        out_shape=out_shape,
        grid=(N_GRID,),
        in_specs=in_specs,
        out_specs=out_spec,
        compiler_params=pltpu.CompilerParams(
            dimension_semantics=("parallel",)),
    )(packed, maskf, bias, pool, *weights)

    predictions = out.reshape(A, 1)                   # per-atom energies
    if per_atom:
        return predictions

    # sum_over_samples(..., 'atom'): tiny (S,A)@(A,1) matmul, kept in plain XLA
    # (a second Mosaic custom call would be pure launch overhead).
    onehot = jax.nn.one_hot(structure_index, N_STRUCT, dtype=f32)   # (A, S)
    return onehot.T @ predictions                                    # (S, 1)


# --------------------------- pure-JAX reference ------------------------------
def pet_reference(positions, nbr_species, cen_species, nbr_mask, params):
    """Pure-JAX reference of the kernel math (bf16 matmuls, f32 elsewhere)."""
    f32, bf16 = jnp.float32, jnp.bfloat16
    A = positions.shape[0]

    def mm(a, b):
        return jnp.dot(a.astype(bf16), b.astype(bf16), preferred_element_type=f32)

    emb = params["species_emb"]
    tok = (jnp.take(emb, nbr_species, axis=0)
           + jnp.take(emb, cen_species, axis=0)[:, None, :]
           + positions @ params["w_pos"] + params["b_pos"])          # (A,K,D)

    flat = tok.reshape(A * K, D)
    q = (mm(flat, params["wq"]) * (1.0 / float(D) ** 0.5)).reshape(A, K, D)
    k = mm(flat, params["wk"]).reshape(A, K, D)
    v = mm(flat, params["wv"]).reshape(A, K, D)
    scores = jnp.einsum("aqd,akd->aqk", q.astype(bf16), k.astype(bf16),
                        preferred_element_type=f32)
    scores = jnp.where(nbr_mask[:, None, :] > 0.5, scores, _NEG)
    p = jax.nn.softmax(scores, axis=-1)
    attn = jnp.einsum("aqk,akd->aqd", p.astype(bf16), v.astype(bf16),
                      preferred_element_type=f32)
    tok = tok + mm(attn.reshape(A * K, D), params["wo"]).reshape(A, K, D)

    h = jax.nn.gelu(mm(tok.reshape(A * K, D), params["w1"]) + params["b1"],
                    approximate=True)
    tok = tok + (mm(h, params["w2"]) + params["b2"]).reshape(A, K, D)

    denom = jnp.sum(nbr_mask, axis=1, keepdims=True)
    pooled = jnp.einsum("akd,ak->ad", tok.astype(bf16), nbr_mask.astype(bf16),
                        preferred_element_type=f32) / (denom + 1e-9)
    h2 = jax.nn.gelu(mm(pooled, params["wr1"]) + params["br1"], approximate=True)
    return mm(h2, params["wr2"].T) + params["br2"]                   # (A, 1)


def init_params(key):
    ks = jax.random.split(key, 10)
    s = 0.1
    return {
        "species_emb": s * jax.random.normal(ks[0], (N_SPECIES, D), jnp.float32),
        "w_pos": s * jax.random.normal(ks[1], (3, D), jnp.float32),
        "b_pos": jnp.zeros((1, D), jnp.float32),
        "wq": s * jax.random.normal(ks[2], (D, D), jnp.float32),
        "wk": s * jax.random.normal(ks[3], (D, D), jnp.float32),
        "wv": s * jax.random.normal(ks[4], (D, D), jnp.float32),
        "wo": s * jax.random.normal(ks[5], (D, D), jnp.float32),
        "w1": s * jax.random.normal(ks[6], (D, DFF), jnp.float32),
        "b1": jnp.zeros((1, DFF), jnp.float32),
        "w2": s * jax.random.normal(ks[7], (DFF, D), jnp.float32),
        "b2": jnp.zeros((1, D), jnp.float32),
        "wr1": s * jax.random.normal(ks[8], (D, DH), jnp.float32),
        "br1": jnp.zeros((1, DH), jnp.float32),
        "wr2": s * jax.random.normal(ks[9], (1, DH), jnp.float32),
        "br2": jnp.zeros((1, 1), jnp.float32),
    }


if __name__ == "__main__":
    key = jax.random.PRNGKey(0)
    k_pos, k_ns, k_cs, k_nv, k_par = jax.random.split(key, 5)

    # synthetic neighbor-list batch (systems_to_batch_dict analogue)
    positions = jax.random.normal(k_pos, (N_ATOMS, K, 3), jnp.float32)     # r_ij
    nbr_species = jax.random.randint(k_ns, (N_ATOMS, K), 0, N_SPECIES)
    cen_species = jax.random.randint(k_cs, (N_ATOMS,), 0, N_SPECIES)
    n_valid = jax.random.randint(k_nv, (N_ATOMS, 1), 4, K + 1)             # 4..K
    nbr_mask = (jnp.arange(K)[None, :] < n_valid).astype(jnp.float32)      # (A,K)
    structure_index = jnp.concatenate(
        [jnp.zeros(N_ATOMS // 2, jnp.int32), jnp.ones(N_ATOMS // 2, jnp.int32)]
    )                                                                      # batch['batch']

    params = init_params(k_par)

    per_atom = pet_forward(positions, nbr_species, cen_species, nbr_mask,
                           structure_index, params, per_atom=True)
    per_structure = pet_forward(positions, nbr_species, cen_species, nbr_mask,
                                structure_index, params, per_atom=False)
    jax.block_until_ready((per_atom, per_structure))

    assert per_atom.shape == (N_ATOMS, 1)
    assert per_structure.shape == (N_STRUCT, 1)

    # correctness: kernel vs pure-JAX reference of the same math
    ref_atom = pet_reference(positions, nbr_species, cen_species, nbr_mask, params)
    assert jnp.allclose(per_atom, ref_atom, atol=1e-2), \
        float(jnp.max(jnp.abs(per_atom - ref_atom)))

    # sanity: per-structure = segment sum of per-atom predictions
    ref_struct = jax.ops.segment_sum(per_atom[:, 0], structure_index,
                                     N_STRUCT)[:, None]
    assert jnp.allclose(per_structure, ref_struct, atol=1e-4)

    print("KERNEL_OK")
</pallas_src>

<mosaic_0001>
module attributes {stable_mosaic.version = 11 : i64} {
  func.func @pet_kernel(%arg0: i32, %arg1: memref<256x8xf32, #tpu.memory_space<vmem>>, %arg2: memref<1x256xf32, #tpu.memory_space<vmem>>, %arg3: memref<128x128xf32, #tpu.memory_space<vmem>>, %arg4: memref<16x128xf32, #tpu.memory_space<vmem>>, %arg5: memref<4x32xf32, #tpu.memory_space<vmem>>, %arg6: memref<3x32xf32, #tpu.memory_space<vmem>>, %arg7: memref<1x32xf32, #tpu.memory_space<vmem>>, %arg8: memref<32x32xf32, #tpu.memory_space<vmem>>, %arg9: memref<32x32xf32, #tpu.memory_space<vmem>>, %arg10: memref<32x32xf32, #tpu.memory_space<vmem>>, %arg11: memref<32x32xf32, #tpu.memory_space<vmem>>, %arg12: memref<32x64xf32, #tpu.memory_space<vmem>>, %arg13: memref<1x64xf32, #tpu.memory_space<vmem>>, %arg14: memref<64x32xf32, #tpu.memory_space<vmem>>, %arg15: memref<1x32xf32, #tpu.memory_space<vmem>>, %arg16: memref<32x32xf32, #tpu.memory_space<vmem>>, %arg17: memref<1x32xf32, #tpu.memory_space<vmem>>, %arg18: memref<1x32xf32, #tpu.memory_space<vmem>>, %arg19: memref<1x1xf32, #tpu.memory_space<vmem>>, %arg20: memref<1x32xf32, #tpu.memory_space<vmem>>) attributes {dimension_semantics = [#tpu.dimension_semantics<parallel>], iteration_bounds = array<i64: 1>, scalar_prefetch = 0 : i64, scratch_operands = 0 : i64, tpu.core_type = #tpu.core_type<tc>, window_params = [{transform_indices = @transform_0, window_bounds = array<i64: 256, 8>}, {transform_indices = @transform_1, window_bounds = array<i64: 1, 256>}, {pipeline_mode = #tpu.pipeline_mode<synchronous>, transform_indices = @transform_2, window_bounds = array<i64: 128, 128>}, {pipeline_mode = #tpu.pipeline_mode<synchronous>, transform_indices = @transform_3, window_bounds = array<i64: 16, 128>}, {pipeline_mode = #tpu.pipeline_mode<synchronous>, transform_indices = @transform_4, window_bounds = array<i64: 4, 32>}, {pipeline_mode = #tpu.pipeline_mode<synchronous>, transform_indices = @transform_5, window_bounds = array<i64: 3, 32>}, {pipeline_mode = #tpu.pipeline_mode<synchronous>, transform_indices = @transform_6, window_bounds = array<i64: 1, 32>}, {pipeline_mode = #tpu.pipeline_mode<synchronous>, transform_indices = @transform_7, window_bounds = array<i64: 32, 32>}, {pipeline_mode = #tpu.pipeline_mode<synchronous>, transform_indices = @transform_8, window_bounds = array<i64: 32, 32>}, {pipeline_mode = #tpu.pipeline_mode<synchronous>, transform_indices = @transform_9, window_bounds = array<i64: 32, 32>}, {pipeline_mode = #tpu.pipeline_mode<synchronous>, transform_indices = @transform_10, window_bounds = array<i64: 32, 32>}, {pipeline_mode = #tpu.pipeline_mode<synchronous>, transform_indices = @transform_11, window_bounds = array<i64: 32, 64>}, {pipeline_mode = #tpu.pipeline_mode<synchronous>, transform_indices = @transform_12, window_bounds = array<i64: 1, 64>}, {pipeline_mode = #tpu.pipeline_mode<synchronous>, transform_indices = @transform_13, window_bounds = array<i64: 64, 32>}, {pipeline_mode = #tpu.pipeline_mode<synchronous>, transform_indices = @transform_14, window_bounds = array<i64: 1, 32>}, {pipeline_mode = #tpu.pipeline_mode<synchronous>, transform_indices = @transform_15, window_bounds = array<i64: 32, 32>}, {pipeline_mode = #tpu.pipeline_mode<synchronous>, transform_indices = @transform_16, window_bounds = array<i64: 1, 32>}, {pipeline_mode = #tpu.pipeline_mode<synchronous>, transform_indices = @transform_17, window_bounds = array<i64: 1, 32>}, {pipeline_mode = #tpu.pipeline_mode<synchronous>, transform_indices = @transform_18, window_bounds = array<i64: 1, 1>}, {pipeline_mode = #tpu.pipeline_mode<synchronous>, transform_indices = @transform_19, window_bounds = array<i64: 1, 32>}]} {
    %c0 = arith.constant 0 : index
    %c0_0 = arith.constant 0 : index
    %0 = vector.load %arg3[%c0, %c0_0] : memref<128x128xf32, #tpu.memory_space<vmem>>, vector<128x128xf32>
    %c0_1 = arith.constant 0 : index
    %c0_2 = arith.constant 0 : index
    %1 = vector.load %arg4[%c0_1, %c0_2] : memref<16x128xf32, #tpu.memory_space<vmem>>, vector<16x128xf32>
    %c0_3 = arith.constant 0 : index
    %c0_4 = arith.constant 0 : index
    %2 = vector.load %arg5[%c0_3, %c0_4] : memref<4x32xf32, #tpu.memory_space<vmem>>, vector<4x32xf32>
    %c0_5 = arith.constant 0 : index
    %c0_6 = arith.constant 0 : index
    %3 = vector.load %arg6[%c0_5, %c0_6] : memref<3x32xf32, #tpu.memory_space<vmem>>, vector<3x32xf32>
    %c0_7 = arith.constant 0 : index
    %c0_8 = arith.constant 0 : index
    %4 = vector.load %arg7[%c0_7, %c0_8] : memref<1x32xf32, #tpu.memory_space<vmem>>, vector<1x32xf32>
    %c0_9 = arith.constant 0 : index
    %c0_10 = arith.constant 0 : index
    %5 = vector.load %arg1[%c0_9, %c0_10] : memref<256x8xf32, #tpu.memory_space<vmem>>, vector<128x8xf32>
    %c0_11 = arith.constant 0 : index
    %c0_12 = arith.constant 0 : index
    %6 = vector.load %arg2[%c0_11, %c0_12] : memref<1x256xf32, #tpu.memory_space<vmem>>, vector<1x128xf32>
    %7 = vector.extract_strided_slice %5 {offsets = [0, 0], sizes = [128, 1], strides = [1, 1]} : vector<128x8xf32> to vector<128x1xf32>
    %8 = vector.extract_strided_slice %3 {offsets = [0, 0], sizes = [1, 32], strides = [1, 1]} : vector<3x32xf32> to vector<1x32xf32>
    %9 = vector.broadcast %7 : vector<128x1xf32> to vector<128x32xf32>
    %10 = vector.broadcast %8 : vector<1x32xf32> to vector<128x32xf32>
    %11 = arith.mulf %9, %10 : vector<128x32xf32>
    %12 = vector.extract_strided_slice %5 {offsets = [0, 1], sizes = [128, 1], strides = [1, 1]} : vector<128x8xf32> to vector<128x1xf32>
    %13 = vector.extract_strided_slice %3 {offsets = [1, 0], sizes = [1, 32], strides = [1, 1]} : vector<3x32xf32> to vector<1x32xf32>
    %14 = vector.broadcast %12 : vector<128x1xf32> to vector<128x32xf32>
    %15 = vector.broadcast %13 : vector<1x32xf32> to vector<128x32xf32>
    %16 = arith.mulf %14, %15 : vector<128x32xf32>
    %17 = arith.addf %11, %16 : vector<128x32xf32>
    %18 = vector.extract_strided_slice %5 {offsets = [0, 2], sizes = [128, 1], strides = [1, 1]} : vector<128x8xf32> to vector<128x1xf32>
    %19 = vector.extract_strided_slice %3 {offsets = [2, 0], sizes = [1, 32], strides = [1, 1]} : vector<3x32xf32> to vector<1x32xf32>
    %20 = vector.broadcast %18 : vector<128x1xf32> to vector<128x32xf32>
    %21 = vector.broadcast %19 : vector<1x32xf32> to vector<128x32xf32>
    %22 = arith.mulf %20, %21 : vector<128x32xf32>
    %23 = arith.addf %17, %22 : vector<128x32xf32>
    %24 = vector.broadcast %4 : vector<1x32xf32> to vector<128x32xf32>
    %25 = arith.addf %23, %24 : vector<128x32xf32>
    %26 = vector.extract_strided_slice %5 {offsets = [0, 3], sizes = [128, 1], strides = [1, 1]} : vector<128x8xf32> to vector<128x1xf32>
    %27 = vector.extract_strided_slice %5 {offsets = [0, 4], sizes = [128, 1], strides = [1, 1]} : vector<128x8xf32> to vector<128x1xf32>
    %cst = arith.constant 0.000000e+00 : f32
    %28 = vector.broadcast %cst : f32 to vector<128x1xf32>
    %29 = arith.cmpf oeq, %26, %28 : vector<128x1xf32>
    %30 = arith.extui %29 : vector<128x1xi1> to vector<128x1xi32>
    %31 = arith.sitofp %30 : vector<128x1xi32> to vector<128x1xf32>
    %cst_13 = arith.constant 0.000000e+00 : f32
    %32 = vector.broadcast %cst_13 : f32 to vector<128x1xf32>
    %33 = arith.cmpf oeq, %27, %32 : vector<128x1xf32>
    %34 = arith.extui %33 : vector<128x1xi1> to vector<128x1xi32>
    %35 = arith.sitofp %34 : vector<128x1xi32> to vector<128x1xf32>
    %36 = arith.addf %31, %35 : vector<128x1xf32>
    %37 = vector.extract_strided_slice %2 {offsets = [0, 0], sizes = [1, 32], strides = [1, 1]} : vector<4x32xf32> to vector<1x32xf32>
    %38 = vector.broadcast %36 : vector<128x1xf32> to vector<128x32xf32>
    %39 = vector.broadcast %37 : vector<1x32xf32> to vector<128x32xf32>
    %40 = arith.mulf %38, %39 : vector<128x32xf32>
    %41 = arith.addf %25, %40 : vector<128x32xf32>
    %cst_14 = arith.constant 1.000000e+00 : f32
    %42 = vector.broadcast %cst_14 : f32 to vector<128x1xf32>
    %43 = arith.cmpf oeq, %26, %42 : vector<128x1xf32>
    %44 = arith.extui %43 : vector<128x1xi1> to vector<128x1xi32>
    %45 = arith.sitofp %44 : vector<128x1xi32> to vector<128x1xf32>
    %cst_15 = arith.constant 1.000000e+00 : f32
    %46 = vector.broadcast %cst_15 : f32 to vector<128x1xf32>
    %47 = arith.cmpf oeq, %27, %46 : vector<128x1xf32>
    %48 = arith.extui %47 : vector<128x1xi1> to vector<128x1xi32>
    %49 = arith.sitofp %48 : vector<128x1xi32> to vector<128x1xf32>
    %50 = arith.addf %45, %49 : vector<128x1xf32>
    %51 = vector.extract_strided_slice %2 {offsets = [1, 0], sizes = [1, 32], strides = [1, 1]} : vector<4x32xf32> to vector<1x32xf32>
    %52 = vector.broadcast %50 : vector<128x1xf32> to vector<128x32xf32>
    %53 = vector.broadcast %51 : vector<1x32xf32> to vector<128x32xf32>
    %54 = arith.mulf %52, %53 : vector<128x32xf32>
    %55 = arith.addf %41, %54 : vector<128x32xf32>
    %cst_16 = arith.constant 2.000000e+00 : f32
    %56 = vector.broadcast %cst_16 : f32 to vector<128x1xf32>
    %57 = arith.cmpf oeq, %26, %56 : vector<128x1xf32>
    %58 = arith.extui %57 : vector<128x1xi1> to vector<128x1xi32>
    %59 = arith.sitofp %58 : vector<128x1xi32> to vector<128x1xf32>
    %cst_17 = arith.constant 2.000000e+00 : f32
    %60 = vector.broadcast %cst_17 : f32 to vector<128x1xf32>
    %61 = arith.cmpf oeq, %27, %60 : vector<128x1xf32>
    %62 = arith.extui %61 : vector<128x1xi1> to vector<128x1xi32>
    %63 = arith.sitofp %62 : vector<128x1xi32> to vector<128x1xf32>
    %64 = arith.addf %59, %63 : vector<128x1xf32>
    %65 = vector.extract_strided_slice %2 {offsets = [2, 0], sizes = [1, 32], strides = [1, 1]} : vector<4x32xf32> to vector<1x32xf32>
    %66 = vector.broadcast %64 : vector<128x1xf32> to vector<128x32xf32>
    %67 = vector.broadcast %65 : vector<1x32xf32> to vector<128x32xf32>
    %68 = arith.mulf %66, %67 : vector<128x32xf32>
    %69 = arith.addf %55, %68 : vector<128x32xf32>
    %cst_18 = arith.constant 3.000000e+00 : f32
    %70 = vector.broadcast %cst_18 : f32 to vector<128x1xf32>
    %71 = arith.cmpf oeq, %26, %70 : vector<128x1xf32>
    %72 = arith.extui %71 : vector<128x1xi1> to vector<128x1xi32>
    %73 = arith.sitofp %72 : vector<128x1xi32> to vector<128x1xf32>
    %cst_19 = arith.constant 3.000000e+00 : f32
    %74 = vector.broadcast %cst_19 : f32 to vector<128x1xf32>
    %75 = arith.cmpf oeq, %27, %74 : vector<128x1xf32>
    %76 = arith.extui %75 : vector<128x1xi1> to vector<128x1xi32>
    %77 = arith.sitofp %76 : vector<128x1xi32> to vector<128x1xf32>
    %78 = arith.addf %73, %77 : vector<128x1xf32>
    %79 = vector.extract_strided_slice %2 {offsets = [3, 0], sizes = [1, 32], strides = [1, 1]} : vector<4x32xf32> to vector<1x32xf32>
    %80 = vector.broadcast %78 : vector<128x1xf32> to vector<128x32xf32>
    %81 = vector.broadcast %79 : vector<1x32xf32> to vector<128x32xf32>
    %82 = arith.mulf %80, %81 : vector<128x32xf32>
    %83 = arith.addf %69, %82 : vector<128x32xf32>
    %c0_20 = arith.constant 0 : index
    %c0_21 = arith.constant 0 : index
    %84 = vector.load %arg8[%c0_20, %c0_21] : memref<32x32xf32, #tpu.memory_space<vmem>>, vector<32x32xf32>
    %85 = arith.truncf %83 : vector<128x32xf32> to vector<128x32xbf16>
    %86 = arith.truncf %84 : vector<32x32xf32> to vector<32x32xbf16>
    %cst_22 = arith.constant dense<0.000000e+00> : vector<128x32xf32>
    %87 = tpu.matmul %85, %86, %cst_22 {dimension_numbers = #tpu.dot_dimension_numbers<[1], [0], [0], [1], [0, 0, 1, 1], [], []>} : vector<128x32xbf16>, vector<32x32xbf16>, vector<128x32xf32> -> vector<128x32xf32>
    %cst_23 = arith.constant 0.176776692 : f32
    %88 = vector.broadcast %cst_23 : f32 to vector<128x32xf32>
    %89 = arith.mulf %87, %88 : vector<128x32xf32>
    %c0_24 = arith.constant 0 : index
    %c0_25 = arith.constant 0 : index
    %90 = vector.load %arg9[%c0_24, %c0_25] : memref<32x32xf32, #tpu.memory_space<vmem>>, vector<32x32xf32>
    %91 = arith.truncf %83 : vector<128x32xf32> to vector<128x32xbf16>
    %92 = arith.truncf %90 : vector<32x32xf32> to vector<32x32xbf16>
    %cst_26 = arith.constant dense<0.000000e+00> : vector<128x32xf32>
    %93 = tpu.matmul %91, %92, %cst_26 {dimension_numbers = #tpu.dot_dimension_numbers<[1], [0], [0], [1], [0, 0, 1, 1], [], []>} : vector<128x32xbf16>, vector<32x32xbf16>, vector<128x32xf32> -> vector<128x32xf32>
    %c0_27 = arith.constant 0 : index
    %c0_28 = arith.constant 0 : index
    %94 = vector.load %arg10[%c0_27, %c0_28] : memref<32x32xf32, #tpu.memory_space<vmem>>, vector<32x32xf32>
    %95 = arith.truncf %83 : vector<128x32xf32> to vector<128x32xbf16>
    %96 = arith.truncf %94 : vector<32x32xf32> to vector<32x32xbf16>
    %cst_29 = arith.constant dense<0.000000e+00> : vector<128x32xf32>
    %97 = tpu.matmul %95, %96, %cst_29 {dimension_numbers = #tpu.dot_dimension_numbers<[1], [0], [0], [1], [0, 0, 1, 1], [], []>} : vector<128x32xbf16>, vector<32x32xbf16>, vector<128x32xf32> -> vector<128x32xf32>
    %98 = arith.truncf %89 : vector<128x32xf32> to vector<128x32xbf16>
    %99 = arith.truncf %93 : vector<128x32xf32> to vector<128x32xbf16>
    %cst_30 = arith.constant dense<0.000000e+00> : vector<128x128xf32>
    %100 = tpu.matmul %98, %99, %cst_30 {dimension_numbers = #tpu.dot_dimension_numbers<[1], [1], [0], [0], [0, 0, 1, 0], [], []>} : vector<128x32xbf16>, vector<128x32xbf16>, vector<128x128xf32> -> vector<128x128xf32>
    %101 = arith.addf %100, %0 : vector<128x128xf32>
    %cst_31 = arith.constant 1.000000e+00 : f32
    %102 = vector.broadcast %cst_31 : f32 to vector<1x128xf32>
    %103 = arith.subf %6, %102 : vector<1x128xf32>
    %cst_32 = arith.constant 1.000000e+09 : f32
    %104 = vector.broadcast %cst_32 : f32 to vector<1x128xf32>
    %105 = arith.mulf %103, %104 : vector<1x128xf32>
    %106 = vector.broadcast %105 : vector<1x128xf32> to vector<128x128xf32>
    %107 = arith.addf %101, %106 : vector<128x128xf32>
    %cst_33 = arith.constant dense<0xFF800000> : vector<128xf32>
    %108 = vector.multi_reduction <maximumf>, %107, %cst_33 [1] : vector<128x128xf32> to vector<128xf32>
    %109 = vector.shape_cast %108 : vector<128xf32> to vector<128x1xf32>
    %110 = vector.broadcast %109 : vector<128x1xf32> to vector<128x128xf32>
    %111 = arith.subf %107, %110 : vector<128x128xf32>
    %112 = math.exp %111 : vector<128x128xf32>
    %cst_34 = arith.constant dense<0.000000e+00> : vector<128xf32>
    %113 = vector.multi_reduction <add>, %112, %cst_34 [1] : vector<128x128xf32> to vector<128xf32>
    %114 = vector.shape_cast %113 : vector<128xf32> to vector<128x1xf32>
    %115 = tpu.reciprocal %114 {approx = true} : vector<128x1xf32> -> vector<128x1xf32>
    %116 = vector.broadcast %115 : vector<128x1xf32> to vector<128x128xf32>
    %117 = arith.mulf %112, %116 : vector<128x128xf32>
    %118 = arith.truncf %117 : vector<128x128xf32> to vector<128x128xbf16>
    %119 = arith.truncf %97 : vector<128x32xf32> to vector<128x32xbf16>
    %cst_35 = arith.constant dense<0.000000e+00> : vector<128x32xf32>
    %120 = tpu.matmul %118, %119, %cst_35 {dimension_numbers = #tpu.dot_dimension_numbers<[1], [0], [0], [1], [0, 0, 1, 1], [], []>} : vector<128x128xbf16>, vector<128x32xbf16>, vector<128x32xf32> -> vector<128x32xf32>
    %c0_36 = arith.constant 0 : index
    %c0_37 = arith.constant 0 : index
    %121 = vector.load %arg11[%c0_36, %c0_37] : memref<32x32xf32, #tpu.memory_space<vmem>>, vector<32x32xf32>
    %122 = arith.truncf %120 : vector<128x32xf32> to vector<128x32xbf16>
    %123 = arith.truncf %121 : vector<32x32xf32> to vector<32x32xbf16>
    %cst_38 = arith.constant dense<0.000000e+00> : vector<128x32xf32>
    %124 = tpu.matmul %122, %123, %cst_38 {dimension_numbers = #tpu.dot_dimension_numbers<[1], [0], [0], [1], [0, 0, 1, 1], [], []>} : vector<128x32xbf16>, vector<32x32xbf16>, vector<128x32xf32> -> vector<128x32xf32>
    %125 = arith.addf %83, %124 : vector<128x32xf32>
    %c0_39 = arith.constant 0 : index
    %c0_40 = arith.constant 0 : index
    %126 = vector.load %arg12[%c0_39, %c0_40] : memref<32x64xf32, #tpu.memory_space<vmem>>, vector<32x64xf32>
    %127 = arith.truncf %125 : vector<128x32xf32> to vector<128x32xbf16>
    %128 = arith.truncf %126 : vector<32x64xf32> to vector<32x64xbf16>
    %cst_41 = arith.constant dense<0.000000e+00> : vector<128x64xf32>
    %129 = tpu.matmul %127, %128, %cst_41 {dimension_numbers = #tpu.dot_dimension_numbers<[1], [0], [0], [1], [0, 0, 1, 1], [], []>} : vector<128x32xbf16>, vector<32x64xbf16>, vector<128x64xf32> -> vector<128x64xf32>
    %c0_42 = arith.constant 0 : index
    %c0_43 = arith.constant 0 : index
    %130 = vector.load %arg13[%c0_42, %c0_43] : memref<1x64xf32, #tpu.memory_space<vmem>>, vector<1x64xf32>
    %131 = vector.broadcast %130 : vector<1x64xf32> to vector<128x64xf32>
    %132 = arith.addf %129, %131 : vector<128x64xf32>
    %133 = arith.mulf %132, %132 : vector<128x64xf32>
    %134 = arith.mulf %132, %133 : vector<128x64xf32>
    %cst_44 = arith.constant 4.471500e-02 : f32
    %135 = vector.broadcast %cst_44 : f32 to vector<128x64xf32>
    %136 = arith.mulf %135, %134 : vector<128x64xf32>
    %137 = arith.addf %132, %136 : vector<128x64xf32>
    %cst_45 = arith.constant 0.797884583 : f32
    %138 = vector.broadcast %cst_45 : f32 to vector<128x64xf32>
    %139 = arith.mulf %138, %137 : vector<128x64xf32>
    %140 = math.tanh %139 : vector<128x64xf32>
    %cst_46 = arith.constant 1.000000e+00 : f32
    %141 = vector.broadcast %cst_46 : f32 to vector<128x64xf32>
    %142 = arith.addf %141, %140 : vector<128x64xf32>
    %cst_47 = arith.constant 5.000000e-01 : f32
    %143 = vector.broadcast %cst_47 : f32 to vector<128x64xf32>
    %144 = arith.mulf %143, %142 : vector<128x64xf32>
    %145 = arith.mulf %132, %144 : vector<128x64xf32>
    %c0_48 = arith.constant 0 : index
    %c0_49 = arith.constant 0 : index
    %146 = vector.load %arg14[%c0_48, %c0_49] : memref<64x32xf32, #tpu.memory_space<vmem>>, vector<64x32xf32>
    %147 = arith.truncf %145 : vector<128x64xf32> to vector<128x64xbf16>
    %148 = arith.truncf %146 : vector<64x32xf32> to vector<64x32xbf16>
    %cst_50 = arith.constant dense<0.000000e+00> : vector<128x32xf32>
    %149 = tpu.matmul %147, %148, %cst_50 {dimension_numbers = #tpu.dot_dimension_numbers<[1], [0], [0], [1], [0, 0, 1, 1], [], []>} : vector<128x64xbf16>, vector<64x32xbf16>, vector<128x32xf32> -> vector<128x32xf32>
    %150 = arith.addf %125, %149 : vector<128x32xf32>
    %c0_51 = arith.constant 0 : index
    %c0_52 = arith.constant 0 : index
    %151 = vector.load %arg15[%c0_51, %c0_52] : memref<1x32xf32, #tpu.memory_space<vmem>>, vector<1x32xf32>
    %152 = vector.broadcast %151 : vector<1x32xf32> to vector<128x32xf32>
    %153 = arith.addf %150, %152 : vector<128x32xf32>
    %154 = vector.broadcast %6 : vector<1x128xf32> to vector<16x128xf32>
    %155 = arith.mulf %1, %154 : vector<16x128xf32>
    %cst_53 = arith.constant dense<0.000000e+00> : vector<16xf32>
    %156 = vector.multi_reduction <add>, %155, %cst_53 [1] : vector<16x128xf32> to vector<16xf32>
    %157 = vector.shape_cast %156 : vector<16xf32> to vector<16x1xf32>
    %158 = arith.truncf %155 : vector<16x128xf32> to vector<16x128xbf16>
    %159 = arith.truncf %153 : vector<128x32xf32> to vector<128x32xbf16>
    %cst_54 = arith.constant dense<0.000000e+00> : vector<16x32xf32>
    %160 = tpu.matmul %158, %159, %cst_54 {dimension_numbers = #tpu.dot_dimension_numbers<[1], [0], [0], [1], [0, 0, 1, 1], [], []>} : vector<16x128xbf16>, vector<128x32xbf16>, vector<16x32xf32> -> vector<16x32xf32>
    %cst_55 = arith.constant 9.99999971E-10 : f32
    %161 = vector.broadcast %cst_55 : f32 to vector<16x1xf32>
    %162 = arith.addf %157, %161 : vector<16x1xf32>
    %163 = vector.broadcast %162 : vector<16x1xf32> to vector<16x32xf32>
    %164 = arith.divf %160, %163 : vector<16x32xf32>
    %c0_56 = arith.constant 0 : index
    %c0_57 = arith.constant 0 : index
    %165 = vector.load %arg16[%c0_56, %c0_57] : memref<32x32xf32, #tpu.memory_space<vmem>>, vector<32x32xf32>
    %166 = arith.truncf %164 : vector<16x32xf32> to vector<16x32xbf16>
    %167 = arith.truncf %165 : vector<32x32xf32> to vector<32x32xbf16>
    %cst_58 = arith.constant dense<0.000000e+00> : vector<16x32xf32>
    %168 = tpu.matmul %166, %167, %cst_58 {dimension_numbers = #tpu.dot_dimension_numbers<[1], [0], [0], [1], [0, 0, 1, 1], [], []>} : vector<16x32xbf16>, vector<32x32xbf16>, vector<16x32xf32> -> vector<16x32xf32>
    %c0_59 = arith.constant 0 : index
    %c0_60 = arith.constant 0 : index
    %169 = vector.load %arg17[%c0_59, %c0_60] : memref<1x32xf32, #tpu.memory_space<vmem>>, vector<1x32xf32>
    %170 = vector.broadcast %169 : vector<1x32xf32> to vector<16x32xf32>
    %171 = arith.addf %168, %170 : vector<16x32xf32>
    %172 = arith.mulf %171, %171 : vector<16x32xf32>
    %173 = arith.mulf %171, %172 : vector<16x32xf32>
    %cst_61 = arith.constant 4.471500e-02 : f32
    %174 = vector.broadcast %cst_61 : f32 to vector<16x32xf32>
    %175 = arith.mulf %174, %173 : vector<16x32xf32>
    %176 = arith.addf %171, %175 : vector<16x32xf32>
    %cst_62 = arith.constant 0.797884583 : f32
    %177 = vector.broadcast %cst_62 : f32 to vector<16x32xf32>
    %178 = arith.mulf %177, %176 : vector<16x32xf32>
    %179 = math.tanh %178 : vector<16x32xf32>
    %cst_63 = arith.constant 1.000000e+00 : f32
    %180 = vector.broadcast %cst_63 : f32 to vector<16x32xf32>
    %181 = arith.addf %180, %179 : vector<16x32xf32>
    %cst_64 = arith.constant 5.000000e-01 : f32
    %182 = vector.broadcast %cst_64 : f32 to vector<16x32xf32>
    %183 = arith.mulf %182, %181 : vector<16x32xf32>
    %184 = arith.mulf %171, %183 : vector<16x32xf32>
    %c0_65 = arith.constant 0 : index
    %c0_66 = arith.constant 0 : index
    %185 = vector.load %arg18[%c0_65, %c0_66] : memref<1x32xf32, #tpu.memory_space<vmem>>, vector<1x32xf32>
    %186 = arith.truncf %185 : vector<1x32xf32> to vector<1x32xbf16>
    %187 = arith.truncf %184 : vector<16x32xf32> to vector<16x32xbf16>
    %cst_67 = arith.constant dense<0.000000e+00> : vector<1x16xf32>
    %188 = tpu.matmul %186, %187, %cst_67 {dimension_numbers = #tpu.dot_dimension_numbers<[1], [1], [0], [0], [0, 0, 1, 0], [], []>} : vector<1x32xbf16>, vector<16x32xbf16>, vector<1x16xf32> -> vector<1x16xf32>
    %c0_68 = arith.constant 0 : index
    %c0_69 = arith.constant 0 : index
    %189 = vector.load %arg19[%c0_68, %c0_69] : memref<1x1xf32, #tpu.memory_space<vmem>>, vector<1x1xf32>
    %190 = vector.broadcast %189 : vector<1x1xf32> to vector<1x16xf32>
    %191 = arith.addf %188, %190 : vector<1x16xf32>
    %c128 = arith.constant 128 : index
    %c0_70 = arith.constant 0 : index
    %192 = vector.load %arg1[%c128, %c0_70] : memref<256x8xf32, #tpu.memory_space<vmem>>, vector<128x8xf32>
    %c0_71 = arith.constant 0 : index
    %c128_72 = arith.constant 128 : index
    %193 = vector.load %arg2[%c0_71, %c128_72] : memref<1x256xf32, #tpu.memory_space<vmem>>, vector<1x128xf32>
    %194 = vector.extract_strided_slice %192 {offsets = [0, 0], sizes = [128, 1], strides = [1, 1]} : vector<128x8xf32> to vector<128x1xf32>
    %195 = vector.extract_strided_slice %3 {offsets = [0, 0], sizes = [1, 32], strides = [1, 1]} : vector<3x32xf32> to vector<1x32xf32>
    %196 = vector.broadcast %194 : vector<128x1xf32> to vector<128x32xf32>
    %197 = vector.broadcast %195 : vector<1x32xf32> to vector<128x32xf32>
    %198 = arith.mulf %196, %197 : vector<128x32xf32>
    %199 = vector.extract_strided_slice %192 {offsets = [0, 1], sizes = [128, 1], strides = [1, 1]} : vector<128x8xf32> to vector<128x1xf32>
    %200 = vector.extract_strided_slice %3 {offsets = [1, 0], sizes = [1, 32], strides = [1, 1]} : vector<3x32xf32> to vector<1x32xf32>
    %201 = vector.broadcast %199 : vector<128x1xf32> to vector<128x32xf32>
    %202 = vector.broadcast %200 : vector<1x32xf32> to vector<128x32xf32>
    %203 = arith.mulf %201, %202 : vector<128x32xf32>
    %204 = arith.addf %198, %203 : vector<128x32xf32>
    %205 = vector.extract_strided_slice %192 {offsets = [0, 2], sizes = [128, 1], strides = [1, 1]} : vector<128x8xf32> to vector<128x1xf32>
    %206 = vector.extract_strided_slice %3 {offsets = [2, 0], sizes = [1, 32], strides = [1, 1]} : vector<3x32xf32> to vector<1x32xf32>
    %207 = vector.broadcast %205 : vector<128x1xf32> to vector<128x32xf32>
    %208 = vector.broadcast %206 : vector<1x32xf32> to vector<128x32xf32>
    %209 = arith.mulf %207, %208 : vector<128x32xf32>
    %210 = arith.addf %204, %209 : vector<128x32xf32>
    %211 = vector.broadcast %4 : vector<1x32xf32> to vector<128x32xf32>
    %212 = arith.addf %210, %211 : vector<128x32xf32>
    %213 = vector.extract_strided_slice %192 {offsets = [0, 3], sizes = [128, 1], strides = [1, 1]} : vector<128x8xf32> to vector<128x1xf32>
    %214 = vector.extract_strided_slice %192 {offsets = [0, 4], sizes = [128, 1], strides = [1, 1]} : vector<128x8xf32> to vector<128x1xf32>
    %cst_73 = arith.constant 0.000000e+00 : f32
    %215 = vector.broadcast %cst_73 : f32 to vector<128x1xf32>
    %216 = arith.cmpf oeq, %213, %215 : vector<128x1xf32>
    %217 = arith.extui %216 : vector<128x1xi1> to vector<128x1xi32>
    %218 = arith.sitofp %217 : vector<128x1xi32> to vector<128x1xf32>
    %cst_74 = arith.constant 0.000000e+00 : f32
    %219 = vector.broadcast %cst_74 : f32 to vector<128x1xf32>
    %220 = arith.cmpf oeq, %214, %219 : vector<128x1xf32>
    %221 = arith.extui %220 : vector<128x1xi1> to vector<128x1xi32>
    %222 = arith.sitofp %221 : vector<128x1xi32> to vector<128x1xf32>
    %223 = arith.addf %218, %222 : vector<128x1xf32>
    %224 = vector.extract_strided_slice %2 {offsets = [0, 0], sizes = [1, 32], strides = [1, 1]} : vector<4x32xf32> to vector<1x32xf32>
    %225 = vector.broadcast %223 : vector<128x1xf32> to vector<128x32xf32>
    %226 = vector.broadcast %224 : vector<1x32xf32> to vector<128x32xf32>
    %227 = arith.mulf %225, %226 : vector<128x32xf32>
    %228 = arith.addf %212, %227 : vector<128x32xf32>
    %cst_75 = arith.constant 1.000000e+00 : f32
    %229 = vector.broadcast %cst_75 : f32 to vector<128x1xf32>
    %230 = arith.cmpf oeq, %213, %229 : vector<128x1xf32>
    %231 = arith.extui %230 : vector<128x1xi1> to vector<128x1xi32>
    %232 = arith.sitofp %231 : vector<128x1xi32> to vector<128x1xf32>
    %cst_76 = arith.constant 1.000000e+00 : f32
    %233 = vector.broadcast %cst_76 : f32 to vector<128x1xf32>
    %234 = arith.cmpf oeq, %214, %233 : vector<128x1xf32>
    %235 = arith.extui %234 : vector<128x1xi1> to vector<128x1xi32>
    %236 = arith.sitofp %235 : vector<128x1xi32> to vector<128x1xf32>
    %237 = arith.addf %232, %236 : vector<128x1xf32>
    %238 = vector.extract_strided_slice %2 {offsets = [1, 0], sizes = [1, 32], strides = [1, 1]} : vector<4x32xf32> to vector<1x32xf32>
    %239 = vector.broadcast %237 : vector<128x1xf32> to vector<128x32xf32>
    %240 = vector.broadcast %238 : vector<1x32xf32> to vector<128x32xf32>
    %241 = arith.mulf %239, %240 : vector<128x32xf32>
    %242 = arith.addf %228, %241 : vector<128x32xf32>
    %cst_77 = arith.constant 2.000000e+00 : f32
    %243 = vector.broadcast %cst_77 : f32 to vector<128x1xf32>
    %244 = arith.cmpf oeq, %213, %243 : vector<128x1xf32>
    %245 = arith.extui %244 : vector<128x1xi1> to vector<128x1xi32>
    %246 = arith.sitofp %245 : vector<128x1xi32> to vector<128x1xf32>
    %cst_78 = arith.constant 2.000000e+00 : f32
    %247 = vector.broadcast %cst_78 : f32 to vector<128x1xf32>
    %248 = arith.cmpf oeq, %214, %247 : vector<128x1xf32>
    %249 = arith.extui %248 : vector<128x1xi1> to vector<128x1xi32>
    %250 = arith.sitofp %249 : vector<128x1xi32> to vector<128x1xf32>
    %251 = arith.addf %246, %250 : vector<128x1xf32>
    %252 = vector.extract_strided_slice %2 {offsets = [2, 0], sizes = [1, 32], strides = [1, 1]} : vector<4x32xf32> to vector<1x32xf32>
    %253 = vector.broadcast %251 : vector<128x1xf32> to vector<128x32xf32>
    %254 = vector.broadcast %252 : vector<1x32xf32> to vector<128x32xf32>
    %255 = arith.mulf %253, %254 : vector<128x32xf32>
    %256 = arith.addf %242, %255 : vector<128x32xf32>
    %cst_79 = arith.constant 3.000000e+00 : f32
    %257 = vector.broadcast %cst_79 : f32 to vector<128x1xf32>
    %258 = arith.cmpf oeq, %213, %257 : vector<128x1xf32>
    %259 = arith.extui %258 : vector<128x1xi1> to vector<128x1xi32>
    %260 = arith.sitofp %259 : vector<128x1xi32> to vector<128x1xf32>
    %cst_80 = arith.constant 3.000000e+00 : f32
    %261 = vector.broadcast %cst_80 : f32 to vector<128x1xf32>
    %262 = arith.cmpf oeq, %214, %261 : vector<128x1xf32>
    %263 = arith.extui %262 : vector<128x1xi1> to vector<128x1xi32>
    %264 = arith.sitofp %263 : vector<128x1xi32> to vector<128x1xf32>
    %265 = arith.addf %260, %264 : vector<128x1xf32>
    %266 = vector.extract_strided_slice %2 {offsets = [3, 0], sizes = [1, 32], strides = [1, 1]} : vector<4x32xf32> to vector<1x32xf32>
    %267 = vector.broadcast %265 : vector<128x1xf32> to vector<128x32xf32>
    %268 = vector.broadcast %266 : vector<1x32xf32> to vector<128x32xf32>
    %269 = arith.mulf %267, %268 : vector<128x32xf32>
    %270 = arith.addf %256, %269 : vector<128x32xf32>
    %c0_81 = arith.constant 0 : index
    %c0_82 = arith.constant 0 : index
    %271 = vector.load %arg8[%c0_81, %c0_82] : memref<32x32xf32, #tpu.memory_space<vmem>>, vector<32x32xf32>
    %272 = arith.truncf %270 : vector<128x32xf32> to vector<128x32xbf16>
    %273 = arith.truncf %271 : vector<32x32xf32> to vector<32x32xbf16>
    %cst_83 = arith.constant dense<0.000000e+00> : vector<128x32xf32>
    %274 = tpu.matmul %272, %273, %cst_83 {dimension_numbers = #tpu.dot_dimension_numbers<[1], [0], [0], [1], [0, 0, 1, 1], [], []>} : vector<128x32xbf16>, vector<32x32xbf16>, vector<128x32xf32> -> vector<128x32xf32>
    %cst_84 = arith.constant 0.176776692 : f32
    %275 = vector.broadcast %cst_84 : f32 to vector<128x32xf32>
    %276 = arith.mulf %274, %275 : vector<128x32xf32>
    %c0_85 = arith.constant 0 : index
    %c0_86 = arith.constant 0 : index
    %277 = vector.load %arg9[%c0_85, %c0_86] : memref<32x32xf32, #tpu.memory_space<vmem>>, vector<32x32xf32>
    %278 = arith.truncf %270 : vector<128x32xf32> to vector<128x32xbf16>
    %279 = arith.truncf %277 : vector<32x32xf32> to vector<32x32xbf16>
    %cst_87 = arith.constant dense<0.000000e+00> : vector<128x32xf32>
    %280 = tpu.matmul %278, %279, %cst_87 {dimension_numbers = #tpu.dot_dimension_numbers<[1], [0], [0], [1], [0, 0, 1, 1], [], []>} : vector<128x32xbf16>, vector<32x32xbf16>, vector<128x32xf32> -> vector<128x32xf32>
    %c0_88 = arith.constant 0 : index
    %c0_89 = arith.constant 0 : index
    %281 = vector.load %arg10[%c0_88, %c0_89] : memref<32x32xf32, #tpu.memory_space<vmem>>, vector<32x32xf32>
    %282 = arith.truncf %270 : vector<128x32xf32> to vector<128x32xbf16>
    %283 = arith.truncf %281 : vector<32x32xf32> to vector<32x32xbf16>
    %cst_90 = arith.constant dense<0.000000e+00> : vector<128x32xf32>
    %284 = tpu.matmul %282, %283, %cst_90 {dimension_numbers = #tpu.dot_dimension_numbers<[1], [0], [0], [1], [0, 0, 1, 1], [], []>} : vector<128x32xbf16>, vector<32x32xbf16>, vector<128x32xf32> -> vector<128x32xf32>
    %285 = arith.truncf %276 : vector<128x32xf32> to vector<128x32xbf16>
    %286 = arith.truncf %280 : vector<128x32xf32> to vector<128x32xbf16>
    %cst_91 = arith.constant dense<0.000000e+00> : vector<128x128xf32>
    %287 = tpu.matmul %285, %286, %cst_91 {dimension_numbers = #tpu.dot_dimension_numbers<[1], [1], [0], [0], [0, 0, 1, 0], [], []>} : vector<128x32xbf16>, vector<128x32xbf16>, vector<128x128xf32> -> vector<128x128xf32>
    %288 = arith.addf %287, %0 : vector<128x128xf32>
    %cst_92 = arith.constant 1.000000e+00 : f32
    %289 = vector.broadcast %cst_92 : f32 to vector<1x128xf32>
    %290 = arith.subf %193, %289 : vector<1x128xf32>
    %cst_93 = arith.constant 1.000000e+09 : f32
    %291 = vector.broadcast %cst_93 : f32 to vector<1x128xf32>
    %292 = arith.mulf %290, %291 : vector<1x128xf32>
    %293 = vector.broadcast %292 : vector<1x128xf32> to vector<128x128xf32>
    %294 = arith.addf %288, %293 : vector<128x128xf32>
    %cst_94 = arith.constant dense<0xFF800000> : vector<128xf32>
    %295 = vector.multi_reduction <maximumf>, %294, %cst_94 [1] : vector<128x128xf32> to vector<128xf32>
    %296 = vector.shape_cast %295 : vector<128xf32> to vector<128x1xf32>
    %297 = vector.broadcast %296 : vector<128x1xf32> to vector<128x128xf32>
    %298 = arith.subf %294, %297 : vector<128x128xf32>
    %299 = math.exp %298 : vector<128x128xf32>
    %cst_95 = arith.constant dense<0.000000e+00> : vector<128xf32>
    %300 = vector.multi_reduction <add>, %299, %cst_95 [1] : vector<128x128xf32> to vector<128xf32>
    %301 = vector.shape_cast %300 : vector<128xf32> to vector<128x1xf32>
    %302 = tpu.reciprocal %301 {approx = true} : vector<128x1xf32> -> vector<128x1xf32>
    %303 = vector.broadcast %302 : vector<128x1xf32> to vector<128x128xf32>
    %304 = arith.mulf %299, %303 : vector<128x128xf32>
    %305 = arith.truncf %304 : vector<128x128xf32> to vector<128x128xbf16>
    %306 = arith.truncf %284 : vector<128x32xf32> to vector<128x32xbf16>
    %cst_96 = arith.constant dense<0.000000e+00> : vector<128x32xf32>
    %307 = tpu.matmul %305, %306, %cst_96 {dimension_numbers = #tpu.dot_dimension_numbers<[1], [0], [0], [1], [0, 0, 1, 1], [], []>} : vector<128x128xbf16>, vector<128x32xbf16>, vector<128x32xf32> -> vector<128x32xf32>
    %c0_97 = arith.constant 0 : index
    %c0_98 = arith.constant 0 : index
    %308 = vector.load %arg11[%c0_97, %c0_98] : memref<32x32xf32, #tpu.memory_space<vmem>>, vector<32x32xf32>
    %309 = arith.truncf %307 : vector<128x32xf32> to vector<128x32xbf16>
    %310 = arith.truncf %308 : vector<32x32xf32> to vector<32x32xbf16>
    %cst_99 = arith.constant dense<0.000000e+00> : vector<128x32xf32>
    %311 = tpu.matmul %309, %310, %cst_99 {dimension_numbers = #tpu.dot_dimension_numbers<[1], [0], [0], [1], [0, 0, 1, 1], [], []>} : vector<128x32xbf16>, vector<32x32xbf16>, vector<128x32xf32> -> vector<128x32xf32>
    %312 = arith.addf %270, %311 : vector<128x32xf32>
    %c0_100 = arith.constant 0 : index
    %c0_101 = arith.constant 0 : index
    %313 = vector.load %arg12[%c0_100, %c0_101] : memref<32x64xf32, #tpu.memory_space<vmem>>, vector<32x64xf32>
    %314 = arith.truncf %312 : vector<128x32xf32> to vector<128x32xbf16>
    %315 = arith.truncf %313 : vector<32x64xf32> to vector<32x64xbf16>
    %cst_102 = arith.constant dense<0.000000e+00> : vector<128x64xf32>
    %316 = tpu.matmul %314, %315, %cst_102 {dimension_numbers = #tpu.dot_dimension_numbers<[1], [0], [0], [1], [0, 0, 1, 1], [], []>} : vector<128x32xbf16>, vector<32x64xbf16>, vector<128x64xf32> -> vector<128x64xf32>
    %c0_103 = arith.constant 0 : index
    %c0_104 = arith.constant 0 : index
    %317 = vector.load %arg13[%c0_103, %c0_104] : memref<1x64xf32, #tpu.memory_space<vmem>>, vector<1x64xf32>
    %318 = vector.broadcast %317 : vector<1x64xf32> to vector<128x64xf32>
    %319 = arith.addf %316, %318 : vector<128x64xf32>
    %320 = arith.mulf %319, %319 : vector<128x64xf32>
    %321 = arith.mulf %319, %320 : vector<128x64xf32>
    %cst_105 = arith.constant 4.471500e-02 : f32
    %322 = vector.broadcast %cst_105 : f32 to vector<128x64xf32>
    %323 = arith.mulf %322, %321 : vector<128x64xf32>
    %324 = arith.addf %319, %323 : vector<128x64xf32>
    %cst_106 = arith.constant 0.797884583 : f32
    %325 = vector.broadcast %cst_106 : f32 to vector<128x64xf32>
    %326 = arith.mulf %325, %324 : vector<128x64xf32>
    %327 = math.tanh %326 : vector<128x64xf32>
    %cst_107 = arith.constant 1.000000e+00 : f32
    %328 = vector.broadcast %cst_107 : f32 to vector<128x64xf32>
    %329 = arith.addf %328, %327 : vector<128x64xf32>
    %cst_108 = arith.constant 5.000000e-01 : f32
    %330 = vector.broadcast %cst_108 : f32 to vector<128x64xf32>
    %331 = arith.mulf %330, %329 : vector<128x64xf32>
    %332 = arith.mulf %319, %331 : vector<128x64xf32>
    %c0_109 = arith.constant 0 : index
    %c0_110 = arith.constant 0 : index
    %333 = vector.load %arg14[%c0_109, %c0_110] : memref<64x32xf32, #tpu.memory_space<vmem>>, vector<64x32xf32>
    %334 = arith.truncf %332 : vector<128x64xf32> to vector<128x64xbf16>
    %335 = arith.truncf %333 : vector<64x32xf32> to vector<64x32xbf16>
    %cst_111 = arith.constant dense<0.000000e+00> : vector<128x32xf32>
    %336 = tpu.matmul %334, %335, %cst_111 {dimension_numbers = #tpu.dot_dimension_numbers<[1], [0], [0], [1], [0, 0, 1, 1], [], []>} : vector<128x64xbf16>, vector<64x32xbf16>, vector<128x32xf32> -> vector<128x32xf32>
    %337 = arith.addf %312, %336 : vector<128x32xf32>
    %c0_112 = arith.constant 0 : index
    %c0_113 = arith.constant 0 : index
    %338 = vector.load %arg15[%c0_112, %c0_113] : memref<1x32xf32, #tpu.memory_space<vmem>>, vector<1x32xf32>
    %339 = vector.broadcast %338 : vector<1x32xf32> to vector<128x32xf32>
    %340 = arith.addf %337, %339 : vector<128x32xf32>
    %341 = vector.broadcast %193 : vector<1x128xf32> to vector<16x128xf32>
    %342 = arith.mulf %1, %341 : vector<16x128xf32>
    %cst_114 = arith.constant dense<0.000000e+00> : vector<16xf32>
    %343 = vector.multi_reduction <add>, %342, %cst_114 [1] : vector<16x128xf32> to vector<16xf32>
    %344 = vector.shape_cast %343 : vector<16xf32> to vector<16x1xf32>
    %345 = arith.truncf %342 : vector<16x128xf32> to vector<16x128xbf16>
    %346 = arith.truncf %340 : vector<128x32xf32> to vector<128x32xbf16>
    %cst_115 = arith.constant dense<0.000000e+00> : vector<16x32xf32>
    %347 = tpu.matmul %345, %346, %cst_115 {dimension_numbers = #tpu.dot_dimension_numbers<[1], [0], [0], [1], [0, 0, 1, 1], [], []>} : vector<16x128xbf16>, vector<128x32xbf16>, vector<16x32xf32> -> vector<16x32xf32>
    %cst_116 = arith.constant 9.99999971E-10 : f32
    %348 = vector.broadcast %cst_116 : f32 to vector<16x1xf32>
    %349 = arith.addf %344, %348 : vector<16x1xf32>
    %350 = vector.broadcast %349 : vector<16x1xf32> to vector<16x32xf32>
    %351 = arith.divf %347, %350 : vector<16x32xf32>
    %c0_117 = arith.constant 0 : index
    %c0_118 = arith.constant 0 : index
    %352 = vector.load %arg16[%c0_117, %c0_118] : memref<32x32xf32, #tpu.memory_space<vmem>>, vector<32x32xf32>
    %353 = arith.truncf %351 : vector<16x32xf32> to vector<16x32xbf16>
    %354 = arith.truncf %352 : vector<32x32xf32> to vector<32x32xbf16>
    %cst_119 = arith.constant dense<0.000000e+00> : vector<16x32xf32>
    %355 = tpu.matmul %353, %354, %cst_119 {dimension_numbers = #tpu.dot_dimension_numbers<[1], [0], [0], [1], [0, 0, 1, 1], [], []>} : vector<16x32xbf16>, vector<32x32xbf16>, vector<16x32xf32> -> vector<16x32xf32>
    %c0_120 = arith.constant 0 : index
    %c0_121 = arith.constant 0 : index
    %356 = vector.load %arg17[%c0_120, %c0_121] : memref<1x32xf32, #tpu.memory_space<vmem>>, vector<1x32xf32>
    %357 = vector.broadcast %356 : vector<1x32xf32> to vector<16x32xf32>
    %358 = arith.addf %355, %357 : vector<16x32xf32>
    %359 = arith.mulf %358, %358 : vector<16x32xf32>
    %360 = arith.mulf %358, %359 : vector<16x32xf32>
    %cst_122 = arith.constant 4.471500e-02 : f32
    %361 = vector.broadcast %cst_122 : f32 to vector<16x32xf32>
    %362 = arith.mulf %361, %360 : vector<16x32xf32>
    %363 = arith.addf %358, %362 : vector<16x32xf32>
    %cst_123 = arith.constant 0.797884583 : f32
    %364 = vector.broadcast %cst_123 : f32 to vector<16x32xf32>
    %365 = arith.mulf %364, %363 : vector<16x32xf32>
    %366 = math.tanh %365 : vector<16x32xf32>
    %cst_124 = arith.constant 1.000000e+00 : f32
    %367 = vector.broadcast %cst_124 : f32 to vector<16x32xf32>
    %368 = arith.addf %367, %366 : vector<16x32xf32>
    %cst_125 = arith.constant 5.000000e-01 : f32
    %369 = vector.broadcast %cst_125 : f32 to vector<16x32xf32>
    %370 = arith.mulf %369, %368 : vector<16x32xf32>
    %371 = arith.mulf %358, %370 : vector<16x32xf32>
    %c0_126 = arith.constant 0 : index
    %c0_127 = arith.constant 0 : index
    %372 = vector.load %arg18[%c0_126, %c0_127] : memref<1x32xf32, #tpu.memory_space<vmem>>, vector<1x32xf32>
    %373 = arith.truncf %372 : vector<1x32xf32> to vector<1x32xbf16>
    %374 = arith.truncf %371 : vector<16x32xf32> to vector<16x32xbf16>
    %cst_128 = arith.constant dense<0.000000e+00> : vector<1x16xf32>
    %375 = tpu.matmul %373, %374, %cst_128 {dimension_numbers = #tpu.dot_dimension_numbers<[1], [1], [0], [0], [0, 0, 1, 0], [], []>} : vector<1x32xbf16>, vector<16x32xbf16>, vector<1x16xf32> -> vector<1x16xf32>
    %c0_129 = arith.constant 0 : index
    %c0_130 = arith.constant 0 : index
    %376 = vector.load %arg19[%c0_129, %c0_130] : memref<1x1xf32, #tpu.memory_space<vmem>>, vector<1x1xf32>
    %377 = vector.broadcast %376 : vector<1x1xf32> to vector<1x16xf32>
    %378 = arith.addf %375, %377 : vector<1x16xf32>
    %379 = tpu.concatenate %191, %378 in 1 : vector<1x16xf32>, vector<1x16xf32> -> vector<1x32xf32>
    %c0_131 = arith.constant 0 : index
    %c0_132 = arith.constant 0 : index
    %380 = vector.load %arg20[%c0_131, %c0_132] : memref<1x32xf32, #tpu.memory_space<vmem>>, vector<1x32xf32>
    tpu.vector_store %arg20[%c0_131, %c0_132], %379 {strides = array<i32>} : memref<1x32xf32, #tpu.memory_space<vmem>>, vector<1x32xf32>,
    return
  }
  func.func @transform_0(%arg0: i32) -> (i32, i32) {
    %c0_i32 = arith.constant 0 : i32
    %c0_i32_0 = arith.constant 0 : i32
    return %arg0, %c0_i32 : i32, i32
  }
  func.func @transform_1(%arg0: i32) -> (i32, i32) {
    %c0_i32 = arith.constant 0 : i32
    %c0_i32_0 = arith.constant 0 : i32
    return %c0_i32, %arg0 : i32, i32
  }
  func.func @transform_2(%arg0: i32) -> (i32, i32) {
    %c0_i32 = arith.constant 0 : i32
    %c0_i32_0 = arith.constant 0 : i32
    %c0_i32_1 = arith.constant 0 : i32
    return %c0_i32, %c0_i32_0 : i32, i32
  }
  func.func @transform_3(%arg0: i32) -> (i32, i32) {
    %c0_i32 = arith.constant 0 : i32
    %c0_i32_0 = arith.constant 0 : i32
    %c0_i32_1 = arith.constant 0 : i32
    return %c0_i32, %c0_i32_0 : i32, i32
  }
  func.func @transform_4(%arg0: i32) -> (i32, i32) {
    %c0_i32 = arith.constant 0 : i32
    %c0_i32_0 = arith.constant 0 : i32
    %c0_i32_1 = arith.constant 0 : i32
    return %c0_i32, %c0_i32_0 : i32, i32
  }
  func.func @transform_5(%arg0: i32) -> (i32, i32) {
    %c0_i32 = arith.constant 0 : i32
    %c0_i32_0 = arith.constant 0 : i32
    %c0_i32_1 = arith.constant 0 : i32
    return %c0_i32, %c0_i32_0 : i32, i32
  }
  func.func @transform_6(%arg0: i32) -> (i32, i32) {
    %c0_i32 = arith.constant 0 : i32
    %c0_i32_0 = arith.constant 0 : i32
    %c0_i32_1 = arith.constant 0 : i32
    return %c0_i32, %c0_i32_0 : i32, i32
  }
  func.func @transform_7(%arg0: i32) -> (i32, i32) {
    %c0_i32 = arith.constant 0 : i32
    %c0_i32_0 = arith.constant 0 : i32
    %c0_i32_1 = arith.constant 0 : i32
    return %c0_i32, %c0_i32_0 : i32, i32
  }
  func.func @transform_8(%arg0: i32) -> (i32, i32) {
    %c0_i32 = arith.constant 0 : i32
    %c0_i32_0 = arith.constant 0 : i32
    %c0_i32_1 = arith.constant 0 : i32
    return %c0_i32, %c0_i32_0 : i32, i32
  }
  func.func @transform_9(%arg0: i32) -> (i32, i32) {
    %c0_i32 = arith.constant 0 : i32
    %c0_i32_0 = arith.constant 0 : i32
    %c0_i32_1 = arith.constant 0 : i32
    return %c0_i32, %c0_i32_0 : i32, i32
  }
  func.func @transform_10(%arg0: i32) -> (i32, i32) {
    %c0_i32 = arith.constant 0 : i32
    %c0_i32_0 = arith.constant 0 : i32
    %c0_i32_1 = arith.constant 0 : i32
    return %c0_i32, %c0_i32_0 : i32, i32
  }
  func.func @transform_11(%arg0: i32) -> (i32, i32) {
    %c0_i32 = arith.constant 0 : i32
    %c0_i32_0 = arith.constant 0 : i32
    %c0_i32_1 = arith.constant 0 : i32
    return %c0_i32, %c0_i32_0 : i32, i32
  }
  func.func @transform_12(%arg0: i32) -> (i32, i32) {
    %c0_i32 = arith.constant 0 : i32
    %c0_i32_0 = arith.constant 0 : i32
    %c0_i32_1 = arith.constant 0 : i32
    return %c0_i32, %c0_i32_0 : i32, i32
  }
  func.func @transform_13(%arg0: i32) -> (i32, i32) {
    %c0_i32 = arith.constant 0 : i32
    %c0_i32_0 = arith.constant 0 : i32
    %c0_i32_1 = arith.constant 0 : i32
    return %c0_i32, %c0_i32_0 : i32, i32
  }
  func.func @transform_14(%arg0: i32) -> (i32, i32) {
    %c0_i32 = arith.constant 0 : i32
    %c0_i32_0 = arith.constant 0 : i32
    %c0_i32_1 = arith.constant 0 : i32
    return %c0_i32, %c0_i32_0 : i32, i32
  }
  func.func @transform_15(%arg0: i32) -> (i32, i32) {
    %c0_i32 = arith.constant 0 : i32
    %c0_i32_0 = arith.constant 0 : i32
    %c0_i32_1 = arith.constant 0 : i32
    return %c0_i32, %c0_i32_0 : i32, i32
  }
  func.func @transform_16(%arg0: i32) -> (i32, i32) {
    %c0_i32 = arith.constant 0 : i32
    %c0_i32_0 = arith.constant 0 : i32
    %c0_i32_1 = arith.constant 0 : i32
    return %c0_i32, %c0_i32_0 : i32, i32
  }
  func.func @transform_17(%arg0: i32) -> (i32, i32) {
    %c0_i32 = arith.constant 0 : i32
    %c0_i32_0 = arith.constant 0 : i32
    %c0_i32_1 = arith.constant 0 : i32
    return %c0_i32, %c0_i32_0 : i32, i32
  }
  func.func @transform_18(%arg0: i32) -> (i32, i32) {
    %c0_i32 = arith.constant 0 : i32
    %c0_i32_0 = arith.constant 0 : i32
    %c0_i32_1 = arith.constant 0 : i32
    return %c0_i32, %c0_i32_0 : i32, i32
  }
  func.func @transform_19(%arg0: i32) -> (i32, i32) {
    %c0_i32 = arith.constant 0 : i32
    %c0_i32_0 = arith.constant 0 : i32
    %c0_i32_1 = arith.constant 0 : i32
    return %c0_i32, %c0_i32_0 : i32, i32
  }
}

</mosaic_0001>

<bundles_post_ra>
// kernel: pet_forward.1
= control target key start
LH: loop header
LB: loop body
LE: loop exit
PB: predicated region body
PF: predicated region fallthrough
CT: control target
= control target key end

     0   :  { %s11259_s0 = inlined_call_operand.vmem [shape: f32[256,8], index: 0, kind: input, shape index: {}]   ;;  %s11260_s1 = inlined_call_operand.vmem [shape: f32[1,256], index: 1, kind: input, shape index: {}]   ;;  %s11261_s2 = inlined_call_operand.vmem [shape: f32[128,128], index: 2, kind: input, shape index: {}]   ;;  %s11262_s3 = inlined_call_operand.vmem [shape: f32[16,128], index: 3, kind: input, shape index: {}]   ;;  %s11263_s4 = inlined_call_operand.vmem [shape: f32[4,32], index: 4, kind: input, shape index: {}]   ;;  %s11264_s5 = inlined_call_operand.vmem [shape: f32[3,32], index: 5, kind: input, shape index: {}]   ;;  %s11265_s6 = inlined_call_operand.vmem [shape: f32[1,32], index: 6, kind: input, shape index: {}]   ;;  %s11266_s7 = inlined_call_operand.vmem [shape: f32[32,32], index: 7, kind: input, shape index: {}]   ;;  %s11267_s8 = inlined_call_operand.vmem [shape: f32[32,32], index: 8, kind: input, shape index: {}]   ;;  %s11268_s9 = inlined_call_operand.vmem [shape: f32[32,32], index: 9, kind: input, shape index: {}]   ;;  %s11269_s10 = inlined_call_operand.vmem [shape: f32[32,32], index: 10, kind: input, shape index: {}]   ;;  %s11270_s11 = inlined_call_operand.vmem [shape: f32[32,64], index: 11, kind: input, shape index: {}]   ;;  %s11271_s12 = inlined_call_operand.vmem [shape: f32[1,64], index: 12, kind: input, shape index: {}]   ;;  %s11272_s13 = inlined_call_operand.vmem [shape: f32[64,32], index: 13, kind: input, shape index: {}]   ;;  %s11273_s14 = inlined_call_operand.vmem [shape: f32[1,32], index: 14, kind: input, shape index: {}]   ;;  %s11274_s15 = inlined_call_operand.vmem [shape: f32[32,32], index: 15, kind: input, shape index: {}]   ;;  %s11275_s16 = inlined_call_operand.vmem [shape: f32[1,32], index: 16, kind: input, shape index: {}]   ;;  %s11276_s17 = inlined_call_operand.vmem [shape: f32[1,32], index: 17, kind: input, shape index: {}]   ;;  %s11277_s18 = inlined_call_operand.<no memory space> [shape: f32[1,1], index: 18, kind: input, shape index: {}]   ;;  %s11278_s19 = inlined_call_operand.hbm [shape: f32[1,32], index: 19, kind: output, shape index: {}]  }
   0x1   :  { %11443 = sst [smem:[#allocation96_spill]] %s11259_s0  ;;  %v24_v0 = vstv %s11277_s18 }
   0x2   :  { %11444 = sst [smem:[#allocation97_spill]] %s11260_s1  ;;  %25 = vst [vmem:[#allocation2] sm:$0x1] %v24_v0 }
   0x3   :  { %11445 = sst [smem:[#allocation98_spill]] %s11261_s2 }
   0x4   :  { %11446 = sst [smem:[#allocation99_spill]] %s11262_s3 }
   0x5   :  { %s11447_s1 = sld [smem:[#allocation96_spill]]  ;;  %v11283_v5 = vmov 0   ;;  %v11285_v6 = vmov 0.0   ;;  %s7581_s3 = smov 127  }
   0x6   :  { %6957 = vset.pattern.permute.xlu1 %v11283_v5  ;;  %6956 = vset.pattern.permute.xlu0 %v11283_v5 }
   0xb   :  { %v7694_v1 = vld [vmem:[%s11447_s1] sm:$0xff]  ;;  %v7699_v2 = vld [vmem:[%s11447_s1 + $0x8] sm:$0xff]  ;;  %v7704_v3 = vld [vmem:[%s11447_s1 + $0x10] sm:$0xff] }
   0xc   :  { %vm670_vm0 = vcmp.eq.f32.partialorder %v7694_v1, 1.0  ;;  %vm671_vm1 = vcmp.eq.f32.partialorder %v7699_v2, 1.0  ;;  %vm426_vm2 = vcmp.eq.f32.partialorder %v7694_v1, 0.0  ;;  %vm427_vm3 = vcmp.eq.f32.partialorder %v7699_v2, 0.0  ;;  %v7713_v4 = vld [vmem:[%s11447_s1 + $0x18] sm:$0xff] }
   0xd   :  { %v7718_v7 = vsel %vm670_vm0, 1.0, %v11285_v6  ;;  %v7721_v8 = vsel %vm671_vm1, 1.0, %v11285_v6  ;;  %v7724_v9 = vsel %vm426_vm2, 1.0, %v11285_v6  ;;  %v7727_v10 = vsel %vm427_vm3, 1.0, %v11285_v6 }
   0xe   :  { %v6806_v11 = vpack.i.bf16 %v7721_v8, %v7718_v7  ;;  %v6796_v12 = vpack.i.bf16 %v7727_v10, %v7724_v9  ;;  %vm672_vm4 = vcmp.eq.f32.partialorder %v7704_v3, 1.0  ;;  %vm673_vm5 = vcmp.eq.f32.partialorder %v7713_v4, 1.0 }
   0xf   :  { %v7736_v13 = vsel %vm672_vm4, 1.0, %v11285_v6  ;;  %v7739_v14 = vsel %vm673_vm5, 1.0, %v11285_v6  ;;  %vm428_vm6 = vcmp.eq.f32.partialorder %v7704_v3, 0.0  ;;  %vm429_vm7 = vcmp.eq.f32.partialorder %v7713_v4, 0.0 }
  0x10   :  { %6807 = vrot.lane.b32.xlu1 %v6806_v11, %s7581_s3  ;;  %6797 = vrot.lane.b32.xlu0 %v6796_v12, %s7581_s3  ;;  %v6811_v15 = vpack.i.bf16 %v7739_v14, %v7736_v13  ;;  %v7748_v16 = vsel %vm428_vm6, 1.0, %v11285_v6  ;;  %v7751_v17 = vsel %vm429_vm7, 1.0, %v11285_v6  ;;  %vm916_vm8 = vcmp.eq.f32.partialorder %v7704_v3, 2.0 }
  0x11   :  { %v6801_v18 = vpack.i.bf16 %v7751_v17, %v7748_v16  ;;  %vm917_vm9 = vcmp.eq.f32.partialorder %v7713_v4, 2.0  ;;  %v7758_v19 = vsel %vm916_vm8, 1.0, %v11285_v6  ;;  %vm914_vm10 = vcmp.eq.f32.partialorder %v7694_v1, 2.0 }
  0x12   :  { %v7762_v20 = vsel %vm917_vm9, 1.0, %v11285_v6  ;;  %vm915_vm11 = vcmp.eq.f32.partialorder %v7699_v2, 2.0  ;;  %v7766_v21 = vsel %vm914_vm10, 1.0, %v11285_v6  ;;  %vm1160_vm12 = vcmp.eq.f32.partialorder %v7704_v3, 3.0 }
  0x13   :  { %26 = vsyncpa [#allocation4], 0  ;;  %v7770_v22 = vsel %vm915_vm11, 1.0, %v11285_v6  ;;  %vm1161_vm13 = vcmp.eq.f32.partialorder %v7713_v4, 3.0  ;;  %v7776_v23 = vld [vmem:[%s11447_s1 + $0x30] sm:$0xff]  ;;  %v7781_v24 = vld [vmem:[%s11447_s1 + $0x38] sm:$0xff]  ;;  %v6821_v26 = vpack.i.bf16 %v7762_v20, %v7758_v19 }
  0x14   :  { %v7786_v25 = vld [vmem:[%s11447_s1 + $0x20] sm:$0xff]  ;;  %6812 = vrot.lane.b32.xlu1 %v6811_v15, %s7581_s3  ;;  %6802 = vrot.lane.b32.xlu0 %v6801_v18, %s7581_s3  ;;  %v6816_v27 = vpack.i.bf16 %v7770_v22, %v7766_v21  ;;  %vm1158_vm14 = vcmp.eq.f32.partialorder %v7694_v1, 3.0  ;;  %vm1159_vm15 = vcmp.eq.f32.partialorder %v7699_v2, 3.0  ;;  %v7799_v28 = vld [vmem:[%s11447_s1 + $0x28] sm:$0xff]  ;;  %v7802_v29 = vsel %vm1160_vm12, 1.0, %v11285_v6  ;;  %s11561_s2 = sld [smem:[#allocation97_spill]] }
  0x15   :  { %v7805_v30 = vsel %vm1161_vm13, 1.0, %v11285_v6  ;;  %v7808_v31 = vsel %vm1158_vm14, 1.0, %v11285_v6  ;;  %v7811_v32 = vsel %vm1159_vm15, 1.0, %v11285_v6  ;;  %vm432_vm0 = vcmp.eq.f32.partialorder %v7776_v23, 0.0  ;;  %v7886_v51 = vld [vmem:[%s11447_s1 + $0x50] sm:$0xff]  ;;  %v7891_v52 = vld [vmem:[%s11447_s1 + $0x58] sm:$0xff] }
  0x16   :  { %vm433_vm1 = vcmp.eq.f32.partialorder %v7781_v24, 0.0  ;;  %vm430_vm2 = vcmp.eq.f32.partialorder %v7786_v25, 0.0  ;;  %vm431_vm3 = vcmp.eq.f32.partialorder %v7799_v28, 0.0  ;;  %v6831_v33 = vpack.i.bf16 %v7805_v30, %v7802_v29  ;;  %v7896_v53 = vld [vmem:[%s11447_s1 + $0x40] sm:$0xff]  ;;  %v7901_v54 = vld [vmem:[%s11447_s1 + $0x48] sm:$0xff]  ;;  %s11569_s21 = sld [smem:[#allocation99_spill]] }
  0x17   :  { %v6826_v34 = vpack.i.bf16 %v7811_v32, %v7808_v31  ;;  %v7824_v35 = vsel %vm432_vm0, 1.0, %v11285_v6  ;;  %v7827_v36 = vsel %vm433_vm1, 1.0, %v11285_v6  ;;  %v7830_v37 = vsel %vm430_vm2, 1.0, %v11285_v6 }
  0x18   :  { %6822 = vrot.lane.b32.xlu1 %v6821_v26, %s7581_s3  ;;  %6817 = vrot.lane.b32.xlu0 %v6816_v27, %s7581_s3  ;;  %v7833_v38 = vsel %vm431_vm3, 1.0, %v11285_v6  ;;  %vm676_vm4 = vcmp.eq.f32.partialorder %v7776_v23, 1.0  ;;  %vm677_vm5 = vcmp.eq.f32.partialorder %v7781_v24, 1.0  ;;  %vm674_vm6 = vcmp.eq.f32.partialorder %v7786_v25, 1.0 }
  0x19   :  { %vm675_vm7 = vcmp.eq.f32.partialorder %v7799_v28, 1.0  ;;  %v6841_v39 = vpack.i.bf16 %v7827_v36, %v7824_v35  ;;  %v6836_v40 = vpack.i.bf16 %v7833_v38, %v7830_v37  ;;  %v7846_v41 = vsel %vm676_vm4, 1.0, %v11285_v6 }
  0x1a   :  { %11448 = vst [vmem:[#allocation6_spill] sm:$0xff] %v7846_v41  ;;  %v7849_v42 = vsel %vm677_vm5, 1.0, %v11285_v6  ;;  %v7852_v43 = vsel %vm674_vm6, 1.0, %v11285_v6  ;;  %v7855_v44 = vsel %vm675_vm7, 1.0, %v11285_v6  ;;  %vm920_vm8 = vcmp.eq.f32.partialorder %v7776_v23, 2.0 }
  0x1b   :  { %11449 = vst [vmem:[#allocation7_spill] sm:$0xff] %v7849_v42  ;;  %vm921_vm9 = vcmp.eq.f32.partialorder %v7781_v24, 2.0  ;;  %vm918_vm10 = vcmp.eq.f32.partialorder %v7786_v25, 2.0  ;;  %vm919_vm11 = vcmp.eq.f32.partialorder %v7799_v28, 2.0  ;;  %v6851_v45 = vpack.i.bf16 %v7849_v42, %v7846_v41 }
  0x1c   :  { %6832 = vrot.lane.b32.xlu1 %v6831_v33, %s7581_s3  ;;  %6827 = vrot.lane.b32.xlu0 %v6826_v34, %s7581_s3  ;;  %v6846_v46 = vpack.i.bf16 %v7855_v44, %v7852_v43  ;;  %v7868_v47 = vsel %vm920_vm8, 1.0, %v11285_v6  ;;  %v7871_v48 = vsel %vm921_vm9, 1.0, %v11285_v6  ;;  %v7874_v49 = vsel %vm918_vm10, 1.0, %v11285_v6 }
  0x1d   :  { %11450 = vst [vmem:[#allocation8_spill] sm:$0xff] %v7871_v48  ;;  %11451 = vst [vmem:[#allocation9_spill] sm:$0xff] %v7874_v49  ;;  %v7877_v50 = vsel %vm919_vm11, 1.0, %v11285_v6  ;;  %vm1164_vm12 = vcmp.eq.f32.partialorder %v7776_v23, 3.0  ;;  %vm1165_vm13 = vcmp.eq.f32.partialorder %v7781_v24, 3.0  ;;  %vm1162_vm14 = vcmp.eq.f32.partialorder %v7786_v25, 3.0 }
  0x1e   :  { %vm1163_vm15 = vcmp.eq.f32.partialorder %v7799_v28, 3.0  ;;  %v6861_v55 = vpack.i.bf16 %v7871_v48, %v7868_v47  ;;  %v6856_v56 = vpack.i.bf16 %v7877_v50, %v7874_v49  ;;  %v7910_v57 = vsel %vm1164_vm12, 1.0, %v11285_v6 }
  0x1f   :  { %v7913_v58 = vsel %vm1165_vm13, 1.0, %v11285_v6  ;;  %v7916_v59 = vsel %vm1162_vm14, 1.0, %v11285_v6  ;;  %v7919_v60 = vsel %vm1163_vm15, 1.0, %v11285_v6  ;;  %vm436_vm0 = vcmp.eq.f32.partialorder %v7886_v51, 0.0 }
  0x20   :  { %6842 = vrot.lane.b32.xlu1 %v6841_v39, %s7581_s3  ;;  %6837 = vrot.lane.b32.xlu0 %v6836_v40, %s7581_s3  ;;  %11452 = vst [vmem:[#allocation10_spill] sm:$0xff] %v7913_v58  ;;  %11453 = vst [vmem:[#allocation11_spill] sm:$0xff] %v7919_v60  ;;  %vm437_vm1 = vcmp.eq.f32.partialorder %v7891_v52, 0.0  ;;  %vm434_vm2 = vcmp.eq.f32.partialorder %v7896_v53, 0.0  ;;  %vm435_vm3 = vcmp.eq.f32.partialorder %v7901_v54, 0.0  ;;  %v6871_v61 = vpack.i.bf16 %v7913_v58, %v7910_v57 }
  0x21   :  { %v6866_v62 = vpack.i.bf16 %v7919_v60, %v7916_v59  ;;  %v7932_v63 = vsel %vm436_vm0, 1.0, %v11285_v6  ;;  %v7935_v0 = vsel %vm437_vm1, 1.0, %v11285_v6  ;;  %v7938_v11 = vsel %vm434_vm2, 1.0, %v11285_v6 }
  0x22   :  { %11454 = vst [vmem:[#allocation12_spill] sm:$0xff] %v7935_v0  ;;  %v7941_v12 = vsel %vm435_vm3, 1.0, %v11285_v6  ;;  %vm680_vm4 = vcmp.eq.f32.partialorder %v7886_v51, 1.0  ;;  %vm681_vm5 = vcmp.eq.f32.partialorder %v7891_v52, 1.0  ;;  %vm678_vm6 = vcmp.eq.f32.partialorder %v7896_v53, 1.0 }
  0x23   :  { %11455 = vst [vmem:[#allocation13_spill] sm:$0xff] %v7941_v12  ;;  %vm679_vm7 = vcmp.eq.f32.partialorder %v7901_v54, 1.0  ;;  %v6881_v15 = vpack.i.bf16 %v7935_v0, %v7932_v63  ;;  %v6876_v18 = vpack.i.bf16 %v7941_v12, %v7938_v11  ;;  %v7954_v26 = vsel %vm680_vm4, 1.0, %v11285_v6 }
  0x24   :  { %6852 = vrot.lane.b32.xlu1 %v6851_v45, %s7581_s3  ;;  %6847 = vrot.lane.b32.xlu0 %v6846_v46, %s7581_s3  ;;  %11456 = vst [vmem:[#allocation14_spill] sm:$0xff] %v7954_v26  ;;  %v7957_v27 = vsel %vm681_vm5, 1.0, %v11285_v6  ;;  %v7960_v33 = vsel %vm678_vm6, 1.0, %v11285_v6  ;;  %v7963_v34 = vsel %vm679_vm7, 1.0, %v11285_v6  ;;  %vm924_vm8 = vcmp.eq.f32.partialorder %v7886_v51, 2.0 }
  0x25   :  { %11457 = vst [vmem:[#allocation15_spill] sm:$0xff] %v7957_v27  ;;  %11458 = vst [vmem:[#allocation16_spill] sm:$0xff] %v7960_v33  ;;  %vm925_vm9 = vcmp.eq.f32.partialorder %v7891_v52, 2.0  ;;  %vm922_vm10 = vcmp.eq.f32.partialorder %v7896_v53, 2.0  ;;  %vm923_vm11 = vcmp.eq.f32.partialorder %v7901_v54, 2.0  ;;  %v6891_v39 = vpack.i.bf16 %v7957_v27, %v7954_v26 }
  0x26   :  { %11459 = vst [vmem:[#allocation17_spill] sm:$0xff] %v7963_v34  ;;  %v6886_v40 = vpack.i.bf16 %v7963_v34, %v7960_v33  ;;  %v7976_v45 = vsel %vm924_vm8, 1.0, %v11285_v6  ;;  %v7979_v46 = vsel %vm925_vm9, 1.0, %v11285_v6  ;;  %vm1168_vm12 = vcmp.eq.f32.partialorder %v7886_v51, 3.0 }
  0x27   :  { %11460 = vst [vmem:[#allocation18_spill] sm:$0xff] %v7979_v46  ;;  %vm1169_vm13 = vcmp.eq.f32.partialorder %v7891_v52, 3.0  ;;  %vm1166_vm14 = vcmp.eq.f32.partialorder %v7896_v53, 3.0  ;;  %vm1167_vm15 = vcmp.eq.f32.partialorder %v7901_v54, 3.0  ;;  %v6901_v5 = vpack.i.bf16 %v7979_v46, %v7976_v45 }
  0x28   :  { %6862 = vrot.lane.b32.xlu1 %v6861_v55, %s7581_s3  ;;  %6857 = vrot.lane.b32.xlu0 %v6856_v56, %s7581_s3  ;;  %v7982_v55 = vsel %vm922_vm10, 1.0, %v11285_v6  ;;  %v7985_v56 = vsel %vm923_vm11, 1.0, %v11285_v6  ;;  %v11466_v27 = vmov 0.0  }
  0x29   :  { %11461 = vst [vmem:[#allocation19_spill] sm:$0xff] %v7982_v55  ;;  %v6896_v6 = vpack.i.bf16 %v7985_v56, %v7982_v55  ;;  %v8018_v26 = vsel %vm1168_vm12, 1.0, %v11466_v27  ;;  %v8021_v34 = vsel %vm1169_vm13, 1.0, %v11466_v27  ;;  %v8024_v33 = vsel %vm1166_vm14, 1.0, %v11466_v27 }
  0x2a   :  { %11467 = vst [vmem:[#allocation24_spill] sm:$0xff] %v8021_v34  ;;  %v8027_v0 = vsel %vm1167_vm15, 1.0, %v11466_v27 }
  0x2b   :  { %11468 = vst [vmem:[#allocation25_spill] sm:$0xff] %v8027_v0 }
  0x2c   :  { %6872 = vrot.lane.b32.xlu1 %v6871_v61, %s7581_s3  ;;  %6867 = vrot.lane.b32.xlu0 %v6866_v62, %s7581_s3  ;;  %v7994_v61 = vld [vmem:[%s11447_s1 + $0x70] sm:$0xff]  ;;  %v7999_v62 = vld [vmem:[%s11447_s1 + $0x78] sm:$0xff] }
  0x2d   :  { %11462 = vst [vmem:[#allocation20_spill] sm:$0xff] %v7994_v61  ;;  %11463 = vst [vmem:[#allocation21_spill] sm:$0xff] %v7999_v62  ;;  %vm440_vm0 = vcmp.eq.f32.partialorder %v7994_v61, 0.0  ;;  %vm441_vm1 = vcmp.eq.f32.partialorder %v7999_v62, 0.0  ;;  %vm684_vm4 = vcmp.eq.f32.partialorder %v7994_v61, 1.0  ;;  %vm685_vm5 = vcmp.eq.f32.partialorder %v7999_v62, 1.0 }
  0x2e   :  { %v8040_v46 = vsel %vm440_vm0, 1.0, %v11466_v27  ;;  %v8043_v55 = vsel %vm441_vm1, 1.0, %v11466_v27  ;;  %vm928_vm8 = vcmp.eq.f32.partialorder %v7994_v61, 2.0  ;;  %vm929_vm9 = vcmp.eq.f32.partialorder %v7999_v62, 2.0 }
  0x2f   :  { %11469 = vst [vmem:[#allocation26_spill] sm:$0xff] %v8043_v55  ;;  %vm1172_vm12 = vcmp.eq.f32.partialorder %v7994_v61, 3.0  ;;  %vm1173_vm13 = vcmp.eq.f32.partialorder %v7999_v62, 3.0  ;;  %vm1416_vm0 = vcmask 261120  }
  0x30   :  { %6882 = vrot.lane.b32.xlu1 %v6881_v15, %s7581_s3  ;;  %6877 = vrot.lane.b32.xlu0 %v6876_v18, %s7581_s3  ;;  %v8004_v15 = vld [vmem:[%s11447_s1 + $0x60] sm:$0xff]  ;;  %v8009_v18 = vld [vmem:[%s11447_s1 + $0x68] sm:$0xff] }
  0x31   :  { %11464 = vst [vmem:[#allocation22_spill] sm:$0xff] %v8004_v15  ;;  %11465 = vst [vmem:[#allocation23_spill] sm:$0xff] %v8009_v18  ;;  %vm438_vm2 = vcmp.eq.f32.partialorder %v8004_v15, 0.0  ;;  %vm439_vm3 = vcmp.eq.f32.partialorder %v8009_v18, 0.0  ;;  %vm682_vm6 = vcmp.eq.f32.partialorder %v8004_v15, 1.0  ;;  %vm683_vm7 = vcmp.eq.f32.partialorder %v8009_v18, 1.0 }
  0x32   :  { %v8046_v12 = vsel %vm438_vm2, 1.0, %v11466_v27  ;;  %v8049_v58 = vsel %vm439_vm3, 1.0, %v11466_v27  ;;  %v8068_v60 = vsel %vm682_vm6, 1.0, %v11466_v27  ;;  %v8071_v48 = vsel %vm683_vm7, 1.0, %v11466_v27 }
  0x33   :  { %11470 = vst [vmem:[#allocation27_spill] sm:$0xff] %v8049_v58  ;;  %11473 = vst [vmem:[#allocation30_spill] sm:$0xff] %v8071_v48  ;;  %vm926_vm10 = vcmp.eq.f32.partialorder %v8004_v15, 2.0  ;;  %vm927_vm11 = vcmp.eq.f32.partialorder %v8009_v18, 2.0  ;;  %vm1170_vm14 = vcmp.eq.f32.partialorder %v8004_v15, 3.0  ;;  %vm1171_vm15 = vcmp.eq.f32.partialorder %v8009_v18, 3.0 }
  0x34   :  { %6892 = vrot.lane.b32.xlu1 %v6891_v39, %s7581_s3  ;;  %6887 = vrot.lane.b32.xlu0 %v6886_v40, %s7581_s3  ;;  %v6911_v39 = vpack.i.bf16 %v8021_v34, %v8018_v26  ;;  %v6906_v40 = vpack.i.bf16 %v8027_v0, %v8024_v33  ;;  %v8062_v34 = vsel %vm684_vm4, 1.0, %v11466_v27  ;;  %v8065_v0 = vsel %vm685_vm5, 1.0, %v11466_v27 }
  0x35   :  { %11471 = vst [vmem:[#allocation28_spill] sm:$0xff] %v8062_v34  ;;  %11472 = vst [vmem:[#allocation29_spill] sm:$0xff] %v8065_v0  ;;  %v8090_v49 = vsel %vm926_vm10, 1.0, %v11466_v27  ;;  %v8093_v42 = vsel %vm927_vm11, 1.0, %v11466_v27  ;;  %v8115_v41 = vsel %vm1171_vm15, 1.0, %v11466_v27 }
  0x36   :  { %11475 = vst [vmem:[#allocation32_spill] sm:$0xff] %v8093_v42  ;;  %11479 = vst [vmem:[#allocation36_spill] sm:$0xff] %v8115_v41 }
  0x38   :  { %6902 = vrot.lane.b32.xlu1 %v6901_v5, %s7581_s3  ;;  %6897 = vrot.lane.b32.xlu0 %v6896_v6, %s7581_s3  ;;  %v6921_v5 = vpack.i.bf16 %v8043_v55, %v8040_v46  ;;  %v6916_v6 = vpack.i.bf16 %v8049_v58, %v8046_v12  ;;  %v8084_v55 = vsel %vm928_vm8, 1.0, %v11466_v27  ;;  %v8087_v58 = vsel %vm929_vm9, 1.0, %v11466_v27 }
  0x39   :  { %11474 = vst [vmem:[#allocation31_spill] sm:$0xff] %v8087_v58 }
  0x3c   :  { %6912 = vrot.lane.b32.xlu1 %v6911_v39, %s7581_s3  ;;  %6907 = vrot.lane.b32.xlu0 %v6906_v40, %s7581_s3  ;;  %v6931_v39 = vpack.i.bf16 %v8065_v0, %v8062_v34  ;;  %v6926_v40 = vpack.i.bf16 %v8071_v48, %v8068_v60  ;;  %v8106_v0 = vsel %vm1172_vm12, 1.0, %v11466_v27  ;;  %v8109_v48 = vsel %vm1173_vm13, 1.0, %v11466_v27 }
  0x3d   :  { %11476 = vst [vmem:[#allocation33_spill] sm:$0xff] %v8106_v0  ;;  %11477 = vst [vmem:[#allocation34_spill] sm:$0xff] %v8109_v48  ;;  %v8112_v34 = vsel %vm1170_vm14, 1.0, %v11466_v27  ;;  %v11309_v27 = vmov 1  }
  0x3e   :  { %11478 = vst [vmem:[#allocation35_spill] sm:$0xff] %v8112_v34 }
  0x40   :  { %6922 = vrot.lane.b32.xlu1 %v6921_v5, %s7581_s3  ;;  %6917 = vrot.lane.b32.xlu0 %v6916_v6, %s7581_s3  ;;  %v6941_v5 = vpack.i.bf16 %v8087_v58, %v8084_v55  ;;  %v6936_v6 = vpack.i.bf16 %v8093_v42, %v8090_v49 }
  0x44   :  { %6932 = vrot.lane.b32.xlu1 %v6931_v39, %s7581_s3  ;;  %6927 = vrot.lane.b32.xlu0 %v6926_v40, %s7581_s3  ;;  %v6951_v39 = vpack.i.bf16 %v8109_v48, %v8106_v0  ;;  %v6946_v40 = vpack.i.bf16 %v8115_v41, %v8112_v34 }
  0x48   :  { %6942 = vrot.lane.b32.xlu1 %v6941_v5, %s7581_s3  ;;  %6937 = vrot.lane.b32.xlu0 %v6936_v6, %s7581_s3  ;;  %v11480_v5 = vmov 0   ;;  %v11311_v6 = vmov 2  }
  0x4c   :  { %6952 = vrot.lane.b32.xlu1 %v6951_v39, %s7581_s3  ;;  %6947 = vrot.lane.b32.xlu0 %v6946_v40, %s7581_s3 }
  0x50   :  { %111 = vperm.xlu1 %6957, %v7699_v2   ;;  %106 = vperm.xlu0 %6956, %v7694_v1  }
  0x54   :  { %6958 = vset.pattern.permute.xlu1 %v11309_v27  ;;  %126 = vperm.xlu0 %6956, %v7786_v25  }
  0x55   :  { %205 = vperm.xlu1 %6958, %v7694_v1  }
  0x58   :  { %136 = vperm.xlu0 %6956, %v7776_v23  }
  0x59   :  { %6959 = vset.pattern.permute.xlu1 %v11480_v5 }
  0x5a   :  { %116 = vperm.xlu1 %6959, %v7704_v3  }
  0x5c   :  { %146 = vperm.xlu0 %6956, %v7896_v53  }
  0x5e   :  { %121 = vperm.xlu1 %6959, %v7713_v4  }
  0x60   :  { %156 = vperm.xlu0 %6956, %v7886_v51  }
  0x62   :  { %6960 = vset.pattern.permute.xlu1 %v11309_v27 }
  0x63   :  { %217 = vperm.xlu1 %6960, %v7713_v4  }
  0x64   :  { %166 = vperm.xlu0 %6956, %v8004_v15  }
  0x67   :  { %6961 = vset.pattern.permute.xlu1 %v11311_v6 }
  0x68   :  { %176 = vperm.xlu0 %6956, %v7994_v61   ;;  %309 = vperm.xlu1 %6961, %v7699_v2  }
  0x6c   :  { %6985 = vset.pattern.permute.xlu0 %v11309_v27  ;;  %313 = vperm.xlu1 %6961, %v7704_v3  }
  0x6d   :  { %209 = vperm.xlu0 %6985, %v7699_v2   ;;  %v11316_v2 = vmov 3  }
  0x70   :  { %6962 = vset.pattern.permute.xlu1 %v11480_v5 }
  0x71   :  { %213 = vperm.xlu0 %6985, %v7704_v3   ;;  %131 = vperm.xlu1 %6962, %v7799_v28  }
  0x75   :  { %225 = vperm.xlu0 %6985, %v7799_v28   ;;  %6963 = vset.pattern.permute.xlu1 %v11309_v27 }
  0x76   :  { %221 = vperm.xlu1 %6963, %v7786_v25  }
  0x79   :  { %233 = vperm.xlu0 %6985, %v7781_v24  }
  0x7a   :  { %6964 = vset.pattern.permute.xlu1 %v11480_v5 }
  0x7b   :  { %141 = vperm.xlu1 %6964, %v7781_v24  }
  0x7d   :  { %241 = vperm.xlu0 %6985, %v7901_v54  }
  0x7f   :  { %6965 = vset.pattern.permute.xlu1 %v11316_v2  ;;  %v11481_v2 = vmov 2  }
  0x81   :  { %249 = vperm.xlu0 %6985, %v7891_v52  }
  0x82   :  { %v6798_v3 = vpop.permute.xlu0 %6797  ;;  %v6808_v39 = vpop.permute.xlu1 %6807 }
  0x83   :  { %v7428_v40 = vadd.low.f32.bf16 %v7724_v9, %v6798_v3 }
  0x85   :  { %257 = vperm.xlu0 %6985, %v8009_v18   ;;  %556 = vperm.xlu1 %6965, %v7428_v40   ;;  %v7431_v40 = vadd.low.f32.bf16 %v7718_v7, %v6808_v39 }
  0x86   :  { %v6803_v27 = vpop.permute.xlu0 %6802  ;;  %v6813_v6 = vpop.permute.xlu1 %6812 }
  0x87   :  { %v7429_v48 = vadd.low.f32.bf16 %v7748_v16, %v6803_v27  ;;  %v7430_v42 = vadd.high.f32.bf16 %v7751_v17, %v6803_v27  ;;  %v7433_v27 = vadd.low.f32.bf16 %v7736_v13, %v6813_v6 }
  0x89   :  { %265 = vperm.xlu0 %6985, %v7999_v62   ;;  %566 = vperm.xlu1 %6965, %v7429_v48   ;;  %v7432_v48 = vadd.high.f32.bf16 %v7721_v8, %v6808_v39  ;;  %v11483_v39 = vmov 3  }
  0x8a   :  { %v8161_v41 = vpop.permute.xlu1 %6822  ;;  %v6818_v58 = vpop.permute.xlu0 %6817 }
  0x8b   :  { %v7436_v0 = vadd.high.f32.bf16 %v7770_v22, %v6818_v58  ;;  %v7439_v22 = vadd.low.f32.bf16 %v7766_v21, %v6818_v58 }
  0x8d   :  { %6988 = vset.pattern.permute.xlu0 %v11481_v2  ;;  %571 = vperm.xlu1 %6965, %v7430_v42  }
  0x8e   :  { %305 = vperm.xlu0 %6988, %v7694_v1   ;;  %v8166_v61 = vpop.permute.xlu1 %6832  ;;  %v8168_v9 = vpop.permute.xlu0 %6827 }
  0x91   :  { %800 = vperm.xlu1 %6965, %v7431_v40   ;;  %v7434_v40 = vadd.high.f32.bf16 %v7727_v10, %v6798_v3  ;;  %v7437_v10 = vadd.low.f32.bf16 %v7758_v19, %v8161_v41  ;;  %v7440_v19 = vadd.low.f32.bf16 %v7802_v29, %v8166_v61 }
  0x92   :  { %317 = vperm.xlu0 %6988, %v7713_v4   ;;  %v8172_v16 = vpop.permute.xlu1 %6842  ;;  %v8174_v62 = vpop.permute.xlu0 %6837  ;;  %v11482_v4 = vmov 1  }
  0x93   :  { %v7442_v58 = vadd.low.f32.bf16 %v7824_v35, %v8172_v16  ;;  %v1556_v35 = vld [vmem:[%s11267_s8 + $0x10] sm:$0xff] }
  0x95   :  { %805 = vperm.xlu1 %6965, %v7432_v48  }
  0x96   :  { %321 = vperm.xlu0 %6988, %v7786_v25   ;;  %v8178_v17 = vpop.permute.xlu1 %6852  ;;  %v8180_v1 = vpop.permute.xlu0 %6847 }
  0x99   :  { %6966 = vset.pattern.permute.xlu1 %v11482_v4 }
  0x9a   :  { %337 = vperm.xlu0 %6988, %v7896_v53   ;;  %v8183_v42 = vpop.permute.xlu1 %6862  ;;  %v8185_v7 = vpop.permute.xlu0 %6857  ;;  %229 = vperm.xlu1 %6966, %v7776_v23  }
  0x9e   :  { %353 = vperm.xlu0 %6988, %v8004_v15   ;;  %v8190_v8 = vpop.permute.xlu1 %6872  ;;  %v8192_v25 = vpop.permute.xlu0 %6867  ;;  %6967 = vset.pattern.permute.xlu1 %v11483_v39  ;;  %v7435_v15 = vadd.high.f32.bf16 %v7739_v14, %v6813_v6  ;;  %v7438_v14 = vadd.low.f32.bf16 %v7808_v31, %v8168_v9 }
  0x9f   :  { %810 = vperm.xlu1 %6967, %v7433_v27  }
  0xa2   :  { %6990 = vset.pattern.permute.xlu0 %v11483_v39  ;;  %v8198_v48 = vpop.permute.xlu1 %6882  ;;  %v8200_v18 = vpop.permute.xlu0 %6877 }
  0xa3   :  { %561 = vperm.xlu0 %6990, %v7434_v40   ;;  %815 = vperm.xlu1 %6967, %v7435_v15   ;;  %v7444_v40 = vadd.high.f32.bf16 %v7877_v50, %v8185_v7 }
  0xa6   :  { %v8204_v34 = vpop.permute.xlu1 %6892  ;;  %v8206_v13 = vpop.permute.xlu0 %6887 }
  0xa7   :  { %1049 = vperm.xlu0 %6990, %v7436_v0   ;;  %6968 = vset.pattern.permute.xlu1 %v11481_v2 }
  0xa8   :  { %325 = vperm.xlu1 %6968, %v7799_v28   ;;  %v7441_v28 = vadd.low.f32.bf16 %v7830_v37, %v8174_v62  ;;  %v7443_v37 = vadd.high.f32.bf16 %v7762_v20, %v8161_v41  ;;  %v7445_v20 = vadd.high.f32.bf16 %v7811_v32, %v8168_v9  ;;  %v1557_v41 = vld [vmem:[%s11267_s8 + $0x18] sm:$0xff]  ;;  %v1403_v32 = vld [vmem:[%s11266_s7 + $0x8] sm:$0xff]  ;;  %v1554_v9 = vld [vmem:[%s11267_s8] sm:$0xff] }
  0xaa   :  { %v8212_v3 = vpop.permute.xlu1 %6902  ;;  %v8214_v27 = vpop.permute.xlu0 %6897 }
  0xab   :  { %1054 = vperm.xlu0 %6990, %v7437_v10   ;;  %v8262_v10 = vpack.c.bf16 %v1557_v41, %v1556_v35  ;;  %v7449_v35 = vadd.high.f32.bf16 %v7833_v38, %v8174_v62  ;;  %v7452_v38 = vadd.low.f32.bf16 %v7938_v11, %v8200_v18 }
  0xac   :  { %6969 = vset.pattern.permute.xlu1 %v11483_v39 }
  0xad   :  { %1044 = vperm.xlu1 %6969, %v7439_v22   ;;  %11485 = vst [vmem:[#allocation38_spill] sm:$0xff] %v8262_v10  ;;  %6347 = vmatprep.subr.bf16.mxu1 %v8262_v10  ;;  %v1402_v22 = vld [vmem:[%s11266_s7] sm:$0xff] }
  0xae   :  { %v8220_v0 = vpop.permute.xlu0 %6907  ;;  %v8222_v15 = vpop.permute.xlu1 %6912  ;;  %6348 = vmatpush3.bf16.msra.mxu1 %v8262_v10 }
  0xaf   :  { %1288 = vperm.xlu0 %6990, %v7438_v14  }
  0xb1   :  { %6970 = vset.pattern.permute.xlu1 %v11481_v2 }
  0xb2   :  { %v8229_v31 = vpop.permute.xlu0 %6917  ;;  %329 = vperm.xlu1 %6970, %v7776_v23   ;;  %v8232_v21 = vpop.permute.xlu1 %6922  ;;  %v1404_v23 = vld [vmem:[%s11266_s7 + $0x10] sm:$0xff] }
  0xb3   :  { %1298 = vperm.xlu0 %6990, %v7440_v19  }
  0xb6   :  { %333 = vperm.xlu1 %6970, %v7781_v24   ;;  %v8237_v6 = vpop.permute.xlu0 %6927  ;;  %v8239_v29 = vpop.permute.xlu1 %6932  ;;  %v1405_v24 = vld [vmem:[%s11266_s7 + $0x18] sm:$0xff]  ;;  %s11562_s7 = sld [smem:[#allocation98_spill]] }
  0xb7   :  { %576 = vperm.xlu0 %6990, %v7441_v28   ;;  %v8260_v50 = vpack.c.bf16 %v1405_v24, %v1404_v23  ;;  %v7446_v28 = vadd.low.f32.bf16 %v7868_v47, %v8183_v42  ;;  %v7447_v23 = vadd.high.f32.bf16 %v7805_v30, %v8166_v61  ;;  %v7448_v24 = vadd.low.f32.bf16 %v7916_v59, %v8192_v25 }
  0xb8   :  { %v7450_v30 = vadd.low.f32.bf16 %v7910_v57, %v8190_v8  ;;  %v7451_v61 = vadd.high.f32.bf16 %v7827_v36, %v8172_v16  ;;  %v7453_v57 = vadd.low.f32.bf16 %v7932_v63, %v8198_v48  ;;  %v7454_v36 = vadd.high.f32.bf16 %v7985_v56, %v8214_v27 }
  0xb9   :  { %11484 = vst [vmem:[#allocation37_spill] sm:$0xff] %v8260_v50  ;;  %6327 = vmatprep.subr.bf16.mxu0 %v8260_v50  ;;  %v7455_v63 = vadd.low.f32.bf16 %v7852_v43, %v8180_v1  ;;  %v7457_v56 = vadd.low.f32.bf16 %v8024_v33, %v8220_v0  ;;  %v7459_v43 = vadd.low.f32.bf16 %v8018_v26, %v8222_v15 }
  0xba   :  { %6971 = vset.pattern.permute.xlu1 %v11483_v39  ;;  %v8264_v14 = vpop.permute.xlu0 %6937  ;;  %v8277_v19 = vpop.permute.xlu1 %6942  ;;  %6328 = vmatpush3.bf16.msra.mxu0 %v8260_v50  ;;  %v7460_v33 = vadd.low.f32.bf16 %v8046_v12, %v8229_v31  ;;  %v7461_v26 = vadd.low.f32.bf16 %v8040_v46, %v8232_v21  ;;  %v7462_v12 = vadd.low.f32.bf16 %v8068_v60, %v8237_v6  ;;  %v11495_v60 = vld [vmem:[#allocation28_spill] sm:$0xff] }
  0xbb   :  { %586 = vperm.xlu0 %6990, %v7442_v58   ;;  %1059 = vperm.xlu1 %6971, %v7443_v37   ;;  %v1555_v58 = vld [vmem:[%s11267_s8 + $0x8] sm:$0xff]  ;;  %v8286_v37 = vpack.c.bf16 %v1403_v32, %v1402_v22  ;;  %s7587_s8 = smov [#allocation3]  }
  0xbd   :  { %11486 = vst [vmem:[#allocation39_spill] sm:$0xff] %v8286_v37  ;;  %6329 = vmatprep.subr.bf16.mxu0 %v8286_v37 }
  0xbe   :  { %v8296_v47 = vpop.permute.xlu0 %6947  ;;  %6330 = vmatpush3.bf16.msra.mxu0 %v8286_v37 }
  0xbf   :  { %1069 = vperm.xlu0 %6990, %v7444_v40   ;;  %1293 = vperm.xlu1 %6971, %v7445_v20   ;;  %v8288_v40 = vpack.c.bf16 %v1555_v58, %v1554_v9  ;;  %v8302_v20 = vpop.permute.xlu1 %6952  ;;  %v7456_v9 = vadd.low.f32.bf16 %v7976_v45, %v8212_v3 }
  0xc0   :  { %11488 = vst [vmem:[#allocation41_spill] sm:$0xff] %v8302_v20 }
  0xc1   :  { %11487 = vst [vmem:[#allocation40_spill] sm:$0xff] %v8288_v40  ;;  %6349 = vmatprep.subr.bf16.mxu1 %v8288_v40 }
  0xc2   :  { %6350 = vmatpush3.bf16.msra.mxu1 %v8288_v40 }
  0xc3   :  { %1074 = vperm.xlu0 %6990, %v7446_v28   ;;  %1303 = vperm.xlu1 %6971, %v7447_v23  }
  0xc7   :  { %1308 = vperm.xlu0 %6990, %v7448_v24   ;;  %581 = vperm.xlu1 %6971, %v7449_v35  }
  0xcb   :  { %1318 = vperm.xlu0 %6990, %v7450_v30   ;;  %v8306_v59 = vpop.permute.xlu0 %106  ;;  %v8310_v41 = vpop.permute.xlu1 %111  ;;  %591 = vperm.xlu1 %6971, %v7451_v61   ;;  %v11493_v61 = vld [vmem:[#allocation6_spill] sm:$0xff] }
  0xcf   :  { %596 = vperm.xlu0 %6990, %v7452_v38   ;;  %v8314_v62 = vpop.permute.xlu0 %126  ;;  %6972 = vset.pattern.permute.xlu1 %v11480_v5  ;;  %v7463_v38 = vadd.low.f32.bf16 %v11493_v61, %v8178_v17 }
  0xd0   :  { %v8316_v22 = vpop.permute.xlu1 %205  ;;  %151 = vperm.xlu1 %6972, %v7901_v54  }
  0xd3   :  { %606 = vperm.xlu0 %6990, %v7453_v57   ;;  %v8324_v16 = vpop.permute.xlu0 %136 }
  0xd4   :  { %6973 = vset.pattern.permute.xlu1 %v11482_v4 }
  0xd5   :  { %v8326_v11 = vpop.permute.xlu1 %116  ;;  %237 = vperm.xlu1 %6973, %v7896_v53   ;;  %v7458_v53 = vadd.high.f32.bf16 %v7855_v44, %v8180_v1 }
  0xd7   :  { %1089 = vperm.xlu0 %6990, %v7454_v36   ;;  %v8330_v32 = vpop.permute.xlu0 %146  ;;  %v11494_v36 = vld [vmem:[#allocation7_spill] sm:$0xff] }
  0xd8   :  { %11489 = vst [vmem:[#allocation42_spill] sm:$0xff] %v8330_v32 }
  0xd9   :  { %6974 = vset.pattern.permute.xlu1 %v11483_v39  ;;  %v8341_v58 = vpop.permute.xlu1 %121 }
  0xda   :  { %820 = vperm.xlu1 %6974, %v7455_v63   ;;  %v7464_v63 = vadd.high.f32.bf16 %v11494_v36, %v8178_v17  ;;  %v11498_v17 = vld [vmem:[#allocation9_spill] sm:$0xff] }
  0xdb   :  { %1094 = vperm.xlu0 %6990, %v7456_v9   ;;  %v8339_v28 = vpop.permute.xlu0 %156  ;;  %v7465_v9 = vadd.low.f32.bf16 %v11495_v60, %v8239_v29 }
  0xdc   :  { %11490 = vst [vmem:[#allocation43_spill] sm:$0xff] %v8339_v28 }
  0xde   :  { %825 = vperm.xlu1 %6974, %v7458_v53   ;;  %v8349_v45 = vpop.permute.xlu1 %217 }
  0xdf   :  { %1328 = vperm.xlu0 %6990, %v7457_v56   ;;  %v8345_v23 = vpop.permute.xlu0 %166  ;;  %v7466_v56 = vadd.low.f32.bf16 %v8090_v49, %v8264_v14  ;;  %v11499_v49 = vld [vmem:[#allocation35_spill] sm:$0xff] }
  0xe0   :  { %11491 = vst [vmem:[#allocation44_spill] sm:$0xff] %v8345_v23  ;;  %v7469_v61 = vadd.low.f32.bf16 %v11499_v49, %v8296_v47 }
  0xe2   :  { %6975 = vset.pattern.permute.xlu1 %v11480_v5 }
  0xe3   :  { %1338 = vperm.xlu0 %6990, %v7459_v43   ;;  %v8353_v24 = vpop.permute.xlu0 %176  ;;  %161 = vperm.xlu1 %6975, %v7891_v52   ;;  %v8357_v44 = vpop.permute.xlu1 %309 }
  0xe4   :  { %11492 = vst [vmem:[#allocation45_spill] sm:$0xff] %v8353_v24 }
  0xe7   :  { %616 = vperm.xlu0 %6990, %v7460_v33   ;;  %6976 = vset.pattern.permute.xlu1 %v11482_v4  ;;  %v8367_v35 = vpop.permute.xlu1 %313 }
  0xe8   :  { %v8359_v1 = vpop.permute.xlu0 %209  ;;  %245 = vperm.xlu1 %6976, %v7886_v51  }
  0xeb   :  { %626 = vperm.xlu0 %6990, %v7461_v26   ;;  %v7467_v26 = vadd.low.f32.bf16 %v11498_v17, %v8185_v7 }
  0xec   :  { %v8369_v30 = vpop.permute.xlu0 %213  ;;  %6977 = vset.pattern.permute.xlu1 %v11483_v39  ;;  %v8376_v57 = vpop.permute.xlu1 %131 }
  0xed   :  { %830 = vperm.xlu1 %6977, %v7463_v38  }
  0xef   :  { %860 = vperm.xlu0 %6990, %v7462_v12   ;;  %v7468_v12 = vadd.low.f32.bf16 %v8084_v55, %v8277_v19 }
  0xf0   :  { %v8374_v46 = vpop.permute.xlu0 %225 }
  0xf1   :  { %835 = vperm.xlu1 %6977, %v7464_v63   ;;  %v8386_v43 = vpop.permute.xlu1 %221  ;;  %v11503_v63 = vld [vmem:[#allocation33_spill] sm:$0xff] }
  0xf2   :  { %v7470_v7 = vadd.low.f32.bf16 %v11503_v63, %v8302_v20 }
  0xf3   :  { %870 = vperm.xlu0 %6990, %v7465_v9  }
  0xf4   :  { %v8384_v53 = vpop.permute.xlu0 %233 }
  0xf5   :  { %11496 = vst [vmem:[#allocation6_spill] sm:$0xff] %v8384_v53  ;;  %6978 = vset.pattern.permute.xlu1 %v11481_v2 }
  0xf6   :  { %341 = vperm.xlu1 %6978, %v7901_v54   ;;  %v8399_v38 = vpop.permute.xlu1 %141 }
  0xf7   :  { %1104 = vperm.xlu0 %6990, %v7466_v56   ;;  %11500 = vst [vmem:[#allocation28_spill] sm:$0xff] %v8399_v38  ;;  %v11505_v56 = vld [vmem:[#allocation8_spill] sm:$0xff] }
  0xf8   :  { %v8390_v33 = vpop.permute.xlu0 %241  ;;  %v7471_v17 = vadd.high.f32.bf16 %v11505_v56, %v8183_v42  ;;  %v11508_v42 = vld [vmem:[#allocation13_spill] sm:$0xff] }
  0xf9   :  { %11497 = vst [vmem:[#allocation7_spill] sm:$0xff] %v8390_v33  ;;  %v7474_v56 = vadd.high.f32.bf16 %v11508_v42, %v8200_v18  ;;  %v11512_v18 = vld [vmem:[#allocation23_spill] sm:$0xff] }
  0xfa   :  { %6979 = vset.pattern.permute.xlu1 %v11483_v39 }
  0xfb   :  { %1114 = vperm.xlu0 %6990, %v7468_v12   ;;  %1064 = vperm.xlu1 %6979, %v7467_v26  }
  0xfc   :  { %v8401_v36 = vpop.permute.xlu0 %249 }
  0xfd   :  { %11501 = vst [vmem:[#allocation9_spill] sm:$0xff] %v8401_v36 }
  0xff   :  { %1348 = vperm.xlu0 %6990, %v7469_v61   ;;  %6980 = vset.pattern.permute.xlu1 %v11481_v2 }
 0x100   :  { %v8403_v54 = vpop.permute.xlu0 %257  ;;  %345 = vperm.xlu1 %6980, %v7886_v51   ;;  %v8409_v55 = vpop.permute.xlu1 %556  ;;  %v11506_v51 = vld [vmem:[#allocation11_spill] sm:$0xff] }
 0x101   :  { %11502 = vst [vmem:[#allocation35_spill] sm:$0xff] %v8403_v54  ;;  %v7472_v49 = vadd.high.f32.bf16 %v11506_v51, %v8192_v25  ;;  %v11516_v54 = vld [vmem:[#allocation22_spill] sm:$0xff] }
 0x103   :  { %1358 = vperm.xlu0 %6990, %v7470_v7  }
 0x104   :  { %v8411_v60 = vpop.permute.xlu0 %265  ;;  %349 = vperm.xlu1 %6980, %v7891_v52   ;;  %v8414_v9 = vpop.permute.xlu1 %566  ;;  %v11507_v52 = vld [vmem:[#allocation10_spill] sm:$0xff] }
 0x105   :  { %11504 = vst [vmem:[#allocation33_spill] sm:$0xff] %v8411_v60  ;;  %v7473_v7 = vadd.high.f32.bf16 %v11507_v52, %v8190_v8 }
 0x107   :  { %7155 = vset.pattern.permute.xlu0 %v11480_v5 }
 0x108   :  { %6981 = vset.pattern.permute.xlu1 %v11483_v39  ;;  %v8420_v12 = vpop.permute.xlu1 %571 }
 0x109   :  { %v306_v26 = vpop.permute.xlu0 %305  ;;  %1079 = vperm.xlu1 %6981, %v7471_v17   ;;  %v11510_v17 = vld [vmem:[#allocation12_spill] sm:$0xff] }
 0x10a   :  { %v7475_v51 = vadd.high.f32.bf16 %v11510_v17, %v8198_v48  ;;  %v85_v48 = vld [vmem:[%s11264_s5] sm:$0x7]  ;;  %s5853_s5 = sshll.u32 %s7587_s8, 4  ;;  %s5854_s5 = int_to_ptr.vmem [resolvable:$true] %s5853_s5 }
 0x10b   :  { %s7557_s18 = scalar_lea.vmem %s5854_s5, 16  ;;  %p7562_p1 = scmp.lt.s32.totalorder %s5854_s5, %s5854_s5 }
 0x10c   :  { %v8424_v63 = vpop.permute.xlu1 %800  ;;  %p7558_p0 = scmp.ne.s32.totalorder %s5854_s5, %s7557_s18 }
 0x10d   :  { %v318_v61 = vpop.permute.xlu0 %317  ;;  %1313 = vperm.xlu1 %6981, %v7472_v49   ;;  %v184_v49 = vlaneseq }
 0x10f   :  { %v8442_v8 = vshrl.u32 %v184_v49, 7 }
 0x110   :  { %v8430_v50 = vpop.permute.xlu1 %805 }
 0x111   :  { %v8428_v37 = vpop.permute.xlu0 %321  ;;  %1323 = vperm.xlu1 %6981, %v7473_v7   ;;  %v270_v60 = vsub.s32 1, %v8442_v8  ;;  %v8452_v42 = vsub.s32 0, %v8442_v8  ;;  %v370_v17 = vsub.s32 2, %v8442_v8 }
 0x113   :  { %11513 = vst [vmem:[#allocation10_spill] sm:$0xff] %v8452_v42  ;;  %v8462_v49 = vrot.slane %v85_v48, %v8452_v42  ;;  %v8473_v33 = vrot.slane %v85_v48, %v370_v17 }
 0x115   :  { %601 = vperm.xlu1 %6981, %v7474_v56   ;;  %v8434_v40 = vpop.permute.xlu1 %229  ;;  %v8436_v25 = vpop.permute.xlu0 %337  ;;  %v8457_v56 = vrot.slane %v85_v48, %v270_v60  ;;  %11515 = vst [vmem:[#allocation12_spill] sm:$0xff] %v8462_v49  ;;  %v188_v36 = vmul.f32 %v8462_v49, %v8306_v59  ;;  %11518 = vst [vmem:[#allocation23_spill] sm:$0xff] %v8473_v33  ;;  %v189_v32 = vmul.f32 %v8462_v49, %v8310_v41  ;;  %v11519_v48 = vld [vmem:[#allocation17_spill] sm:$0xff] }
 0x116   :  { %11509 = vst [vmem:[#allocation8_spill] sm:$0xff] %v8436_v25  ;;  %v373_v59 = vmul.f32 %v8473_v33, %v8357_v44  ;;  %v7477_v53 = vadd.high.f32.bf16 %v11519_v48, %v8206_v13  ;;  %v191_v44 = vmul.f32 %v8462_v49, %v8341_v58  ;;  %v1368_v48 = vsub.s32 3, %v8442_v8 }
 0x117   :  { %11514 = vst [vmem:[#allocation13_spill] sm:$0xff] %v8457_v56  ;;  %v272_v28 = vmul.f32 %v8457_v56, %v8316_v22  ;;  %v273_v25 = vmul.f32 %v8457_v56, %v8359_v1  ;;  %v84_v1 = vld [vmem:[%s11263_s4] sm:$0xf]  ;;  %s7561_s4 = scalar_lea.vmem %s5854_s5, 32 }
 0x118   :  { %p7563_p2 = scmp.lt.s32.totalorder %s7561_s4, %s7557_s18 }
 0x119   :  { %611 = vperm.xlu1 %6981, %v7475_v51   ;;  %v8444_v52 = vpop.permute.xlu0 %353  ;;  %v288_v38 = vadd.f32 %v272_v28, %v188_v36  ;;  %v289_v22 = vadd.f32 %v273_v25, %v189_v32  ;;  %v8493_v36 = vrot.slane %v84_v1, %v8452_v42  ;;  %v8508_v25 = vrot.slane %v84_v1, %v270_v60  ;;  %v11522_v42 = vld [vmem:[#allocation21_spill] sm:$0xff] }
 0x11a   :  { %v8440_v10 = vpop.permute.xlu1 %810  ;;  %11511 = vst [vmem:[#allocation11_spill] sm:$0xff] %v8444_v52  ;;  %v11517_v52 = vld [vmem:[#allocation16_spill] sm:$0xff]  ;;  %v374_v60 = vmul.f32 %v8473_v33, %v8367_v35  ;;  %p7564_p3 = por %p7563_p2, %p7562_p1 }
 0x11b   :  { %v7476_v23 = vadd.low.f32.bf16 %v11517_v52, %v8206_v13  ;;  %v389_v28 = vadd.f32 %v373_v59, %v289_v22  ;;  %11520 = vst [vmem:[#allocation22_spill] sm:$0xff] %v8493_v36  ;;  %v190_v13 = vmul.f32 %v8462_v49, %v8326_v11  ;;  %11521 = vst [vmem:[#allocation16_spill] sm:$0xff] %v8508_v25 }
 0x11c   :  { %v638_v11 = vmul.f32 %v8493_v36, %v8409_v55  ;;  %v883_v8 = vmul.f32 %v8508_v25, %v8430_v50  ;;  %v640_v35 = vmul.f32 %v8493_v36, %v8414_v9  ;;  %p7565_p4 = pnand %p7564_p3, %p7558_p0 }
 0x11d   :  { %6982 = vset.pattern.permute.xlu1 %v11480_v5 }
 0x11e   :  { %171 = vperm.xlu1 %6982, %v11512_v18   ;;  %v8449_v7 = vpop.permute.xlu1 %815  ;;  %v562_v51 = vpop.permute.xlu0 %561 }
 0x122   :  { %6983 = vset.pattern.permute.xlu1 %v11482_v4  ;;  %v1050_v20 = vpop.permute.xlu0 %1049 }
 0x123   :  { %253 = vperm.xlu1 %6983, %v11516_v54   ;;  %v8465_v24 = vpop.permute.xlu1 %325  ;;  %v372_v54 = vmul.f32 %v8473_v33, %v306_v26  ;;  %v275_v26 = vmul.f32 %v8457_v56, %v8349_v45  ;;  %v8504_v45 = vld [vmem:[%s11265_s6] ss:$0 sm:$0xff] }
 0x124   :  { %v411_v58 = vadd.f32 %v8504_v45, %v389_v28  ;;  %v8527_v28 = vrot.slane %v84_v1, %v1368_v48 }
 0x125   :  { %v388_v41 = vadd.f32 %v372_v54, %v288_v38  ;;  %v639_v54 = vmul.f32 %v8493_v36, %v562_v51  ;;  %v291_v59 = vadd.f32 %v275_v26, %v191_v44  ;;  %v882_v26 = vmul.f32 %v8508_v25, %v8424_v63  ;;  %v11525_v63 = vld [vmem:[#allocation20_spill] sm:$0xff] }
 0x126   :  { %11524 = vst [vmem:[#allocation21_spill] sm:$0xff] %v8527_v28 }
 0x127   :  { %6984 = vset.pattern.permute.xlu1 %v11483_v39  ;;  %v410_v38 = vadd.f32 %v8504_v45, %v388_v41 }
 0x128   :  { %840 = vperm.xlu1 %6984, %v7476_v23   ;;  %v1045_v52 = vpop.permute.xlu1 %1044  ;;  %v274_v23 = vmul.f32 %v8457_v56, %v8369_v30  ;;  %v375_v30 = vmul.f32 %v8473_v33, %v318_v61 }
 0x129   :  { %v654_v51 = vadd.f32 %v638_v11, %v410_v38  ;;  %v885_v11 = vmul.f32 %v8508_v25, %v8449_v7 }
 0x12a   :  { %v290_v22 = vadd.f32 %v274_v23, %v190_v13  ;;  %v391_v41 = vadd.f32 %v375_v30, %v291_v59  ;;  %v655_v23 = vadd.f32 %v639_v54, %v411_v58  ;;  %v8523_v13 = vrot.slane %v84_v1, %v370_v17 }
 0x12b   :  { %v898_v38 = vadd.f32 %v882_v26, %v654_v51  ;;  %v641_v1 = vmul.f32 %v8493_v36, %v8420_v12 }
 0x12c   :  { %845 = vperm.xlu1 %6984, %v7477_v53   ;;  %v1055_v53 = vpop.permute.xlu0 %1054  ;;  %11523 = vst [vmem:[#allocation17_spill] sm:$0xff] %v8523_v13  ;;  %v390_v55 = vadd.f32 %v374_v60, %v290_v22  ;;  %v413_v30 = vadd.f32 %v8504_v45, %v391_v41  ;;  %v899_v54 = vadd.f32 %v883_v8, %v655_v23  ;;  %v11526_v22 = vld [vmem:[#allocation14_spill] sm:$0xff] }
 0x12d   :  { %v8495_v32 = vpop.permute.xlu1 %329  ;;  %v1127_v59 = vmul.f32 %v8523_v13, %v1050_v20  ;;  %v7478_v9 = vadd.low.f32.bf16 %v11526_v22, %v8204_v34  ;;  %v1128_v12 = vmul.f32 %v8523_v13, %v1055_v53 }
 0x12e   :  { %v412_v50 = vadd.f32 %v8504_v45, %v390_v55  ;;  %v657_v41 = vadd.f32 %v641_v1, %v413_v30  ;;  %v11527_v55 = vld [vmem:[#allocation15_spill] sm:$0xff] }
 0x12f   :  { %v1143_v26 = vadd.f32 %v1127_v59, %v899_v54  ;;  %v7479_v7 = vadd.high.f32.bf16 %v11527_v55, %v8204_v34 }
 0x130   :  { %6986 = vset.pattern.permute.xlu1 %v11480_v5  ;;  %v1289_v44 = vpop.permute.xlu0 %1288  ;;  %v1126_v5 = vmul.f32 %v8523_v13, %v1045_v52  ;;  %v884_v52 = vmul.f32 %v8508_v25, %v8440_v10  ;;  %v656_v60 = vadd.f32 %v640_v35, %v412_v50 }
 0x131   :  { %181 = vperm.xlu1 %6986, %v11522_v42   ;;  %v8517_v61 = vpop.permute.xlu1 %333  ;;  %v1370_v58 = vmul.f32 %v8527_v28, %v1289_v44  ;;  %v901_v44 = vadd.f32 %v885_v11, %v657_v41 }
 0x132   :  { %v1142_v48 = vadd.f32 %v1126_v5, %v898_v38  ;;  %v900_v8 = vadd.f32 %v884_v52, %v656_v60 }
 0x134   :  { %v1299_v20 = vpop.permute.xlu0 %1298  ;;  %v8552_v5 = vadd.f32 %v1370_v58, %v1142_v48  ;;  %v1144_v54 = vadd.f32 %v1128_v12, %v900_v8  ;;  %v11529_v48 = vld [vmem:[#allocation18_spill] sm:$0xff] }
 0x135   :  { %6987 = vset.pattern.permute.xlu1 %v11482_v4  ;;  %v1372_v35 = vmul.f32 %v8527_v28, %v1299_v20  ;;  %v7481_v60 = vadd.high.f32.bf16 %v11529_v48, %v8212_v3 }
 0x136   :  { %261 = vperm.xlu1 %6987, %v11525_v63   ;;  %v1060_v17 = vpop.permute.xlu1 %1059 }
 0x137   :  { %v1129_v10 = vmul.f32 %v8523_v13, %v1060_v17  ;;  %v8562_v34 = vadd.f32 %v1372_v35, %v1144_v54  ;;  %v11535_v35 = vld [vmem:[#allocation29_spill] sm:$0xff] }
 0x139   :  { %v1145_v53 = vadd.f32 %v1129_v10, %v901_v44  ;;  %v577_v44 = vpop.permute.xlu0 %576 }
 0x13a   :  { %6989 = vset.pattern.permute.xlu1 %v11483_v39  ;;  %v1294_v51 = vpop.permute.xlu1 %1293 }
 0x13b   :  { %v1371_v23 = vmul.f32 %v8527_v28, %v1294_v51  ;;  %850 = vperm.xlu1 %6989, %v7478_v9   ;;  %v11528_v9 = vld [vmem:[#allocation19_spill] sm:$0xff] }
 0x13c   :  { %v7480_v11 = vadd.low.f32.bf16 %v11528_v9, %v8214_v27  ;;  %v11530_v27 = vld [vmem:[#allocation25_spill] sm:$0xff] }
 0x13d   :  { %v8555_v30 = vadd.f32 %v1371_v23, %v1143_v26  ;;  %v7482_v20 = vadd.high.f32.bf16 %v11530_v27, %v8220_v0  ;;  %v11531_v26 = vld [vmem:[#allocation24_spill] sm:$0xff]  ;;  %v11533_v23 = vld [vmem:[#allocation26_spill] sm:$0xff] }
 0x13e   :  { %v1304_v38 = vpop.permute.xlu1 %1303  ;;  %v7485_v55 = vadd.high.f32.bf16 %v11533_v23, %v8232_v21  ;;  %v11534_v0 = vld [vmem:[#allocation30_spill] sm:$0xff]  ;;  %v11537_v21 = vld [vmem:[#allocation31_spill] sm:$0xff] }
 0x13f   :  { %v1373_v17 = vmul.f32 %v8527_v28, %v1304_v38  ;;  %855 = vperm.xlu1 %6989, %v7479_v7   ;;  %v8560_v59 = vpack.c.bf16 %v8555_v30, %v8552_v5  ;;  %v7486_v8 = vadd.high.f32.bf16 %v11534_v0, %v8237_v6  ;;  %v7487_v38 = vadd.high.f32.bf16 %v11535_v35, %v8239_v29  ;;  %v11542_v0 = vld [vmem:[#allocation34_spill] sm:$0xff] }
 0x140   :  { %v7489_v9 = vadd.high.f32.bf16 %v11537_v21, %v8277_v19  ;;  %v192_v6 = vmul.f32 %v8462_v49, %v8314_v62  ;;  %v277_v29 = vmul.f32 %v8457_v56, %v8374_v46  ;;  %v376_v19 = vmul.f32 %v8473_v33, %v8428_v37  ;;  %v1660_v21 = vld [vmem:[%s11268_s9 + $0x18] sm:$0xff] }
 0x141   :  { %v8564_v50 = vadd.f32 %v1373_v17, %v1145_v53  ;;  %6331 = vmatprep.mubr.msk.bf16.mxu0 %vm1416_vm0, %v8560_v59  ;;  %6351 = vmatprep.mubr.msk.bf16.mxu1 %vm1416_vm0, %v8560_v59  ;;  %v587_v17 = vpop.permute.xlu0 %586  ;;  %v278_v62 = vmul.f32 %v8457_v56, %v8434_v40  ;;  %v377_v46 = vmul.f32 %v8473_v33, %v8465_v24 }
 0x142   :  { %v8570_v1 = vpop.permute.xlu1 %581 }
 0x143   :  { %v8574_v52 = vpack.c.bf16 %v8564_v50, %v8562_v34  ;;  %6991 = vset.pattern.permute.xlu1 %v11481_v2 }
 0x144   :  { %357 = vperm.xlu1 %6991, %v11512_v18  }
 0x145   :  { %6332 = vmatmul.mubr.msk.bf16.vlgmr.msra.gmra.mxu0 %vm1416_vm0, %v8574_v52  ;;  %6352 = vmatmul.mubr.msk.bf16.vlgmr.msra.gmra.mxu1 %vm1416_vm0, %v8574_v52  ;;  %v1070_v27 = vpop.permute.xlu0 %1069 }
 0x146   :  { %v8582_v22 = vpop.permute.xlu1 %591 }
 0x148   :  { %6992 = vset.pattern.permute.xlu1 %v11483_v39 }
 0x149   :  { %1084 = vperm.xlu1 %6992, %v7480_v11   ;;  %v276_v11 = vmul.f32 %v8457_v56, %v8386_v43  ;;  %v11538_v43 = vld [vmem:[#allocation36_spill] sm:$0xff] }
 0x14b   :  { %v8587_v58 = vpop.permute.xlu1 %151 }
 0x14d   :  { %6993 = vset.pattern.permute.xlu1 %v11481_v2 }
 0x14e   :  { %361 = vperm.xlu1 %6993, %v11525_v63   ;;  %v7483_v63 = vadd.high.f32.bf16 %v11531_v26, %v8222_v15  ;;  %v292_v26 = vadd.f32 %v276_v11, %v192_v6 }
 0x150   :  { %v8591_v18 = vpop.permute.xlu1 %237  ;;  %v392_v23 = vadd.f32 %v376_v19, %v292_v26 }
 0x152   :  { %365 = vperm.xlu1 %6993, %v11522_v42   ;;  %v11532_v42 = vld [vmem:[#allocation27_spill] sm:$0xff] }
 0x153   :  { %v7484_v10 = vadd.high.f32.bf16 %v11532_v42, %v8229_v31  ;;  %v11536_v31 = vld [vmem:[#allocation32_spill] sm:$0xff]  ;;  %v11539_v42 = vld [vmem:[#allocation6_spill] sm:$0xff] }
 0x154   :  { %v7488_v54 = vadd.high.f32.bf16 %v11536_v31, %v8264_v14  ;;  %v193_v14 = vmul.f32 %v8462_v49, %v8376_v57  ;;  %v378_v57 = vmul.f32 %v8473_v33, %v8495_v32  ;;  %v279_v37 = vmul.f32 %v8457_v56, %v11539_v42  ;;  %v1075_v31 = vpop.permute.xlu0 %1074 }
 0x155   :  { %v8596_v41 = vpop.permute.xlu1 %820  ;;  %v379_v32 = vmul.f32 %v8473_v33, %v8517_v61  ;;  %v414_v61 = vadd.f32 %v8504_v45, %v392_v23 }
 0x156   :  { %6994 = vset.pattern.permute.xlu1 %v11483_v39 }
 0x157   :  { %1099 = vperm.xlu1 %6994, %v7481_v60   ;;  %v194_v60 = vmul.f32 %v8462_v49, %v8324_v16 }
 0x158   :  { %v1309_v42 = vpop.permute.xlu0 %1308 }
 0x159   :  { %v826_v51 = vpop.permute.xlu1 %825 }
 0x15a   :  { %v887_v19 = vmul.f32 %v8508_v25, %v826_v51 }
 0x15b   :  { %1333 = vperm.xlu1 %6994, %v7482_v20   ;;  %v7490_v20 = vadd.high.f32.bf16 %v11538_v43, %v8296_v47  ;;  %v11541_v47 = vld [vmem:[#allocation41_spill] sm:$0xff] }
 0x15e   :  { %v8603_v12 = vpop.permute.xlu1 %161 }
 0x15f   :  { %1343 = vperm.xlu1 %6994, %v7483_v63   ;;  %v293_v63 = vadd.f32 %v277_v29, %v193_v14  ;;  %v644_v29 = vmul.f32 %v8493_v36, %v587_v17  ;;  %v1658_v17 = vld [vmem:[%s11268_s9 + $0x8] sm:$0xff] }
 0x161   :  { %v393_v24 = vadd.f32 %v377_v46, %v293_v63 }
 0x163   :  { %621 = vperm.xlu1 %6994, %v7484_v10   ;;  %v8607_v3 = vpop.permute.xlu1 %245  ;;  %v11540_v10 = vld [vmem:[#allocation28_spill] sm:$0xff]  ;;  %v415_v14 = vadd.f32 %v8504_v45, %v393_v24 }
 0x164   :  { %v195_v40 = vmul.f32 %v8462_v49, %v11540_v10  ;;  %v1131_v10 = vmul.f32 %v8523_v13, %v1070_v27  ;;  %v1132_v27 = vmul.f32 %v8523_v13, %v1075_v31 }
 0x167   :  { %631 = vperm.xlu1 %6994, %v7485_v55   ;;  %v294_v55 = vadd.f32 %v278_v62, %v194_v60  ;;  %v886_v60 = vmul.f32 %v8508_v25, %v8596_v41 }
 0x168   :  { %v831_v7 = vpop.permute.xlu1 %830 }
 0x169   :  { %v394_v35 = vadd.f32 %v378_v57, %v294_v55  ;;  %v888_v41 = vmul.f32 %v8508_v25, %v831_v7  ;;  %v11545_v57 = vmov 0  }
 0x16b   :  { %865 = vperm.xlu1 %6994, %v7486_v8   ;;  %v7491_v8 = vadd.high.f32.bf16 %v11542_v0, %v11541_v47  ;;  %v416_v43 = vadd.f32 %v8504_v45, %v394_v35 }
 0x16c   :  { %v8613_v15 = vpop.permute.xlu1 %835 }
 0x16d   :  { %v660_v63 = vadd.f32 %v644_v29, %v416_v43  ;;  %v889_v0 = vmul.f32 %v8508_v25, %v8613_v15 }
 0x16f   :  { %875 = vperm.xlu1 %6994, %v7487_v38   ;;  %v642_v38 = vmul.f32 %v8493_v36, %v577_v44  ;;  %v295_v44 = vadd.f32 %v279_v37, %v195_v40  ;;  %v645_v40 = vmul.f32 %v8493_v36, %v8582_v22  ;;  %v904_v47 = vadd.f32 %v888_v41, %v660_v63 }
 0x171   :  { %v8619_v53 = vpop.permute.xlu1 %341  ;;  %v395_v62 = vadd.f32 %v379_v32, %v295_v44 }
 0x173   :  { %1109 = vperm.xlu1 %6994, %v7488_v54   ;;  %v1659_v54 = vld [vmem:[%s11268_s9 + $0x10] sm:$0xff]  ;;  %v417_v7 = vadd.f32 %v8504_v45, %v395_v62 }
 0x174   :  { %v8664_v11 = vpack.c.bf16 %v1660_v21, %v1659_v54  ;;  %v1319_v54 = vpop.permute.xlu0 %1318  ;;  %v1148_v21 = vadd.f32 %v1132_v27, %v904_v47  ;;  %v280_v47 = vmul.f32 %v8457_v56, %v8591_v18 }
 0x175   :  { %v661_v35 = vadd.f32 %v645_v40, %v417_v7  ;;  %v1376_v15 = vmul.f32 %v8527_v28, %v1319_v54 }
 0x176   :  { %v1065_v48 = vpop.permute.xlu1 %1064  ;;  %11543 = vst [vmem:[#allocation20_spill] sm:$0xff] %v8664_v11  ;;  %6367 = vmatprep.subr.bf16.mxu0 %v8664_v11 }
 0x177   :  { %1119 = vperm.xlu1 %6994, %v7489_v9   ;;  %v643_v9 = vmul.f32 %v8493_v36, %v8570_v1  ;;  %v658_v1 = vadd.f32 %v642_v38, %v414_v61  ;;  %6368 = vmatpush3.bf16.msra.mxu0 %v8664_v11  ;;  %v1130_v51 = vmul.f32 %v8523_v13, %v1065_v48 }
 0x178   :  { %v1374_v48 = vmul.f32 %v8527_v28, %v1309_v42  ;;  %v597_v63 = vpop.permute.xlu0 %596 }
 0x179   :  { %v659_v46 = vadd.f32 %v643_v9, %v415_v14  ;;  %v902_v23 = vadd.f32 %v886_v60, %v658_v1  ;;  %v905_v9 = vadd.f32 %v889_v0, %v661_v35  ;;  %v11547_v0 = vld [vmem:[#allocation42_spill] sm:$0xff]  ;;  %v646_v11 = vmul.f32 %v8493_v36, %v597_v63 }
 0x17b   :  { %1353 = vperm.xlu1 %6994, %v7490_v20   ;;  %v8643_v16 = vpop.permute.xlu1 %345  ;;  %v1657_v20 = vld [vmem:[%s11268_s9] sm:$0xff]  ;;  %v903_v55 = vadd.f32 %v887_v19, %v659_v46  ;;  %v8708_v19 = vadd.f32 %v1376_v15, %v1148_v21  ;;  %v197_v21 = vmul.f32 %v8462_v49, %v8587_v58  ;;  %v381_v15 = vmul.f32 %v8473_v33, %v8619_v53 }
 0x17c   :  { %v8683_v26 = vpack.c.bf16 %v1658_v17, %v1657_v20 }
 0x17d   :  { %v1147_v38 = vadd.f32 %v1131_v10, %v903_v55  ;;  %11546 = vst [vmem:[#allocation15_spill] sm:$0xff] %v8708_v19 }
 0x17e   :  { %11544 = vst [vmem:[#allocation14_spill] sm:$0xff] %v8683_v26  ;;  %6369 = vmatprep.subr.bf16.mxu0 %v8683_v26 }
 0x17f   :  { %1363 = vperm.xlu1 %6994, %v7491_v8   ;;  %v8662_v6 = vpop.permute.xlu1 %349  ;;  %6370 = vmatpush3.bf16.msra.mxu0 %v8683_v26  ;;  %v1146_v8 = vadd.f32 %v1130_v51, %v902_v23 }
 0x181   :  { %v8698_v44 = vadd.f32 %v1374_v48, %v1146_v8  ;;  %v196_v8 = vmul.f32 %v8462_v49, %v11547_v0 }
 0x183   :  { %7156 = vset.pattern.permute.xlu1 %v11545_v57 }
 0x184   :  { %v1080_v37 = vpop.permute.xlu1 %1079 }
 0x185   :  { %v1133_v22 = vmul.f32 %v8523_v13, %v1080_v37  ;;  %v607_v37 = vpop.permute.xlu0 %606 }
 0x187   :  { %v1149_v14 = vadd.f32 %v1133_v22, %v905_v9  ;;  %v296_v22 = vadd.f32 %v280_v47, %v196_v8  ;;  %v282_v9 = vmul.f32 %v8457_v56, %v8607_v3  ;;  %v199_v3 = vmul.f32 %v8462_v49, %v8603_v12 }
 0x188   :  { %v1314_v24 = vpop.permute.xlu1 %1313 }
 0x189   :  { %v1375_v32 = vmul.f32 %v8527_v28, %v1314_v24  ;;  %v1090_v40 = vpop.permute.xlu0 %1089  ;;  %v11548_v24 = vld [vmem:[#allocation8_spill] sm:$0xff] }
 0x18a   :  { %v380_v35 = vmul.f32 %v8473_v33, %v11548_v24 }
 0x18b   :  { %v8700_v61 = vadd.f32 %v1375_v32, %v1147_v38  ;;  %v11549_v32 = vld [vmem:[#allocation7_spill] sm:$0xff] }
 0x18c   :  { %v1324_v29 = vpop.permute.xlu1 %1323  ;;  %v281_v54 = vmul.f32 %v8457_v56, %v11549_v32  ;;  %v11551_v32 = vld [vmem:[#allocation9_spill] sm:$0xff] }
 0x18d   :  { %v8705_v31 = vpack.c.bf16 %v8700_v61, %v8698_v44  ;;  %v1377_v60 = vmul.f32 %v8527_v28, %v1324_v29  ;;  %v1095_v7 = vpop.permute.xlu0 %1094  ;;  %v11550_v29 = vld [vmem:[#allocation43_spill] sm:$0xff]  ;;  %v283_v58 = vmul.f32 %v8457_v56, %v11551_v32 }
 0x18e   :  { %v198_v18 = vmul.f32 %v8462_v49, %v11550_v29  ;;  %v297_v0 = vadd.f32 %v281_v54, %v197_v21 }
 0x18f   :  { %v8710_v1 = vadd.f32 %v1377_v60, %v1149_v14  ;;  %6335 = vmatprep.mubr.msk.bf16.mxu0 %vm1416_vm0, %v8705_v31  ;;  %6355 = vmatprep.mubr.msk.bf16.mxu1 %vm1416_vm0, %v8705_v31  ;;  %v382_v14 = vmul.f32 %v8473_v33, %v8643_v16  ;;  %v396_v60 = vadd.f32 %v380_v35, %v296_v22 }
 0x190   :  { %v602_v62 = vpop.permute.xlu1 %601  ;;  %v298_v8 = vadd.f32 %v282_v9, %v198_v18  ;;  %v397_v26 = vadd.f32 %v381_v15, %v297_v0  ;;  %v383_v16 = vmul.f32 %v8473_v33, %v8662_v6  ;;  %v299_v54 = vadd.f32 %v283_v58, %v199_v3 }
 0x191   :  { %v8718_v43 = vpack.c.bf16 %v8710_v1, %v8708_v19  ;;  %v1329_v27 = vpop.permute.xlu0 %1328  ;;  %v418_v53 = vadd.f32 %v8504_v45, %v396_v60  ;;  %v647_v35 = vmul.f32 %v8493_v36, %v602_v62  ;;  %v648_v15 = vmul.f32 %v8493_v36, %v607_v37 }
 0x192   :  { %v398_v29 = vadd.f32 %v382_v14, %v298_v8  ;;  %v419_v12 = vadd.f32 %v8504_v45, %v397_v26  ;;  %v399_v60 = vadd.f32 %v383_v16, %v299_v54  ;;  %v1135_v26 = vmul.f32 %v8523_v13, %v1090_v40 }
 0x193   :  { %6336 = vmatmul.mubr.msk.bf16.gmra.mxu0 %vm1416_vm0, %v8718_v43  ;;  %6356 = vmatmul.mubr.msk.bf16.gmra.mxu1 %vm1416_vm0, %v8718_v43  ;;  %v662_v14 = vadd.f32 %v646_v11, %v418_v53  ;;  %v1136_v53 = vmul.f32 %v8523_v13, %v1095_v7 }
 0x194   :  { %v612_v20 = vpop.permute.xlu1 %611  ;;  %v420_v9 = vadd.f32 %v8504_v45, %v398_v29  ;;  %v663_v6 = vadd.f32 %v647_v35, %v419_v12 }
 0x195   :  { %v1339_v47 = vpop.permute.xlu0 %1338  ;;  %v649_v32 = vmul.f32 %v8493_v36, %v612_v20 }
 0x196   :  { %v664_v29 = vadd.f32 %v648_v15, %v420_v9  ;;  %v1380_v15 = vmul.f32 %v8527_v28, %v1339_v47  ;;  %v11552_v47 = vld [vmem:[#allocation44_spill] sm:$0xff] }
 0x199   :  { %v8724_v17 = vpop.permute.xlu1 %171  ;;  %v8765_v21 = vpop.permute.xlu0 %616 }
 0x19e   :  { %v8726_v46 = vpop.permute.xlu1 %253 }
 0x1a3   :  { %v841_v41 = vpop.permute.xlu1 %840 }
 0x1a4   :  { %v890_v18 = vmul.f32 %v8508_v25, %v841_v41  ;;  %v627_v41 = vpop.permute.xlu0 %626 }
 0x1a6   :  { %v906_v58 = vadd.f32 %v890_v18, %v662_v14 }
 0x1a7   :  { %v846_v51 = vpop.permute.xlu1 %845 }
 0x1a8   :  { %v891_v63 = vmul.f32 %v8508_v25, %v846_v51  ;;  %v421_v51 = vadd.f32 %v8504_v45, %v399_v60  ;;  %v284_v60 = vmul.f32 %v8457_v56, %v8726_v46 }
 0x1aa   :  { %v907_v3 = vadd.f32 %v891_v63, %v663_v6  ;;  %v665_v16 = vadd.f32 %v649_v32, %v421_v51  ;;  %v861_v63 = vpop.permute.xlu0 %860 }
 0x1ac   :  { %v8728_v42 = vpop.permute.xlu1 %181  ;;  %v1151_v35 = vadd.f32 %v1135_v26, %v907_v3 }
 0x1ae   :  { %v871_v32 = vpop.permute.xlu0 %870 }
 0x1b1   :  { %v8730_v10 = vpop.permute.xlu1 %261 }
 0x1b2   :  { %v286_v26 = vmul.f32 %v8457_v56, %v8730_v10 }
 0x1b6   :  { %v851_v23 = vpop.permute.xlu1 %850 }
 0x1b7   :  { %v892_v62 = vmul.f32 %v8508_v25, %v851_v23  ;;  %v1378_v23 = vmul.f32 %v8527_v28, %v1329_v27 }
 0x1b9   :  { %v908_v19 = vadd.f32 %v892_v62, %v664_v29  ;;  %v200_v62 = vmul.f32 %v8462_v49, %v11552_v47 }
 0x1ba   :  { %v856_v55 = vpop.permute.xlu1 %855 }
 0x1bb   :  { %v893_v11 = vmul.f32 %v8508_v25, %v856_v55  ;;  %v1152_v9 = vadd.f32 %v1136_v53, %v908_v19  ;;  %v300_v46 = vadd.f32 %v284_v60, %v200_v62  ;;  %v11556_v60 = vld [vmem:[#allocation33_spill] sm:$0xff] }
 0x1bc   :  { %v287_v47 = vmul.f32 %v8457_v56, %v11556_v60 }
 0x1bd   :  { %v909_v40 = vadd.f32 %v893_v11, %v665_v16  ;;  %v8794_v19 = vadd.f32 %v1380_v15, %v1152_v9  ;;  %v11554_v11 = vld [vmem:[#allocation45_spill] sm:$0xff]  ;;  %v201_v16 = vmul.f32 %v8462_v49, %v8724_v17 }
 0x1bf   :  { %v8732_v48 = vpop.permute.xlu1 %357 }
 0x1c0   :  { %v385_v10 = vmul.f32 %v8473_v33, %v8732_v48 }
 0x1c4   :  { %v1085_v38 = vpop.permute.xlu1 %1084 }
 0x1c5   :  { %v1134_v0 = vmul.f32 %v8523_v13, %v1085_v38 }
 0x1c7   :  { %v1150_v37 = vadd.f32 %v1134_v0, %v906_v58  ;;  %v11553_v58 = vld [vmem:[#allocation11_spill] sm:$0xff] }
 0x1c8   :  { %v384_v3 = vmul.f32 %v8473_v33, %v11553_v58  ;;  %v894_v58 = vmul.f32 %v8508_v25, %v861_v63 }
 0x1c9   :  { %v8752_v24 = vpop.permute.xlu1 %361  ;;  %v8782_v12 = vadd.f32 %v1378_v23, %v1150_v37  ;;  %v202_v37 = vmul.f32 %v8462_v49, %v11554_v11  ;;  %v1105_v23 = vpop.permute.xlu0 %1104 }
 0x1ca   :  { %v400_v51 = vadd.f32 %v384_v3, %v300_v46  ;;  %v386_v53 = vmul.f32 %v8473_v33, %v8752_v24 }
 0x1cd   :  { %v8763_v22 = vpop.permute.xlu1 %365 }
 0x1ce   :  { %v387_v48 = vmul.f32 %v8473_v33, %v8763_v22  ;;  %v896_v22 = vmul.f32 %v8508_v25, %v871_v32 }
 0x1d2   :  { %v1100_v8 = vpop.permute.xlu1 %1099 }
 0x1d3   :  { %v1137_v20 = vmul.f32 %v8523_v13, %v1100_v8 }
 0x1d5   :  { %v1153_v7 = vadd.f32 %v1137_v20, %v909_v40  ;;  %v302_v20 = vadd.f32 %v286_v26, %v202_v37 }
 0x1d6   :  { %v1334_v38 = vpop.permute.xlu1 %1333 }
 0x1d7   :  { %v1379_v54 = vmul.f32 %v8527_v28, %v1334_v38  ;;  %v402_v40 = vadd.f32 %v386_v53, %v302_v20  ;;  %v1138_v20 = vmul.f32 %v8523_v13, %v1105_v23 }
 0x1d9   :  { %v8784_v18 = vadd.f32 %v1379_v54, %v1151_v35  ;;  %v422_v35 = vadd.f32 %v8504_v45, %v400_v51  ;;  %v11555_v54 = vld [vmem:[#allocation35_spill] sm:$0xff]  ;;  %v424_v46 = vadd.f32 %v8504_v45, %v402_v40 }
 0x1da   :  { %v1344_v55 = vpop.permute.xlu1 %1343  ;;  %v285_v9 = vmul.f32 %v8457_v56, %v11555_v54 }
 0x1db   :  { %v8789_v27 = vpack.c.bf16 %v8784_v18, %v8782_v12  ;;  %v1381_v14 = vmul.f32 %v8527_v28, %v1344_v55  ;;  %v650_v55 = vmul.f32 %v8493_v36, %v8765_v21  ;;  %v652_v21 = vmul.f32 %v8493_v36, %v627_v41 }
 0x1dc   :  { %v301_v24 = vadd.f32 %v285_v9, %v201_v16 }
 0x1dd   :  { %v8796_v6 = vadd.f32 %v1381_v14, %v1153_v7  ;;  %6339 = vmatprep.mubr.msk.bf16.mxu0 %vm1416_vm0, %v8789_v27  ;;  %6359 = vmatprep.mubr.msk.bf16.mxu1 %vm1416_vm0, %v8789_v27  ;;  %v203_v7 = vmul.f32 %v8462_v49, %v8728_v42  ;;  %v1115_v14 = vpop.permute.xlu0 %1114  ;;  %v666_v17 = vadd.f32 %v650_v55, %v422_v35 }
 0x1de   :  { %v622_v0 = vpop.permute.xlu1 %621  ;;  %v401_v62 = vadd.f32 %v385_v10, %v301_v24  ;;  %v668_v11 = vadd.f32 %v652_v21, %v424_v46 }
 0x1df   :  { %v8806_v8 = vpack.c.bf16 %v8796_v6, %v8794_v19  ;;  %v303_v26 = vadd.f32 %v287_v47, %v203_v7  ;;  %v651_v51 = vmul.f32 %v8493_v36, %v622_v0  ;;  %v910_v42 = vadd.f32 %v894_v58, %v666_v17 }
 0x1e0   :  { %v423_v53 = vadd.f32 %v8504_v45, %v401_v62  ;;  %v912_v0 = vadd.f32 %v896_v22, %v668_v11 }
 0x1e1   :  { %6340 = vmatmul.mubr.msk.bf16.gmra.mxu0 %vm1416_vm0, %v8806_v8  ;;  %6360 = vmatmul.mubr.msk.bf16.gmra.mxu1 %vm1416_vm0, %v8806_v8  ;;  %v403_v37 = vadd.f32 %v387_v48, %v303_v26  ;;  %v1349_v35 = vpop.permute.xlu0 %1348  ;;  %v1154_v10 = vadd.f32 %v1138_v20, %v910_v42 }
 0x1e2   :  { %v632_v29 = vpop.permute.xlu1 %631  ;;  %v667_v63 = vadd.f32 %v651_v51, %v423_v53  ;;  %v1382_v23 = vmul.f32 %v8527_v28, %v1349_v35 }
 0x1e3   :  { %v653_v9 = vmul.f32 %v8493_v36, %v632_v29  ;;  %v425_v40 = vadd.f32 %v8504_v45, %v403_v37 }
 0x1e4   :  { %v8851_v46 = vadd.f32 %v1382_v23, %v1154_v10 }
 0x1e5   :  { %v669_v17 = vadd.f32 %v653_v9, %v425_v40  ;;  %v1359_v47 = vpop.permute.xlu0 %1358 }
 0x1e6   :  { %v866_v38 = vpop.permute.xlu1 %865 }
 0x1e7   :  { %v895_v16 = vmul.f32 %v8508_v25, %v866_v38  ;;  %v1140_v38 = vmul.f32 %v8523_v13, %v1115_v14 }
 0x1e9   :  { %v911_v55 = vadd.f32 %v895_v16, %v667_v63  ;;  %v1156_v45 = vadd.f32 %v1140_v38, %v912_v0 }
 0x1ea   :  { %v876_v15 = vpop.permute.xlu1 %875 }
 0x1eb   :  { %v897_v24 = vmul.f32 %v8508_v25, %v876_v15  ;;  %v1384_v15 = vmul.f32 %v8527_v28, %v1359_v47 }
 0x1ed   :  { %v913_v62 = vadd.f32 %v897_v24, %v669_v17  ;;  %v8859_v26 = vadd.f32 %v1384_v15, %v1156_v45 }
 0x1ee   :  { %v1110_v3 = vpop.permute.xlu1 %1109 }
 0x1ef   :  { %v1139_v41 = vmul.f32 %v8523_v13, %v1110_v3 }
 0x1f1   :  { %v1155_v60 = vadd.f32 %v1139_v41, %v911_v55 }
 0x1f2   :  { %v1120_v54 = vpop.permute.xlu1 %1119 }
 0x1f3   :  { %v1141_v32 = vmul.f32 %v8523_v13, %v1120_v54 }
 0x1f5   :  { %v1157_v14 = vadd.f32 %v1141_v32, %v913_v62 }
 0x1f6   :  { %v1354_v7 = vpop.permute.xlu1 %1353 }
 0x1f7   :  { %v1383_v29 = vmul.f32 %v8527_v28, %v1354_v7 }
 0x1f9   :  { %v8853_v48 = vadd.f32 %v1383_v29, %v1155_v60 }
 0x1fa   :  { %v1364_v58 = vpop.permute.xlu1 %1363 }
 0x1fb   :  { %v1412_v3 = vpack.c.bf16 %v8853_v48, %v8851_v46  ;;  %v1385_v21 = vmul.f32 %v8527_v28, %v1364_v58 }
 0x1fd   :  { %v8861_v51 = vadd.f32 %v1385_v21, %v1157_v14  ;;  %6343 = vmatprep.mubr.msk.bf16.mxu0 %vm1416_vm0, %v1412_v3  ;;  %6363 = vmatprep.mubr.msk.bf16.mxu1 %vm1416_vm0, %v1412_v3 }
 0x1ff   :  { %v1413_v42 = vpack.c.bf16 %v8861_v51, %v8859_v26 }
 0x201   :  { %6344 = vmatmul.mubr.msk.bf16.gmra.mxu0 %vm1416_vm0, %v1413_v42  ;;  %6364 = vmatmul.mubr.msk.bf16.gmra.mxu1 %vm1416_vm0, %v1413_v42 }
 0x202   :  { %6371 = vmatprep.mubr.msk.bf16.mxu0 %vm1416_vm0, %v8560_v59 }
 0x205   :  { %v6333_v11 = vpop.f32.mrf.mxu0  ;;  %v6353_v37 = vpop.f32.mrf.mxu1 }
 0x206   :  { %v8875_v54 = vmul.f32 0.17677669, %v6333_v11 }
 0x207   :  { %v1475_v53 = vpop.f32.mrf.mxu0  ;;  %v8871_v16 = vpop.f32.mrf.mxu1 }
 0x208   :  { %v1538_v9 = vmul.f32 0.17677669, %v1475_v53 }
 0x209   :  { %v6334_v20 = vpop.f32.mrf.mxu0  ;;  %v6354_v35 = vpop.f32.mrf.mxu1  ;;  %6372 = vmatmul.mubr.msk.bf16.vlgmr.msra.gmra.mxu0 %vm1416_vm0, %v8574_v52 }
 0x20a   :  { %v8877_v22 = vmul.f32 0.17677669, %v6334_v20  ;;  %v8879_v63 = vpack.c.bf16 %v6354_v35, %v6353_v37  ;;  %6375 = vmatprep.mubr.msk.bf16.mxu0 %vm1416_vm0, %v8705_v31 }
 0x20b   :  { %v1478_v59 = vpop.f32.mrf.mxu0  ;;  %v8904_v23 = vpop.f32.mrf.mxu1 }
 0x20c   :  { %v1539_v10 = vmul.f32 0.17677669, %v1478_v59 }
 0x20e   :  { %v1760_v0 = vpack.c.bf16 %v1539_v10, %v1538_v9 }
 0x210   :  { %6403 = vmatprep.mubr.msk.bf16.mxu1 %vm1416_vm0, %v1760_v0 }
 0x211   :  { %6376 = vmatmul.mubr.msk.bf16.gmra.mxu0 %vm1416_vm0, %v8718_v43 }
 0x212   :  { %6379 = vmatprep.mubr.msk.bf16.mxu0 %vm1416_vm0, %v8789_v27 }
 0x219   :  { %6380 = vmatmul.mubr.msk.bf16.gmra.mxu0 %vm1416_vm0, %v8806_v8 }
 0x21a   :  { %6383 = vmatprep.mubr.msk.bf16.mxu0 %vm1416_vm0, %v1412_v3 }
 0x221   :  { %6384 = vmatmul.mubr.msk.bf16.gmra.mxu0 %vm1416_vm0, %v1413_v42 }
 0x253   :  { %v6337_v52 = vpop.f32.mrf.mxu0  ;;  %v6357_v7 = vpop.f32.mrf.mxu1 }
 0x254   :  { %v8896_v55 = vmul.f32 0.17677669, %v6337_v52 }
 0x255   :  { %v8894_v31 = vpop.f32.mrf.mxu0  ;;  %v1610_v47 = vpop.f32.mrf.mxu1 }
 0x257   :  { %v6338_v40 = vpop.f32.mrf.mxu0  ;;  %v6358_v62 = vpop.f32.mrf.mxu1 }
 0x258   :  { %v8898_v24 = vmul.f32 0.17677669, %v6338_v40 }
 0x259   :  { %v8902_v38 = vpop.f32.mrf.mxu0  ;;  %v1613_v45 = vpop.f32.mrf.mxu1 }
 0x2a1   :  { %v6341_v27 = vpop.f32.mrf.mxu0  ;;  %v6361_v58 = vpop.f32.mrf.mxu1 }
 0x2a2   :  { %v8908_v60 = vmul.f32 0.17677669, %v6341_v27 }
 0x2a3   :  { %v8906_v8 = vpop.f32.mrf.mxu0  ;;  %v1626_v15 = vpop.f32.mrf.mxu1 }
 0x2a5   :  { %v6342_v17 = vpop.f32.mrf.mxu0  ;;  %v6362_v14 = vpop.f32.mrf.mxu1 }
 0x2a6   :  { %v8910_v32 = vmul.f32 0.17677669, %v6342_v17  ;;  %v1773_v41 = vpack.c.bf16 %v6362_v14, %v6361_v58  ;;  %v1771_v58 = vpack.c.bf16 %v6358_v62, %v6357_v7 }
 0x2a7   :  { %v8914_v3 = vpop.f32.mrf.mxu0  ;;  %v1629_v21 = vpop.f32.mrf.mxu1 }
 0x2c1   :  { %v6345_v42 = vpop.f32.mrf.mxu0  ;;  %v6365_v11 = vpop.f32.mrf.mxu1 }
 0x2c2   :  { %v8918_v59 = vmul.f32 0.17677669, %v6345_v42 }
 0x2c3   :  { %v8916_v37 = vpop.f32.mrf.mxu0  ;;  %v1642_v53 = vpop.f32.mrf.mxu1 }
 0x2c5   :  { %v6346_v20 = vpop.f32.mrf.mxu0  ;;  %v6366_v35 = vpop.f32.mrf.mxu1 }
 0x2c6   :  { %v8920_v9 = vmul.f32 0.17677669, %v6346_v20  ;;  %v1775_v10 = vpack.c.bf16 %v6366_v35, %v6365_v11 }
 0x2c7   :  { %v8922_v0 = vpop.f32.mrf.mxu0  ;;  %v1645_v52 = vpop.f32.mrf.mxu1 }
 0x2c8   :  { %v1822_v27 = vsel %vm1416_vm0, %v1775_v10, 0  ;;  %v1774_v17 = vpack.c.bf16 %v1645_v52, %v1642_v53  ;;  %6771 = vmatprep.subr.msk.bf16.mxu1 %vm1416_vm0, %v1775_v10  ;;  %v1816_v53 = vsel %vm1416_vm0, %v1773_v41, 0  ;;  %v1772_v10 = vpack.c.bf16 %v1629_v21, %v1626_v15 }
 0x2c9   :  { %v6373_v29 = vpop.f32.mrf.mxu0  ;;  %6388 = vmatpush3.bf16.xpose.msra.mxu1 %v1822_v27  ;;  %v1770_v15 = vpack.c.bf16 %v1613_v45, %v1610_v47  ;;  %v1542_v45 = vmul.f32 0.17677669, %v8894_v31  ;;  %v1551_v31 = vmul.f32 0.17677669, %v8922_v0 }
 0x2ca   :  { %6772 = vmatprep.subr.msk.bf16.mxu1 %vm1416_vm0, %v1774_v17  ;;  %v1819_v11 = vsel %vm1416_vm0, %v1774_v17, 0  ;;  %v1813_v14 = vsel %vm1416_vm0, %v1772_v10, 0 }
 0x2cb   :  { %v1697_v42 = vpop.f32.mrf.mxu0 }
 0x2cd   :  { %v6374_v43 = vpop.f32.mrf.mxu0 }
 0x2cf   :  { %v1700_v20 = vpop.f32.mrf.mxu0 }
 0x2d0   :  { %v2097_v47 = vpack.c.bf16 %v1700_v20, %v1697_v42 }
 0x2d1   :  { %v6377_v35 = vpop.f32.mrf.mxu0  ;;  %6390 = vmatpush3.bf16.xpose.msra.mxu1 %v1819_v11 }
 0x2d2   :  { %6773 = vmatprep.subr.msk.bf16.mxu1 %vm1416_vm0, %v1773_v41  ;;  %v1810_v41 = vsel %vm1416_vm0, %v1771_v58, 0 }
 0x2d3   :  { %v1713_v40 = vpop.f32.mrf.mxu0 }
 0x2d5   :  { %v6378_v28 = vpop.f32.mrf.mxu0 }
 0x2d7   :  { %v1716_v13 = vpop.f32.mrf.mxu0 }
 0x2d9   :  { %v6381_v52 = vpop.f32.mrf.mxu0  ;;  %6392 = vmatpush3.bf16.xpose.msra.mxu1 %v1816_v53  ;;  %v1807_v53 = vsel %vm1416_vm0, %v1770_v15, 0 }
 0x2da   :  { %6774 = vmatprep.subr.msk.bf16.mxu1 %vm1416_vm0, %v1772_v10 }
 0x2db   :  { %v1729_v27 = vpop.f32.mrf.mxu0 }
 0x2dd   :  { %v6382_v25 = vpop.f32.mrf.mxu0 }
 0x2de   :  { %v2102_v7 = vpack.c.bf16 %v6382_v25, %v6381_v52  ;;  %v2099_v25 = vpack.c.bf16 %v1716_v13, %v1713_v40  ;;  %v11558_v40 = vpack.c.bf16 %v8898_v24, %v8896_v55  ;;  %v8974_v55 = vld [vmem:[%s11561_s2] sm:$0x1] }
 0x2df   :  { %v1732_v36 = vpop.f32.mrf.mxu0  ;;  %v5958_v24 = vadd.f32 -1.0, %v8974_v55 }
 0x2e0   :  { %v2101_v62 = vpack.c.bf16 %v1732_v36, %v1729_v27  ;;  %v2098_v36 = vpack.c.bf16 %v6374_v43, %v6373_v29  ;;  %v1547_v43 = vmul.f32 0.17677669, %v8914_v3  ;;  %v69_v27 = vld [vmem:[%s11562_s7 + $0x18] sm:$0xff] }
 0x2e1   :  { %v6385_v17 = vpop.f32.mrf.mxu0  ;;  %6394 = vmatpush3.bf16.xpose.msra.mxu1 %v1813_v14  ;;  %v1922_v3 = vmul.f32 1e+09, %v5958_v24 }
 0x2e2   :  { %6775 = vmatprep.subr.msk.bf16.mxu1 %vm1416_vm0, %v1771_v58 }
 0x2e3   :  { %v1745_v11 = vpop.f32.mrf.mxu0 }
 0x2e5   :  { %v6386_v33 = vpop.f32.mrf.mxu0 }
 0x2e6   :  { %v2104_v56 = vpack.c.bf16 %v6386_v33, %v6385_v17  ;;  %v2100_v33 = vpack.c.bf16 %v6378_v28, %v6377_v35  ;;  %v67_v35 = vld [vmem:[%s11562_s7 + $0x8] sm:$0xff] }
 0x2e7   :  { %v1748_v49 = vpop.f32.mrf.mxu0 }
 0x2e8   :  { %v2103_v21 = vpack.c.bf16 %v1748_v49, %v1745_v11  ;;  %6419 = vmatprep.subr.bf16.mxu0 %v2104_v56  ;;  %v1768_v49 = vpack.c.bf16 %v8904_v23, %v8871_v16  ;;  %v11557_v16 = vpack.c.bf16 %v8877_v22, %v8875_v54  ;;  %v1546_v23 = vmul.f32 0.17677669, %v8906_v8  ;;  %v70_v11 = vld [vmem:[%s11562_s7 + $0x20] sm:$0xff] }
 0x2e9   :  { %6396 = vmatpush3.bf16.xpose.msra.mxu1 %v1810_v41  ;;  %6420 = vmatpush3.bf16.msra.mxu0 %v2104_v56  ;;  %v1804_v56 = vsel %vm1416_vm0, %v8879_v63, 0  ;;  %v1550_v54 = vmul.f32 0.17677669, %v8916_v37  ;;  %v11560_v8 = vpack.c.bf16 %v8920_v9, %v8918_v59  ;;  %v11563_v9 = vld [vmem:[#allocation10_spill] sm:$0xff] }
 0x2ea   :  { %6776 = vmatprep.subr.msk.bf16.mxu1 %vm1416_vm0, %v1770_v15  ;;  %6421 = vmatprep.subr.bf16.mxu0 %v2103_v21  ;;  %v1801_v28 = vsel %vm1416_vm0, %v1768_v49, 0  ;;  %v1764_v29 = vpack.c.bf16 %v1547_v43, %v1546_v23  ;;  %v8984_v0 = vrot.slane %v1922_v3, %v11563_v9  ;;  %v77_v3 = vld [vmem:[%s11562_s7 + $0x58] sm:$0xff] }
 0x2eb   :  { %v1766_v22 = vpack.c.bf16 %v1551_v31, %v1550_v54 }
 0x2ed   :  { %6422 = vmatpush3.bf16.msra.mxu0 %v2103_v21 }
 0x2ee   :  { %6423 = vmatprep.subr.bf16.mxu0 %v2102_v7 }
 0x2f1   :  { %6398 = vmatpush3.bf16.xpose.msra.mxu1 %v1807_v53  ;;  %6424 = vmatpush3.bf16.msra.mxu0 %v2102_v7  ;;  %v72_v7 = vld [vmem:[%s11562_s7 + $0x30] sm:$0xff] }
 0x2f2   :  { %6777 = vmatprep.subr.msk.bf16.mxu1 %vm1416_vm0, %v8879_v63  ;;  %6425 = vmatprep.subr.bf16.mxu0 %v2101_v62  ;;  %v1543_v63 = vmul.f32 0.17677669, %v8902_v38  ;;  %v11559_v38 = vpack.c.bf16 %v8910_v32, %v8908_v60  ;;  %v66_v60 = vld [vmem:[%s11562_s7] sm:$0xff]  ;;  %v68_v32 = vld [vmem:[%s11562_s7 + $0x10] sm:$0xff] }
 0x2f4   :  { %v1762_v13 = vpack.c.bf16 %v1543_v63, %v1542_v45 }
 0x2f5   :  { %6426 = vmatpush3.bf16.msra.mxu0 %v2101_v62 }
 0x2f6   :  { %6427 = vmatprep.subr.bf16.mxu0 %v2100_v33 }
 0x2f9   :  { %6400 = vmatpush3.bf16.xpose.msra.mxu1 %v1804_v56  ;;  %6428 = vmatpush3.bf16.msra.mxu0 %v2100_v33  ;;  %v71_v56 = vld [vmem:[%s11562_s7 + $0x28] sm:$0xff] }
 0x2fa   :  { %6778 = vmatprep.subr.msk.bf16.mxu1 %vm1416_vm0, %v1768_v49  ;;  %6429 = vmatprep.subr.bf16.mxu0 %v2099_v25 }
 0x2fd   :  { %6430 = vmatpush3.bf16.msra.mxu0 %v2099_v25 }
 0x2fe   :  { %6431 = vmatprep.subr.bf16.mxu0 %v2098_v36 }
 0x301   :  { %6402 = vmatpush3.bf16.xpose.msra.mxu1 %v1801_v28  ;;  %6432 = vmatpush3.bf16.msra.mxu0 %v2098_v36 }
 0x302   :  { %6433 = vmatprep.subr.bf16.mxu0 %v2097_v47 }
 0x305   :  { %6434 = vmatpush3.bf16.msra.mxu0 %v2097_v47  ;;  %v73_v47 = vld [vmem:[%s11562_s7 + $0x38] sm:$0xff] }
 0x308   :  { %6404 = vmatmul.mubr.msk.bf16.vlgmr.msra.gmra.mxu1 %vm1416_vm0, %v11557_v16 }
 0x309   :  { %6407 = vmatprep.mubr.msk.bf16.mxu1 %vm1416_vm0, %v1762_v13  ;;  %v74_v13 = vld [vmem:[%s11562_s7 + $0x40] sm:$0xff] }
 0x310   :  { %6408 = vmatmul.mubr.msk.bf16.gmra.mxu1 %vm1416_vm0, %v11558_v40 }
 0x311   :  { %6411 = vmatprep.mubr.msk.bf16.mxu1 %vm1416_vm0, %v1764_v29  ;;  %v76_v29 = vld [vmem:[%s11562_s7 + $0x50] sm:$0xff] }
 0x318   :  { %6412 = vmatmul.mubr.msk.bf16.gmra.mxu1 %vm1416_vm0, %v11559_v38 }
 0x319   :  { %6415 = vmatprep.mubr.msk.bf16.mxu1 %vm1416_vm0, %v1766_v22  ;;  %v75_v22 = vld [vmem:[%s11562_s7 + $0x48] sm:$0xff] }
 0x320   :  { %6416 = vmatmul.mubr.msk.bf16.gmra.mxu1 %vm1416_vm0, %v11560_v8 }
 0x3c8   :  { %v6405_v37 = vpop.f32.mrf.mxu1 }
 0x3c9   :  { %v1867_v10 = vadd.f32 %v6405_v37, %v68_v32 }
 0x3ca   :  { %v1858_v59 = vpop.f32.mrf.mxu1 }
 0x3cb   :  { %v1859_v42 = vadd.f32 %v1858_v59, %v66_v60  ;;  %v9000_v41 = vadd.f32 %v8984_v0, %v1867_v10  ;;  %v78_v59 = vld [vmem:[%s11562_s7 + $0x60] sm:$0xff]  ;;  %v80_v10 = vld [vmem:[%s11562_s7 + $0x70] sm:$0xff] }
 0x3cc   :  { %v6406_v20 = vpop.f32.mrf.mxu1 }
 0x3cd   :  { %v8990_v52 = vadd.f32 %v8984_v0, %v1859_v42  ;;  %v1870_v15 = vadd.f32 %v6406_v20, %v69_v27 }
 0x3ce   :  { %v1861_v58 = vpop.f32.mrf.mxu1 }
 0x3cf   :  { %v1862_v14 = vadd.f32 %v1861_v58, %v67_v35  ;;  %1945 = vmax.xlane.f32.xlu0 %v8990_v52  ;;  %v9014_v49 = vadd.f32 %v8984_v0, %v1870_v15 }
 0x3d0   :  { %v6409_v17 = vpop.f32.mrf.mxu1 }
 0x3d1   :  { %v9003_v21 = vadd.f32 %v8984_v0, %v1862_v14  ;;  %v1883_v25 = vadd.f32 %v6409_v17, %v72_v7  ;;  %v79_v17 = vld [vmem:[%s11562_s7 + $0x68] sm:$0xff] }
 0x3d2   :  { %v1874_v62 = vpop.f32.mrf.mxu1 }
 0x3d3   :  { %v1875_v53 = vadd.f32 %v1874_v62, %v70_v11  ;;  %1947 = vmax.xlane.f32.xlu1 %v9003_v21  ;;  %1949 = vmax.xlane.f32.xlu0 %v9000_v41  ;;  %v9028_v16 = vadd.f32 %v8984_v0, %v1883_v25  ;;  %v81_v62 = vld [vmem:[%s11562_s7 + $0x78] sm:$0xff] }
 0x3d4   :  { %v6410_v33 = vpop.f32.mrf.mxu1 }
 0x3d5   :  { %v9017_v36 = vadd.f32 %v8984_v0, %v1875_v53  ;;  %v1886_v43 = vadd.f32 %v6410_v33, %v73_v47 }
 0x3d6   :  { %v1877_v28 = vpop.f32.mrf.mxu1 }
 0x3d7   :  { %v1878_v63 = vadd.f32 %v1877_v28, %v71_v56  ;;  %1953 = vmax.xlane.f32.xlu1 %v9017_v36  ;;  %1951 = vmax.xlane.f32.xlu0 %v9014_v49  ;;  %v9042_v38 = vadd.f32 %v8984_v0, %v1886_v43 }
 0x3d8   :  { %v6413_v45 = vpop.f32.mrf.mxu1 }
 0x3d9   :  { %v9031_v23 = vadd.f32 %v8984_v0, %v1878_v63  ;;  %v1899_v8 = vadd.f32 %v6413_v45, %v76_v29 }
 0x3da   :  { %v1890_v40 = vpop.f32.mrf.mxu1 }
 0x3db   :  { %v1891_v31 = vadd.f32 %v1890_v40, %v74_v13  ;;  %1957 = vmax.xlane.f32.xlu1 %v9028_v16  ;;  %1955 = vmax.xlane.f32.xlu0 %v9031_v23  ;;  %v9056_v42 = vadd.f32 %v8984_v0, %v1899_v8 }
 0x3dc   :  { %v6414_v54 = vpop.f32.mrf.mxu1 }
 0x3dd   :  { %v9045_v24 = vadd.f32 %v8984_v0, %v1891_v31  ;;  %v1902_v20 = vadd.f32 %v6414_v54, %v77_v3 }
 0x3de   :  { %v1893_v37 = vpop.f32.mrf.mxu1 }
 0x3df   :  { %v1894_v60 = vadd.f32 %v1893_v37, %v75_v22  ;;  %1961 = vmax.xlane.f32.xlu1 %v9045_v24  ;;  %1959 = vmax.xlane.f32.xlu0 %v9042_v38  ;;  %v9070_v11 = vadd.f32 %v8984_v0, %v1902_v20 }
 0x3e0   :  { %v6417_v32 = vpop.f32.mrf.mxu1 }
 0x3e1   :  { %v9059_v35 = vadd.f32 %v8984_v0, %v1894_v60  ;;  %v1915_v15 = vadd.f32 %v6417_v32, %v80_v10 }
 0x3e2   :  { %v1906_v27 = vpop.f32.mrf.mxu1 }
 0x3e3   :  { %v1907_v58 = vadd.f32 %v1906_v27, %v78_v59  ;;  %1965 = vmax.xlane.f32.xlu1 %v9056_v42  ;;  %1963 = vmax.xlane.f32.xlu0 %v9059_v35  ;;  %v9081_v56 = vadd.f32 %v8984_v0, %v1915_v15 }
 0x3e4   :  { %v6418_v14 = vpop.f32.mrf.mxu1 }
 0x3e5   :  { %v9073_v7 = vadd.f32 %v8984_v0, %v1907_v58  ;;  %v1918_v25 = vadd.f32 %v6418_v14, %v81_v62 }
 0x3e6   :  { %v1909_v53 = vpop.f32.mrf.mxu1 }
 0x3e7   :  { %v1910_v33 = vadd.f32 %v1909_v53, %v79_v17  ;;  %1969 = vmax.xlane.f32.xlu1 %v9073_v7  ;;  %1967 = vmax.xlane.f32.xlu0 %v9070_v11  ;;  %v9089_v28 = vadd.f32 %v8984_v0, %v1918_v25 }
 0x3e9   :  { %v9084_v47 = vadd.f32 %v8984_v0, %v1910_v33 }
 0x3eb   :  { %1973 = vmax.xlane.f32.xlu1 %v9081_v56  ;;  %1971 = vmax.xlane.f32.xlu0 %v9084_v47 }
 0x3ef   :  { %1975 = vmax.xlane.f32.xlu0 %v9089_v28 }
 0x458   :  { %v1946_v63 = vpop.xlane.xlu0 %1945 }
 0x459   :  { %v1977_v45 = vsub.f32 %v8990_v52, %v1946_v63 }
 0x45b   :  { %v1993_v13 = vmul.f32 1.442695, %v1977_v45 }
 0x45c   :  { %v1948_v43 = vpop.xlane.xlu1 %1947  ;;  %v1950_v29 = vpop.xlane.xlu0 %1949 }
 0x45d   :  { %7196 = vpow2.f32 %v1993_v13  ;;  %v1978_v40 = vsub.f32 %v9003_v21, %v1948_v43  ;;  %v1979_v31 = vsub.f32 %v9000_v41, %v1950_v29 }
 0x45f   :  { %v1995_v54 = vmul.f32 1.442695, %v1978_v40  ;;  %v1997_v22 = vmul.f32 1.442695, %v1979_v31 }
 0x460   :  { %v1954_v8 = vpop.xlane.xlu1 %1953  ;;  %v1952_v3 = vpop.xlane.xlu0 %1951 }
 0x461   :  { %7198 = vpow2.f32 %v1995_v54  ;;  %v1981_v0 = vsub.f32 %v9017_v36, %v1954_v8  ;;  %v1980_v37 = vsub.f32 %v9014_v49, %v1952_v3 }
 0x462   :  { %7200 = vpow2.f32 %v1997_v22 }
 0x463   :  { %v2001_v60 = vmul.f32 1.442695, %v1981_v0  ;;  %v1999_v52 = vmul.f32 1.442695, %v1980_v37 }
 0x464   :  { %v1958_v32 = vpop.xlane.xlu1 %1957  ;;  %v1956_v59 = vpop.xlane.xlu0 %1955 }
 0x465   :  { %7202 = vpow2.f32 %v2001_v60  ;;  %v1983_v20 = vsub.f32 %v9028_v16, %v1958_v32  ;;  %v1982_v21 = vsub.f32 %v9031_v23, %v1956_v59 }
 0x466   :  { %7204 = vpow2.f32 %v1999_v52 }
 0x467   :  { %v2005_v41 = vmul.f32 1.442695, %v1983_v20  ;;  %v2003_v10 = vmul.f32 1.442695, %v1982_v21 }
 0x468   :  { %v1962_v27 = vpop.xlane.xlu1 %1961  ;;  %v1960_v58 = vpop.xlane.xlu0 %1959 }
 0x469   :  { %7206 = vpow2.f32 %v2005_v41  ;;  %v1985_v36 = vsub.f32 %v9045_v24, %v1962_v27  ;;  %v1984_v49 = vsub.f32 %v9042_v38, %v1960_v58  ;;  %v2204_v27 = vld [vmem:[%s11269_s10 + $0x10] sm:$0xff]  ;;  %v2205_v58 = vld [vmem:[%s11269_s10 + $0x18] sm:$0xff] }
 0x46a   :  { %v9101_v14 = vpop.eup %7196  ;;  %7208 = vpow2.f32 %v2003_v10 }
 0x46b   :  { %v2009_v17 = vmul.f32 1.442695, %v1985_v36  ;;  %v2007_v15 = vmul.f32 1.442695, %v1984_v49  ;;  %2025 = vadd.xlane.f32.xlu1 %v9101_v14  ;;  %v9162_v36 = vpack.c.bf16 %v2205_v58, %v2204_v27 }
 0x46c   :  { %v1966_v16 = vpop.xlane.xlu1 %1965  ;;  %v1964_v62 = vpop.xlane.xlu0 %1963 }
 0x46d   :  { %7210 = vpow2.f32 %v2009_v17  ;;  %v1987_v23 = vsub.f32 %v9056_v42, %v1966_v16  ;;  %v1986_v53 = vsub.f32 %v9059_v35, %v1964_v62  ;;  %11564 = vst [vmem:[#allocation19_spill] sm:$0xff] %v9162_v36  ;;  %6451 = vmatprep.subr.bf16.mxu0 %v9162_v36 }
 0x46e   :  { %v9106_v33 = vpop.eup %7198  ;;  %7212 = vpow2.f32 %v2007_v15 }
 0x46f   :  { %v9108_v24 = vpop.eup %7200  ;;  %v2013_v38 = vmul.f32 1.442695, %v1987_v23  ;;  %v2011_v25 = vmul.f32 1.442695, %v1986_v53  ;;  %2027 = vadd.xlane.f32.xlu0 %v9106_v33 }
 0x470   :  { %2029 = vadd.xlane.f32.xlu1 %v9108_v24  ;;  %v1970_v63 = vpop.xlane.xlu1 %1969  ;;  %v1968_v45 = vpop.xlane.xlu0 %1967 }
 0x471   :  { %7214 = vpow2.f32 %v2013_v38  ;;  %v1989_v13 = vsub.f32 %v9073_v7, %v1970_v63  ;;  %v1988_v42 = vsub.f32 %v9070_v11, %v1968_v45 }
 0x472   :  { %v9114_v43 = vpop.eup %7202  ;;  %7216 = vpow2.f32 %v2011_v25 }
 0x473   :  { %v9116_v35 = vpop.eup %7204  ;;  %v2017_v29 = vmul.f32 1.442695, %v1989_v13  ;;  %v2015_v40 = vmul.f32 1.442695, %v1988_v42 }
 0x474   :  { %2033 = vadd.xlane.f32.xlu1 %v9114_v43  ;;  %2031 = vadd.xlane.f32.xlu0 %v9116_v35  ;;  %v1974_v31 = vpop.xlane.xlu1 %1973  ;;  %v1972_v54 = vpop.xlane.xlu0 %1971 }
 0x475   :  { %7218 = vpow2.f32 %v2017_v29  ;;  %v1991_v22 = vsub.f32 %v9081_v56, %v1974_v31  ;;  %v1990_v7 = vsub.f32 %v9084_v47, %v1972_v54 }
 0x476   :  { %v9122_v8 = vpop.eup %7206  ;;  %7220 = vpow2.f32 %v2015_v40 }
 0x477   :  { %v9124_v11 = vpop.eup %7208  ;;  %v2021_v3 = vmul.f32 1.442695, %v1991_v22  ;;  %v2019_v0 = vmul.f32 1.442695, %v1990_v7  ;;  %v2202_v7 = vld [vmem:[%s11269_s10] sm:$0xff] }
 0x478   :  { %2037 = vadd.xlane.f32.xlu1 %v9122_v8  ;;  %2035 = vadd.xlane.f32.xlu0 %v9124_v11  ;;  %v1976_v37 = vpop.xlane.xlu0 %1975 }
 0x479   :  { %7222 = vpow2.f32 %v2021_v3  ;;  %v1992_v60 = vsub.f32 %v9089_v28, %v1976_v37  ;;  %v2203_v3 = vld [vmem:[%s11269_s10 + $0x8] sm:$0xff] }
 0x47a   :  { %v9129_v52 = vpop.eup %7210  ;;  %7224 = vpow2.f32 %v2019_v0  ;;  %v9175_v27 = vpack.c.bf16 %v2203_v3, %v2202_v7 }
 0x47b   :  { %v9131_v56 = vpop.eup %7212  ;;  %v2023_v47 = vmul.f32 1.442695, %v1992_v60 }
 0x47c   :  { %2041 = vadd.xlane.f32.xlu1 %v9129_v52  ;;  %2039 = vadd.xlane.f32.xlu0 %v9131_v56  ;;  %11565 = vst [vmem:[#allocation18_spill] sm:$0xff] %v9175_v27 }
 0x47d   :  { %7226 = vpow2.f32 %v2023_v47 }
 0x47e   :  { %v9135_v32 = vpop.eup %7214 }
 0x47f   :  { %v9137_v59 = vpop.eup %7216 }
 0x480   :  { %2045 = vadd.xlane.f32.xlu1 %v9135_v32  ;;  %2043 = vadd.xlane.f32.xlu0 %v9137_v59 }
 0x482   :  { %v9141_v28 = vpop.eup %7218 }
 0x483   :  { %v9143_v20 = vpop.eup %7220 }
 0x484   :  { %2049 = vadd.xlane.f32.xlu1 %v9141_v28  ;;  %2047 = vadd.xlane.f32.xlu0 %v9143_v20 }
 0x486   :  { %v9147_v21 = vpop.eup %7222 }
 0x487   :  { %v9149_v41 = vpop.eup %7224 }
 0x488   :  { %2053 = vadd.xlane.f32.xlu1 %v9147_v21  ;;  %2051 = vadd.xlane.f32.xlu0 %v9149_v41 }
 0x48a   :  { %v9153_v10 = vpop.eup %7226 }
 0x48c   :  { %2055 = vadd.xlane.f32.xlu0 %v9153_v10 }
 0x4f4   :  { %v2026_v49 = vpop.xlane.xlu1 %2025 }
 0x4f5   :  { %7228 = vrcp.f32 %v2026_v49 }
 0x4f8   :  { %v2028_v17 = vpop.xlane.xlu0 %2027 }
 0x4f9   :  { %v2030_v15 = vpop.xlane.xlu1 %2029  ;;  %7230 = vrcp.f32 %v2028_v17 }
 0x4fa   :  { %7232 = vrcp.f32 %v2030_v15 }
 0x4fd   :  { %v2034_v16 = vpop.xlane.xlu1 %2033  ;;  %v2032_v62 = vpop.xlane.xlu0 %2031 }
 0x4fe   :  { %7234 = vrcp.f32 %v2032_v62 }
 0x4ff   :  { %7236 = vrcp.f32 %v2034_v16 }
 0x501   :  { %v2038_v23 = vpop.xlane.xlu1 %2037  ;;  %v2036_v53 = vpop.xlane.xlu0 %2035 }
 0x502   :  { %7238 = vrcp.f32 %v2036_v53  ;;  %v7229_v38 = vpop.eup %7228 }
 0x503   :  { %7240 = vrcp.f32 %v2038_v23  ;;  %v2073_v13 = vmul.f32 %v7229_v38, %v9101_v14 }
 0x505   :  { %v2042_v25 = vpop.xlane.xlu1 %2041  ;;  %v2040_v63 = vpop.xlane.xlu0 %2039 }
 0x506   :  { %v7231_v45 = vpop.eup %7230  ;;  %7242 = vrcp.f32 %v2040_v63 }
 0x507   :  { %v2074_v42 = vmul.f32 %v7231_v45, %v9106_v33  ;;  %7244 = vrcp.f32 %v2042_v25  ;;  %v7233_v54 = vpop.eup %7232 }
 0x508   :  { %v2075_v33 = vmul.f32 %v7233_v54, %v9108_v24 }
 0x509   :  { %v2046_v29 = vpop.xlane.xlu1 %2045  ;;  %v2044_v40 = vpop.xlane.xlu0 %2043  ;;  %v2089_v31 = vpack.c.bf16 %v2074_v42, %v2073_v13 }
 0x50a   :  { %7246 = vrcp.f32 %v2044_v40 }
 0x50b   :  { %6435 = vmatprep.mubr.bf16.mxu0 %v2089_v31  ;;  %v7235_v22 = vpop.eup %7234  ;;  %7248 = vrcp.f32 %v2046_v29 }
 0x50c   :  { %v2076_v37 = vmul.f32 %v7235_v22, %v9116_v35  ;;  %v7237_v60 = vpop.eup %7236 }
 0x50d   :  { %v2050_v14 = vpop.xlane.xlu1 %2049  ;;  %v2048_v0 = vpop.xlane.xlu0 %2047  ;;  %v2077_v15 = vmul.f32 %v7237_v60, %v9114_v43 }
 0x50e   :  { %7250 = vrcp.f32 %v2048_v0  ;;  %v2090_v47 = vpack.c.bf16 %v2076_v37, %v2075_v33  ;;  %v11568_v37 = vmov 0.0  }
 0x50f   :  { %v7239_v58 = vpop.eup %7238  ;;  %7252 = vrcp.f32 %v2050_v14 }
 0x510   :  { %6436 = vmatmul.mubr.bf16.vlgmr.msra.gmra.mxu0 %v2090_v47  ;;  %v2078_v16 = vmul.f32 %v7239_v58, %v9124_v11  ;;  %v7241_v62 = vpop.eup %7240 }
 0x511   :  { %v2054_v49 = vpop.xlane.xlu1 %2053  ;;  %v2052_v17 = vpop.xlane.xlu0 %2051  ;;  %6452 = vmatpush3.bf16.msra.mxu0 %v9162_v36  ;;  %v2079_v53 = vmul.f32 %v7241_v62, %v9122_v8 }
 0x512   :  { %7254 = vrcp.f32 %v2052_v17  ;;  %v2091_v24 = vpack.c.bf16 %v2078_v16, %v2077_v15  ;;  %6453 = vmatprep.subr.bf16.mxu0 %v9175_v27 }
 0x513   :  { %v7243_v35 = vpop.eup %7242  ;;  %7256 = vrcp.f32 %v2054_v49 }
 0x514   :  { %6439 = vmatprep.mubr.bf16.mxu0 %v2091_v24  ;;  %v2080_v38 = vmul.f32 %v7243_v35, %v9131_v56  ;;  %v7245_v25 = vpop.eup %7244 }
 0x515   :  { %v2056_v23 = vpop.xlane.xlu0 %2055  ;;  %6454 = vmatpush3.bf16.msra.mxu0 %v9175_v27  ;;  %v2081_v63 = vmul.f32 %v7245_v25, %v9129_v52  ;;  %v9425_v27 = vld [vmem:[%s11447_s1 + $0xd8] sm:$0xff] }
 0x516   :  { %7258 = vrcp.f32 %v2056_v23  ;;  %v2092_v43 = vpack.c.bf16 %v2080_v38, %v2079_v53 }
 0x517   :  { %v7247_v11 = vpop.eup %7246 }
 0x518   :  { %6440 = vmatmul.mubr.bf16.gmra.mxu0 %v2092_v43  ;;  %v2082_v45 = vmul.f32 %v7247_v11, %v9137_v59  ;;  %v7249_v13 = vpop.eup %7248 }
 0x519   :  { %v2083_v40 = vmul.f32 %v7249_v13, %v9135_v32  ;;  %v2355_v32 = vld [vmem:[%s11270_s11 + $0x10] sm:$0xff] }
 0x51a   :  { %v2093_v42 = vpack.c.bf16 %v2082_v45, %v2081_v63 }
 0x51b   :  { %v7251_v29 = vpop.eup %7250 }
 0x51c   :  { %6443 = vmatprep.mubr.bf16.mxu0 %v2093_v42  ;;  %v2084_v8 = vmul.f32 %v7251_v29, %v9143_v20  ;;  %v7253_v56 = vpop.eup %7252  ;;  %v2356_v20 = vld [vmem:[%s11270_s11 + $0x18] sm:$0xff] }
 0x51d   :  { %v2085_v7 = vmul.f32 %v7253_v56, %v9141_v28  ;;  %v2353_v28 = vld [vmem:[%s11270_s11] sm:$0xff] }
 0x51e   :  { %v2094_v31 = vpack.c.bf16 %v2084_v8, %v2083_v40 }
 0x51f   :  { %v7255_v54 = vpop.eup %7254 }
 0x520   :  { %v7257_v22 = vpop.eup %7256  ;;  %6444 = vmatmul.mubr.bf16.gmra.mxu0 %v2094_v31  ;;  %v2086_v3 = vmul.f32 %v7255_v54, %v9149_v41  ;;  %v9201_v41 = vpack.c.bf16 %v2356_v20, %v2355_v32  ;;  %v2824_v31 = vrot.slane %v8974_v55, %v11563_v9  ;;  %v82_v54 = vld [vmem:[%s11569_s21] sm:$0xff]  ;;  %v9265_v32 = vld [vmem:[%s11447_s1 + $0x98] sm:$0xff] }
 0x521   :  { %v2087_v59 = vmul.f32 %v7257_v22, %v9147_v21  ;;  %v2354_v21 = vld [vmem:[%s11270_s11 + $0x8] sm:$0xff]  ;;  %11574 = vst [vmem:[#allocation32_spill] sm:$0xff] %v9265_v32  ;;  %vm3347_vm5 = vcmp.eq.f32.partialorder %v9265_v32, 0.0  ;;  %vm3587_vm8 = vcmp.eq.f32.partialorder %v9265_v32, 1.0  ;;  %vm3827_vm10 = vcmp.eq.f32.partialorder %v9265_v32, 2.0 }
 0x522   :  { %v2095_v14 = vpack.c.bf16 %v2086_v3, %v2085_v7  ;;  %11566 = vst [vmem:[#allocation25_spill] sm:$0xff] %v9201_v41  ;;  %6471 = vmatprep.subr.bf16.mxu1 %v9201_v41  ;;  %v9226_v22 = vmul.f32 %v2824_v31, %v82_v54  ;;  %v83_v7 = vld [vmem:[%s11569_s21 + $0x8] sm:$0xff]  ;;  %vm4067_vm12 = vcmp.eq.f32.partialorder %v9265_v32, 3.0 }
 0x523   :  { %v7259_v52 = vpop.eup %7258  ;;  %6472 = vmatpush3.bf16.msra.mxu1 %v9201_v41  ;;  %v9232_v3 = vmul.f32 %v2824_v31, %v83_v7 }
 0x524   :  { %v2088_v0 = vmul.f32 %v7259_v52, %v9153_v10  ;;  %6447 = vmatprep.mubr.bf16.mxu0 %v2095_v14  ;;  %v9206_v10 = vpack.c.bf16 %v2354_v21, %v2353_v28  ;;  %11570 = vst [vmem:[#allocation27_spill] sm:$0xff] %v9226_v22  ;;  %2828 = vadd.xlane.f32.xlu1 %v9226_v22  ;;  %v9237_v52 = vld [vmem:[%s11561_s2 + $0x1] ss:$0 sm:$0xff] }
 0x525   :  { %11571 = vst [vmem:[#allocation26_spill] sm:$0xff] %v9232_v3  ;;  %11572 = vst [vmem:[#allocation30_spill] sm:$0xff] %v9237_v52  ;;  %2830 = vadd.xlane.f32.xlu0 %v9232_v3  ;;  %v9243_v14 = vmul.f32 %v9237_v52, %v83_v7  ;;  %v9379_v7 = vld [vmem:[%s11447_s1 + $0xa0] sm:$0xff] }
 0x526   :  { %v2096_v33 = vpack.c.bf16 %v2088_v0, %v2087_v59  ;;  %11567 = vst [vmem:[#allocation24_spill] sm:$0xff] %v9206_v10  ;;  %6473 = vmatprep.subr.bf16.mxu1 %v9206_v10  ;;  %v9248_v59 = vld [vmem:[%s11447_s1 + $0x80] sm:$0xff]  ;;  %v9253_v0 = vld [vmem:[%s11447_s1 + $0x88] sm:$0xff] }
 0x527   :  { %6474 = vmatpush3.bf16.msra.mxu1 %v9206_v10  ;;  %11573 = vst [vmem:[#allocation29_spill] sm:$0xff] %v9243_v14  ;;  %vm3344_vm1 = vcmp.eq.f32.partialorder %v9248_v59, 0.0  ;;  %vm3345_vm2 = vcmp.eq.f32.partialorder %v9253_v0, 0.0  ;;  %vm3584_vm4 = vcmp.eq.f32.partialorder %v9248_v59, 1.0  ;;  %vm3585_vm6 = vcmp.eq.f32.partialorder %v9253_v0, 1.0  ;;  %v9464_v3 = vld [vmem:[%s11447_s1 + $0xc0] sm:$0xff] }
 0x528   :  { %6448 = vmatmul.mubr.bf16.gmra.mxu0 %v2096_v33  ;;  %6515 = vmatprep.subr.bf16.mxu1 %v11568_v37  ;;  %v9258_v33 = vld [vmem:[%s11447_s1 + $0x90] sm:$0xff]  ;;  %v9270_v20 = vsel %vm3344_vm1, 1.0, %v11568_v37  ;;  %v9273_v28 = vsel %vm3345_vm2, 1.0, %v11568_v37  ;;  %vm3824_vm13 = vcmp.eq.f32.partialorder %v9248_v59, 2.0  ;;  %vm3825_vm14 = vcmp.eq.f32.partialorder %v9253_v0, 2.0 }
 0x529   :  { %vm3346_vm3 = vcmp.eq.f32.partialorder %v9258_v33, 0.0  ;;  %11575 = vst [vmem:[#allocation31_spill] sm:$0xff] %v9273_v28  ;;  %vm3586_vm7 = vcmp.eq.f32.partialorder %v9258_v33, 1.0  ;;  %vm3826_vm9 = vcmp.eq.f32.partialorder %v9258_v33, 2.0  ;;  %vm4066_vm11 = vcmp.eq.f32.partialorder %v9258_v33, 3.0 }
 0x52a   :  { %v9277_v21 = vsel %vm3346_vm3, 1.0, %v11568_v37 }
 0x5d0   :  { %v6437_v60 = vpop.f32.mrf.mxu0 }
 0x5d2   :  { %v2139_v47 = vpop.f32.mrf.mxu0 }
 0x5d4   :  { %v6438_v58 = vpop.f32.mrf.mxu0 }
 0x5d5   :  { %v2207_v15 = vpack.c.bf16 %v6438_v58, %v6437_v60  ;;  %v6995_v60 = vpack.i.bf16 %v9273_v28, %v9270_v20  ;;  %v9286_v58 = vsel %vm3584_vm4, 1.0, %v11568_v37  ;;  %vm4064_vm4 = vcmp.eq.f32.partialorder %v9248_v59, 3.0 }
 0x5d6   :  { %v2142_v49 = vpop.f32.mrf.mxu0  ;;  %v9374_v54 = vsel %vm4064_vm4, 1.0, %v11568_v37 }
 0x5d7   :  { %v2206_v17 = vpack.c.bf16 %v2142_v49, %v2139_v47  ;;  %v9282_v47 = vsel %vm3347_vm5, 1.0, %v11568_v37  ;;  %6996 = vrot.lane.b32.xlu1 %v6995_v60, %s7581_s3  ;;  %11580 = vst [vmem:[#allocation34_spill] sm:$0xff] %v9374_v54 }
 0x5d8   :  { %v6441_v16 = vpop.f32.mrf.mxu0  ;;  %v7000_v49 = vpack.i.bf16 %v9282_v47, %v9277_v21 }
 0x5d9   :  { %6455 = vmatprep.mubr.msk.bf16.mxu0 %vm1416_vm0, %v2206_v17  ;;  %v9291_v17 = vsel %vm3585_vm6, 1.0, %v11568_v37  ;;  %vm4065_vm6 = vcmp.eq.f32.partialorder %v9253_v0, 3.0 }
 0x5da   :  { %v2155_v62 = vpop.f32.mrf.mxu0  ;;  %6456 = vmatmul.mubr.msk.bf16.vlgmr.msra.gmra.mxu0 %vm1416_vm0, %v2207_v15  ;;  %v7005_v15 = vpack.i.bf16 %v9291_v17, %v9286_v58  ;;  %7001 = vrot.lane.b32.xlu0 %v7000_v49, %s7581_s3  ;;  %v9383_v60 = vsel %vm4065_vm6, 1.0, %v11568_v37  ;;  %v9388_v49 = vld [vmem:[%s11447_s1 + $0xa8] sm:$0xff]  ;;  %vm3595_vm6 = vcmp.eq.f32.partialorder %v9425_v27, 1.0 }
 0x5db   :  { %vm4069_vm4 = vcmp.eq.f32.partialorder %v9388_v49, 3.0 }
 0x5dc   :  { %v6442_v24 = vpop.f32.mrf.mxu0  ;;  %7006 = vrot.lane.b32.xlu1 %v7005_v15, %s7581_s3  ;;  %v7025_v15 = vpack.i.bf16 %v9383_v60, %v9374_v54  ;;  %v9497_v54 = vsel %vm3595_vm6, 1.0, %v11568_v37  ;;  %vm3592_vm6 = vcmp.eq.f32.partialorder %v9464_v3, 1.0 }
 0x5dd   :  { %v2209_v53 = vpack.c.bf16 %v6442_v24, %v6441_v16  ;;  %v9300_v16 = vsel %vm3586_vm7, 1.0, %v11568_v37  ;;  %11589 = vst [vmem:[#allocation35_spill] sm:$0xff] %v9497_v54 }
 0x5de   :  { %v2158_v35 = vpop.f32.mrf.mxu0 }
 0x5df   :  { %v2208_v23 = vpack.c.bf16 %v2158_v35, %v2155_v62  ;;  %v9303_v62 = vsel %vm3587_vm8, 1.0, %v11568_v37  ;;  %v9311_v35 = vsel %vm3826_vm9, 1.0, %v11568_v37  ;;  %vm3348_vm9 = vcmp.eq.f32.partialorder %v9379_v7, 0.0 }
 0x5e0   :  { %v6445_v38 = vpop.f32.mrf.mxu0  ;;  %v7010_v24 = vpack.i.bf16 %v9303_v62, %v9300_v16  ;;  %11576 = vst [vmem:[#allocation36_spill] sm:$0xff] %v9311_v35 }
 0x5e1   :  { %6459 = vmatprep.mubr.msk.bf16.mxu0 %vm1416_vm0, %v2208_v23  ;;  %v9314_v23 = vsel %vm3827_vm10, 1.0, %v11568_v37  ;;  %vm3349_vm10 = vcmp.eq.f32.partialorder %v9388_v49, 0.0 }
 0x5e2   :  { %v2171_v25 = vpop.f32.mrf.mxu0  ;;  %6460 = vmatmul.mubr.msk.bf16.gmra.mxu0 %vm1416_vm0, %v2209_v53  ;;  %v9321_v53 = vld [vmem:[%s11447_s1 + $0xb0] sm:$0xff]  ;;  %7011 = vrot.lane.b32.xlu1 %v7010_v24, %s7581_s3 }
 0x5e3   :  { %vm3350_vm15 = vcmp.eq.f32.partialorder %v9321_v53, 0.0  ;;  %vm3590_vm2 = vcmp.eq.f32.partialorder %v9321_v53, 1.0  ;;  %vm3830_vm5 = vcmp.eq.f32.partialorder %v9321_v53, 2.0  ;;  %vm4070_vm8 = vcmp.eq.f32.partialorder %v9321_v53, 3.0 }
 0x5e4   :  { %v6446_v43 = vpop.f32.mrf.mxu0  ;;  %v9440_v36 = vsel %vm4070_vm8, 1.0, %v11568_v37 }
 0x5e5   :  { %v2211_v45 = vpack.c.bf16 %v6446_v43, %v6445_v38  ;;  %v9326_v38 = vld [vmem:[%s11447_s1 + $0xb8] sm:$0xff]  ;;  %v9332_v43 = vsel %vm4066_vm11, 1.0, %v11568_v37  ;;  %vm3588_vm11 = vcmp.eq.f32.partialorder %v9379_v7, 1.0  ;;  %11583 = vst [vmem:[#allocation7_spill] sm:$0xff] %v9440_v36 }
 0x5e6   :  { %v2174_v11 = vpop.f32.mrf.mxu0  ;;  %11577 = vst [vmem:[#allocation6_spill] sm:$0xff] %v9332_v43  ;;  %vm3351_vm1 = vcmp.eq.f32.partialorder %v9326_v38, 0.0  ;;  %vm3591_vm3 = vcmp.eq.f32.partialorder %v9326_v38, 1.0  ;;  %vm3831_vm7 = vcmp.eq.f32.partialorder %v9326_v38, 2.0  ;;  %v9415_v55 = vsel %vm3588_vm11, 1.0, %v11568_v37 }
 0x5e7   :  { %v2210_v63 = vpack.c.bf16 %v2174_v11, %v2171_v25  ;;  %v7020_v25 = vpack.i.bf16 %v9314_v23, %v9311_v35  ;;  %v9335_v11 = vsel %vm4067_vm12, 1.0, %v11568_v37  ;;  %v9369_v31 = vsel %vm3591_vm3, 1.0, %v11568_v37 }
 0x5e8   :  { %v6449_v13 = vpop.f32.mrf.mxu0  ;;  %vm4071_vm12 = vcmp.eq.f32.partialorder %v9326_v38, 3.0  ;;  %vm4068_vm3 = vcmp.eq.f32.partialorder %v9379_v7, 3.0 }
 0x5e9   :  { %6463 = vmatprep.mubr.msk.bf16.mxu0 %vm1416_vm0, %v2210_v63  ;;  %v9342_v63 = vsel %vm3824_vm13, 1.0, %v11568_v37  ;;  %7021 = vrot.lane.b32.xlu1 %v7020_v25, %s7581_s3  ;;  %v9396_v25 = vsel %vm3830_vm5, 1.0, %v11568_v37  ;;  %vm3589_vm13 = vcmp.eq.f32.partialorder %v9388_v49, 1.0  ;;  %v9443_v10 = vsel %vm4071_vm12, 1.0, %v11568_v37 }
 0x5ea   :  { %v2187_v42 = vpop.f32.mrf.mxu0  ;;  %6464 = vmatmul.mubr.msk.bf16.gmra.mxu0 %vm1416_vm0, %v2211_v45  ;;  %v9345_v45 = vsel %vm3825_vm14, 1.0, %v11568_v37  ;;  %11581 = vst [vmem:[#allocation42_spill] sm:$0xff] %v9396_v25  ;;  %v9430_v52 = vsel %vm3589_vm13, 1.0, %v11568_v37  ;;  %vm3828_vm14 = vcmp.eq.f32.partialorder %v9379_v7, 2.0  ;;  %vm4075_vm12 = vcmp.eq.f32.partialorder %v9425_v27, 3.0 }
 0x5eb   :  { %11578 = vst [vmem:[#allocation28_spill] sm:$0xff] %v9345_v45  ;;  %v7045_v41 = vpack.i.bf16 %v9430_v52, %v9415_v55 }
 0x5ec   :  { %v6450_v29 = vpop.f32.mrf.mxu0 }
 0x5ed   :  { %v2213_v56 = vpack.c.bf16 %v6450_v29, %v6449_v13  ;;  %v7015_v13 = vpack.i.bf16 %v9345_v45, %v9342_v63  ;;  %v9353_v29 = vsel %vm3350_vm15, 1.0, %v11568_v37  ;;  %vm3829_vm15 = vcmp.eq.f32.partialorder %v9388_v49, 2.0 }
 0x5ee   :  { %v2190_v40 = vpop.f32.mrf.mxu0  ;;  %11579 = vst [vmem:[#allocation41_spill] sm:$0xff] %v9353_v29  ;;  %v9454_v22 = vsel %vm3829_vm15, 1.0, %v11568_v37 }
 0x5ef   :  { %v2212_v8 = vpack.c.bf16 %v2190_v40, %v2187_v42  ;;  %v7030_v42 = vpack.i.bf16 %v9335_v11, %v9332_v43  ;;  %v9356_v40 = vsel %vm3351_vm1, 1.0, %v11568_v37  ;;  %7016 = vrot.lane.b32.xlu0 %v7015_v13, %s7581_s3  ;;  %v9401_v13 = vsel %vm3831_vm7, 1.0, %v11568_v37  ;;  %11584 = vst [vmem:[#allocation43_spill] sm:$0xff] %v9454_v22 }
 0x5f0   :  { %v7060_v9 = vpack.i.bf16 %v9401_v13, %v9396_v25  ;;  %v9469_v25 = vld [vmem:[%s11447_s1 + $0xc8] sm:$0xff]  ;;  %v9486_v43 = vsel %vm4069_vm4, 1.0, %v11568_v37  ;;  %vm3352_vm7 = vcmp.eq.f32.partialorder %v9464_v3, 0.0 }
 0x5f1   :  { %6467 = vmatprep.mubr.msk.bf16.mxu0 %vm1416_vm0, %v2212_v8  ;;  %7031 = vrot.lane.b32.xlu1 %v7030_v42, %s7581_s3  ;;  %v7040_v8 = vpack.i.bf16 %v9356_v40, %v9353_v29  ;;  %v9406_v42 = vsel %vm3348_vm9, 1.0, %v11568_v37  ;;  %vm3353_vm8 = vcmp.eq.f32.partialorder %v9469_v25, 0.0 }
 0x5f2   :  { %6468 = vmatmul.mubr.msk.bf16.gmra.mxu0 %vm1416_vm0, %v2213_v56  ;;  %v9365_v56 = vsel %vm3590_vm2, 1.0, %v11568_v37  ;;  %11582 = vst [vmem:[#allocation8_spill] sm:$0xff] %v9406_v42  ;;  %vm3355_vm2 = vcmp.eq.f32.partialorder %v9425_v27, 0.0 }
 0x5f3   :  { %v7050_v24 = vpack.i.bf16 %v9369_v31, %v9365_v56  ;;  %7026 = vrot.lane.b32.xlu0 %v7025_v15, %s7581_s3  ;;  %v9420_v15 = vld [vmem:[%s11447_s1 + $0xd0] sm:$0xff]  ;;  %v9475_v29 = vsel %vm3355_vm2, 1.0, %v11568_v37 }
 0x5f4   :  { %vm3354_vm1 = vcmp.eq.f32.partialorder %v9420_v15, 0.0  ;;  %11586 = vst [vmem:[#allocation44_spill] sm:$0xff] %v9475_v29  ;;  %vm3594_vm5 = vcmp.eq.f32.partialorder %v9420_v15, 1.0  ;;  %vm3834_vm9 = vcmp.eq.f32.partialorder %v9420_v15, 2.0  ;;  %vm4074_vm11 = vcmp.eq.f32.partialorder %v9420_v15, 3.0 }
 0x5f5   :  { %7041 = vrot.lane.b32.xlu1 %v7040_v8, %s7581_s3  ;;  %v9411_v8 = vsel %vm3349_vm10, 1.0, %v11568_v37  ;;  %vm3835_vm10 = vcmp.eq.f32.partialorder %v9425_v27, 2.0 }
 0x5f6   :  { %v7035_v14 = vpack.i.bf16 %v9411_v8, %v9406_v42  ;;  %v9472_v42 = vsel %vm3354_vm1, 1.0, %v11568_v37 }
 0x5f7   :  { %11585 = vst [vmem:[#allocation9_spill] sm:$0xff] %v9472_v42 }
 0x5f8   :  { %7036 = vrot.lane.b32.xlu0 %v7035_v14, %s7581_s3  ;;  %v7070_v14 = vpack.i.bf16 %v9443_v10, %v9440_v36  ;;  %v9483_v36 = vsel %vm4068_vm3, 1.0, %v11568_v37 }
 0x5f9   :  { %7051 = vrot.lane.b32.xlu1 %v7050_v24, %s7581_s3  ;;  %v9451_v24 = vsel %vm3828_vm14, 1.0, %v11568_v37  ;;  %11587 = vst [vmem:[#allocation11_spill] sm:$0xff] %v9483_v36  ;;  %v7065_v35 = vpack.i.bf16 %v9486_v43, %v9483_v36  ;;  %v9517_v36 = vsel %vm3835_vm10, 1.0, %v11568_v37  ;;  %vm4072_vm10 = vcmp.eq.f32.partialorder %v9464_v3, 3.0 }
 0x5fa   :  { %11593 = vst [vmem:[#allocation48_spill] sm:$0xff] %v9517_v36 }
 0x5fc   :  { %7046 = vrot.lane.b32.xlu0 %v7045_v41, %s7581_s3  ;;  %v7080_v41 = vpack.i.bf16 %v9475_v29, %v9472_v42  ;;  %v9508_v42 = vsel %vm3353_vm8, 1.0, %v11568_v37  ;;  %vm3832_vm8 = vcmp.eq.f32.partialorder %v9464_v3, 2.0 }
 0x5fd   :  { %7061 = vrot.lane.b32.xlu1 %v7060_v9, %s7581_s3  ;;  %v7055_v9 = vpack.i.bf16 %v9454_v22, %v9451_v24  ;;  %v9494_v22 = vsel %vm3594_vm5, 1.0, %v11568_v37  ;;  %11591 = vst [vmem:[#allocation46_spill] sm:$0xff] %v9508_v42 }
 0x5fe   :  { %11588 = vst [vmem:[#allocation45_spill] sm:$0xff] %v9494_v22  ;;  %v7090_v45 = vpack.i.bf16 %v9497_v54, %v9494_v22  ;;  %v9532_v22 = vld [vmem:[%s11447_s1 + $0xf8] sm:$0xff]  ;;  %v9541_v54 = vsel %vm4075_vm12, 1.0, %v11568_v37 }
 0x5ff   :  { %11595 = vst [vmem:[#allocation50_spill] sm:$0xff] %v9541_v54  ;;  %vm3359_vm14 = vcmp.eq.f32.partialorder %v9532_v22, 0.0  ;;  %vm3599_vm1 = vcmp.eq.f32.partialorder %v9532_v22, 1.0  ;;  %vm3839_vm3 = vcmp.eq.f32.partialorder %v9532_v22, 2.0  ;;  %vm4079_vm5 = vcmp.eq.f32.partialorder %v9532_v22, 3.0 }
 0x600   :  { %7056 = vrot.lane.b32.xlu0 %v7055_v9, %s7581_s3  ;;  %v9514_v9 = vsel %vm3834_vm9, 1.0, %v11568_v37  ;;  %vm3833_vm9 = vcmp.eq.f32.partialorder %v9469_v25, 2.0 }
 0x601   :  { %7071 = vrot.lane.b32.xlu1 %v7070_v14, %s7581_s3  ;;  %v9505_v14 = vsel %vm3352_vm7, 1.0, %v11568_v37  ;;  %11592 = vst [vmem:[#allocation47_spill] sm:$0xff] %v9514_v9  ;;  %vm3593_vm7 = vcmp.eq.f32.partialorder %v9469_v25, 1.0 }
 0x602   :  { %11590 = vst [vmem:[#allocation33_spill] sm:$0xff] %v9505_v14  ;;  %v7075_v28 = vpack.i.bf16 %v9508_v42, %v9505_v14  ;;  %v9538_v14 = vsel %vm4074_vm11, 1.0, %v11568_v37  ;;  %vm4073_vm11 = vcmp.eq.f32.partialorder %v9469_v25, 3.0 }
 0x603   :  { %11594 = vst [vmem:[#allocation49_spill] sm:$0xff] %v9538_v14 }
 0x604   :  { %7066 = vrot.lane.b32.xlu0 %v7065_v35, %s7581_s3  ;;  %v7100_v35 = vpack.i.bf16 %v9517_v36, %v9514_v9  ;;  %v9553_v36 = vsel %vm3359_vm14, 1.0, %v11568_v37 }
 0x605   :  { %7081 = vrot.lane.b32.xlu1 %v7080_v41, %s7581_s3  ;;  %v9527_v41 = vld [vmem:[%s11447_s1 + $0xf0] sm:$0xff]  ;;  %11597 = vst [vmem:[#allocation52_spill] sm:$0xff] %v9553_v36 }
 0x606   :  { %vm3358_vm13 = vcmp.eq.f32.partialorder %v9527_v41, 0.0  ;;  %vm3598_vm15 = vcmp.eq.f32.partialorder %v9527_v41, 1.0  ;;  %vm3838_vm2 = vcmp.eq.f32.partialorder %v9527_v41, 2.0  ;;  %vm4078_vm4 = vcmp.eq.f32.partialorder %v9527_v41, 3.0 }
 0x607   :  { %v9550_v29 = vsel %vm3358_vm13, 1.0, %v11568_v37 }
 0x608   :  { %7076 = vrot.lane.b32.xlu0 %v7075_v28, %s7581_s3  ;;  %11596 = vst [vmem:[#allocation51_spill] sm:$0xff] %v9550_v29  ;;  %v7120_v28 = vpack.i.bf16 %v9553_v36, %v9550_v29  ;;  %v9575_v36 = vsel %vm3839_vm3, 1.0, %v11568_v37 }
 0x609   :  { %7091 = vrot.lane.b32.xlu1 %v7090_v45, %s7581_s3  ;;  %v7110_v45 = vpack.i.bf16 %v9541_v54, %v9538_v14  ;;  %v9564_v54 = vsel %vm3599_vm1, 1.0, %v11568_v37  ;;  %11601 = vst [vmem:[#allocation56_spill] sm:$0xff] %v9575_v36 }
 0x60a   :  { %11599 = vst [vmem:[#allocation54_spill] sm:$0xff] %v9564_v54 }
 0x60d   :  { %7101 = vrot.lane.b32.xlu1 %v7100_v35, %s7581_s3  ;;  %v9561_v35 = vsel %vm3598_vm15, 1.0, %v11568_v37 }
 0x60e   :  { %11598 = vst [vmem:[#allocation53_spill] sm:$0xff] %v9561_v35  ;;  %v7130_v14 = vpack.i.bf16 %v9564_v54, %v9561_v35  ;;  %v9586_v54 = vsel %vm4079_vm5, 1.0, %v11568_v37  ;;  %vm2659_vm5 = vcmask 523264  }
 0x60f   :  { %11603 = vst [vmem:[#allocation58_spill] sm:$0xff] %v9586_v54 }
 0x611   :  { %7111 = vrot.lane.b32.xlu1 %v7110_v45, %s7581_s3  ;;  %v9572_v45 = vsel %vm3838_vm2, 1.0, %v11568_v37 }
 0x612   :  { %11600 = vst [vmem:[#allocation55_spill] sm:$0xff] %v9572_v45  ;;  %v7140_v29 = vpack.i.bf16 %v9575_v36, %v9572_v45 }
 0x615   :  { %7121 = vrot.lane.b32.xlu1 %v7120_v28, %s7581_s3  ;;  %v9583_v28 = vsel %vm4078_vm4, 1.0, %v11568_v37 }
 0x616   :  { %11602 = vst [vmem:[#allocation57_spill] sm:$0xff] %v9583_v28  ;;  %v7150_v35 = vpack.i.bf16 %v9586_v54, %v9583_v28 }
 0x619   :  { %7131 = vrot.lane.b32.xlu1 %v7130_v14, %s7581_s3 }
 0x61d   :  { %7141 = vrot.lane.b32.xlu1 %v7140_v29, %s7581_s3 }
 0x621   :  { %7151 = vrot.lane.b32.xlu1 %v7150_v35, %s7581_s3 }
 0x625   :  { %3047 = vperm.xlu1 %7156, %v9253_v0  }
 0x629   :  { %7157 = vset.pattern.permute.xlu1 %v11482_v4 }
 0x62a   :  { %3137 = vperm.xlu1 %7157, %v9248_v59  }
 0x62e   :  { %7158 = vset.pattern.permute.xlu1 %v11545_v57 }
 0x62f   :  { %3052 = vperm.xlu1 %7158, %v9258_v33  }
 0x633   :  { %3057 = vperm.xlu1 %7158, %v9265_v32  }
 0x637   :  { %7159 = vset.pattern.permute.xlu1 %v11482_v4 }
 0x638   :  { %3149 = vperm.xlu1 %7159, %v9265_v32  }
 0x63c   :  { %7160 = vset.pattern.permute.xlu1 %v11481_v2 }
 0x63d   :  { %3237 = vperm.xlu1 %7160, %v9253_v0  }
 0x641   :  { %3241 = vperm.xlu1 %7160, %v9258_v33  }
 0x645   :  { %7161 = vset.pattern.permute.xlu1 %v11483_v39 }
 0x69a   :  { %v6457_v29 = vpop.f32.mrf.mxu0 }
 0x69b   :  { %v9612_v9 = vadd.f32 %v6457_v29, %v8562_v34 }
 0x69c   :  { %v2274_v14 = vpop.f32.mrf.mxu0 }
 0x69d   :  { %v9606_v36 = vadd.f32 %v2274_v14, %v8552_v5  ;;  %11607 = vst [vmem:[#allocation62_spill] sm:$0xff] %v9612_v9  ;;  %v11611_v14 = vld [vmem:[#allocation15_spill] sm:$0xff] }
 0x69e   :  { %v6458_v54 = vpop.f32.mrf.mxu0 }
 0x69f   :  { %v9603_v35 = vadd.f32 %v6458_v54, %v8564_v50  ;;  %11605 = vst [vmem:[#allocation60_spill] sm:$0xff] %v9606_v36 }
 0x6a0   :  { %v2277_v28 = vpop.f32.mrf.mxu0 }
 0x6a1   :  { %11604 = vst [vmem:[#allocation59_spill] sm:$0xff] %v9603_v35  ;;  %v9609_v45 = vadd.f32 %v2277_v28, %v8555_v30  ;;  %v2358_v50 = vpack.c.bf16 %v9603_v35, %v9612_v9 }
 0x6a2   :  { %v6461_v42 = vpop.f32.mrf.mxu0 }
 0x6a3   :  { %11606 = vst [vmem:[#allocation61_spill] sm:$0xff] %v9609_v45  ;;  %v2357_v32 = vpack.c.bf16 %v9609_v45, %v9606_v36  ;;  %v9632_v36 = vadd.f32 %v6461_v42, %v11611_v14 }
 0x6a4   :  { %v2290_v54 = vpop.f32.mrf.mxu0 }
 0x6a5   :  { %6475 = vmatprep.mubr.msk.bf16.mxu1 %vm1416_vm0, %v2357_v32  ;;  %v9626_v28 = vadd.f32 %v2290_v54, %v8698_v44  ;;  %11612 = vst [vmem:[#allocation15_spill] sm:$0xff] %v9632_v36 }
 0x6a6   :  { %v6462_v5 = vpop.f32.mrf.mxu0  ;;  %6476 = vmatmul.mubr.msk.bf16.vlgmr.msra.gmra.mxu1 %vm1416_vm0, %v2358_v50 }
 0x6a7   :  { %v9623_v30 = vadd.f32 %v6462_v5, %v8710_v1  ;;  %11609 = vst [vmem:[#allocation64_spill] sm:$0xff] %v9626_v28  ;;  %v9649_v5 = vpop.xlane.xlu1 %2828 }
 0x6a8   :  { %v2293_v34 = vpop.f32.mrf.mxu0  ;;  %11616 = vst [vmem:[#allocation69_spill] sm:$0xff] %v9649_v5 }
 0x6a9   :  { %11608 = vst [vmem:[#allocation63_spill] sm:$0xff] %v9623_v30  ;;  %v9629_v29 = vadd.f32 %v2293_v34, %v8700_v61  ;;  %v2360_v50 = vpack.c.bf16 %v9623_v30, %v9632_v36 }
 0x6aa   :  { %v6465_v45 = vpop.f32.mrf.mxu0 }
 0x6ab   :  { %11610 = vst [vmem:[#allocation65_spill] sm:$0xff] %v9629_v29  ;;  %v2359_v32 = vpack.c.bf16 %v9629_v29, %v9626_v28  ;;  %v9652_v34 = vadd.f32 %v6465_v45, %v8794_v19 }
 0x6ac   :  { %v2306_v9 = vpop.f32.mrf.mxu0 }
 0x6ad   :  { %6479 = vmatprep.mubr.msk.bf16.mxu1 %vm1416_vm0, %v2359_v32  ;;  %v9644_v42 = vadd.f32 %v2306_v9, %v8782_v12  ;;  %11617 = vst [vmem:[#allocation70_spill] sm:$0xff] %v9652_v34  ;;  %v9659_v12 = vpop.permute.xlu1 %6996  ;;  %v9661_v9 = vpop.xlane.xlu0 %2830 }
 0x6ae   :  { %v6466_v1 = vpop.f32.mrf.mxu0  ;;  %6480 = vmatmul.mubr.msk.bf16.gmra.mxu1 %vm1416_vm0, %v2360_v50  ;;  %11618 = vst [vmem:[#allocation71_spill] sm:$0xff] %v9661_v9 }
 0x6af   :  { %v9641_v44 = vadd.f32 %v6466_v1, %v8796_v6  ;;  %11614 = vst [vmem:[#allocation67_spill] sm:$0xff] %v9644_v42  ;;  %v7493_v1 = vadd.low.f32.bf16 %v9270_v20, %v9659_v12 }
 0x6b0   :  { %v2309_v61 = vpop.f32.mrf.mxu0 }
 0x6b1   :  { %11613 = vst [vmem:[#allocation66_spill] sm:$0xff] %v9641_v44  ;;  %v9647_v54 = vadd.f32 %v2309_v61, %v8784_v18  ;;  %v2362_v6 = vpack.c.bf16 %v9641_v44, %v9652_v34  ;;  %3474 = vperm.xlu1 %7161, %v7493_v1  }
 0x6b2   :  { %v6469_v14 = vpop.f32.mrf.mxu0 }
 0x6b3   :  { %11615 = vst [vmem:[#allocation68_spill] sm:$0xff] %v9647_v54  ;;  %v2361_v32 = vpack.c.bf16 %v9647_v54, %v9644_v42  ;;  %v9676_v35 = vadd.f32 %v6469_v14, %v8859_v26 }
 0x6b4   :  { %v2322_v50 = vpop.f32.mrf.mxu0 }
 0x6b5   :  { %6483 = vmatprep.mubr.msk.bf16.mxu1 %vm1416_vm0, %v2361_v32  ;;  %v9670_v61 = vadd.f32 %v2322_v50, %v8851_v46  ;;  %v7002_v32 = vpop.permute.xlu0 %7001  ;;  %11622 = vst [vmem:[#allocation75_spill] sm:$0xff] %v9676_v35 }
 0x6b6   :  { %v6470_v18 = vpop.f32.mrf.mxu0  ;;  %6484 = vmatmul.mubr.msk.bf16.gmra.mxu1 %vm1416_vm0, %v2362_v6  ;;  %v7495_v46 = vadd.high.f32.bf16 %v9282_v47, %v7002_v32 }
 0x6b7   :  { %v9665_v19 = vadd.f32 %v6470_v18, %v8861_v51  ;;  %11620 = vst [vmem:[#allocation73_spill] sm:$0xff] %v9670_v61  ;;  %v7494_v18 = vadd.low.f32.bf16 %v9277_v21, %v7002_v32  ;;  %v9735_v32 = vsel %vm4072_vm10, 1.0, %v11568_v37 }
 0x6b8   :  { %v2325_v45 = vpop.f32.mrf.mxu0 }
 0x6b9   :  { %11619 = vst [vmem:[#allocation72_spill] sm:$0xff] %v9665_v19  ;;  %v9673_v5 = vadd.f32 %v2325_v45, %v8853_v48  ;;  %v2364_v51 = vpack.c.bf16 %v9665_v19, %v9676_v35  ;;  %3484 = vperm.xlu1 %7161, %v7494_v18   ;;  %v7007_v48 = vpop.permute.xlu1 %7006  ;;  %v9726_v45 = vsel %vm3833_vm9, 1.0, %v11568_v37 }
 0x6ba   :  { %v7496_v26 = vadd.low.f32.bf16 %v9286_v58, %v7007_v48  ;;  %v7497_v20 = vadd.high.f32.bf16 %v9291_v17, %v7007_v48  ;;  %v9701_v17 = vpop.permute.xlu0 %7016  ;;  %v9752_v48 = vld [vmem:[%s11447_s1 + $0xe8] sm:$0xff] }
 0x6bb   :  { %11621 = vst [vmem:[#allocation74_spill] sm:$0xff] %v9673_v5  ;;  %v2363_v6 = vpack.c.bf16 %v9673_v5, %v9670_v61  ;;  %v7500_v14 = vadd.low.f32.bf16 %v9342_v63, %v9701_v17  ;;  %v9723_v63 = vsel %vm3832_vm8, 1.0, %v11568_v37  ;;  %vm3357_vm13 = vcmp.eq.f32.partialorder %v9752_v48, 0.0 }
 0x6bc   :  { %v7095_v1 = vpack.i.bf16 %v9726_v45, %v9723_v63  ;;  %vm3597_vm15 = vcmp.eq.f32.partialorder %v9752_v48, 1.0  ;;  %vm3837_vm2 = vcmp.eq.f32.partialorder %v9752_v48, 2.0  ;;  %vm4077_vm4 = vcmp.eq.f32.partialorder %v9752_v48, 3.0 }
 0x6bd   :  { %6487 = vmatprep.mubr.msk.bf16.mxu1 %vm1416_vm0, %v2363_v6  ;;  %3489 = vperm.xlu1 %7161, %v7495_v46   ;;  %v7012_v21 = vpop.permute.xlu1 %7011  ;;  %v9738_v6 = vsel %vm4073_vm11, 1.0, %v11568_v37  ;;  %v9747_v46 = vld [vmem:[%s11447_s1 + $0xe0] sm:$0xff]  ;;  %v9849_v30 = vsel %vm4077_vm4, 1.0, %v11568_v37  ;;  %vm5845_vm8 = vcmask 253952  }
 0x6be   :  { %6488 = vmatmul.mubr.msk.bf16.gmra.mxu1 %vm1416_vm0, %v2364_v51  ;;  %v7498_v47 = vadd.low.f32.bf16 %v9300_v16, %v7012_v21  ;;  %v7499_v58 = vadd.high.f32.bf16 %v9303_v62, %v7012_v21  ;;  %v9710_v16 = vsel %vm3592_vm6, 1.0, %v11568_v37  ;;  %v9713_v62 = vsel %vm3593_vm7, 1.0, %v11568_v37  ;;  %11632 = vst [vmem:[#allocation85_spill] sm:$0xff] %v9849_v30 }
 0x6bf   :  { %v7085_v50 = vpack.i.bf16 %v9713_v62, %v9710_v16  ;;  %v7105_v18 = vpack.i.bf16 %v9738_v6, %v9735_v32  ;;  %vm3356_vm12 = vcmp.eq.f32.partialorder %v9747_v46, 0.0  ;;  %vm3596_vm14 = vcmp.eq.f32.partialorder %v9747_v46, 1.0 }
 0x6c0   :  { %vm3836_vm1 = vcmp.eq.f32.partialorder %v9747_v46, 2.0  ;;  %vm4076_vm3 = vcmp.eq.f32.partialorder %v9747_v46, 3.0  ;;  %vm7585_vm6 = vmmov 0   ;;  %vm5843_vm7 = vcmask 130048  }
 0x6c1   :  { %7162 = vset.pattern.permute.xlu1 %v11545_v57  ;;  %7086 = vrot.lane.b32.xlu0 %v7085_v50, %s7581_s3  ;;  %v9740_v51 = vpop.permute.xlu1 %7021  ;;  %v9774_v50 = vpop.permute.xlu0 %7026  ;;  %v9846_v36 = vsel %vm4076_vm3, 1.0, %v11568_v37 }
 0x6c2   :  { %3067 = vperm.xlu1 %7162, %v9388_v49   ;;  %11631 = vst [vmem:[#allocation84_spill] sm:$0xff] %v9846_v36  ;;  %v7145_v54 = vpack.i.bf16 %v9849_v30, %v9846_v36 }
 0x6c5   :  { %7096 = vrot.lane.b32.xlu0 %v7095_v1, %s7581_s3  ;;  %v9828_v28 = vpop.permute.xlu0 %7036 }
 0x6c6   :  { %7163 = vset.pattern.permute.xlu1 %v11482_v4 }
 0x6c7   :  { %3153 = vperm.xlu1 %7163, %v9379_v7  }
 0x6c9   :  { %7106 = vrot.lane.b32.xlu0 %v7105_v18, %s7581_s3  ;;  %v2644_v18 = vld [vmem:[%s11272_s13 + $0x28] sm:$0xff] }
 0x6cb   :  { %7164 = vset.pattern.permute.xlu1 %v11483_v39 }
 0x6cc   :  { %3714 = vperm.xlu1 %7164, %v7496_v26   ;;  %v2645_v26 = vld [vmem:[%s11272_s13 + $0x30] sm:$0xff] }
 0x6d0   :  { %3719 = vperm.xlu1 %7164, %v7497_v20   ;;  %v2646_v20 = vld [vmem:[%s11272_s13 + $0x38] sm:$0xff] }
 0x6d1   :  { %v9763_v21 = vpack.c.bf16 %v2646_v20, %v2645_v26  ;;  %v7502_v20 = vadd.high.f32.bf16 %v9383_v60, %v9774_v50  ;;  %v9803_v60 = vpop.permute.xlu1 %7031 }
 0x6d3   :  { %11623 = vst [vmem:[#allocation76_spill] sm:$0xff] %v9763_v21  ;;  %6491 = vmatprep.subr.bf16.mxu0 %v9763_v21 }
 0x6d4   :  { %7165 = vset.pattern.permute.xlu1 %v11545_v57  ;;  %6492 = vmatpush3.bf16.msra.mxu0 %v9763_v21  ;;  %v2642_v21 = vld [vmem:[%s11272_s13 + $0x18] sm:$0xff] }
 0x6d5   :  { %3077 = vperm.xlu1 %7165, %v9326_v38   ;;  %v9826_v9 = vpop.permute.xlu1 %7041 }
 0x6d9   :  { %7166 = vset.pattern.permute.xlu1 %v11482_v4  ;;  %v7052_v42 = vpop.permute.xlu1 %7051 }
 0x6da   :  { %3161 = vperm.xlu1 %7166, %v9321_v53  }
 0x6de   :  { %7167 = vset.pattern.permute.xlu1 %v11483_v39 }
 0x6df   :  { %3724 = vperm.xlu1 %7167, %v7498_v47   ;;  %v7501_v47 = vadd.high.f32.bf16 %v9314_v23, %v9740_v51  ;;  %v2643_v23 = vld [vmem:[%s11272_s13 + $0x20] sm:$0xff] }
 0x6e0   :  { %v9787_v26 = vpack.c.bf16 %v2644_v18, %v2643_v23  ;;  %v9806_v23 = vsel %vm3596_vm14, 1.0, %v11568_v37  ;;  %v9809_v18 = vsel %vm3597_vm15, 1.0, %v11568_v37 }
 0x6e1   :  { %11626 = vst [vmem:[#allocation79_spill] sm:$0xff] %v9806_v23  ;;  %11627 = vst [vmem:[#allocation80_spill] sm:$0xff] %v9809_v18 }
 0x6e2   :  { %11624 = vst [vmem:[#allocation77_spill] sm:$0xff] %v9787_v26  ;;  %6493 = vmatprep.subr.bf16.mxu0 %v9787_v26 }
 0x6e3   :  { %3729 = vperm.xlu1 %7167, %v7499_v58   ;;  %v9769_v58 = vsel %vm3356_vm12, 1.0, %v11568_v37  ;;  %6494 = vmatpush3.bf16.msra.mxu0 %v9787_v26  ;;  %v7503_v26 = vadd.high.f32.bf16 %v9335_v11, %v9803_v60 }
 0x6e7   :  { %7168 = vset.pattern.permute.xlu1 %v11481_v2 }
 0x6e8   :  { %3253 = vperm.xlu1 %7168, %v9388_v49  }
 0x6ec   :  { %7169 = vset.pattern.permute.xlu1 %v11483_v39 }
 0x6ed   :  { %3954 = vperm.xlu1 %7169, %v7500_v14   ;;  %v9772_v14 = vsel %vm3357_vm13, 1.0, %v11568_v37 }
 0x6ee   :  { %v7115_v1 = vpack.i.bf16 %v9772_v14, %v9769_v58 }
 0x6f0   :  { %7116 = vrot.lane.b32.xlu0 %v7115_v1, %s7581_s3 }
 0x6f1   :  { %7170 = vset.pattern.permute.xlu1 %v11481_v2 }
 0x6f2   :  { %3257 = vperm.xlu1 %7170, %v9321_v53  }
 0x6f6   :  { %3261 = vperm.xlu1 %7170, %v9326_v38  }
 0x6fa   :  { %7171 = vset.pattern.permute.xlu1 %v11483_v39 }
 0x6fb   :  { %3969 = vperm.xlu1 %7171, %v7501_v47   ;;  %v2641_v47 = vld [vmem:[%s11272_s13 + $0x10] sm:$0xff] }
 0x6fc   :  { %v9801_v1 = vpack.c.bf16 %v2642_v21, %v2641_v47  ;;  %v9821_v21 = vsel %vm3836_vm1, 1.0, %v11568_v37  ;;  %v9824_v47 = vsel %vm3837_vm2, 1.0, %v11568_v37 }
 0x6fd   :  { %11628 = vst [vmem:[#allocation81_spill] sm:$0xff] %v9821_v21  ;;  %11629 = vst [vmem:[#allocation82_spill] sm:$0xff] %v9824_v47  ;;  %v7135_v11 = vpack.i.bf16 %v9824_v47, %v9821_v21 }
 0x6fe   :  { %11625 = vst [vmem:[#allocation78_spill] sm:$0xff] %v9801_v1  ;;  %6495 = vmatprep.subr.bf16.mxu0 %v9801_v1 }
 0x6ff   :  { %4199 = vperm.xlu1 %7171, %v7502_v20   ;;  %v7125_v20 = vpack.i.bf16 %v9809_v18, %v9806_v23  ;;  %6496 = vmatpush3.bf16.msra.mxu0 %v9801_v1  ;;  %v2640_v1 = vld [vmem:[%s11272_s13 + $0x8] sm:$0xff] }
 0x701   :  { %7126 = vrot.lane.b32.xlu0 %v7125_v20, %s7581_s3  ;;  %v2639_v20 = vld [vmem:[%s11272_s13] sm:$0xff] }
 0x702   :  { %v9843_v29 = vpack.c.bf16 %v2640_v1, %v2639_v20  ;;  %v11633_v1 = vld [vmem:[#allocation38_spill] sm:$0xff] }
 0x703   :  { %4209 = vperm.xlu1 %7171, %v7503_v26   ;;  %v7504_v26 = vadd.high.f32.bf16 %v9411_v8, %v9828_v28  ;;  %v7505_v8 = vadd.high.f32.bf16 %v9356_v40, %v9826_v9  ;;  %v7047_v40 = vpop.permute.xlu0 %7046 }
 0x704   :  { %11630 = vst [vmem:[#allocation83_spill] sm:$0xff] %v9843_v29  ;;  %6497 = vmatprep.subr.bf16.mxu0 %v9843_v29  ;;  %v7507_v34 = vadd.high.f32.bf16 %v9430_v52, %v7047_v40  ;;  %v7508_v52 = vadd.low.f32.bf16 %v9365_v56, %v7052_v42 }
 0x705   :  { %7136 = vrot.lane.b32.xlu0 %v7135_v11, %s7581_s3  ;;  %6498 = vmatpush3.bf16.msra.mxu0 %v9843_v29  ;;  %v9859_v11 = vpop.permute.xlu1 %7061 }
 0x706   :  { %6569 = vmatprep.subr.bf16.mxu0 %v11633_v1 }
 0x707   :  { %3499 = vperm.xlu1 %7171, %v7504_v26   ;;  %v9903_v5 = vpop.permute.xlu0 %7056 }
 0x709   :  { %7146 = vrot.lane.b32.xlu0 %v7145_v54, %s7581_s3  ;;  %v9862_v20 = vpop.permute.xlu1 %7071 }
 0x70b   :  { %3509 = vperm.xlu1 %7171, %v7505_v8   ;;  %v7506_v8 = vadd.low.f32.bf16 %v9415_v55, %v7047_v40  ;;  %v7509_v40 = vadd.high.f32.bf16 %v9369_v31, %v7052_v42 }
 0x70d   :  { %3042 = vperm.xlu0 %7155, %v9248_v59   ;;  %v9867_v26 = vpop.permute.xlu1 %7081 }
 0x70f   :  { %7172 = vset.pattern.permute.xlu1 %v11545_v57 }
 0x710   :  { %3087 = vperm.xlu1 %7172, %v9469_v25  }
 0x711   :  { %3062 = vperm.xlu0 %7155, %v9379_v7   ;;  %v9872_v54 = vpop.permute.xlu1 %7091 }
 0x714   :  { %7173 = vset.pattern.permute.xlu1 %v11482_v4 }
 0x715   :  { %3072 = vperm.xlu0 %7155, %v9321_v53   ;;  %3169 = vperm.xlu1 %7173, %v9464_v3   ;;  %v9877_v29 = vpop.permute.xlu1 %7101 }
 0x719   :  { %3082 = vperm.xlu0 %7155, %v9464_v3   ;;  %7174 = vset.pattern.permute.xlu1 %v11483_v39  ;;  %v9881_v53 = vpop.permute.xlu1 %7111 }
 0x71a   :  { %3734 = vperm.xlu1 %7174, %v7506_v8  }
 0x71d   :  { %3092 = vperm.xlu0 %7155, %v9420_v15   ;;  %v9884_v44 = vpop.permute.xlu1 %7121 }
 0x71e   :  { %3739 = vperm.xlu1 %7174, %v7507_v34  }
 0x721   :  { %3102 = vperm.xlu0 %7155, %v9747_v46   ;;  %v9889_v55 = vpop.permute.xlu1 %7131 }
 0x722   :  { %7175 = vset.pattern.permute.xlu1 %v11545_v57  ;;  %11634 = vst [vmem:[#allocation38_spill] sm:$0xff] %v9889_v55 }
 0x723   :  { %3097 = vperm.xlu1 %7175, %v9425_v27  }
 0x725   :  { %3112 = vperm.xlu0 %7155, %v9527_v41   ;;  %v9896_v34 = vpop.permute.xlu1 %7141 }
 0x726   :  { %11635 = vst [vmem:[#allocation86_spill] sm:$0xff] %v9896_v34  ;;  %v11665_v34 = vld [vmem:[#allocation35_spill] sm:$0xff] }
 0x727   :  { %7176 = vset.pattern.permute.xlu1 %v11482_v4 }
 0x728   :  { %3177 = vperm.xlu1 %7176, %v9420_v15  }
 0x729   :  { %7185 = vset.pattern.permute.xlu0 %v11482_v4  ;;  %v9901_v8 = vpop.permute.xlu1 %7151 }
 0x72a   :  { %3141 = vperm.xlu0 %7185, %v9253_v0   ;;  %11636 = vst [vmem:[#allocation87_spill] sm:$0xff] %v9901_v8  ;;  %v11662_v8 = vld [vmem:[#allocation7_spill] sm:$0xff] }
 0x72c   :  { %7177 = vset.pattern.permute.xlu1 %v11483_v39 }
 0x72d   :  { %3744 = vperm.xlu1 %7177, %v7508_v52   ;;  %v9906_v61 = vpop.permute.xlu1 %3047 }
 0x72e   :  { %3145 = vperm.xlu0 %7185, %v9258_v33   ;;  %11637 = vst [vmem:[#allocation88_spill] sm:$0xff] %v9906_v61  ;;  %v7510_v33 = vadd.low.f32.bf16 %v9451_v24, %v9903_v5 }
 0x731   :  { %3749 = vperm.xlu1 %7177, %v7509_v40   ;;  %v9910_v0 = vpop.permute.xlu1 %3137  ;;  %v11645_v40 = vld [vmem:[#allocation32_spill] sm:$0xff] }
 0x732   :  { %3157 = vperm.xlu0 %7185, %v9388_v49   ;;  %11638 = vst [vmem:[#allocation89_spill] sm:$0xff] %v9910_v0  ;;  %v9927_v49 = vpop.permute.xlu0 %7066 }
 0x735   :  { %7178 = vset.pattern.permute.xlu1 %v11481_v2  ;;  %v9916_v56 = vpop.permute.xlu1 %3052 }
 0x736   :  { %3165 = vperm.xlu0 %7185, %v9326_v38   ;;  %3269 = vperm.xlu1 %7178, %v9469_v25   ;;  %11639 = vst [vmem:[#allocation90_spill] sm:$0xff] %v9916_v56  ;;  %v11658_v56 = vld [vmem:[#allocation41_spill] sm:$0xff] }
 0x739   :  { %v9920_v31 = vpop.permute.xlu1 %3057 }
 0x73a   :  { %3173 = vperm.xlu0 %7185, %v9469_v25   ;;  %7179 = vset.pattern.permute.xlu1 %v11483_v39  ;;  %11640 = vst [vmem:[#allocation91_spill] sm:$0xff] %v9920_v31  ;;  %v7511_v25 = vadd.high.f32.bf16 %v9401_v13, %v9859_v11  ;;  %v7513_v13 = vadd.high.f32.bf16 %v9443_v10, %v9862_v20 }
 0x73b   :  { %3974 = vperm.xlu1 %7179, %v7510_v33   ;;  %v11646_v33 = vld [vmem:[#allocation46_spill] sm:$0xff] }
 0x73d   :  { %v9925_v38 = vpop.permute.xlu1 %3149 }
 0x73e   :  { %3181 = vperm.xlu0 %7185, %v9425_v27   ;;  %11641 = vst [vmem:[#allocation92_spill] sm:$0xff] %v9925_v38 }
 0x73f   :  { %7180 = vset.pattern.permute.xlu1 %v11481_v2 }
 0x740   :  { %3273 = vperm.xlu1 %7180, %v9420_v15   ;;  %v7512_v15 = vadd.high.f32.bf16 %v9486_v43, %v9927_v49 }
 0x741   :  { %v9933_v24 = vpop.permute.xlu1 %3237 }
 0x742   :  { %3189 = vperm.xlu0 %7185, %v9752_v48   ;;  %11642 = vst [vmem:[#allocation93_spill] sm:$0xff] %v9933_v24  ;;  %v11659_v24 = vld [vmem:[#allocation8_spill] sm:$0xff] }
 0x744   :  { %3277 = vperm.xlu1 %7180, %v9425_v27   ;;  %v9942_v27 = vpop.permute.xlu0 %7076 }
 0x745   :  { %v9939_v42 = vpop.permute.xlu1 %3241  ;;  %v7514_v43 = vadd.high.f32.bf16 %v11646_v33, %v9942_v27 }
 0x746   :  { %3197 = vperm.xlu0 %7185, %v9532_v22   ;;  %11643 = vst [vmem:[#allocation94_spill] sm:$0xff] %v9939_v42 }
 0x748   :  { %7181 = vset.pattern.permute.xlu1 %v11483_v39 }
 0x749   :  { %3989 = vperm.xlu1 %7181, %v7511_v25   ;;  %v9946_v52 = vpop.permute.xlu1 %3474 }
 0x74a   :  { %7188 = vset.pattern.permute.xlu0 %v11481_v2  ;;  %11644 = vst [vmem:[#allocation95_spill] sm:$0xff] %v9946_v52  ;;  %v11654_v52 = vld [vmem:[#allocation36_spill] sm:$0xff] }
 0x74b   :  { %3233 = vperm.xlu0 %7188, %v9248_v59   ;;  %v11648_v59 = vld [vmem:[#allocation44_spill] sm:$0xff]  ;;  %v7518_v42 = vadd.low.f32.bf16 %v11654_v52, %v9740_v51 }
 0x74c   :  { %v7515_v19 = vadd.high.f32.bf16 %v11648_v59, %v9867_v26 }
 0x74d   :  { %4219 = vperm.xlu1 %7181, %v7512_v15   ;;  %v9952_v25 = vpop.permute.xlu1 %3484  ;;  %v9962_v15 = vld [vmem:[%s11271_s12] ss:$0 sm:$0xff] }
 0x74e   :  { %11647 = vst [vmem:[#allocation32_spill] sm:$0xff] %v9952_v25 }
 0x74f   :  { %3245 = vperm.xlu0 %7188, %v11645_v40  }
 0x751   :  { %4229 = vperm.xlu1 %7181, %v7513_v13   ;;  %v9957_v10 = vpop.permute.xlu1 %3489 }
 0x752   :  { %11649 = vst [vmem:[#allocation46_spill] sm:$0xff] %v9957_v10 }
 0x753   :  { %3249 = vperm.xlu0 %7188, %v9379_v7   ;;  %v11651_v7 = vld [vmem:[#allocation31_spill] sm:$0xff] }
 0x754   :  { %v7516_v40 = vadd.high.f32.bf16 %v11651_v7, %v9659_v12  ;;  %v11653_v12 = vld [vmem:[#allocation28_spill] sm:$0xff] }
 0x755   :  { %3519 = vperm.xlu1 %7181, %v7514_v43   ;;  %v9965_v13 = vpop.permute.xlu1 %3067  ;;  %v7517_v7 = vadd.high.f32.bf16 %v11653_v12, %v9701_v17 }
 0x756   :  { %11650 = vst [vmem:[#allocation44_spill] sm:$0xff] %v9965_v13 }
 0x757   :  { %3265 = vperm.xlu0 %7188, %v9464_v3  }
 0x759   :  { %3529 = vperm.xlu1 %7181, %v7515_v19   ;;  %v9975_v19 = vpop.permute.xlu1 %3153 }
 0x75a   :  { %11652 = vst [vmem:[#allocation31_spill] sm:$0xff] %v9975_v19 }
 0x75b   :  { %3281 = vperm.xlu0 %7188, %v9747_v46  }
 0x75d   :  { %7182 = vset.pattern.permute.xlu1 %v11545_v57  ;;  %v9995_v17 = vpop.permute.xlu1 %3714 }
 0x75e   :  { %3107 = vperm.xlu1 %7182, %v9752_v48   ;;  %11656 = vst [vmem:[#allocation28_spill] sm:$0xff] %v9995_v17 }
 0x75f   :  { %7190 = vset.pattern.permute.xlu0 %v11483_v39 }
 0x760   :  { %3479 = vperm.xlu0 %7190, %v7516_v40  }
 0x762   :  { %7183 = vset.pattern.permute.xlu1 %v11482_v4 }
 0x763   :  { %3185 = vperm.xlu1 %7183, %v9747_v46  }
 0x764   :  { %3959 = vperm.xlu0 %7190, %v7517_v7  }
 0x766   :  { %v6477_v33 = vpop.f32.mrf.mxu1 }
 0x767   :  { %v9970_v43 = vadd.f32 %v6477_v33, %v9962_v15  ;;  %v7087_v33 = vpop.permute.xlu0 %7086  ;;  %7184 = vset.pattern.permute.xlu1 %v11483_v39 }
 0x768   :  { %v2432_v3 = vpop.f32.mrf.mxu1  ;;  %v7521_v17 = vadd.low.f32.bf16 %v9710_v16, %v7087_v33  ;;  %3964 = vperm.xlu0 %7190, %v7518_v42  }
 0x769   :  { %v2497_v59 = vmul.f32 %v9970_v43, %v9970_v43  ;;  %v9980_v35 = vadd.f32 %v9962_v15, %v2432_v3  ;;  %v11655_v3 = vld [vmem:[#allocation34_spill] sm:$0xff] }
 0x76a   :  { %v6478_v37 = vpop.f32.mrf.mxu1  ;;  %v7519_v38 = vadd.low.f32.bf16 %v11655_v3, %v9774_v50  ;;  %v11657_v50 = vld [vmem:[#allocation6_spill] sm:$0xff]  ;;  %3754 = vperm.xlu1 %7184, %v7521_v17  }
 0x76b   :  { %v2513_v13 = vmul.f32 %v2497_v59, %v9970_v43  ;;  %v2495_v10 = vmul.f32 %v9980_v35, %v9980_v35  ;;  %v9988_v25 = vadd.f32 %v6478_v37, %v9962_v15  ;;  %v10004_v51 = vpop.permute.xlu0 %7096  ;;  %v7520_v3 = vadd.low.f32.bf16 %v11657_v50, %v9803_v60  ;;  %v10020_v50 = vpop.permute.xlu1 %3719  ;;  %v11661_v60 = vld [vmem:[#allocation42_spill] sm:$0xff] }
 0x76c   :  { %v2435_v19 = vpop.f32.mrf.mxu1  ;;  %11660 = vst [vmem:[#allocation36_spill] sm:$0xff] %v10020_v50  ;;  %4194 = vperm.xlu0 %7190, %v7519_v38  }
 0x76d   :  { %v2529_v40 = vmul.f32 0.044715, %v2513_v13  ;;  %v2511_v59 = vmul.f32 %v2495_v10, %v9980_v35  ;;  %v2498_v12 = vmul.f32 %v9988_v25, %v9988_v25  ;;  %v10001_v37 = vadd.f32 %v9962_v15, %v2435_v19 }
 0x76e   :  { %v6481_v52 = vpop.f32.mrf.mxu1 }
 0x76f   :  { %v2545_v13 = vadd.f32 %v2529_v40, %v9970_v43  ;;  %v2527_v10 = vmul.f32 0.044715, %v2511_v59  ;;  %v2514_v31 = vmul.f32 %v2498_v12, %v9988_v25  ;;  %v2496_v19 = vmul.f32 %v10001_v37, %v10001_v37 }
 0x770   :  { %v10014_v7 = vadd.f32 %v6481_v52, %v9962_v15  ;;  %v2448_v46 = vpop.f32.mrf.mxu1  ;;  %4204 = vperm.xlu0 %7190, %v7520_v3  }
 0x771   :  { %v2561_v16 = vmul.f32 0.7978846, %v2545_v13  ;;  %v2543_v40 = vadd.f32 %v2527_v10, %v9980_v35  ;;  %v2530_v59 = vmul.f32 0.044715, %v2514_v31  ;;  %v2512_v12 = vmul.f32 %v2496_v19, %v10001_v37  ;;  %v10034_v19 = vpop.permute.xlu0 %7106 }
 0x772   :  { %v2501_v52 = vmul.f32 %v10014_v7, %v10014_v7  ;;  %v10028_v61 = vadd.f32 %v9962_v15, %v2448_v46  ;;  %v6482_v0 = vpop.f32.mrf.mxu1  ;;  %v7525_v13 = vadd.high.f32.bf16 %v9713_v62, %v7087_v33  ;;  %v10044_v33 = vpop.permute.xlu1 %3077 }
 0x773   :  { %7260 = vtanh.f32 %v2561_v16  ;;  %v2559_v31 = vmul.f32 0.7978846, %v2543_v40  ;;  %v2546_v10 = vadd.f32 %v2530_v59, %v9988_v25  ;;  %v2528_v42 = vmul.f32 0.044715, %v2512_v12  ;;  %11663 = vst [vmem:[#allocation34_spill] sm:$0xff] %v10044_v33 }
 0x774   :  { %v2517_v50 = vmul.f32 %v2501_v52, %v10014_v7  ;;  %v2499_v46 = vmul.f32 %v10028_v61, %v10028_v61  ;;  %v10040_v30 = vadd.f32 %v6482_v0, %v9962_v15  ;;  %v2451_v36 = vpop.f32.mrf.mxu1  ;;  %3759 = vperm.xlu1 %7184, %v7525_v13  }
 0x775   :  { %7262 = vtanh.f32 %v2559_v31  ;;  %v2562_v17 = vmul.f32 0.7978846, %v2546_v10  ;;  %v2544_v16 = vadd.f32 %v2528_v42, %v10001_v37  ;;  %v10048_v40 = vadd.f32 %v9962_v15, %v2451_v36 }
 0x776   :  { %v2533_v59 = vmul.f32 0.044715, %v2517_v50  ;;  %v2515_v12 = vmul.f32 %v2499_v46, %v10028_v61  ;;  %v2502_v0 = vmul.f32 %v10040_v30, %v10040_v30  ;;  %v6485_v52 = vpop.f32.mrf.mxu1  ;;  %v10060_v46 = vpop.permute.xlu1 %3161 }
 0x777   :  { %7264 = vtanh.f32 %v2562_v17  ;;  %v2560_v62 = vmul.f32 0.7978846, %v2544_v16  ;;  %v2500_v31 = vmul.f32 %v10048_v40, %v10048_v40  ;;  %v10056_v10 = vadd.f32 %v6485_v52, %v9962_v15  ;;  %11664 = vst [vmem:[#allocation6_spill] sm:$0xff] %v10060_v46  ;;  %v10068_v16 = vpop.permute.xlu0 %7116 }
 0x778   :  { %v2549_v36 = vadd.f32 %v2533_v59, %v10014_v7  ;;  %v2531_v42 = vmul.f32 0.044715, %v2515_v12  ;;  %v2518_v38 = vmul.f32 %v2502_v0, %v10040_v30  ;;  %v2464_v50 = vpop.f32.mrf.mxu1  ;;  %7186 = vset.pattern.permute.xlu1 %v11545_v57 }
 0x779   :  { %7266 = vtanh.f32 %v2560_v62  ;;  %v2516_v33 = vmul.f32 %v2500_v31, %v10048_v40  ;;  %v2505_v13 = vmul.f32 %v10056_v10, %v10056_v10  ;;  %v10066_v17 = vadd.f32 %v9962_v15, %v2464_v50  ;;  %3117 = vperm.xlu1 %7186, %v9532_v22  }
 0x77a   :  { %v2565_v52 = vmul.f32 0.7978846, %v2549_v36  ;;  %v2547_v59 = vadd.f32 %v2531_v42, %v10028_v61  ;;  %v2534_v12 = vmul.f32 0.044715, %v2518_v38  ;;  %v6486_v0 = vpop.f32.mrf.mxu1  ;;  %v10082_v47 = vpop.permute.xlu1 %3724 }
 0x77b   :  { %v2532_v62 = vmul.f32 0.044715, %v2516_v33  ;;  %v2521_v31 = vmul.f32 %v2505_v13, %v10056_v10  ;;  %v2503_v50 = vmul.f32 %v10066_v17, %v10066_v17  ;;  %v10078_v3 = vadd.f32 %v6486_v0, %v9962_v15  ;;  %11666 = vst [vmem:[#allocation41_spill] sm:$0xff] %v10082_v47  ;;  %v10099_v55 = vpop.permute.xlu0 %7126 }
 0x77c   :  { %7268 = vtanh.f32 %v2565_v52  ;;  %v2563_v36 = vmul.f32 0.7978846, %v2547_v59  ;;  %v2550_v42 = vadd.f32 %v2534_v12, %v10040_v30  ;;  %v2467_v38 = vpop.f32.mrf.mxu1  ;;  %v11667_v0 = vadd.low.f32.bf16 %v11659_v24, %v9828_v28  ;;  %v11668_v12 = vld [vmem:[#allocation45_spill] sm:$0xff]  ;;  %11669 = vst [vmem:[#allocation8_spill] sm:$0xff] %v10099_v55 }
 0x77d   :  { %v2548_v46 = vadd.f32 %v2532_v62, %v10048_v40  ;;  %v2537_v33 = vmul.f32 0.044715, %v2521_v31  ;;  %v2519_v13 = vmul.f32 %v2503_v50, %v10066_v17  ;;  %v2506_v57 = vmul.f32 %v10078_v3, %v10078_v3  ;;  %7187 = vset.pattern.permute.xlu1 %v11482_v4 }
 0x77e   :  { %3494 = vperm.xlu0 %7190, %v11667_v0   ;;  %7270 = vtanh.f32 %v2563_v36  ;;  %v2566_v22 = vmul.f32 0.7978846, %v2550_v42  ;;  %v10092_v52 = vadd.f32 %v9962_v15, %v2467_v38  ;;  %v6489_v59 = vpop.f32.mrf.mxu1  ;;  %v7528_v47 = vadd.low.f32.bf16 %v11668_v12, %v9872_v54  ;;  %3193 = vperm.xlu1 %7187, %v9527_v41  }
 0x77f   :  { %v2564_v62 = vmul.f32 0.7978846, %v2548_v46  ;;  %v2553_v31 = vadd.f32 %v2537_v33, %v10056_v10  ;;  %v2535_v50 = vmul.f32 0.044715, %v2519_v13  ;;  %v2522_v21 = vmul.f32 %v2506_v57, %v10078_v3  ;;  %v11670_v46 = vld [vmem:[#allocation43_spill] sm:$0xff]  ;;  %v10109_v33 = vpop.permute.xlu1 %3729 }
 0x780   :  { %v7261_v28 = vpop.eup %7260  ;;  %7272 = vtanh.f32 %v2566_v22  ;;  %v2504_v24 = vmul.f32 %v10092_v52, %v10092_v52  ;;  %v10104_v36 = vadd.f32 %v6489_v59, %v9962_v15  ;;  %v2480_v42 = vpop.f32.mrf.mxu1  ;;  %v7529_v38 = vadd.high.f32.bf16 %v11670_v46, %v9903_v5  ;;  %11671 = vst [vmem:[#allocation42_spill] sm:$0xff] %v10109_v33 }
 0x781   :  { %7274 = vtanh.f32 %v2564_v62  ;;  %v2569_v4 = vmul.f32 0.7978846, %v2553_v31  ;;  %v2551_v57 = vadd.f32 %v2535_v50, %v10066_v17  ;;  %v11672_v13 = vadd.low.f32.bf16 %v11658_v56, %v9826_v9 }
 0x782   :  { %v7263_v0 = vpop.eup %7262  ;;  %v2538_v22 = vmul.f32 0.044715, %v2522_v21  ;;  %v2520_v59 = vmul.f32 %v2504_v24, %v10092_v52  ;;  %v2509_v12 = vmul.f32 %v10104_v36, %v10104_v36  ;;  %v10119_v5 = vadd.f32 %v9962_v15, %v2480_v42  ;;  %v6490_v41 = vpop.f32.mrf.mxu1  ;;  %7189 = vset.pattern.permute.xlu1 %v11483_v39 }
 0x783   :  { %3504 = vperm.xlu0 %7190, %v11672_v13   ;;  %v2593_v46 = vadd.f32 1.0, %v7261_v28  ;;  %v2591_v62 = vadd.f32 1.0, %v7263_v0  ;;  %7276 = vtanh.f32 %v2569_v4  ;;  %v2567_v31 = vmul.f32 0.7978846, %v2551_v57  ;;  %v10126_v24 = vpop.permute.xlu1 %3253  ;;  %v11674_v28 = vld [vmem:[#allocation11_spill] sm:$0xff]  ;;  %3764 = vperm.xlu1 %7189, %v7528_v47   ;;  %v10130_v57 = vpop.permute.xlu0 %7136 }
 0x784   :  { %v7265_v50 = vpop.eup %7264  ;;  %v2554_v33 = vadd.f32 %v2538_v22, %v10078_v3  ;;  %v2536_v9 = vmul.f32 0.044715, %v2520_v59  ;;  %v2525_v56 = vmul.f32 %v2509_v12, %v10104_v36  ;;  %v2507_v21 = vmul.f32 %v10119_v5, %v10119_v5  ;;  %11673 = vst [vmem:[#allocation7_spill] sm:$0xff] %v10126_v24  ;;  %v2483_v18 = vpop.f32.mrf.mxu1 }
 0x785   :  { %v2594_v42 = vadd.f32 1.0, %v7265_v50  ;;  %7278 = vtanh.f32 %v2567_v31  ;;  %v7530_v4 = vadd.low.f32.bf16 %v11674_v28, %v9927_v49  ;;  %v2607_v23 = vmul.f32 0.5, %v2591_v62 }
 0x786   :  { %v7267_v13 = vpop.eup %7266  ;;  %v2570_v0 = vmul.f32 0.7978846, %v2554_v33  ;;  %v2552_v22 = vadd.f32 %v2536_v9, %v10092_v52  ;;  %v2541_v59 = vmul.f32 0.044715, %v2525_v56  ;;  %v2523_v12 = vmul.f32 %v2507_v21, %v10119_v5 }
 0x787   :  { %3979 = vperm.xlu0 %7190, %v7529_v38   ;;  %v2610_v55 = vmul.f32 0.5, %v2594_v42  ;;  %v2592_v24 = vadd.f32 1.0, %v7267_v13  ;;  %v10135_v31 = vadd.f32 %v6490_v41, %v9962_v15  ;;  %v2609_v50 = vmul.f32 0.5, %v2593_v46  ;;  %v10137_v38 = vpop.permute.xlu1 %3954 }
 0x788   :  { %7280 = vtanh.f32 %v2570_v0  ;;  %v2568_v49 = vmul.f32 0.7978846, %v2552_v22  ;;  %v2539_v47 = vmul.f32 0.044715, %v2523_v12  ;;  %v2557_v9 = vadd.f32 %v2541_v59, %v10104_v36 }
 0x789   :  { %v7269_v28 = vpop.eup %7268  ;;  %v2608_v33 = vmul.f32 0.5, %v2592_v24  ;;  %v2510_v56 = vmul.f32 %v10135_v31, %v10135_v31  ;;  %v10143_v62 = vadd.f32 %v9962_v15, %v2483_v18  ;;  %v11675_v41 = vadd.low.f32.bf16 %v11661_v60, %v9859_v11  ;;  %v10158_v15 = vpop.permute.xlu0 %7146 }
 0x78a   :  { %v11676_v46 = vadd.high.f32.bf16 %v11665_v34, %v9872_v54  ;;  %v2626_v21 = vmul.f32 %v2610_v55, %v9988_v25  ;;  %7282 = vtanh.f32 %v2568_v49  ;;  %v2555_v24 = vadd.f32 %v2539_v47, %v10119_v5 }
 0x78b   :  { %3984 = vperm.xlu0 %7190, %v11675_v41   ;;  %v7271_v42 = vpop.eup %7270  ;;  %v2623_v13 = vmul.f32 %v2607_v23, %v9980_v35  ;;  %v2624_v0 = vmul.f32 %v2608_v33, %v10001_v37  ;;  %v2526_v18 = vmul.f32 %v2510_v56, %v10135_v31  ;;  %v2508_v11 = vmul.f32 %v10143_v62, %v10143_v62  ;;  %v10161_v25 = vpop.permute.xlu1 %3257 }
 0x78c   :  { %3769 = vperm.xlu1 %7189, %v11676_v46   ;;  %v2625_v54 = vmul.f32 %v2609_v50, %v9970_v43  ;;  %v2597_v34 = vadd.f32 1.0, %v7269_v28  ;;  %v2595_v60 = vadd.f32 1.0, %v7271_v42  ;;  %v2571_v55 = vmul.f32 0.7978846, %v2555_v24  ;;  %v11677_v46 = vld [vmem:[#allocation33_spill] sm:$0xff] }
 0x78d   :  { %v7273_v22 = vpop.eup %7272  ;;  %v2573_v59 = vmul.f32 0.7978846, %v2557_v9  ;;  %v2542_v12 = vmul.f32 0.044715, %v2526_v18  ;;  %v2524_v35 = vmul.f32 %v2508_v11, %v10143_v62  ;;  %v2647_v23 = vpack.c.bf16 %v2624_v0, %v2623_v13  ;;  %v10179_v0 = vpop.permute.xlu0 %3042 }
 0x78e   :  { %v7275_v37 = vpop.eup %7274  ;;  %v2648_v49 = vpack.c.bf16 %v2626_v21, %v2625_v54  ;;  %v2598_v47 = vadd.f32 1.0, %v7273_v22  ;;  %v7531_v43 = vadd.low.f32.bf16 %v9723_v63, %v10004_v51  ;;  %v2611_v50 = vmul.f32 0.5, %v2595_v60 }
 0x78f   :  { %4214 = vperm.xlu0 %7190, %v7530_v4   ;;  %v2596_v28 = vadd.f32 1.0, %v7275_v37  ;;  %v2558_v33 = vadd.f32 %v2542_v12, %v10135_v31  ;;  %v2540_v9 = vmul.f32 0.044715, %v2524_v35  ;;  %6499 = vmatprep.mubr.msk.bf16.mxu0 %vm2659_vm5, %v2647_v23  ;;  %v2613_v41 = vmul.f32 0.5, %v2597_v34  ;;  %v10173_v24 = vpop.permute.xlu1 %3261 }
 0x790   :  { %7191 = vset.pattern.permute.xlu1 %v11481_v2  ;;  %v7277_v56 = vpop.eup %7276  ;;  %v2614_v4 = vmul.f32 0.5, %v2598_v47  ;;  %7284 = vtanh.f32 %v2571_v55  ;;  %6500 = vmatmul.mubr.msk.bf16.vlgmr.msra.gmra.mxu0 %vm2659_vm5, %v2648_v49  ;;  %v7532_v21 = vadd.low.f32.bf16 %v11677_v46, %v9942_v27  ;;  %v11678_v13 = vadd.low.f32.bf16 %v11662_v8, %v9862_v20  ;;  %v11679_v27 = vld [vmem:[#allocation40_spill] sm:$0xff] }
 0x791   :  { %3285 = vperm.xlu1 %7191, %v9752_v48   ;;  %v2612_v63 = vmul.f32 0.5, %v2596_v28  ;;  %7286 = vtanh.f32 %v2573_v59  ;;  %v2574_v48 = vmul.f32 0.7978846, %v2558_v33  ;;  %v2556_v42 = vadd.f32 %v2540_v9, %v10143_v62  ;;  %6570 = vmatpush3.bf16.msra.mxu0 %v11633_v1  ;;  %v10192_v35 = vpop.permute.xlu0 %3062 }
 0x792   :  { %v7279_v18 = vpop.eup %7278  ;;  %v2630_v11 = vmul.f32 %v2614_v4, %v10040_v30  ;;  %6571 = vmatprep.subr.bf16.mxu0 %v11679_v27  ;;  %v2627_v54 = vmul.f32 %v2611_v50, %v10028_v61  ;;  %v2629_v20 = vmul.f32 %v2613_v41, %v10014_v7  ;;  %v2601_v22 = vadd.f32 1.0, %v7277_v56  ;;  %v11680_v30 = vld [vmem:[#allocation9_spill] sm:$0xff] }
 0x793   :  { %4224 = vperm.xlu0 %7190, %v11678_v13   ;;  %v2628_v34 = vmul.f32 %v2612_v63, %v10048_v40  ;;  %7288 = vtanh.f32 %v2574_v48  ;;  %v2599_v8 = vadd.f32 1.0, %v7279_v18  ;;  %v2572_v60 = vmul.f32 0.7978846, %v2556_v42  ;;  %v10188_v55 = vpop.permute.xlu1 %3969  ;;  %v7405_v41 = vld [vmem:[%s11447_s1 + $0xf8] sm:$0xff] }
 0x794   :  { %v7533_v59 = vadd.low.f32.bf16 %v11680_v30, %v9867_v26  ;;  %v2650_v40 = vpack.c.bf16 %v2630_v11, %v2629_v20  ;;  %v7404_v26 = vld [vmem:[%s11447_s1 + $0xf0] sm:$0xff]  ;;  %v7534_v50 = vadd.high.f32.bf16 %v9726_v45, %v10004_v51  ;;  %v11683_v30 = vld [vmem:[#allocation49_spill] sm:$0xff] }
 0x795   :  { %7192 = vset.pattern.permute.xlu1 %v11483_v39  ;;  %v7281_v1 = vpop.eup %7280  ;;  %v2649_v12 = vpack.c.bf16 %v2628_v34, %v2627_v54  ;;  %6572 = vmatpush3.bf16.msra.mxu0 %v11679_v27  ;;  %7290 = vtanh.f32 %v2572_v60  ;;  %v2615_v7 = vmul.f32 0.5, %v2599_v8  ;;  %v10205_v28 = vpop.permute.xlu0 %3072  ;;  %v11681_v51 = vld [vmem:[#allocation47_spill] sm:$0xff]  ;;  %v7537_v54 = vadd.low.f32.bf16 %v9735_v32, %v10034_v19 }
 0x796   :  { %3994 = vperm.xlu1 %7192, %v7531_v43   ;;  %v2602_v61 = vadd.f32 1.0, %v7281_v1  ;;  %v2617_v43 = vmul.f32 0.5, %v2601_v22 }
 0x797   :  { %3514 = vperm.xlu0 %7190, %v7532_v21   ;;  %v7283_v23 = vpop.eup %7282  ;;  %6503 = vmatprep.mubr.msk.bf16.mxu0 %vm2659_vm5, %v2649_v12  ;;  %v10201_v47 = vpop.permute.xlu1 %4199  ;;  %v2631_v9 = vmul.f32 %v2615_v7, %v10066_v17  ;;  %v7535_v21 = vadd.low.f32.bf16 %v11681_v51, %v9877_v29  ;;  %v11682_v17 = vld [vmem:[#allocation48_spill] sm:$0xff]  ;;  %v11691_v51 = vld [vmem:[#allocation38_spill] sm:$0xff] }
 0x798   :  { %v2618_v37 = vmul.f32 0.5, %v2602_v61  ;;  %v2600_v49 = vadd.f32 1.0, %v7283_v23  ;;  %6504 = vmatmul.mubr.msk.bf16.gmra.mxu0 %vm2659_vm5, %v2650_v40  ;;  %v2633_v45 = vmul.f32 %v2617_v43, %v10056_v10  ;;  %v11684_v61 = vld [vmem:[#allocation50_spill] sm:$0xff] }
 0x799   :  { %v10218_v63 = vpop.permute.xlu0 %3082  ;;  %v7540_v40 = vadd.high.f32.bf16 %v11684_v61, %v9881_v53 }
 0x79a   :  { %7193 = vset.pattern.permute.xlu1 %v11481_v2  ;;  %v2616_v2 = vmul.f32 0.5, %v2600_v49  ;;  %v2634_v33 = vmul.f32 %v2618_v37, %v10078_v3  ;;  %v7541_v49 = vadd.low.f32.bf16 %v9769_v58, %v10068_v16  ;;  %v11687_v58 = vld [vmem:[#allocation52_spill] sm:$0xff] }
 0x79b   :  { %3289 = vperm.xlu1 %7193, %v7404_v26   ;;  %3524 = vperm.xlu0 %7190, %v7533_v59   ;;  %v10213_v4 = vpop.permute.xlu1 %4209  ;;  %v7539_v59 = vadd.low.f32.bf16 %v11683_v30, %v9881_v53  ;;  %v7542_v53 = vadd.high.f32.bf16 %v9772_v14, %v10068_v16  ;;  %v11688_v14 = vld [vmem:[#allocation8_spill] sm:$0xff]  ;;  %v11689_v16 = vld [vmem:[#allocation79_spill] sm:$0xff] }
 0x79c   :  { %v2632_v56 = vmul.f32 %v2616_v2, %v10092_v52  ;;  %v7536_v52 = vadd.high.f32.bf16 %v11682_v17, %v9877_v29  ;;  %v2652_v42 = vpack.c.bf16 %v2634_v33, %v2633_v45  ;;  %v7538_v29 = vadd.high.f32.bf16 %v9738_v6, %v10034_v19 }
 0x79d   :  { %v7285_v46 = vpop.eup %7284  ;;  %v10229_v34 = vpop.permute.xlu0 %3092 }
 0x79e   :  { %v7287_v3 = vpop.eup %7286  ;;  %v2651_v48 = vpack.c.bf16 %v2632_v56, %v2631_v9  ;;  %v2603_v18 = vadd.f32 1.0, %v7285_v46  ;;  %v7545_v9 = vadd.low.f32.bf16 %v11689_v16, %v11688_v14  ;;  %v11690_v56 = vld [vmem:[#allocation80_spill] sm:$0xff] }
 0x79f   :  { %3293 = vperm.xlu1 %7193, %v7405_v41   ;;  %3999 = vperm.xlu0 %7190, %v7534_v50   ;;  %v10224_v11 = vpop.permute.xlu1 %3499  ;;  %v2605_v10 = vadd.f32 1.0, %v7287_v3  ;;  %v7546_v41 = vadd.high.f32.bf16 %v11690_v56, %v11688_v14  ;;  %v11713_v56 = vld [vmem:[#allocation12_spill] sm:$0xff] }
 0x7a0   :  { %v7289_v13 = vpop.eup %7288  ;;  %6507 = vmatprep.mubr.msk.bf16.mxu0 %vm2659_vm5, %v2651_v48  ;;  %v2619_v60 = vmul.f32 0.5, %v2603_v18  ;;  %v11696_v18 = vld [vmem:[#allocation82_spill] sm:$0xff] }
 0x7a1   :  { %v2606_v27 = vadd.f32 1.0, %v7289_v13  ;;  %6508 = vmatmul.mubr.msk.bf16.gmra.mxu0 %vm2659_vm5, %v2652_v42  ;;  %v2621_v22 = vmul.f32 0.5, %v2605_v10  ;;  %v10237_v12 = vpop.permute.xlu0 %3102  ;;  %v11695_v42 = vld [vmem:[#allocation81_spill] sm:$0xff]  ;;  %v7550_v10 = vadd.high.f32.bf16 %v11696_v18, %v10130_v57 }
 0x7a2   :  { %v7291_v20 = vpop.eup %7290  ;;  %v2635_v19 = vmul.f32 %v2619_v60, %v10119_v5  ;;  %v7549_v13 = vadd.low.f32.bf16 %v11695_v42, %v10130_v57  ;;  %v11700_v60 = vld [vmem:[#allocation56_spill] sm:$0xff]  ;;  %v11717_v42 = vld [vmem:[#allocation23_spill] sm:$0xff] }
 0x7a3   :  { %7194 = vset.pattern.permute.xlu1 %v11483_v39  ;;  %4004 = vperm.xlu0 %7190, %v7535_v21   ;;  %v2622_v8 = vmul.f32 0.5, %v2606_v27  ;;  %v2604_v39 = vadd.f32 1.0, %v7291_v20  ;;  %v10233_v1 = vpop.permute.xlu1 %3509  ;;  %v2637_v37 = vmul.f32 %v2621_v22, %v10104_v36  ;;  %v7544_v36 = vadd.high.f32.bf16 %v11687_v58, %v9884_v44  ;;  %v11692_v21 = vld [vmem:[#allocation53_spill] sm:$0xff]  ;;  %v11699_v20 = vld [vmem:[#allocation55_spill] sm:$0xff] }
 0x7a4   :  { %4009 = vperm.xlu1 %7194, %v7536_v52   ;;  %v7547_v3 = vadd.low.f32.bf16 %v11692_v21, %v11691_v51  ;;  %v11715_v21 = vld [vmem:[#allocation13_spill] sm:$0xff] }
 0x7a5   :  { %v2620_v32 = vmul.f32 0.5, %v2604_v39  ;;  %v2638_v6 = vmul.f32 %v2622_v8, %v10135_v31  ;;  %v10249_v26 = vpop.permute.xlu0 %3112 }
 0x7a6   :  { %11685 = vst [vmem:[#allocation35_spill] sm:$0xff] %v10249_v26 }
 0x7a7   :  { %4234 = vperm.xlu0 %7190, %v7537_v54   ;;  %v2636_v23 = vmul.f32 %v2620_v32, %v10143_v62  ;;  %v10244_v7 = vpop.permute.xlu1 %3087  ;;  %v2654_v31 = vpack.c.bf16 %v2638_v6, %v2637_v37  ;;  %v11686_v62 = vld [vmem:[#allocation51_spill] sm:$0xff]  ;;  %v11702_v32 = vld [vmem:[#allocation85_spill] sm:$0xff] }
 0x7a8   :  { %4239 = vperm.xlu1 %7194, %v7538_v29   ;;  %v7543_v50 = vadd.low.f32.bf16 %v11686_v62, %v9884_v44  ;;  %v11693_v44 = vld [vmem:[#allocation54_spill] sm:$0xff]  ;;  %v7554_v61 = vadd.high.f32.bf16 %v11702_v32, %v10158_v15  ;;  %v11721_v32 = vld [vmem:[#allocation91_spill] sm:$0xff] }
 0x7a9   :  { %v2653_v43 = vpack.c.bf16 %v2636_v23, %v2635_v19  ;;  %v3142_v2 = vpop.permute.xlu0 %3141  ;;  %v7548_v17 = vadd.high.f32.bf16 %v11693_v44, %v11691_v51  ;;  %v11698_v29 = vld [vmem:[#allocation86_spill] sm:$0xff]  ;;  %v11704_v19 = vld [vmem:[#allocation87_spill] sm:$0xff]  ;;  %v11705_v23 = vld [vmem:[#allocation57_spill] sm:$0xff] }
 0x7aa   :  { %v7551_v8 = vadd.low.f32.bf16 %v11699_v20, %v11698_v29  ;;  %v7552_v39 = vadd.high.f32.bf16 %v11700_v60, %v11698_v29  ;;  %v7555_v37 = vadd.low.f32.bf16 %v11705_v23, %v11704_v19  ;;  %v11719_v20 = vld [vmem:[#allocation89_spill] sm:$0xff]  ;;  %v11720_v60 = vld [vmem:[#allocation90_spill] sm:$0xff] }
 0x7ab   :  { %4244 = vperm.xlu0 %7190, %v7539_v59   ;;  %6511 = vmatprep.mubr.msk.bf16.mxu0 %vm2659_vm5, %v2653_v43  ;;  %v10254_v5 = vpop.permute.xlu1 %3169  ;;  %v11701_v59 = vld [vmem:[#allocation84_spill] sm:$0xff] }
 0x7ac   :  { %4249 = vperm.xlu1 %7194, %v7540_v40   ;;  %6512 = vmatmul.mubr.msk.bf16.gmra.mxu0 %vm2659_vm5, %v2654_v31  ;;  %v7553_v57 = vadd.low.f32.bf16 %v11701_v59, %v10158_v15  ;;  %v3120_v59 = vmul.f32 %v10179_v0, %v11713_v56 }
 0x7ad   :  { %v3146_v46 = vpop.permute.xlu0 %3145 }
 0x7af   :  { %3534 = vperm.xlu0 %7190, %v7541_v49   ;;  %v10261_v33 = vpop.permute.xlu1 %3734  ;;  %v11706_v49 = vld [vmem:[#allocation58_spill] sm:$0xff] }
 0x7b0   :  { %3539 = vperm.xlu1 %7194, %v7542_v53   ;;  %v7556_v43 = vadd.high.f32.bf16 %v11706_v49, %v11704_v19  ;;  %v11722_v19 = vld [vmem:[#allocation92_spill] sm:$0xff] }
 0x7b1   :  { %v10273_v52 = vpop.permute.xlu0 %3157  ;;  %v3203_v23 = vmul.f32 %v11722_v19, %v11715_v21 }
 0x7b3   :  { %3544 = vperm.xlu0 %7190, %v7543_v50   ;;  %v10267_v45 = vpop.permute.xlu1 %3739  ;;  %v11710_v50 = vmov 0  }
 0x7b4   :  { %3549 = vperm.xlu1 %7194, %v7544_v36  }
 0x7b5   :  { %v10281_v27 = vpop.permute.xlu0 %3165 }
 0x7b7   :  { %3774 = vperm.xlu0 %7190, %v7545_v9   ;;  %v10275_v48 = vpop.permute.xlu1 %3097 }
 0x7b8   :  { %3779 = vperm.xlu1 %7194, %v7546_v41   ;;  %11694 = vst [vmem:[#allocation45_spill] sm:$0xff] %v10275_v48  ;;  %v11714_v41 = vld [vmem:[#allocation88_spill] sm:$0xff] }
 0x7b9   :  { %v10289_v22 = vpop.permute.xlu0 %3173  ;;  %v3121_v51 = vmul.f32 %v11714_v41, %v11713_v56 }
 0x7bb   :  { %3784 = vperm.xlu0 %7190, %v7547_v3   ;;  %v10283_v54 = vpop.permute.xlu1 %3177  ;;  %v3201_v3 = vmul.f32 %v3142_v2, %v11715_v21  ;;  %v3202_v2 = vmul.f32 %v3146_v46, %v11715_v21 }
 0x7bc   :  { %3789 = vperm.xlu1 %7194, %v7548_v17   ;;  %11697 = vst [vmem:[#allocation43_spill] sm:$0xff] %v10283_v54 }
 0x7bd   :  { %v10297_v40 = vpop.permute.xlu0 %3181 }
 0x7be   :  { %11703 = vst [vmem:[#allocation11_spill] sm:$0xff] %v10297_v40  ;;  %v11742_v40 = vld [vmem:[#allocation21_spill] sm:$0xff] }
 0x7bf   :  { %4014 = vperm.xlu0 %7190, %v7549_v13   ;;  %v10291_v30 = vpop.permute.xlu1 %3744  ;;  %v11718_v13 = vld [vmem:[#allocation93_spill] sm:$0xff] }
 0x7c0   :  { %4019 = vperm.xlu1 %7194, %v7550_v10   ;;  %v3297_v18 = vmul.f32 %v11718_v13, %v11717_v42  ;;  %v3217_v10 = vadd.f32 %v3201_v3, %v3121_v51  ;;  %v10351_v13 = vld [vmem:[%s11265_s6] ss:$0 sm:$0xff] }
 0x7c1   :  { %v10305_v53 = vpop.permute.xlu0 %3189 }
 0x7c2   :  { %11707 = vst [vmem:[#allocation33_spill] sm:$0xff] %v10305_v53 }
 0x7c3   :  { %4024 = vperm.xlu0 %7190, %v7551_v8   ;;  %v10299_v6 = vpop.permute.xlu1 %3749  ;;  %v3200_v8 = vmul.f32 %v11719_v20, %v11715_v21 }
 0x7c4   :  { %4029 = vperm.xlu1 %7194, %v7552_v39   ;;  %v3122_v39 = vmul.f32 %v11720_v60, %v11713_v56  ;;  %v11725_v60 = vld [vmem:[#allocation22_spill] sm:$0xff] }
 0x7c5   :  { %v10309_v15 = vpop.permute.xlu0 %3197  ;;  %v3216_v41 = vadd.f32 %v3200_v8, %v3120_v59  ;;  %v11727_v59 = vld [vmem:[#allocation36_spill] sm:$0xff] }
 0x7c6   :  { %11709 = vst [vmem:[#allocation9_spill] sm:$0xff] %v10309_v15  ;;  %v3218_v51 = vadd.f32 %v3202_v2, %v3122_v39  ;;  %v11726_v39 = vld [vmem:[#allocation16_spill] sm:$0xff] }
 0x7c7   :  { %4254 = vperm.xlu0 %7190, %v7553_v57   ;;  %v10307_v31 = vpop.permute.xlu1 %3269 }
 0x7c8   :  { %4259 = vperm.xlu1 %7194, %v7554_v61   ;;  %11708 = vst [vmem:[#allocation40_spill] sm:$0xff] %v10307_v31  ;;  %v3123_v61 = vmul.f32 %v11721_v32, %v11713_v56  ;;  %v11741_v31 = vld [vmem:[#allocation7_spill] sm:$0xff] }
 0x7c9   :  { %v3234_v58 = vpop.permute.xlu0 %3233 }
 0x7ca   :  { %v3296_v3 = vmul.f32 %v3234_v58, %v11717_v42  ;;  %v3219_v0 = vadd.f32 %v3203_v23, %v3123_v61  ;;  %v3793_v58 = vmul.f32 %v11727_v59, %v11726_v39 }
 0x7cb   :  { %4264 = vperm.xlu0 %7190, %v7555_v37   ;;  %v10311_v62 = vpop.permute.xlu1 %3974  ;;  %v3313_v37 = vadd.f32 %v3297_v18, %v3217_v10 }
 0x7cc   :  { %4269 = vperm.xlu1 %7194, %v7556_v43   ;;  %v11723_v43 = vld [vmem:[#allocation94_spill] sm:$0xff]  ;;  %v3312_v8 = vadd.f32 %v3296_v3, %v3216_v41 }
 0x7cd   :  { %v3246_v14 = vpop.permute.xlu0 %3245  ;;  %v3329_v20 = vadd.f32 %v10351_v13, %v3313_v37  ;;  %v11730_v37 = vld [vmem:[#allocation32_spill] sm:$0xff] }
 0x7ce   :  { %v3299_v46 = vmul.f32 %v3246_v14, %v11717_v42  ;;  %v3554_v26 = vmul.f32 %v11730_v37, %v11725_v60  ;;  %v11735_v37 = vld [vmem:[#allocation31_spill] sm:$0xff] }
 0x7cf   :  { %v10314_v36 = vpop.permute.xlu1 %3273 }
 0x7d0   :  { %7195 = vset.pattern.permute.xlu1 %v11710_v50  ;;  %11711 = vst [vmem:[#allocation47_spill] sm:$0xff] %v10314_v36  ;;  %v3298_v50 = vmul.f32 %v11723_v43, %v11717_v42  ;;  %v3315_v2 = vadd.f32 %v3299_v46, %v3219_v0  ;;  %v11729_v43 = vld [vmem:[#allocation95_spill] sm:$0xff] }
 0x7d1   :  { %v10318_v9 = vpop.permute.xlu0 %3249  ;;  %v3552_v15 = vmul.f32 %v11729_v43, %v11725_v60 }
 0x7d2   :  { %v3314_v19 = vadd.f32 %v3298_v50, %v3218_v51  ;;  %v11731_v50 = vld [vmem:[#allocation46_spill] sm:$0xff]  ;;  %v11732_v51 = vld [vmem:[#allocation44_spill] sm:$0xff]  ;;  %v3331_v0 = vadd.f32 %v10351_v13, %v3315_v2  ;;  %v11739_v2 = vld [vmem:[#allocation41_spill] sm:$0xff] }
 0x7d3   :  { %v10316_v16 = vpop.permute.xlu1 %3277  ;;  %v3555_v41 = vmul.f32 %v11731_v50, %v11725_v60  ;;  %v3125_v3 = vmul.f32 %v11732_v51, %v11713_v56 }
 0x7d4   :  { %11712 = vst [vmem:[#allocation48_spill] sm:$0xff] %v10316_v16  ;;  %v3330_v53 = vadd.f32 %v10351_v13, %v3314_v19  ;;  %v11736_v19 = vld [vmem:[#allocation28_spill] sm:$0xff]  ;;  %v11738_v16 = vld [vmem:[#allocation6_spill] sm:$0xff] }
 0x7d5   :  { %v10325_v17 = vpop.permute.xlu0 %3265  ;;  %v3206_v51 = vmul.f32 %v11738_v16, %v11715_v21  ;;  %v3205_v16 = vmul.f32 %v10273_v52, %v11715_v21 }
 0x7d6   :  { %11716 = vst [vmem:[#allocation49_spill] sm:$0xff] %v10325_v17 }
 0x7d7   :  { %v10323_v44 = vpop.permute.xlu1 %3989 }
 0x7d9   :  { %v3282_v57 = vpop.permute.xlu0 %3281 }
 0x7db   :  { %v10329_v29 = vpop.permute.xlu1 %4219 }
 0x7dd   :  { %v3480_v18 = vpop.permute.xlu0 %3479 }
 0x7de   :  { %v3553_v32 = vmul.f32 %v3480_v18, %v11725_v60  ;;  %v3328_v18 = vadd.f32 %v10351_v13, %v3312_v8  ;;  %v3792_v8 = vmul.f32 %v11736_v19, %v11726_v39 }
 0x7df   :  { %v10342_v49 = vpop.permute.xlu1 %4229 }
 0x7e0   :  { %v3569_v61 = vadd.f32 %v3553_v32, %v3329_v20  ;;  %v11733_v20 = vld [vmem:[#allocation17_spill] sm:$0xff]  ;;  %v3568_v36 = vadd.f32 %v3552_v15, %v3328_v18  ;;  %v3571_v15 = vadd.f32 %v3555_v41, %v3331_v0  ;;  %v3126_v0 = vmul.f32 %v10205_v28, %v11713_v56 }
 0x7e1   :  { %v3960_v14 = vpop.permute.xlu0 %3959  ;;  %v4032_v19 = vmul.f32 %v10137_v38, %v11733_v20  ;;  %v3207_v38 = vmul.f32 %v10281_v27, %v11715_v21 }
 0x7e2   :  { %v3809_v46 = vadd.f32 %v3793_v58, %v3569_v61  ;;  %v4033_v32 = vmul.f32 %v3960_v14, %v11733_v20  ;;  %v3794_v58 = vmul.f32 %v11739_v2, %v11726_v39  ;;  %v11740_v61 = vld [vmem:[#allocation42_spill] sm:$0xff]  ;;  %v4273_v2 = vmul.f32 %v10201_v47, %v11742_v40 }
 0x7e3   :  { %v10354_v10 = vpop.permute.xlu1 %3519  ;;  %v3795_v14 = vmul.f32 %v11740_v61, %v11726_v39  ;;  %v3132_v61 = vmul.f32 %v10237_v12, %v11713_v56  ;;  %v3808_v17 = vadd.f32 %v3792_v8, %v3568_v36  ;;  %v3303_v36 = vmul.f32 %v10173_v24, %v11717_v42 }
 0x7e4   :  { %11724 = vst [vmem:[#allocation50_spill] sm:$0xff] %v10354_v10  ;;  %v11737_v10 = vld [vmem:[#allocation34_spill] sm:$0xff] }
 0x7e5   :  { %v3965_v59 = vpop.permute.xlu0 %3964  ;;  %v3127_v50 = vmul.f32 %v11737_v10, %v11713_v56  ;;  %v3124_v10 = vmul.f32 %v10192_v35, %v11713_v56  ;;  %v3308_v35 = vmul.f32 %v3282_v57, %v11717_v42  ;;  %v4048_v57 = vadd.f32 %v4032_v19, %v3808_v17 }
 0x7e6   :  { %v4034_v52 = vmul.f32 %v3965_v59, %v11733_v20  ;;  %v3222_v17 = vadd.f32 %v3206_v51, %v3126_v0  ;;  %v3557_v51 = vmul.f32 %v10224_v11, %v11725_v60  ;;  %v3797_v11 = vmul.f32 %v10267_v45, %v11726_v39 }
 0x7e7   :  { %v10359_v23 = vpop.permute.xlu1 %3529  ;;  %v3223_v8 = vadd.f32 %v3207_v38, %v3127_v50 }
 0x7e8   :  { %11728 = vst [vmem:[#allocation51_spill] sm:$0xff] %v10359_v23  ;;  %v3204_v23 = vmul.f32 %v11735_v37, %v11715_v21  ;;  %v3301_v37 = vmul.f32 %v11741_v31, %v11717_v42  ;;  %v4035_v31 = vmul.f32 %v10188_v55, %v11733_v20  ;;  %v3300_v55 = vmul.f32 %v10318_v9, %v11717_v42 }
 0x7e9   :  { %v3302_v9 = vmul.f32 %v10161_v25, %v11717_v42 }
 0x7ea   :  { %v3220_v41 = vadd.f32 %v3204_v23, %v3124_v10  ;;  %v4275_v23 = vmul.f32 %v10213_v4, %v11742_v40 }
 0x7eb   :  { %v10373_v43 = vpop.permute.xlu1 %3107  ;;  %v3318_v25 = vadd.f32 %v3302_v9, %v3222_v17  ;;  %v4039_v9 = vmul.f32 %v10323_v44, %v11733_v20 }
 0x7ec   :  { %11734 = vst [vmem:[#allocation52_spill] sm:$0xff] %v10373_v43  ;;  %v3570_v43 = vadd.f32 %v3554_v26, %v3330_v53  ;;  %v4049_v26 = vadd.f32 %v4033_v32, %v3809_v46  ;;  %v4195_v53 = vpop.permute.xlu0 %4194  ;;  %v3221_v46 = vadd.f32 %v3205_v16, %v3125_v3  ;;  %v3811_v32 = vadd.f32 %v3795_v14, %v3571_v15 }
 0x7ed   :  { %v4272_v47 = vmul.f32 %v4195_v53, %v11742_v40  ;;  %v3316_v19 = vadd.f32 %v3300_v55, %v3220_v41  ;;  %v3799_v55 = vmul.f32 %v10299_v6, %v11726_v39  ;;  %v4277_v6 = vmul.f32 %v10329_v29, %v11742_v40 }
 0x7ee   :  { %v3810_v48 = vadd.f32 %v3794_v58, %v3570_v43  ;;  %v10411_v27 = vadd.f32 %v4273_v2, %v4049_v26  ;;  %v3317_v14 = vadd.f32 %v3301_v37, %v3221_v46  ;;  %v4051_v24 = vadd.f32 %v4035_v31, %v3811_v32 }
 0x7ef   :  { %v3186_v18 = vpop.permute.xlu1 %3185  ;;  %v10419_v3 = vadd.f32 %v4272_v47, %v4048_v57  ;;  %v3332_v15 = vadd.f32 %v10351_v13, %v3316_v19  ;;  %v3559_v31 = vmul.f32 %v10233_v1, %v11725_v60  ;;  %v3796_v47 = vmul.f32 %v10261_v33, %v11726_v39 }
 0x7f0   :  { %v3212_v12 = vmul.f32 %v3186_v18, %v11715_v21  ;;  %v4205_v59 = vpop.permute.xlu0 %4204  ;;  %v4050_v28 = vadd.f32 %v4034_v52, %v3810_v48  ;;  %v3319_v48 = vadd.f32 %v3303_v36, %v3223_v8  ;;  %v3333_v37 = vadd.f32 %v10351_v13, %v3317_v14 }
 0x7f1   :  { %v10427_v10 = vpack.c.bf16 %v10411_v27, %v10419_v3  ;;  %v4274_v50 = vmul.f32 %v4205_v59, %v11742_v40  ;;  %v3798_v57 = vmul.f32 %v10291_v30, %v11726_v39  ;;  %v4036_v36 = vmul.f32 %v10311_v62, %v11733_v20 }
 0x7f2   :  { %v3228_v54 = vadd.f32 %v3212_v12, %v3132_v61  ;;  %v3335_v38 = vadd.f32 %v10351_v13, %v3319_v48  ;;  %v3573_v0 = vadd.f32 %v3557_v51, %v3333_v37  ;;  %v3128_v14 = vmul.f32 %v10218_v63, %v11713_v56 }
 0x7f3   :  { %v10413_v43 = vpop.permute.xlu1 %3754  ;;  %v10432_v2 = vadd.f32 %v4274_v50, %v4050_v28  ;;  %6573 = vmatprep.mubr.msk.bf16.mxu0 %vm1416_vm0, %v10427_v10  ;;  %v3208_v30 = vmul.f32 %v10254_v5, %v11715_v21  ;;  %v3209_v50 = vmul.f32 %v10289_v22, %v11715_v21  ;;  %v3130_v51 = vmul.f32 %v10229_v34, %v11713_v56  ;;  %v11744_v22 = vld [vmem:[#allocation49_spill] sm:$0xff] }
 0x7f4   :  { %v10421_v58 = vadd.f32 %v3308_v35, %v3228_v54  ;;  %v10434_v54 = vadd.f32 %v4275_v23, %v4051_v24  ;;  %v3334_v35 = vadd.f32 %v10351_v13, %v3318_v25  ;;  %v3575_v1 = vadd.f32 %v3559_v31, %v3335_v38  ;;  %v11745_v38 = vld [vmem:[#allocation45_spill] sm:$0xff] }
 0x7f5   :  { %v3813_v32 = vadd.f32 %v3797_v11, %v3573_v0  ;;  %v3129_v24 = vmul.f32 %v10244_v7, %v11713_v56  ;;  %v4279_v25 = vmul.f32 %v10342_v49, %v11742_v40  ;;  %v3224_v37 = vadd.f32 %v3208_v30, %v3128_v14  ;;  %v11743_v7 = vld [vmem:[#allocation43_spill] sm:$0xff] }
 0x7f6   :  { %v10443_v61 = vpack.c.bf16 %v10434_v54, %v10432_v2  ;;  %v3815_v28 = vadd.f32 %v3799_v55, %v3575_v1  ;;  %v3131_v49 = vmul.f32 %v11745_v38, %v11713_v56 }
 0x7f7   :  { %v10430_v4 = vpop.permute.xlu1 %3759  ;;  %v3225_v11 = vadd.f32 %v3209_v50, %v3129_v24 }
 0x7f8   :  { %6574 = vmatmul.mubr.msk.bf16.vlgmr.msra.gmra.mxu0 %vm1416_vm0, %v10443_v61  ;;  %v4055_v29 = vadd.f32 %v4039_v9, %v3815_v28  ;;  %v11749_v28 = vld [vmem:[#allocation48_spill] sm:$0xff] }
 0x7f9   :  { %v3495_v16 = vpop.permute.xlu0 %3494  ;;  %v3307_v9 = vmul.f32 %v11749_v28, %v11717_v42 }
 0x7fa   :  { %v3556_v26 = vmul.f32 %v3495_v16, %v11725_v60  ;;  %v10505_v0 = vadd.f32 %v4279_v25, %v4055_v29 }
 0x7fb   :  { %v10447_v18 = vpop.permute.xlu1 %3117 }
 0x7fc   :  { %v3572_v12 = vadd.f32 %v3556_v26, %v3332_v15  ;;  %v3210_v15 = vmul.f32 %v11743_v7, %v11715_v21  ;;  %v3304_v26 = vmul.f32 %v11744_v22, %v11717_v42 }
 0x7fe   :  { %v3505_v53 = vpop.permute.xlu0 %3504  ;;  %v3812_v33 = vadd.f32 %v3796_v47, %v3572_v12  ;;  %v11747_v47 = vld [vmem:[#allocation40_spill] sm:$0xff] }
 0x7ff   :  { %v3558_v52 = vmul.f32 %v3505_v53, %v11725_v60  ;;  %v10460_v46 = vpop.permute.xlu1 %3193  ;;  %v3305_v34 = vmul.f32 %v11747_v47, %v11717_v42 }
 0x800   :  { %v4052_v16 = vadd.f32 %v4036_v36, %v3812_v33 }
 0x801   :  { %v3574_v59 = vadd.f32 %v3558_v52, %v3334_v35  ;;  %v11746_v35 = vld [vmem:[#allocation11_spill] sm:$0xff] }
 0x802   :  { %v3980_v41 = vpop.permute.xlu0 %3979  ;;  %v3211_v52 = vmul.f32 %v11746_v35, %v11715_v21 }
 0x803   :  { %v4037_v45 = vmul.f32 %v3980_v41, %v11733_v20  ;;  %v10469_v23 = vpop.permute.xlu1 %3764  ;;  %v3814_v19 = vadd.f32 %v3798_v57, %v3574_v59  ;;  %v3320_v59 = vadd.f32 %v3304_v26, %v3224_v37 }
 0x804   :  { %v3227_v33 = vadd.f32 %v3211_v52, %v3131_v49  ;;  %v3801_v49 = vmul.f32 %v10430_v4, %v11726_v39  ;;  %v3802_v52 = vmul.f32 %v10469_v23, %v11726_v39 }
 0x805   :  { %v4053_v17 = vadd.f32 %v4037_v45, %v3813_v32  ;;  %v3226_v45 = vadd.f32 %v3210_v15, %v3130_v51  ;;  %v11748_v32 = vld [vmem:[#allocation47_spill] sm:$0xff]  ;;  %v3800_v51 = vmul.f32 %v10413_v43, %v11726_v39 }
 0x806   :  { %v3985_v8 = vpop.permute.xlu0 %3984  ;;  %v3306_v57 = vmul.f32 %v11748_v32, %v11717_v42  ;;  %v3323_v24 = vadd.f32 %v3307_v9, %v3227_v33 }
 0x807   :  { %v4038_v62 = vmul.f32 %v3985_v8, %v11733_v20  ;;  %v3770_v48 = vpop.permute.xlu1 %3769  ;;  %v10486_v63 = vadd.f32 %v4277_v6, %v4053_v17  ;;  %v3321_v8 = vadd.f32 %v3305_v34, %v3225_v11 }
 0x808   :  { %v3322_v30 = vadd.f32 %v3306_v57, %v3226_v45  ;;  %v3339_v26 = vadd.f32 %v10351_v13, %v3323_v24  ;;  %v3803_v45 = vmul.f32 %v3770_v48, %v11726_v39 }
 0x809   :  { %v4054_v53 = vadd.f32 %v4038_v62, %v3814_v19  ;;  %v3336_v19 = vadd.f32 %v10351_v13, %v3320_v59  ;;  %v3337_v50 = vadd.f32 %v10351_v13, %v3321_v8 }
 0x80a   :  { %v4215_v44 = vpop.permute.xlu0 %4214  ;;  %v3338_v7 = vadd.f32 %v10351_v13, %v3322_v30 }
 0x80b   :  { %v4276_v5 = vmul.f32 %v4215_v44, %v11742_v40  ;;  %v11750_v44 = vld [vmem:[#allocation50_spill] sm:$0xff] }
 0x80c   :  { %v10503_v41 = vpop.permute.xlu1 %3285 }
 0x80d   :  { %v10495_v31 = vadd.f32 %v4276_v5, %v4052_v16  ;;  %v3561_v16 = vmul.f32 %v11750_v44, %v11725_v60  ;;  %v11751_v5 = vmov 0.0  }
 0x80e   :  { %v4225_v12 = vpop.permute.xlu0 %4224  ;;  %6531 = vmatprep.mubr.msk.bf16.mxu1 %vm7585_vm6, %v11751_v5 }
 0x80f   :  { %v10509_v1 = vpack.c.bf16 %v10486_v63, %v10495_v31  ;;  %v4278_v55 = vmul.f32 %v4225_v12, %v11742_v40  ;;  %v3577_v22 = vadd.f32 %v3561_v16, %v3337_v50 }
 0x811   :  { %v10514_v36 = vadd.f32 %v4278_v55, %v4054_v53  ;;  %6577 = vmatprep.mubr.msk.bf16.mxu0 %vm1416_vm0, %v10509_v1  ;;  %v3995_v17 = vpop.permute.xlu1 %3994  ;;  %v11752_v53 = vld [vmem:[#allocation51_spill] sm:$0xff]  ;;  %v3817_v55 = vadd.f32 %v3801_v49, %v3577_v22 }
 0x812   :  { %v3515_v6 = vpop.permute.xlu0 %3514  ;;  %v3563_v38 = vmul.f32 %v11752_v53, %v11725_v60  ;;  %v4040_v47 = vmul.f32 %v3995_v17, %v11733_v20 }
 0x813   :  { %v10522_v14 = vpack.c.bf16 %v10505_v0, %v10514_v36  ;;  %v3560_v62 = vmul.f32 %v3515_v6, %v11725_v60 }
 0x814   :  { %v3579_v12 = vadd.f32 %v3563_v38, %v3339_v26  ;;  %v11754_v26 = vld [vmem:[#allocation52_spill] sm:$0xff] }
 0x815   :  { %6578 = vmatmul.mubr.msk.bf16.gmra.mxu0 %vm1416_vm0, %v10522_v14  ;;  %v3576_v37 = vadd.f32 %v3560_v62, %v3336_v19  ;;  %v3133_v53 = vmul.f32 %v11754_v26, %v11713_v56 }
 0x816   :  { %v3525_v29 = vpop.permute.xlu0 %3524  ;;  %v3290_v25 = vpop.permute.xlu1 %3289  ;;  %v3819_v28 = vadd.f32 %v3803_v45, %v3579_v12  ;;  %v11756_v12 = vld [vmem:[#allocation9_spill] sm:$0xff] }
 0x817   :  { %v3562_v15 = vmul.f32 %v3525_v29, %v11725_v60  ;;  %v3816_v43 = vadd.f32 %v3800_v51, %v3576_v37 }
 0x819   :  { %v3578_v34 = vadd.f32 %v3562_v15, %v3338_v7  ;;  %v4056_v33 = vadd.f32 %v4040_v47, %v3816_v43  ;;  %v11753_v15 = vld [vmem:[#allocation33_spill] sm:$0xff]  ;;  %v11755_v43 = vld [vmem:[#allocation35_spill] sm:$0xff] }
 0x81a   :  { %v4000_v11 = vpop.permute.xlu0 %3999  ;;  %v3294_v35 = vpop.permute.xlu1 %3293  ;;  %v3213_v22 = vmul.f32 %v11753_v15, %v11715_v21  ;;  %v3134_v47 = vmul.f32 %v11755_v43, %v11713_v56 }
 0x81b   :  { %v4041_v32 = vmul.f32 %v4000_v11, %v11733_v20  ;;  %v3818_v8 = vadd.f32 %v3802_v52, %v3578_v34  ;;  %v3214_v34 = vmul.f32 %v10460_v46, %v11715_v21 }
 0x81c   :  { %v3229_v45 = vadd.f32 %v3213_v22, %v3133_v53 }
 0x81d   :  { %v4057_v9 = vadd.f32 %v4041_v32, %v3817_v55  ;;  %v3215_v55 = vmul.f32 %v11756_v12, %v11715_v21  ;;  %v3135_v32 = vmul.f32 %v10447_v18, %v11713_v56  ;;  %v3340_v56 = vadd.f32 %v10351_v13, %v10421_v58 }
 0x81e   :  { %v4005_v57 = vpop.permute.xlu0 %4004 }
 0x81f   :  { %v4010_v59 = vpop.permute.xlu1 %4009  ;;  %v4042_v4 = vmul.f32 %v4005_v57, %v11733_v20  ;;  %v3309_v57 = vmul.f32 %v10503_v41, %v11717_v42 }
 0x820   :  { %v4043_v23 = vmul.f32 %v4010_v59, %v11733_v20 }
 0x821   :  { %v4058_v62 = vadd.f32 %v4042_v4, %v3818_v8  ;;  %v3230_v8 = vadd.f32 %v3214_v34, %v3134_v47  ;;  %v3310_v4 = vmul.f32 %v3290_v25, %v11717_v42  ;;  %v3325_v46 = vadd.f32 %v3309_v57, %v3229_v45 }
 0x822   :  { %v4235_v6 = vpop.permute.xlu0 %4234  ;;  %v4059_v24 = vadd.f32 %v4043_v23, %v3819_v28  ;;  %v3231_v28 = vadd.f32 %v3215_v55, %v3135_v32 }
 0x823   :  { %v4280_v17 = vmul.f32 %v4235_v6, %v11742_v40  ;;  %v4240_v30 = vpop.permute.xlu1 %4239  ;;  %v3326_v6 = vadd.f32 %v3310_v4, %v3230_v8 }
 0x824   :  { %v4281_v19 = vmul.f32 %v4240_v30, %v11742_v40 }
 0x825   :  { %v10551_v48 = vadd.f32 %v4280_v17, %v4056_v33  ;;  %v3341_v17 = vadd.f32 %v10351_v13, %v3325_v46 }
 0x826   :  { %v10553_v50 = vadd.f32 %v4281_v19, %v4057_v9  ;;  %v4245_v44 = vpop.permute.xlu0 %4244  ;;  %v3311_v9 = vmul.f32 %v3294_v35, %v11717_v42 }
 0x827   :  { %v4282_v16 = vmul.f32 %v4245_v44, %v11742_v40  ;;  %v4250_v29 = vpop.permute.xlu1 %4249 }
 0x828   :  { %v10558_v51 = vpack.c.bf16 %v10553_v50, %v10551_v48  ;;  %v4283_v37 = vmul.f32 %v4250_v29, %v11742_v40  ;;  %v3327_v41 = vadd.f32 %v3311_v9, %v3231_v28 }
 0x829   :  { %v10561_v7 = vadd.f32 %v4282_v16, %v4058_v62 }
 0x82a   :  { %v10567_v38 = vadd.f32 %v4283_v37, %v4059_v24  ;;  %v3535_v49 = vpop.permute.xlu0 %3534  ;;  %6581 = vmatprep.mubr.msk.bf16.mxu0 %vm1416_vm0, %v10558_v51  ;;  %v3342_v24 = vadd.f32 %v10351_v13, %v3326_v6  ;;  %v3343_v16 = vadd.f32 %v10351_v13, %v3327_v41 }
 0x82b   :  { %v3540_v11 = vpop.permute.xlu1 %3539  ;;  %v3564_v18 = vmul.f32 %v3535_v49, %v11725_v60 }
 0x82c   :  { %v10573_v52 = vpack.c.bf16 %v10567_v38, %v10561_v7  ;;  %v3565_v30 = vmul.f32 %v3540_v11, %v11725_v60 }
 0x82d   :  { %v3580_v25 = vadd.f32 %v3564_v18, %v3340_v56 }
 0x82e   :  { %v3545_v59 = vpop.permute.xlu0 %3544  ;;  %6582 = vmatmul.mubr.msk.bf16.gmra.mxu0 %vm1416_vm0, %v10573_v52  ;;  %v3581_v44 = vadd.f32 %v3565_v30, %v3341_v17 }
 0x82f   :  { %v3550_v33 = vpop.permute.xlu1 %3549  ;;  %v3566_v42 = vmul.f32 %v3545_v59, %v11725_v60 }
 0x830   :  { %v3567_v58 = vmul.f32 %v3550_v33, %v11725_v60 }
 0x831   :  { %v3582_v22 = vadd.f32 %v3566_v42, %v3342_v24 }
 0x832   :  { %v3775_v21 = vpop.permute.xlu0 %3774  ;;  %v3583_v11 = vadd.f32 %v3567_v58, %v3343_v16 }
 0x833   :  { %v3780_v23 = vpop.permute.xlu1 %3779  ;;  %v3804_v35 = vmul.f32 %v3775_v21, %v11726_v39 }
 0x834   :  { %v3805_v29 = vmul.f32 %v3780_v23, %v11726_v39 }
 0x835   :  { %v3820_v26 = vadd.f32 %v3804_v35, %v3580_v25 }
 0x836   :  { %v3785_v19 = vpop.permute.xlu0 %3784  ;;  %v3821_v43 = vadd.f32 %v3805_v29, %v3581_v44 }
 0x837   :  { %v3790_v62 = vpop.permute.xlu1 %3789  ;;  %v3806_v53 = vmul.f32 %v3785_v19, %v11726_v39 }
 0x838   :  { %v3807_v47 = vmul.f32 %v3790_v62, %v11726_v39 }
 0x839   :  { %v3822_v55 = vadd.f32 %v3806_v53, %v3582_v22 }
 0x83a   :  { %v4015_v37 = vpop.permute.xlu0 %4014  ;;  %v3823_v32 = vadd.f32 %v3807_v47, %v3583_v11  ;;  %v11758_v11 = vld [vmem:[#allocation72_spill] sm:$0xff]  ;;  %v5984_v47 = vld [vmem:[%s11273_s14] ss:$0 sm:$0xff] }
 0x83b   :  { %v4020_v15 = vpop.permute.xlu1 %4019  ;;  %v4044_v49 = vmul.f32 %v4015_v37, %v11733_v20 }
 0x83c   :  { %v4045_v34 = vmul.f32 %v4020_v15, %v11733_v20 }
 0x83d   :  { %v4060_v60 = vadd.f32 %v4044_v49, %v3820_v26  ;;  %v11757_v26 = vld [vmem:[#allocation75_spill] sm:$0xff] }
 0x83e   :  { %v4025_v12 = vpop.permute.xlu0 %4024  ;;  %v4061_v57 = vadd.f32 %v4045_v34, %v3821_v43 }
 0x83f   :  { %v4030_v13 = vpop.permute.xlu1 %4029  ;;  %v4046_v45 = vmul.f32 %v4025_v12, %v11733_v20 }
 0x840   :  { %v4047_v59 = vmul.f32 %v4030_v13, %v11733_v20  ;;  %v11759_v13 = vld [vmem:[#allocation73_spill] sm:$0xff] }
 0x841   :  { %v4062_v46 = vadd.f32 %v4046_v45, %v3822_v55  ;;  %v11760_v45 = vld [vmem:[#allocation74_spill] sm:$0xff] }
 0x842   :  { %v4255_v33 = vpop.permute.xlu0 %4254  ;;  %v4063_v9 = vadd.f32 %v4047_v59, %v3823_v32 }
 0x843   :  { %v4284_v8 = vmul.f32 %v4255_v33, %v11742_v40  ;;  %v4260_v4 = vpop.permute.xlu1 %4259 }
 0x844   :  { %v4285_v28 = vmul.f32 %v4260_v4, %v11742_v40  ;;  %v11762_v4 = vld [vmem:[#allocation70_spill] sm:$0xff] }
 0x845   :  { %v10608_v39 = vadd.f32 %v4284_v8, %v4060_v60 }
 0x846   :  { %v10610_v21 = vadd.f32 %v4285_v28, %v4061_v57  ;;  %v4265_v23 = vpop.permute.xlu0 %4264  ;;  %v11761_v57 = vld [vmem:[#allocation66_spill] sm:$0xff] }
 0x847   :  { %v4286_v6 = vmul.f32 %v4265_v23, %v11742_v40  ;;  %v4270_v56 = vpop.permute.xlu1 %4269  ;;  %v11763_v23 = vld [vmem:[#allocation68_spill] sm:$0xff] }
 0x848   :  { %v10615_v18 = vpack.c.bf16 %v10610_v21, %v10608_v39  ;;  %v4287_v20 = vmul.f32 %v4270_v56, %v11742_v40 }
 0x849   :  { %v10618_v41 = vadd.f32 %v4286_v6, %v4062_v46 }
 0x84a   :  { %v10620_v17 = vadd.f32 %v4287_v20, %v4063_v9  ;;  %6585 = vmatprep.mubr.msk.bf16.mxu0 %vm1416_vm0, %v10615_v18 }
 0x84c   :  { %v10626_v30 = vpack.c.bf16 %v10620_v17, %v10618_v41 }
 0x84e   :  { %6586 = vmatmul.mubr.msk.bf16.gmra.mxu0 %vm1416_vm0, %v10626_v30 }
 0x850   :  { %v6501_v19 = vpop.f32.mrf.mxu0 }
 0x852   :  { %v2718_v62 = vpop.f32.mrf.mxu0 }
 0x854   :  { %v6502_v25 = vpop.f32.mrf.mxu0 }
 0x856   :  { %v2721_v24 = vpop.f32.mrf.mxu0 }
 0x858   :  { %v6505_v42 = vpop.f32.mrf.mxu0 }
 0x85a   :  { %v2734_v40 = vpop.f32.mrf.mxu0 }
 0x85c   :  { %v6506_v35 = vpop.f32.mrf.mxu0 }
 0x85e   :  { %v2737_v44 = vpop.f32.mrf.mxu0 }
 0x861   :  { %v6509_v16 = vpop.f32.mrf.mxu0 }
 0x862   :  { %v2791_v28 = vadd.f32 %v6509_v16, %v11762_v4  ;;  %v11771_v4 = vld [vmem:[#allocation61_spill] sm:$0xff] }
 0x863   :  { %v2750_v58 = vpop.f32.mrf.mxu0 }
 0x864   :  { %v2814_v20 = vadd.f32 %v5984_v47, %v2791_v28 }
 0x865   :  { %v6510_v29 = vpop.f32.mrf.mxu0 }
 0x866   :  { %v2792_v59 = vadd.f32 %v6510_v29, %v11761_v57 }
 0x867   :  { %v2753_v37 = vpop.f32.mrf.mxu0 }
 0x868   :  { %v2815_v9 = vadd.f32 %v5984_v47, %v2792_v59  ;;  %v2790_v6 = vadd.f32 %v2753_v37, %v11763_v23  ;;  %v11770_v59 = vld [vmem:[#allocation62_spill] sm:$0xff] }
 0x86c   :  { %v6513_v15 = vpop.f32.mrf.mxu0 }
 0x86d   :  { %v2795_v53 = vadd.f32 %v6513_v15, %v11757_v26  ;;  %v11764_v15 = vld [vmem:[#allocation67_spill] sm:$0xff] }
 0x86e   :  { %v2766_v22 = vpop.f32.mrf.mxu0  ;;  %v11765_v26 = vld [vmem:[#allocation63_spill] sm:$0xff] }
 0x86f   :  { %v2818_v12 = vadd.f32 %v5984_v47, %v2795_v53  ;;  %v2793_v55 = vadd.f32 %v2766_v22, %v11759_v13  ;;  %v2789_v22 = vadd.f32 %v2750_v58, %v11764_v15  ;;  %v2788_v29 = vadd.f32 %v6506_v35, %v11765_v26  ;;  %v2889_v26 = vld [vmem:[%s11274_s15 + $0x8] sm:$0xff] }
 0x870   :  { %v6514_v49 = vpop.f32.mrf.mxu0  ;;  %v2838_v53 = vpack.c.bf16 %v2815_v9, %v2814_v20  ;;  %v11772_v9 = vld [vmem:[#allocation60_spill] sm:$0xff]  ;;  %v11774_v20 = vld [vmem:[#allocation27_spill] sm:$0xff] }
 0x871   :  { %v2796_v43 = vadd.f32 %v6514_v49, %v11758_v11  ;;  %v2816_v46 = vadd.f32 %v5984_v47, %v2793_v55  ;;  %v2813_v49 = vadd.f32 %v5984_v47, %v2790_v6  ;;  %v11766_v11 = vld [vmem:[#allocation15_spill] sm:$0xff] }
 0x872   :  { %v2769_v34 = vpop.f32.mrf.mxu0  ;;  %v2787_v16 = vadd.f32 %v6505_v42, %v11766_v11  ;;  %v2783_v42 = vadd.f32 %v6501_v19, %v11770_v59 }
 0x873   :  { %v2819_v60 = vadd.f32 %v5984_v47, %v2796_v43  ;;  %v2794_v32 = vadd.f32 %v2769_v34, %v11760_v45  ;;  %v2812_v43 = vadd.f32 %v5984_v47, %v2789_v22  ;;  %v2811_v34 = vadd.f32 %v5984_v47, %v2788_v29  ;;  %v11769_v45 = vld [vmem:[#allocation59_spill] sm:$0xff]  ;;  %v2888_v22 = vld [vmem:[%s11274_s15] sm:$0xff] }
 0x874   :  { %v2810_v55 = vadd.f32 %v5984_v47, %v2787_v16  ;;  %v2784_v35 = vadd.f32 %v6502_v25, %v11769_v45  ;;  %v10678_v29 = vpack.c.bf16 %v2889_v26, %v2888_v22  ;;  %v11778_v26 = vld [vmem:[#allocation25_spill] sm:$0xff] }
 0x875   :  { %v2840_v33 = vpack.c.bf16 %v2819_v60, %v2818_v12  ;;  %v2817_v8 = vadd.f32 %v5984_v47, %v2794_v32  ;;  %v11767_v12 = vld [vmem:[#allocation65_spill] sm:$0xff]  ;;  %v2837_v13 = vpack.c.bf16 %v2813_v49, %v2812_v43  ;;  %v11768_v60 = vld [vmem:[#allocation64_spill] sm:$0xff] }
 0x876   :  { %v2786_v37 = vadd.f32 %v2737_v44, %v11767_v12  ;;  %v2785_v58 = vadd.f32 %v2734_v40, %v11768_v60  ;;  %v2836_v32 = vpack.c.bf16 %v2811_v34, %v2810_v55  ;;  %v2782_v44 = vadd.f32 %v2721_v24, %v11771_v4 }
 0x877   :  { %6516 = vmatpush3.bf16.msra.mxu1 %v2840_v33  ;;  %v2839_v56 = vpack.c.bf16 %v2817_v8, %v2816_v46  ;;  %v2807_v8 = vadd.f32 %v5984_v47, %v2784_v35  ;;  %v2806_v46 = vadd.f32 %v5984_v47, %v2783_v42  ;;  %v2781_v40 = vadd.f32 %v2718_v62, %v11772_v9  ;;  %v2890_v62 = vld [vmem:[%s11274_s15 + $0x10] sm:$0xff] }
 0x878   :  { %6517 = vmatprep.subr.bf16.mxu1 %v11751_v5  ;;  %v2809_v57 = vadd.f32 %v5984_v47, %v2786_v37  ;;  %v2808_v33 = vadd.f32 %v5984_v47, %v2785_v58  ;;  %v2805_v25 = vadd.f32 %v5984_v47, %v2782_v44 }
 0x879   :  { %v2834_v23 = vpack.c.bf16 %v2807_v8, %v2806_v46  ;;  %v2804_v6 = vadd.f32 %v5984_v47, %v2781_v40  ;;  %v2891_v47 = vld [vmem:[%s11274_s15 + $0x18] sm:$0xff] }
 0x87a   :  { %v2835_v28 = vpack.c.bf16 %v2809_v57, %v2808_v33  ;;  %v10668_v15 = vpack.c.bf16 %v2891_v47, %v2890_v62  ;;  %v11777_v47 = vld [vmem:[#allocation71_spill] sm:$0xff] }
 0x87b   :  { %6518 = vmatpush3.bf16.msra.mxu1 %v2839_v56  ;;  %v2833_v19 = vpack.c.bf16 %v2805_v25, %v2804_v6  ;;  %v11773_v56 = vld [vmem:[#allocation26_spill] sm:$0xff]  ;;  %v2883_v22 = vadd.f32 1e-09, %v11777_v47 }
 0x87c   :  { %6519 = vmatprep.subr.bf16.mxu1 %v11751_v5  ;;  %v11775_v24 = vpack.c.bf16 %v11773_v56, %v11774_v20  ;;  %v11776_v20 = vld [vmem:[#allocation69_spill] sm:$0xff] }
 0x87f   :  { %6520 = vmatpush3.bf16.msra.mxu1 %v2838_v53 }
 0x880   :  { %6521 = vmatprep.subr.bf16.mxu1 %v11751_v5 }
 0x883   :  { %6522 = vmatpush3.bf16.msra.mxu1 %v2837_v13 }
 0x884   :  { %6523 = vmatprep.subr.bf16.mxu1 %v11751_v5 }
 0x887   :  { %6524 = vmatpush3.bf16.msra.mxu1 %v2836_v32 }
 0x888   :  { %6525 = vmatprep.subr.bf16.mxu1 %v11751_v5 }
 0x88b   :  { %6526 = vmatpush3.bf16.msra.mxu1 %v2835_v28 }
 0x88c   :  { %6527 = vmatprep.subr.bf16.mxu1 %v11751_v5 }
 0x88f   :  { %6528 = vmatpush3.bf16.msra.mxu1 %v2834_v23 }
 0x890   :  { %6529 = vmatprep.subr.bf16.mxu1 %v11751_v5 }
 0x893   :  { %6530 = vmatpush3.bf16.msra.mxu1 %v2833_v19 }
 0x894   :  { %6535 = vmatprep.subr.bf16.mxu1 %v11751_v5 }
 0x896   :  { %6532 = vmatmul.mubr.bf16.vlgmr.msra.gmra.mxu1 %v11775_v24  ;;  %v2882_v24 = vadd.f32 1e-09, %v11776_v20 }
 0x897   :  { %6539 = vmatprep.mubr.msk.bf16.mxu1 %vm7585_vm6, %v11751_v5  ;;  %6536 = vmatpush3.bf16.msra.mxu1 %v10668_v15 }
 0x898   :  { %6537 = vmatprep.subr.bf16.mxu1 %v11751_v5  ;;  %7292 = vrcp.f32 %v2882_v24 }
 0x899   :  { %7294 = vrcp.f32 %v2883_v22 }
 0x89b   :  { %6538 = vmatpush3.bf16.msra.mxu1 %v10678_v29 }
 0x89c   :  { %6543 = vmatprep.subr.bf16.mxu1 %v11751_v5 }
 0x8b8   :  { %v6575_v53 = vpop.f32.mrf.mxu0 }
 0x8ba   :  { %v4483_v49 = vpop.f32.mrf.mxu0 }
 0x8bc   :  { %v6576_v11 = vpop.f32.mrf.mxu0 }
 0x8bd   :  { %v4652_v16 = vpack.c.bf16 %v6576_v11, %v6575_v53  ;;  %v7293_v11 = vpop.eup %7292 }
 0x8be   :  { %v4486_v43 = vpop.f32.mrf.mxu0 }
 0x8bf   :  { %v4651_v34 = vpack.c.bf16 %v4486_v43, %v4483_v49  ;;  %v4687_v56 = vsel %vm1416_vm0, %v4652_v16, 0  ;;  %v7295_v43 = vpop.eup %7294 }
 0x8c1   :  { %v4684_v62 = vsel %vm1416_vm0, %v4651_v34, 0 }
 0x8d5   :  { %v6579_v12 = vpop.f32.mrf.mxu0 }
 0x8d7   :  { %v4499_v37 = vpop.f32.mrf.mxu0 }
 0x8d9   :  { %v6580_v13 = vpop.f32.mrf.mxu0 }
 0x8da   :  { %v4654_v40 = vpack.c.bf16 %v6580_v13, %v6579_v12 }
 0x8db   :  { %v4502_v55 = vpop.f32.mrf.mxu0 }
 0x8dc   :  { %v4693_v25 = vsel %vm1416_vm0, %v4654_v40, 0  ;;  %v4653_v6 = vpack.c.bf16 %v4502_v55, %v4499_v37 }
 0x8de   :  { %v4690_v19 = vsel %vm1416_vm0, %v4653_v6, 0 }
 0x8ee   :  { %v6583_v60 = vpop.f32.mrf.mxu0 }
 0x8f0   :  { %v4515_v58 = vpop.f32.mrf.mxu0 }
 0x8f2   :  { %v6584_v45 = vpop.f32.mrf.mxu0 }
 0x8f3   :  { %v4656_v44 = vpack.c.bf16 %v6584_v45, %v6583_v60 }
 0x8f4   :  { %v4518_v35 = vpop.f32.mrf.mxu0 }
 0x8f5   :  { %v4699_v46 = vsel %vm1416_vm0, %v4656_v44, 0  ;;  %v4655_v9 = vpack.c.bf16 %v4518_v35, %v4515_v58 }
 0x8f7   :  { %v4696_v23 = vsel %vm1416_vm0, %v4655_v9, 0 }
 0x90e   :  { %v6587_v32 = vpop.f32.mrf.mxu0 }
 0x910   :  { %v4531_v57 = vpop.f32.mrf.mxu0 }
 0x912   :  { %v6588_v59 = vpop.f32.mrf.mxu0 }
 0x913   :  { %v4658_v42 = vpack.c.bf16 %v6588_v59, %v6587_v32 }
 0x914   :  { %v4534_v33 = vpop.f32.mrf.mxu0 }
 0x915   :  { %v4705_v8 = vsel %vm1416_vm0, %v4658_v42, 0  ;;  %6779 = vmatprep.subr.msk.bf16.mxu0 %vm1416_vm0, %v4658_v42  ;;  %v4657_v4 = vpack.c.bf16 %v4534_v33, %v4531_v57 }
 0x916   :  { %6610 = vmatpush3.bf16.xpose.msra.mxu0 %v4705_v8 }
 0x917   :  { %6780 = vmatprep.subr.msk.bf16.mxu0 %vm1416_vm0, %v4657_v4  ;;  %v4702_v28 = vsel %vm1416_vm0, %v4657_v4, 0 }
 0x91e   :  { %6612 = vmatpush3.bf16.xpose.msra.mxu0 %v4702_v28 }
 0x91f   :  { %6781 = vmatprep.subr.msk.bf16.mxu0 %vm1416_vm0, %v4656_v44 }
 0x926   :  { %6614 = vmatpush3.bf16.xpose.msra.mxu0 %v4699_v46 }
 0x927   :  { %6782 = vmatprep.subr.msk.bf16.mxu0 %vm1416_vm0, %v4655_v9 }
 0x92e   :  { %6616 = vmatpush3.bf16.xpose.msra.mxu0 %v4696_v23 }
 0x92f   :  { %6783 = vmatprep.subr.msk.bf16.mxu0 %vm1416_vm0, %v4654_v40 }
 0x936   :  { %6618 = vmatpush3.bf16.xpose.msra.mxu0 %v4693_v25 }
 0x937   :  { %6784 = vmatprep.subr.msk.bf16.mxu0 %vm1416_vm0, %v4653_v6 }
 0x93e   :  { %6620 = vmatpush3.bf16.xpose.msra.mxu0 %v4690_v19 }
 0x93f   :  { %6785 = vmatprep.subr.msk.bf16.mxu0 %vm1416_vm0, %v4652_v16 }
 0x946   :  { %6622 = vmatpush3.bf16.xpose.msra.mxu0 %v4687_v56 }
 0x947   :  { %6786 = vmatprep.subr.msk.bf16.mxu0 %vm1416_vm0, %v4651_v34  ;;  %v5985_v34 = vld [vmem:[%s11275_s16] ss:$0 sm:$0xff] }
 0x94e   :  { %6624 = vmatpush3.bf16.xpose.msra.mxu0 %v4684_v62 }
 0x94f   :  { %6693 = vmatprep.subr.bf16.mxu0 %v11778_v26 }
 0x956   :  { %v2875_v53 = vpop.f32.mrf.mxu1 }
 0x957   :  { %v2885_v16 = vmul.f32 %v7293_v11, %v2875_v53  ;;  %v2964_v53 = vld [vmem:[%s11276_s17] sm:$0x1] }
 0x958   :  { %v6533_v49 = vpop.f32.mrf.mxu1  ;;  %v10712_v11 = vpack.c.bf16 %v2964_v53, %v2964_v53 }
 0x959   :  { %v11779_v49 = vld [vmem:[#allocation37_spill] sm:$0xff] }
 0x95a   :  { %v2878_v12 = vpop.f32.mrf.mxu1 }
 0x95b   :  { %v2887_v37 = vmul.f32 %v7295_v43, %v2878_v12  ;;  %v11780_v43 = vld [vmem:[#allocation39_spill] sm:$0xff]  ;;  %v11781_v12 = vld [vmem:[#allocation20_spill] sm:$0xff] }
 0x95c   :  { %v6534_v13 = vpop.f32.mrf.mxu1 }
 0x95d   :  { %v2892_v55 = vpack.c.bf16 %v2887_v37, %v2885_v16  ;;  %v11782_v16 = vld [vmem:[#allocation14_spill] sm:$0xff] }
 0x95f   :  { %6540 = vmatmul.mubr.msk.bf16.vlgmr.msra.gmra.mxu1 %vm1416_vm0, %v2892_v55 }
 0x960   :  { %6545 = vmatprep.mubr.msk.bf16.mxu1 %vm7585_vm6, %v11751_v5 }
 0xa1f   :  { %v2939_v60 = vpop.f32.mrf.mxu1 }
 0xa20   :  { %v2940_v58 = vadd.f32 %v5985_v34, %v2939_v60 }
 0xa21   :  { %v6541_v45 = vpop.f32.mrf.mxu1 }
 0xa22   :  { %v2946_v35 = vmul.f32 %v2940_v58, %v2940_v58 }
 0xa23   :  { %v2942_v32 = vpop.f32.mrf.mxu1 }
 0xa24   :  { %v2948_v57 = vmul.f32 %v2946_v35, %v2940_v58  ;;  %v2943_v59 = vadd.f32 %v5985_v34, %v2942_v32 }
 0xa25   :  { %v6542_v42 = vpop.f32.mrf.mxu1 }
 0xa26   :  { %v2950_v33 = vmul.f32 0.044715, %v2948_v57  ;;  %v2947_v8 = vmul.f32 %v2943_v59, %v2943_v59  ;;  %v11783_v42 = vld [vmem:[#allocation24_spill] sm:$0xff] }
 0xa28   :  { %v2952_v4 = vadd.f32 %v2950_v33, %v2940_v58  ;;  %v2949_v44 = vmul.f32 %v2947_v8, %v2943_v59 }
 0xa2a   :  { %v2954_v28 = vmul.f32 0.7978846, %v2952_v4  ;;  %v2951_v46 = vmul.f32 0.044715, %v2949_v44 }
 0xa2c   :  { %7296 = vtanh.f32 %v2954_v28  ;;  %v2953_v9 = vadd.f32 %v2951_v46, %v2943_v59 }
 0xa2e   :  { %v2955_v40 = vmul.f32 0.7978846, %v2953_v9 }
 0xa30   :  { %7298 = vtanh.f32 %v2955_v40 }
 0xa39   :  { %v7297_v23 = vpop.eup %7296 }
 0xa3a   :  { %v2958_v25 = vadd.f32 1.0, %v7297_v23 }
 0xa3c   :  { %v2960_v56 = vmul.f32 0.5, %v2958_v25 }
 0xa3d   :  { %v7299_v6 = vpop.eup %7298 }
 0xa3e   :  { %v2959_v19 = vadd.f32 1.0, %v7299_v6  ;;  %v2962_v24 = vmul.f32 %v2960_v56, %v2940_v58 }
 0xa40   :  { %v2961_v20 = vmul.f32 0.5, %v2959_v19 }
 0xa42   :  { %v2963_v62 = vmul.f32 %v2961_v20, %v2943_v59 }
 0xa44   :  { %v2966_v47 = vpack.c.bf16 %v2963_v62, %v2962_v24 }
 0xa46   :  { %v2981_v22 = vsel %vm1416_vm0, %v2966_v47, 0 }
 0xa47   :  { %6544 = vmatpush3.bf16.xpose.msra.mxu1 %v2981_v22 }
 0xa48   :  { %6549 = vmatprep.subr.bf16.mxu1 %v11779_v49 }
 0xa4e   :  { %6546 = vmatmul.mubr.msk.bf16.vlgmr.msra.gmra.mxu1 %vm1416_vm0, %v10712_v11 }
 0xa4f   :  { %6550 = vmatpush3.bf16.msra.mxu1 %v11779_v49  ;;  %6553 = vmatprep.mubr.msk.bf16.mxu1 %vm1416_vm0, %v10427_v10 }
 0xa50   :  { %6551 = vmatprep.subr.bf16.mxu1 %v11780_v43 }
 0xa53   :  { %6552 = vmatpush3.bf16.msra.mxu1 %v11780_v43 }
 0xa54   :  { %6589 = vmatprep.subr.bf16.mxu1 %v11781_v12 }
 0xa56   :  { %6554 = vmatmul.mubr.msk.bf16.vlgmr.msra.gmra.mxu1 %vm1416_vm0, %v10443_v61 }
 0xa57   :  { %6557 = vmatprep.mubr.msk.bf16.mxu1 %vm1416_vm0, %v10509_v1  ;;  %6590 = vmatpush3.bf16.msra.mxu1 %v11781_v12 }
 0xa58   :  { %6591 = vmatprep.subr.bf16.mxu1 %v11782_v16 }
 0xa5b   :  { %6592 = vmatpush3.bf16.msra.mxu1 %v11782_v16 }
 0xa5e   :  { %6558 = vmatmul.mubr.msk.bf16.gmra.mxu1 %vm1416_vm0, %v10522_v14 }
 0xa5f   :  { %6561 = vmatprep.mubr.msk.bf16.mxu1 %vm1416_vm0, %v10558_v51 }
 0xa66   :  { %6562 = vmatmul.mubr.msk.bf16.gmra.mxu1 %vm1416_vm0, %v10573_v52 }
 0xa67   :  { %6565 = vmatprep.mubr.msk.bf16.mxu1 %vm1416_vm0, %v10615_v18 }
 0xa6e   :  { %6566 = vmatmul.mubr.msk.bf16.gmra.mxu1 %vm1416_vm0, %v10626_v30 }
 0xa6f   :  { %6593 = vmatprep.mubr.msk.bf16.mxu1 %vm1416_vm0, %v10427_v10 }
 0xa76   :  { %6594 = vmatmul.mubr.msk.bf16.vlgmr.msra.gmra.mxu1 %vm1416_vm0, %v10443_v61 }
 0xa77   :  { %6597 = vmatprep.mubr.msk.bf16.mxu1 %vm1416_vm0, %v10509_v1 }
 0xa7e   :  { %6598 = vmatmul.mubr.msk.bf16.gmra.mxu1 %vm1416_vm0, %v10522_v14 }
 0xa7f   :  { %6601 = vmatprep.mubr.msk.bf16.mxu1 %vm1416_vm0, %v10558_v51 }
 0xa86   :  { %6602 = vmatmul.mubr.msk.bf16.gmra.mxu1 %vm1416_vm0, %v10573_v52 }
 0xa87   :  { %6605 = vmatprep.mubr.msk.bf16.mxu1 %vm1416_vm0, %v10615_v18 }
 0xa8e   :  { %6606 = vmatmul.mubr.msk.bf16.gmra.mxu1 %vm1416_vm0, %v10626_v30 }
 0xb0e   :  { %v10755_v10 = vpop.f32.mrf.mxu1 }
 0xb10   :  { %v6547_v61 = vpop.f32.mrf.mxu1 }
 0xb12   :  { %v3020_v37 = vpop.f32.mrf.mxu1 }
 0xb14   :  { %v6548_v1 = vpop.f32.mrf.mxu1 }
 0xb16   :  { %v6555_v13 = vpop.f32.mrf.mxu1 }
 0xb17   :  { %v4435_v45 = vmul.f32 0.17677669, %v6555_v13 }
 0xb18   :  { %v4370_v55 = vpop.f32.mrf.mxu1 }
 0xb19   :  { %v4433_v51 = vmul.f32 0.17677669, %v4370_v55 }
 0xb1a   :  { %v6556_v14 = vpop.f32.mrf.mxu1 }
 0xb1b   :  { %v4436_v34 = vmul.f32 0.17677669, %v6556_v14 }
 0xb1c   :  { %v4373_v60 = vpop.f32.mrf.mxu1 }
 0xb1d   :  { %v4434_v58 = vmul.f32 0.17677669, %v4373_v60  ;;  %v4644_v32 = vpack.c.bf16 %v4436_v34, %v4435_v45 }
 0xb1e   :  { %v6559_v52 = vpop.f32.mrf.mxu1 }
 0xb1f   :  { %v4643_v35 = vpack.c.bf16 %v4434_v58, %v4433_v51  ;;  %v4439_v4 = vmul.f32 0.17677669, %v6559_v52 }
 0xb20   :  { %v4386_v18 = vpop.f32.mrf.mxu1 }
 0xb21   :  { %6625 = vmatprep.mubr.msk.bf16.mxu0 %vm1416_vm0, %v4643_v35  ;;  %v4437_v33 = vmul.f32 0.17677669, %v4386_v18 }
 0xb22   :  { %v6560_v30 = vpop.f32.mrf.mxu1  ;;  %6626 = vmatmul.mubr.msk.bf16.vlgmr.msra.gmra.mxu0 %vm1416_vm0, %v4644_v32 }
 0xb23   :  { %6694 = vmatpush3.bf16.msra.mxu0 %v11778_v26  ;;  %v4440_v57 = vmul.f32 0.17677669, %v6560_v30 }
 0xb24   :  { %v4389_v59 = vpop.f32.mrf.mxu1  ;;  %6695 = vmatprep.subr.bf16.mxu0 %v11783_v42 }
 0xb25   :  { %v4438_v8 = vmul.f32 0.17677669, %v4389_v59  ;;  %v4646_v46 = vpack.c.bf16 %v4440_v57, %v4439_v4 }
 0xb26   :  { %v6563_v44 = vpop.f32.mrf.mxu1 }
 0xb27   :  { %v4645_v28 = vpack.c.bf16 %v4438_v8, %v4437_v33  ;;  %6696 = vmatpush3.bf16.msra.mxu0 %v11783_v42  ;;  %v4443_v19 = vmul.f32 0.17677669, %v6563_v44 }
 0xb28   :  { %v4402_v9 = vpop.f32.mrf.mxu1  ;;  %6737 = vmatprep.subr.bf16.mxu0 %v11751_v5 }
 0xb29   :  { %6629 = vmatprep.mubr.msk.bf16.mxu0 %vm1416_vm0, %v4645_v28  ;;  %v4441_v25 = vmul.f32 0.17677669, %v4402_v9  ;;  %v11784_v9 = vld [vmem:[#allocation19_spill] sm:$0xff] }
 0xb2a   :  { %v6564_v40 = vpop.f32.mrf.mxu1  ;;  %6630 = vmatmul.mubr.msk.bf16.gmra.mxu0 %vm1416_vm0, %v4646_v46 }
 0xb2b   :  { %v4444_v26 = vmul.f32 0.17677669, %v6564_v40  ;;  %v7407_v40 = vld [vmem:[%s11561_s2 + $0x1] sm:$0x1] }
 0xb2c   :  { %v4405_v23 = vpop.f32.mrf.mxu1 }
 0xb2d   :  { %v4442_v6 = vmul.f32 0.17677669, %v4405_v23  ;;  %v4648_v24 = vpack.c.bf16 %v4444_v26, %v4443_v19  ;;  %v6084_v26 = vadd.f32 -1.0, %v7407_v40  ;;  %v11785_v19 = vld [vmem:[#allocation10_spill] sm:$0xff]  ;;  %v7417_v40 = vld [vmem:[%s11562_s7 + $0x50] sm:$0xff] }
 0xb2e   :  { %v6567_v56 = vpop.f32.mrf.mxu1 }
 0xb2f   :  { %v4647_v20 = vpack.c.bf16 %v4442_v6, %v4441_v25  ;;  %v4447_v12 = vmul.f32 0.17677669, %v6567_v56  ;;  %v4805_v23 = vmul.f32 1e+09, %v6084_v26 }
 0xb30   :  { %v4418_v62 = vpop.f32.mrf.mxu1 }
 0xb31   :  { %6633 = vmatprep.mubr.msk.bf16.mxu0 %vm1416_vm0, %v4647_v20  ;;  %v4445_v49 = vmul.f32 0.17677669, %v4418_v62  ;;  %v10774_v56 = vrot.slane %v4805_v23, %v11785_v19  ;;  %v7408_v20 = vld [vmem:[%s11562_s7] sm:$0xff] }
 0xb32   :  { %v6568_v47 = vpop.f32.mrf.mxu1  ;;  %6634 = vmatmul.mubr.msk.bf16.gmra.mxu0 %vm1416_vm0, %v4648_v24 }
 0xb33   :  { %v4448_v22 = vmul.f32 0.17677669, %v6568_v47  ;;  %v7409_v47 = vld [vmem:[%s11562_s7 + $0x10] sm:$0xff] }
 0xb34   :  { %v4421_v53 = vpop.f32.mrf.mxu1 }
 0xb35   :  { %v4446_v43 = vmul.f32 0.17677669, %v4421_v53  ;;  %v4650_v37 = vpack.c.bf16 %v4448_v22, %v4447_v12 }
 0xb36   :  { %v6595_v16 = vpop.f32.mrf.mxu1 }
 0xb37   :  { %v4649_v61 = vpack.c.bf16 %v4446_v43, %v4445_v49  ;;  %v7410_v43 = vld [vmem:[%s11562_s7 + $0x8] sm:$0xff] }
 0xb38   :  { %v4580_v1 = vpop.f32.mrf.mxu1 }
 0xb39   :  { %6637 = vmatprep.mubr.msk.bf16.mxu0 %vm1416_vm0, %v4649_v61 }
 0xb3a   :  { %v6596_v13 = vpop.f32.mrf.mxu1  ;;  %6638 = vmatmul.mubr.msk.bf16.gmra.mxu0 %vm1416_vm0, %v4650_v37  ;;  %v7411_v37 = vld [vmem:[%s11562_s7 + $0x18] sm:$0xff] }
 0xb3b   :  { %v4981_v28 = vpack.c.bf16 %v6596_v13, %v6595_v16 }
 0xb3c   :  { %v4583_v55 = vpop.f32.mrf.mxu1 }
 0xb3d   :  { %v4980_v46 = vpack.c.bf16 %v4583_v55, %v4580_v1 }
 0xb3e   :  { %v6599_v14 = vpop.f32.mrf.mxu1 }
 0xb40   :  { %v4596_v34 = vpop.f32.mrf.mxu1 }
 0xb42   :  { %v6600_v60 = vpop.f32.mrf.mxu1 }
 0xb43   :  { %v4983_v4 = vpack.c.bf16 %v6600_v60, %v6599_v14  ;;  %v7412_v14 = vld [vmem:[%s11562_s7 + $0x20] sm:$0xff] }
 0xb44   :  { %v4599_v51 = vpop.f32.mrf.mxu1 }
 0xb45   :  { %v4982_v44 = vpack.c.bf16 %v4599_v51, %v4596_v34 }
 0xb46   :  { %v6603_v58 = vpop.f32.mrf.mxu1 }
 0xb48   :  { %v4612_v45 = vpop.f32.mrf.mxu1 }
 0xb4a   :  { %v6604_v52 = vpop.f32.mrf.mxu1 }
 0xb4b   :  { %v4985_v33 = vpack.c.bf16 %v6604_v52, %v6603_v58  ;;  %v7413_v58 = vld [vmem:[%s11562_s7 + $0x30] sm:$0xff] }
 0xb4c   :  { %v4615_v35 = vpop.f32.mrf.mxu1 }
 0xb4d   :  { %v4984_v8 = vpack.c.bf16 %v4615_v35, %v4612_v45 }
 0xb4e   :  { %v6607_v32 = vpop.f32.mrf.mxu1 }
 0xb50   :  { %v4628_v18 = vpop.f32.mrf.mxu1 }
 0xb52   :  { %v6608_v30 = vpop.f32.mrf.mxu1 }
 0xb53   :  { %v4987_v57 = vpack.c.bf16 %v6608_v30, %v6607_v32  ;;  %v7414_v32 = vld [vmem:[%s11562_s7 + $0x28] sm:$0xff] }
 0xb54   :  { %v4631_v59 = vpop.f32.mrf.mxu1 }
 0xb55   :  { %v4986_v42 = vpack.c.bf16 %v4631_v59, %v4628_v18  ;;  %6641 = vmatprep.subr.bf16.mxu1 %v4987_v57  ;;  %v7415_v59 = vld [vmem:[%s11562_s7 + $0x38] sm:$0xff] }
 0xb56   :  { %6642 = vmatpush3.bf16.msra.mxu1 %v4987_v57 }
 0xb57   :  { %6643 = vmatprep.subr.bf16.mxu1 %v4986_v42 }
 0xb5a   :  { %6644 = vmatpush3.bf16.msra.mxu1 %v4986_v42 }
 0xb5b   :  { %6645 = vmatprep.subr.bf16.mxu1 %v4985_v33 }
 0xb5e   :  { %6646 = vmatpush3.bf16.msra.mxu1 %v4985_v33 }
 0xb5f   :  { %6647 = vmatprep.subr.bf16.mxu1 %v4984_v8 }
 0xb62   :  { %6648 = vmatpush3.bf16.msra.mxu1 %v4984_v8 }
 0xb63   :  { %6649 = vmatprep.subr.bf16.mxu1 %v4983_v4 }
 0xb66   :  { %6650 = vmatpush3.bf16.msra.mxu1 %v4983_v4  ;;  %v7416_v4 = vld [vmem:[%s11562_s7 + $0x40] sm:$0xff] }
 0xb67   :  { %6651 = vmatprep.subr.bf16.mxu1 %v4982_v44 }
 0xb6a   :  { %6652 = vmatpush3.bf16.msra.mxu1 %v4982_v44 }
 0xb6b   :  { %6653 = vmatprep.subr.bf16.mxu1 %v4981_v28 }
 0xb6e   :  { %6654 = vmatpush3.bf16.msra.mxu1 %v4981_v28 }
 0xb6f   :  { %6655 = vmatprep.subr.bf16.mxu1 %v4980_v46 }
 0xb72   :  { %6656 = vmatpush3.bf16.msra.mxu1 %v4980_v46 }
 0xb73   :  { %6673 = vmatprep.subr.bf16.mxu1 %v11784_v9 }
 0xbe2   :  { %v6627_v25 = vpop.f32.mrf.mxu0 }
 0xbe3   :  { %v4750_v22 = vadd.f32 %v7409_v47, %v6627_v25  ;;  %v7419_v47 = vld [vmem:[%s11562_s7 + $0x58] sm:$0xff] }
 0xbe4   :  { %v4741_v6 = vpop.f32.mrf.mxu0 }
 0xbe5   :  { %v4742_v24 = vadd.f32 %v7408_v20, %v4741_v6  ;;  %v10790_v61 = vadd.f32 %v10774_v56, %v4750_v22  ;;  %v7418_v6 = vld [vmem:[%s11562_s7 + $0x48] sm:$0xff] }
 0xbe6   :  { %v6628_v62 = vpop.f32.mrf.mxu0 }
 0xbe7   :  { %v10783_v53 = vadd.f32 %v10774_v56, %v4742_v24  ;;  %v4753_v1 = vadd.f32 %v7411_v37, %v6628_v62 }
 0xbe8   :  { %v4744_v49 = vpop.f32.mrf.mxu0 }
 0xbe9   :  { %v4745_v12 = vadd.f32 %v7410_v43, %v4744_v49  ;;  %4828 = vmax.xlane.f32.xlu0 %v10783_v53  ;;  %v10804_v51 = vadd.f32 %v10774_v56, %v4753_v1 }
 0xbea   :  { %v6631_v16 = vpop.f32.mrf.mxu0 }
 0xbeb   :  { %v10796_v13 = vadd.f32 %v10774_v56, %v4745_v12  ;;  %v4766_v45 = vadd.f32 %v7413_v58, %v6631_v16  ;;  %v7420_v12 = vld [vmem:[%s11562_s7 + $0x60] sm:$0xff]  ;;  %v7422_v58 = vld [vmem:[%s11562_s7 + $0x68] sm:$0xff] }
 0xbec   :  { %v4757_v55 = vpop.f32.mrf.mxu0 }
 0xbed   :  { %v4758_v34 = vadd.f32 %v7412_v14, %v4757_v55  ;;  %4830 = vmax.xlane.f32.xlu1 %v10796_v13  ;;  %4832 = vmax.xlane.f32.xlu0 %v10790_v61  ;;  %v10818_v57 = vadd.f32 %v10774_v56, %v4766_v45  ;;  %v7421_v55 = vld [vmem:[%s11562_s7 + $0x70] sm:$0xff] }
 0xbee   :  { %v6632_v60 = vpop.f32.mrf.mxu0 }
 0xbef   :  { %v10810_v52 = vadd.f32 %v10774_v56, %v4758_v34  ;;  %v4769_v42 = vadd.f32 %v7415_v59, %v6632_v60 }
 0xbf0   :  { %v4760_v35 = vpop.f32.mrf.mxu0 }
 0xbf1   :  { %v4761_v18 = vadd.f32 %v7414_v32, %v4760_v35  ;;  %4836 = vmax.xlane.f32.xlu1 %v10810_v52  ;;  %4834 = vmax.xlane.f32.xlu0 %v10804_v51  ;;  %v10832_v46 = vadd.f32 %v10774_v56, %v4769_v42  ;;  %v7423_v32 = vld [vmem:[%s11562_s7 + $0x78] sm:$0xff] }
 0xbf2   :  { %v6635_v30 = vpop.f32.mrf.mxu0 }
 0xbf3   :  { %v10824_v33 = vadd.f32 %v10774_v56, %v4761_v18  ;;  %v4782_v26 = vadd.f32 %v7417_v40, %v6635_v30 }
 0xbf4   :  { %v4773_v8 = vpop.f32.mrf.mxu0 }
 0xbf5   :  { %v4774_v44 = vadd.f32 %v7416_v4, %v4773_v8  ;;  %4840 = vmax.xlane.f32.xlu1 %v10818_v57  ;;  %4838 = vmax.xlane.f32.xlu0 %v10824_v33  ;;  %v10846_v62 = vadd.f32 %v10774_v56, %v4782_v26 }
 0xbf6   :  { %v6636_v28 = vpop.f32.mrf.mxu0 }
 0xbf7   :  { %v10838_v23 = vadd.f32 %v10774_v56, %v4774_v44  ;;  %v4785_v22 = vadd.f32 %v7419_v47, %v6636_v28 }
 0xbf8   :  { %v4776_v25 = vpop.f32.mrf.mxu0 }
 0xbf9   :  { %v4777_v20 = vadd.f32 %v7418_v6, %v4776_v25  ;;  %4844 = vmax.xlane.f32.xlu1 %v10838_v23  ;;  %4842 = vmax.xlane.f32.xlu0 %v10832_v46  ;;  %v10860_v1 = vadd.f32 %v10774_v56, %v4785_v22 }
 0xbfa   :  { %v6639_v24 = vpop.f32.mrf.mxu0 }
 0xbfb   :  { %v10852_v49 = vadd.f32 %v10774_v56, %v4777_v20  ;;  %v4798_v14 = vadd.f32 %v7421_v55, %v6639_v24 }
 0xbfc   :  { %v4789_v43 = vpop.f32.mrf.mxu0 }
 0xbfd   :  { %v4790_v16 = vadd.f32 %v7420_v12, %v4789_v43  ;;  %4848 = vmax.xlane.f32.xlu1 %v10846_v62  ;;  %4846 = vmax.xlane.f32.xlu0 %v10852_v49  ;;  %v10874_v35 = vadd.f32 %v10774_v56, %v4798_v14 }
 0xbfe   :  { %v6640_v37 = vpop.f32.mrf.mxu0 }
 0xbff   :  { %v10866_v34 = vadd.f32 %v10774_v56, %v4790_v16  ;;  %v4801_v18 = vadd.f32 %v7423_v32, %v6640_v37 }
 0xc00   :  { %v4792_v60 = vpop.f32.mrf.mxu0 }
 0xc01   :  { %v4793_v45 = vadd.f32 %v7422_v58, %v4792_v60  ;;  %4850 = vmax.xlane.f32.xlu0 %v10860_v1  ;;  %4852 = vmax.xlane.f32.xlu1 %v10866_v34  ;;  %v10885_v59 = vadd.f32 %v10774_v56, %v4801_v18 }
 0xc03   :  { %v10880_v30 = vadd.f32 %v10774_v56, %v4793_v45 }
 0xc05   :  { %4854 = vmax.xlane.f32.xlu0 %v10880_v30  ;;  %4856 = vmax.xlane.f32.xlu1 %v10874_v35 }
 0xc09   :  { %4858 = vmax.xlane.f32.xlu0 %v10885_v59 }
 0xc72   :  { %v4829_v42 = vpop.xlane.xlu0 %4828 }
 0xc73   :  { %v4860_v8 = vsub.f32 %v10783_v53, %v4829_v42 }
 0xc75   :  { %v4876_v4 = vmul.f32 1.442695, %v4860_v8 }
 0xc76   :  { %v4831_v44 = vpop.xlane.xlu1 %4830  ;;  %v4833_v28 = vpop.xlane.xlu0 %4832 }
 0xc77   :  { %7300 = vpow2.f32 %v4876_v4  ;;  %v4861_v40 = vsub.f32 %v10796_v13, %v4831_v44  ;;  %v4862_v26 = vsub.f32 %v10790_v61, %v4833_v28 }
 0xc79   :  { %v4878_v25 = vmul.f32 1.442695, %v4861_v40  ;;  %v4880_v6 = vmul.f32 1.442695, %v4862_v26 }
 0xc7a   :  { %v4837_v20 = vpop.xlane.xlu1 %4836  ;;  %v4835_v24 = vpop.xlane.xlu0 %4834 }
 0xc7b   :  { %7302 = vpow2.f32 %v4878_v25  ;;  %v4864_v56 = vsub.f32 %v10810_v52, %v4837_v20  ;;  %v4863_v47 = vsub.f32 %v10804_v51, %v4835_v24 }
 0xc7c   :  { %7304 = vpow2.f32 %v4880_v6 }
 0xc7d   :  { %v4884_v22 = vmul.f32 1.442695, %v4864_v56  ;;  %v4882_v53 = vmul.f32 1.442695, %v4863_v47 }
 0xc7e   :  { %v4841_v43 = vpop.xlane.xlu1 %4840  ;;  %v4839_v12 = vpop.xlane.xlu0 %4838 }
 0xc7f   :  { %7306 = vpow2.f32 %v4884_v22  ;;  %v4866_v16 = vsub.f32 %v10818_v57, %v4841_v43  ;;  %v4865_v13 = vsub.f32 %v10824_v33, %v4839_v12 }
 0xc80   :  { %7308 = vpow2.f32 %v4882_v53 }
 0xc81   :  { %v4888_v61 = vmul.f32 1.442695, %v4866_v16  ;;  %v4886_v37 = vmul.f32 1.442695, %v4865_v13 }
 0xc82   :  { %v4845_v55 = vpop.xlane.xlu1 %4844  ;;  %v4843_v14 = vpop.xlane.xlu0 %4842 }
 0xc83   :  { %7310 = vpow2.f32 %v4888_v61  ;;  %v4868_v52 = vsub.f32 %v10838_v23, %v4845_v55  ;;  %v4867_v51 = vsub.f32 %v10832_v46, %v4843_v14  ;;  %v7424_v14 = vld [vmem:[%s11569_s21] sm:$0xff] }
 0xc84   :  { %v10897_v60 = vpop.eup %7300  ;;  %7312 = vpow2.f32 %v4886_v37 }
 0xc85   :  { %v4892_v58 = vmul.f32 1.442695, %v4868_v52  ;;  %v4890_v45 = vmul.f32 1.442695, %v4867_v51  ;;  %4908 = vadd.xlane.f32.xlu1 %v10897_v60  ;;  %v11786_v52 = vld [vmem:[#allocation30_spill] sm:$0xff] }
 0xc86   :  { %v4849_v57 = vpop.xlane.xlu1 %4848  ;;  %v4847_v32 = vpop.xlane.xlu0 %4846  ;;  %v10953_v51 = vmul.f32 %v11786_v52, %v7424_v14 }
 0xc87   :  { %7314 = vpow2.f32 %v4892_v58  ;;  %v4870_v33 = vsub.f32 %v10846_v62, %v4849_v57  ;;  %v4869_v18 = vsub.f32 %v10852_v49, %v4847_v32  ;;  %v2967_v57 = vld [vmem:[#allocation2] sm:$0x1] }
 0xc88   :  { %v10902_v42 = vpop.eup %7302  ;;  %7316 = vpow2.f32 %v4890_v45  ;;  %v11787_v45 = vld [vmem:[#allocation29_spill] sm:$0xff] }
 0xc89   :  { %v10904_v23 = vpop.eup %7304  ;;  %v4896_v46 = vmul.f32 1.442695, %v4870_v33  ;;  %v4894_v8 = vmul.f32 1.442695, %v4869_v18  ;;  %4910 = vadd.xlane.f32.xlu0 %v10902_v42 }
 0xc8a   :  { %4912 = vadd.xlane.f32.xlu1 %v10904_v23  ;;  %v4851_v4 = vpop.xlane.xlu0 %4850  ;;  %v4853_v44 = vpop.xlane.xlu1 %4852 }
 0xc8b   :  { %7318 = vpow2.f32 %v4896_v46  ;;  %v4871_v28 = vsub.f32 %v10860_v1, %v4851_v4  ;;  %v4872_v62 = vsub.f32 %v10866_v34, %v4853_v44 }
 0xc8c   :  { %v10910_v40 = vpop.eup %7306  ;;  %7320 = vpow2.f32 %v4894_v8 }
 0xc8d   :  { %v10912_v49 = vpop.eup %7308  ;;  %v4898_v26 = vmul.f32 1.442695, %v4871_v28  ;;  %v4900_v25 = vmul.f32 1.442695, %v4872_v62 }
 0xc8e   :  { %4914 = vadd.xlane.f32.xlu0 %v10912_v49  ;;  %4916 = vadd.xlane.f32.xlu1 %v10910_v40  ;;  %v4855_v6 = vpop.xlane.xlu0 %4854  ;;  %v4857_v20 = vpop.xlane.xlu1 %4856 }
 0xc8f   :  { %7322 = vpow2.f32 %v4898_v26  ;;  %v4873_v24 = vsub.f32 %v10880_v30, %v4855_v6  ;;  %v4874_v1 = vsub.f32 %v10874_v35, %v4857_v20 }
 0xc90   :  { %v10918_v56 = vpop.eup %7310  ;;  %7324 = vpow2.f32 %v4900_v25 }
 0xc91   :  { %v10920_v34 = vpop.eup %7312  ;;  %v4902_v47 = vmul.f32 1.442695, %v4873_v24  ;;  %v4904_v22 = vmul.f32 1.442695, %v4874_v1 }
 0xc92   :  { %4918 = vadd.xlane.f32.xlu0 %v10920_v34  ;;  %4920 = vadd.xlane.f32.xlu1 %v10918_v56  ;;  %v4859_v53 = vpop.xlane.xlu0 %4858 }
 0xc93   :  { %7326 = vpow2.f32 %v4902_v47  ;;  %v4875_v43 = vsub.f32 %v10885_v59, %v4859_v53 }
 0xc94   :  { %v10925_v12 = vpop.eup %7314  ;;  %7328 = vpow2.f32 %v4904_v22 }
 0xc95   :  { %v10927_v30 = vpop.eup %7316  ;;  %v4906_v35 = vmul.f32 1.442695, %v4875_v43 }
 0xc96   :  { %4922 = vadd.xlane.f32.xlu0 %v10927_v30  ;;  %4924 = vadd.xlane.f32.xlu1 %v10925_v12 }
 0xc97   :  { %7330 = vpow2.f32 %v4906_v35 }
 0xc98   :  { %v10931_v16 = vpop.eup %7318 }
 0xc99   :  { %v10933_v13 = vpop.eup %7320 }
 0xc9a   :  { %4926 = vadd.xlane.f32.xlu0 %v10933_v13  ;;  %4928 = vadd.xlane.f32.xlu1 %v10931_v16 }
 0xc9c   :  { %v10937_v59 = vpop.eup %7322 }
 0xc9d   :  { %v10939_v61 = vpop.eup %7324 }
 0xc9e   :  { %4930 = vadd.xlane.f32.xlu0 %v10937_v59  ;;  %4932 = vadd.xlane.f32.xlu1 %v10939_v61 }
 0xca0   :  { %v10943_v37 = vpop.eup %7326 }
 0xca1   :  { %v10945_v55 = vpop.eup %7328 }
 0xca2   :  { %4934 = vadd.xlane.f32.xlu0 %v10943_v37  ;;  %4936 = vadd.xlane.f32.xlu1 %v10945_v55 }
 0xca4   :  { %v10955_v58 = vpop.eup %7330 }
 0xca6   :  { %4938 = vadd.xlane.f32.xlu0 %v10955_v58  ;;  %5672 = vadd.xlane.f32.xlu1 %v10953_v51 }
 0xcaa   :  { %5674 = vadd.xlane.f32.xlu0 %v11787_v45 }
 0xcb7   :  { %2970 = vperm.xlu1 %7195, %v2967_v57  }
 0xd0e   :  { %v4909_v32 = vpop.xlane.xlu1 %4908 }
 0xd0f   :  { %7332 = vrcp.f32 %v4909_v32 }
 0xd12   :  { %v4911_v33 = vpop.xlane.xlu0 %4910 }
 0xd13   :  { %7334 = vrcp.f32 %v4911_v33  ;;  %v4913_v18 = vpop.xlane.xlu1 %4912 }
 0xd14   :  { %7336 = vrcp.f32 %v4913_v18 }
 0xd17   :  { %v4915_v46 = vpop.xlane.xlu0 %4914  ;;  %v4917_v8 = vpop.xlane.xlu1 %4916 }
 0xd18   :  { %7338 = vrcp.f32 %v4915_v46 }
 0xd19   :  { %7340 = vrcp.f32 %v4917_v8 }
 0xd1b   :  { %v4919_v4 = vpop.xlane.xlu0 %4918  ;;  %v4921_v44 = vpop.xlane.xlu1 %4920 }
 0xd1c   :  { %7342 = vrcp.f32 %v4919_v4  ;;  %v7333_v28 = vpop.eup %7332 }
 0xd1d   :  { %7344 = vrcp.f32 %v4921_v44  ;;  %v4956_v6 = vmul.f32 %v7333_v28, %v10897_v60 }
 0xd1f   :  { %v4923_v62 = vpop.xlane.xlu0 %4922  ;;  %v4925_v26 = vpop.xlane.xlu1 %4924 }
 0xd20   :  { %v7335_v25 = vpop.eup %7334  ;;  %7346 = vrcp.f32 %v4923_v62 }
 0xd21   :  { %v4957_v20 = vmul.f32 %v7335_v25, %v10902_v42  ;;  %7348 = vrcp.f32 %v4925_v26  ;;  %v7337_v24 = vpop.eup %7336  ;;  %v11789_v26 = vld [vmem:[#allocation76_spill] sm:$0xff] }
 0xd22   :  { %v4958_v43 = vmul.f32 %v7337_v24, %v10904_v23 }
 0xd23   :  { %v4927_v1 = vpop.xlane.xlu0 %4926  ;;  %v4929_v47 = vpop.xlane.xlu1 %4928  ;;  %v4972_v22 = vpack.c.bf16 %v4957_v20, %v4956_v6 }
 0xd24   :  { %7350 = vrcp.f32 %v4927_v1 }
 0xd25   :  { %v7339_v53 = vpop.eup %7338  ;;  %6657 = vmatprep.mubr.bf16.mxu1 %v4972_v22  ;;  %7352 = vrcp.f32 %v4929_v47 }
 0xd26   :  { %v4959_v35 = vmul.f32 %v7339_v53, %v10912_v49  ;;  %v7341_v14 = vpop.eup %7340  ;;  %v11788_v49 = vld [vmem:[#allocation18_spill] sm:$0xff] }
 0xd27   :  { %v4931_v52 = vpop.xlane.xlu0 %4930  ;;  %v4933_v57 = vpop.xlane.xlu1 %4932  ;;  %v4960_v42 = vmul.f32 %v7341_v14, %v10910_v40 }
 0xd28   :  { %7354 = vrcp.f32 %v4931_v52  ;;  %v4973_v60 = vpack.c.bf16 %v4959_v35, %v4958_v43 }
 0xd29   :  { %v7343_v32 = vpop.eup %7342  ;;  %7356 = vrcp.f32 %v4933_v57 }
 0xd2a   :  { %6658 = vmatmul.mubr.bf16.vlgmr.msra.gmra.mxu1 %v4973_v60  ;;  %v4961_v33 = vmul.f32 %v7343_v32, %v10920_v34  ;;  %v7345_v18 = vpop.eup %7344 }
 0xd2b   :  { %v4935_v46 = vpop.xlane.xlu0 %4934  ;;  %v4937_v8 = vpop.xlane.xlu1 %4936  ;;  %6674 = vmatpush3.bf16.msra.mxu1 %v11784_v9  ;;  %v4962_v44 = vmul.f32 %v7345_v18, %v10918_v56 }
 0xd2c   :  { %7358 = vrcp.f32 %v4935_v46  ;;  %v4974_v23 = vpack.c.bf16 %v4961_v33, %v4960_v42  ;;  %6675 = vmatprep.subr.bf16.mxu1 %v11788_v49 }
 0xd2d   :  { %v7347_v4 = vpop.eup %7346  ;;  %7360 = vrcp.f32 %v4937_v8 }
 0xd2e   :  { %6661 = vmatprep.mubr.bf16.mxu1 %v4974_v23  ;;  %v4963_v28 = vmul.f32 %v7347_v4, %v10927_v30  ;;  %v7349_v62 = vpop.eup %7348  ;;  %v11791_v4 = vld [vmem:[#allocation78_spill] sm:$0xff] }
 0xd2f   :  { %v4939_v40 = vpop.xlane.xlu0 %4938  ;;  %6676 = vmatpush3.bf16.msra.mxu1 %v11788_v49  ;;  %v4964_v25 = vmul.f32 %v7349_v62, %v10925_v12  ;;  %v11792_v62 = vld [vmem:[#allocation83_spill] sm:$0xff] }
 0xd30   :  { %7362 = vrcp.f32 %v4939_v40  ;;  %v4975_v34 = vpack.c.bf16 %v4963_v28, %v4962_v44  ;;  %6713 = vmatprep.subr.bf16.mxu1 %v11789_v26 }
 0xd31   :  { %v7351_v9 = vpop.eup %7350 }
 0xd32   :  { %6662 = vmatmul.mubr.bf16.gmra.mxu1 %v4975_v34  ;;  %v4965_v6 = vmul.f32 %v7351_v9, %v10933_v13  ;;  %v7353_v20 = vpop.eup %7352 }
 0xd33   :  { %v4966_v56 = vmul.f32 %v7353_v20, %v10931_v16 }
 0xd34   :  { %v4976_v24 = vpack.c.bf16 %v4965_v6, %v4964_v25 }
 0xd35   :  { %v7355_v1 = vpop.eup %7354 }
 0xd36   :  { %6665 = vmatprep.mubr.bf16.mxu1 %v4976_v24  ;;  %v4967_v30 = vmul.f32 %v7355_v1, %v10937_v59  ;;  %v7357_v47 = vpop.eup %7356 }
 0xd37   :  { %v4968_v43 = vmul.f32 %v7357_v47, %v10939_v61 }
 0xd38   :  { %v4977_v22 = vpack.c.bf16 %v4967_v30, %v4966_v56 }
 0xd39   :  { %v7359_v53 = vpop.eup %7358 }
 0xd3a   :  { %6666 = vmatmul.mubr.bf16.gmra.mxu1 %v4977_v22  ;;  %v4969_v35 = vmul.f32 %v7359_v53, %v10943_v37  ;;  %v7361_v14 = vpop.eup %7360 }
 0xd3b   :  { %v4970_v13 = vmul.f32 %v7361_v14, %v10945_v55  ;;  %v11790_v55 = vld [vmem:[#allocation77_spill] sm:$0xff] }
 0xd3c   :  { %v4978_v12 = vpack.c.bf16 %v4969_v35, %v4968_v43 }
 0xd3d   :  { %v7363_v52 = vpop.eup %7362 }
 0xd3e   :  { %6669 = vmatprep.mubr.bf16.mxu1 %v4978_v12  ;;  %v4971_v57 = vmul.f32 %v7363_v52, %v10955_v58 }
 0xd40   :  { %v4979_v60 = vpack.c.bf16 %v4971_v57, %v4970_v13 }
 0xd42   :  { %6670 = vmatmul.mubr.bf16.gmra.mxu1 %v4979_v60 }
 0xdea   :  { %v6659_v16 = vpop.f32.mrf.mxu1 }
 0xdec   :  { %v5022_v59 = vpop.f32.mrf.mxu1 }
 0xdee   :  { %v6660_v32 = vpop.f32.mrf.mxu1 }
 0xdef   :  { %v5086_v18 = vpack.c.bf16 %v6660_v32, %v6659_v16 }
 0xdf0   :  { %v5025_v42 = vpop.f32.mrf.mxu1 }
 0xdf1   :  { %v5085_v33 = vpack.c.bf16 %v5025_v42, %v5022_v59 }
 0xdf2   :  { %v6663_v46 = vpop.f32.mrf.mxu1 }
 0xdf3   :  { %6677 = vmatprep.mubr.msk.bf16.mxu1 %vm1416_vm0, %v5085_v33 }
 0xdf4   :  { %v5038_v61 = vpop.f32.mrf.mxu1  ;;  %6678 = vmatmul.mubr.msk.bf16.vlgmr.msra.gmra.mxu1 %vm1416_vm0, %v5086_v18 }
 0xdf5   :  { %6714 = vmatpush3.bf16.msra.mxu1 %v11789_v26 }
 0xdf6   :  { %v6664_v37 = vpop.f32.mrf.mxu1  ;;  %6715 = vmatprep.subr.bf16.mxu1 %v11790_v55 }
 0xdf7   :  { %v5088_v23 = vpack.c.bf16 %v6664_v37, %v6663_v46 }
 0xdf8   :  { %v5041_v58 = vpop.f32.mrf.mxu1 }
 0xdf9   :  { %v5087_v8 = vpack.c.bf16 %v5041_v58, %v5038_v61  ;;  %6716 = vmatpush3.bf16.msra.mxu1 %v11790_v55 }
 0xdfa   :  { %v6667_v49 = vpop.f32.mrf.mxu1  ;;  %6717 = vmatprep.subr.bf16.mxu1 %v11791_v4 }
 0xdfb   :  { %6681 = vmatprep.mubr.msk.bf16.mxu1 %vm1416_vm0, %v5087_v8 }
 0xdfc   :  { %v5054_v44 = vpop.f32.mrf.mxu1  ;;  %6682 = vmatmul.mubr.msk.bf16.gmra.mxu1 %vm1416_vm0, %v5088_v23 }
 0xdfd   :  { %6718 = vmatpush3.bf16.msra.mxu1 %v11791_v4 }
 0xdfe   :  { %v6668_v28 = vpop.f32.mrf.mxu1  ;;  %6719 = vmatprep.subr.bf16.mxu1 %v11792_v62 }
 0xdff   :  { %v5090_v26 = vpack.c.bf16 %v6668_v28, %v6667_v49 }
 0xe00   :  { %v5057_v40 = vpop.f32.mrf.mxu1 }
 0xe01   :  { %v5089_v34 = vpack.c.bf16 %v5057_v40, %v5054_v44  ;;  %6720 = vmatpush3.bf16.msra.mxu1 %v11792_v62 }
 0xe02   :  { %v6671_v9 = vpop.f32.mrf.mxu1 }
 0xe03   :  { %6685 = vmatprep.mubr.msk.bf16.mxu1 %vm1416_vm0, %v5089_v34 }
 0xe04   :  { %v5070_v25 = vpop.f32.mrf.mxu1  ;;  %6686 = vmatmul.mubr.msk.bf16.gmra.mxu1 %vm1416_vm0, %v5090_v26 }
 0xe06   :  { %v6672_v6 = vpop.f32.mrf.mxu1 }
 0xe07   :  { %v5092_v1 = vpack.c.bf16 %v6672_v6, %v6671_v9 }
 0xe08   :  { %v5073_v20 = vpop.f32.mrf.mxu1 }
 0xe09   :  { %v5091_v24 = vpack.c.bf16 %v5073_v20, %v5070_v25 }
 0xe0b   :  { %6689 = vmatprep.mubr.msk.bf16.mxu1 %vm1416_vm0, %v5091_v24 }
 0xe0c   :  { %6690 = vmatmul.mubr.msk.bf16.gmra.mxu1 %vm1416_vm0, %v5092_v1 }
 0xeb4   :  { %v6679_v56 = vpop.f32.mrf.mxu1 }
 0xeb5   :  { %v11005_v14 = vadd.f32 %v6679_v56, %v10432_v2 }
 0xeb6   :  { %v5151_v30 = vpop.f32.mrf.mxu1 }
 0xeb7   :  { %v10999_v43 = vadd.f32 %v5151_v30, %v10419_v3 }
 0xeb8   :  { %v6680_v47 = vpop.f32.mrf.mxu1 }
 0xeb9   :  { %v10996_v22 = vadd.f32 %v6680_v47, %v10434_v54 }
 0xeba   :  { %v5154_v53 = vpop.f32.mrf.mxu1 }
 0xebb   :  { %v11002_v35 = vadd.f32 %v5154_v53, %v10411_v27  ;;  %v5231_v13 = vpack.c.bf16 %v10996_v22, %v11005_v14 }
 0xebc   :  { %v6683_v12 = vpop.f32.mrf.mxu1 }
 0xebd   :  { %v5230_v52 = vpack.c.bf16 %v11002_v35, %v10999_v43  ;;  %v11023_v16 = vadd.f32 %v6683_v12, %v10514_v36 }
 0xebe   :  { %v5167_v57 = vpop.f32.mrf.mxu1 }
 0xebf   :  { %6697 = vmatprep.mubr.msk.bf16.mxu0 %vm1416_vm0, %v5230_v52  ;;  %v11017_v2 = vadd.f32 %v5167_v57, %v10495_v31 }
 0xec0   :  { %v6684_v54 = vpop.f32.mrf.mxu1  ;;  %6698 = vmatmul.mubr.msk.bf16.vlgmr.msra.gmra.mxu0 %vm1416_vm0, %v5231_v13 }
 0xec1   :  { %v11014_v3 = vadd.f32 %v6684_v54, %v10505_v0 }
 0xec2   :  { %v5170_v27 = vpop.f32.mrf.mxu1 }
 0xec3   :  { %v11020_v60 = vadd.f32 %v5170_v27, %v10486_v63  ;;  %v5233_v42 = vpack.c.bf16 %v11014_v3, %v11023_v16 }
 0xec4   :  { %v6687_v59 = vpop.f32.mrf.mxu1 }
 0xec5   :  { %v5232_v32 = vpack.c.bf16 %v11020_v60, %v11017_v2  ;;  %v11041_v46 = vadd.f32 %v6687_v59, %v10561_v7 }
 0xec6   :  { %v5183_v33 = vpop.f32.mrf.mxu1 }
 0xec7   :  { %6701 = vmatprep.mubr.msk.bf16.mxu0 %vm1416_vm0, %v5232_v32  ;;  %v11035_v36 = vadd.f32 %v5183_v33, %v10551_v48 }
 0xec8   :  { %v6688_v0 = vpop.f32.mrf.mxu1  ;;  %6702 = vmatmul.mubr.msk.bf16.gmra.mxu0 %vm1416_vm0, %v5233_v42 }
 0xec9   :  { %v11032_v31 = vadd.f32 %v6688_v0, %v10567_v38 }
 0xeca   :  { %v5186_v63 = vpop.f32.mrf.mxu1 }
 0xecb   :  { %v11038_v18 = vadd.f32 %v5186_v63, %v10553_v50  ;;  %v5235_v55 = vpack.c.bf16 %v11032_v31, %v11041_v46 }
 0xecc   :  { %v6691_v61 = vpop.f32.mrf.mxu1 }
 0xecd   :  { %v5234_v37 = vpack.c.bf16 %v11038_v18, %v11035_v36  ;;  %v11059_v23 = vadd.f32 %v6691_v61, %v10618_v41 }
 0xece   :  { %v5199_v58 = vpop.f32.mrf.mxu1 }
 0xecf   :  { %6705 = vmatprep.mubr.msk.bf16.mxu0 %vm1416_vm0, %v5234_v37  ;;  %v11053_v7 = vadd.f32 %v5199_v58, %v10608_v39 }
 0xed0   :  { %v6692_v38 = vpop.f32.mrf.mxu1  ;;  %6706 = vmatmul.mubr.msk.bf16.gmra.mxu0 %vm1416_vm0, %v5235_v55 }
 0xed1   :  { %v11050_v48 = vadd.f32 %v6692_v38, %v10620_v17 }
 0xed2   :  { %v5202_v50 = vpop.f32.mrf.mxu1 }
 0xed3   :  { %v11056_v8 = vadd.f32 %v5202_v50, %v10610_v21  ;;  %v5237_v4 = vpack.c.bf16 %v11050_v48, %v11059_v23  ;;  %v11072_v21 = vld [vmem:[%s11271_s12] ss:$0 sm:$0xff] }
 0xed5   :  { %v5236_v49 = vpack.c.bf16 %v11056_v8, %v11053_v7 }
 0xed7   :  { %6709 = vmatprep.mubr.msk.bf16.mxu0 %vm1416_vm0, %v5236_v49 }
 0xed8   :  { %6710 = vmatmul.mubr.msk.bf16.gmra.mxu0 %vm1416_vm0, %v5237_v4 }
 0xed9   :  { %6753 = vmatprep.mubr.msk.bf16.mxu0 %vm7585_vm6, %v11751_v5 }
 0xf80   :  { %v6699_v39 = vpop.f32.mrf.mxu0 }
 0xf81   :  { %v11075_v41 = vadd.f32 %v11072_v21, %v6699_v39 }
 0xf82   :  { %v5296_v17 = vpop.f32.mrf.mxu0 }
 0xf83   :  { %v5361_v44 = vmul.f32 %v11075_v41, %v11075_v41  ;;  %v11080_v28 = vadd.f32 %v11072_v21, %v5296_v17 }
 0xf84   :  { %v6700_v62 = vpop.f32.mrf.mxu0 }
 0xf85   :  { %v5377_v40 = vmul.f32 %v5361_v44, %v11075_v41  ;;  %v5359_v34 = vmul.f32 %v11080_v28, %v11080_v28  ;;  %v11086_v26 = vadd.f32 %v11072_v21, %v6700_v62 }
 0xf86   :  { %v5299_v9 = vpop.f32.mrf.mxu0 }
 0xf87   :  { %v5393_v25 = vmul.f32 0.044715, %v5377_v40  ;;  %v5375_v6 = vmul.f32 %v5359_v34, %v11080_v28  ;;  %v5362_v20 = vmul.f32 %v11086_v26, %v11086_v26  ;;  %v11092_v24 = vadd.f32 %v11072_v21, %v5299_v9 }
 0xf88   :  { %v6703_v1 = vpop.f32.mrf.mxu0 }
 0xf89   :  { %v5409_v56 = vadd.f32 %v5393_v25, %v11075_v41  ;;  %v5391_v30 = vmul.f32 0.044715, %v5375_v6  ;;  %v5378_v47 = vmul.f32 %v5362_v20, %v11086_v26  ;;  %v5360_v53 = vmul.f32 %v11092_v24, %v11092_v24 }
 0xf8a   :  { %v11099_v12 = vadd.f32 %v11072_v21, %v6703_v1  ;;  %v5312_v52 = vpop.f32.mrf.mxu0 }
 0xf8b   :  { %v5425_v13 = vmul.f32 0.7978846, %v5409_v56  ;;  %v5407_v57 = vadd.f32 %v5391_v30, %v11080_v28  ;;  %v5394_v54 = vmul.f32 0.044715, %v5378_v47  ;;  %v5376_v27 = vmul.f32 %v5360_v53, %v11092_v24 }
 0xf8c   :  { %v5365_v59 = vmul.f32 %v11099_v12, %v11099_v12  ;;  %v11106_v32 = vadd.f32 %v11072_v21, %v5312_v52  ;;  %v6704_v42 = vpop.f32.mrf.mxu0 }
 0xf8d   :  { %7364 = vtanh.f32 %v5425_v13  ;;  %v5423_v33 = vmul.f32 0.7978846, %v5407_v57  ;;  %v5410_v0 = vadd.f32 %v5394_v54, %v11086_v26  ;;  %v5392_v63 = vmul.f32 0.044715, %v5376_v27 }
 0xf8e   :  { %v5381_v61 = vmul.f32 %v5365_v59, %v11099_v12  ;;  %v5363_v37 = vmul.f32 %v11106_v32, %v11106_v32  ;;  %v11113_v55 = vadd.f32 %v11072_v21, %v6704_v42  ;;  %v5315_v58 = vpop.f32.mrf.mxu0 }
 0xf8f   :  { %7366 = vtanh.f32 %v5423_v33  ;;  %v5426_v38 = vmul.f32 0.7978846, %v5410_v0  ;;  %v5408_v50 = vadd.f32 %v5392_v63, %v11092_v24  ;;  %v11117_v49 = vadd.f32 %v11072_v21, %v5315_v58 }
 0xf90   :  { %v5397_v4 = vmul.f32 0.044715, %v5381_v61  ;;  %v5379_v39 = vmul.f32 %v5363_v37, %v11106_v32  ;;  %v5366_v17 = vmul.f32 %v11113_v55, %v11113_v55  ;;  %v6707_v44 = vpop.f32.mrf.mxu0 }
 0xf91   :  { %7368 = vtanh.f32 %v5426_v38  ;;  %v5424_v62 = vmul.f32 0.7978846, %v5408_v50  ;;  %v5364_v40 = vmul.f32 %v11117_v49, %v11117_v49  ;;  %v11125_v34 = vadd.f32 %v11072_v21, %v6707_v44 }
 0xf92   :  { %v5413_v9 = vadd.f32 %v5397_v4, %v11099_v12  ;;  %v5395_v25 = vmul.f32 0.044715, %v5379_v39  ;;  %v5382_v6 = vmul.f32 %v5366_v17, %v11113_v55  ;;  %v5328_v20 = vpop.f32.mrf.mxu0 }
 0xf93   :  { %7370 = vtanh.f32 %v5424_v62  ;;  %v5380_v1 = vmul.f32 %v5364_v40, %v11117_v49  ;;  %v5369_v56 = vmul.f32 %v11125_v34, %v11125_v34  ;;  %v11133_v30 = vadd.f32 %v11072_v21, %v5328_v20 }
 0xf94   :  { %v5429_v47 = vmul.f32 0.7978846, %v5413_v9  ;;  %v5411_v53 = vadd.f32 %v5395_v25, %v11106_v32  ;;  %v5398_v52 = vmul.f32 0.044715, %v5382_v6  ;;  %v6708_v13 = vpop.f32.mrf.mxu0 }
 0xf95   :  { %v5396_v57 = vmul.f32 0.044715, %v5380_v1  ;;  %v5385_v54 = vmul.f32 %v5369_v56, %v11125_v34  ;;  %v5367_v27 = vmul.f32 %v11133_v30, %v11133_v30  ;;  %v11140_v59 = vadd.f32 %v11072_v21, %v6708_v13 }
 0xf96   :  { %7372 = vtanh.f32 %v5429_v47  ;;  %v5427_v42 = vmul.f32 0.7978846, %v5411_v53  ;;  %v5414_v33 = vadd.f32 %v5398_v52, %v11113_v55  ;;  %v5331_v0 = vpop.f32.mrf.mxu0 }
 0xf97   :  { %v5412_v63 = vadd.f32 %v5396_v57, %v11117_v49  ;;  %v5401_v61 = vmul.f32 0.044715, %v5385_v54  ;;  %v5383_v37 = vmul.f32 %v5367_v27, %v11133_v30  ;;  %v5370_v58 = vmul.f32 %v11140_v59, %v11140_v59 }
 0xf98   :  { %7374 = vtanh.f32 %v5427_v42  ;;  %v5430_v38 = vmul.f32 0.7978846, %v5414_v33  ;;  %v11148_v50 = vadd.f32 %v11072_v21, %v5331_v0  ;;  %v6711_v4 = vpop.f32.mrf.mxu0 }
 0xf99   :  { %v5428_v39 = vmul.f32 0.7978846, %v5412_v63  ;;  %v5417_v17 = vadd.f32 %v5401_v61, %v11125_v34  ;;  %v5399_v44 = vmul.f32 0.044715, %v5383_v37  ;;  %v5386_v62 = vmul.f32 %v5370_v58, %v11140_v59 }
 0xf9a   :  { %v7365_v40 = vpop.eup %7364  ;;  %7376 = vtanh.f32 %v5430_v38  ;;  %v5368_v9 = vmul.f32 %v11148_v50, %v11148_v50  ;;  %v11155_v25 = vadd.f32 %v11072_v21, %v6711_v4  ;;  %v5344_v6 = vpop.f32.mrf.mxu0 }
 0xf9b   :  { %7378 = vtanh.f32 %v5428_v39  ;;  %v5433_v20 = vmul.f32 0.7978846, %v5417_v17  ;;  %v5415_v1 = vadd.f32 %v5399_v44, %v11133_v30  ;;  %v5402_v47 = vmul.f32 0.044715, %v5386_v62 }
 0xf9c   :  { %v7367_v56 = vpop.eup %7366  ;;  %v5384_v53 = vmul.f32 %v5368_v9, %v11148_v50  ;;  %v5373_v52 = vmul.f32 %v11155_v25, %v11155_v25  ;;  %v11162_v13 = vadd.f32 %v11072_v21, %v5344_v6  ;;  %v6712_v57 = vpop.f32.mrf.mxu0  ;;  %v5457_v54 = vadd.f32 1.0, %v7365_v40 }
 0xf9d   :  { %v5455_v27 = vadd.f32 1.0, %v7367_v56  ;;  %7380 = vtanh.f32 %v5433_v20  ;;  %v5431_v42 = vmul.f32 0.7978846, %v5415_v1  ;;  %v5418_v0 = vadd.f32 %v5402_v47, %v11140_v59 }
 0xf9e   :  { %v7369_v33 = vpop.eup %7368  ;;  %v5400_v63 = vmul.f32 0.044715, %v5384_v53  ;;  %v5389_v61 = vmul.f32 %v5373_v52, %v11155_v25  ;;  %v5371_v37 = vmul.f32 %v11162_v13, %v11162_v13  ;;  %v5347_v62 = vpop.f32.mrf.mxu0  ;;  %v11171_v20 = vadd.f32 %v11072_v21, %v6712_v57 }
 0xf9f   :  { %v5458_v58 = vadd.f32 1.0, %v7369_v33  ;;  %7382 = vtanh.f32 %v5431_v42  ;;  %v5434_v4 = vmul.f32 0.7978846, %v5418_v0  ;;  %v5471_v40 = vmul.f32 0.5, %v5455_v27 }
 0xfa0   :  { %v7371_v38 = vpop.eup %7370  ;;  %v5416_v39 = vadd.f32 %v5400_v63, %v11148_v50  ;;  %v5405_v17 = vmul.f32 0.044715, %v5389_v61  ;;  %v5387_v44 = vmul.f32 %v5371_v37, %v11162_v13  ;;  %v5473_v1 = vmul.f32 0.5, %v5457_v54 }
 0xfa1   :  { %v5474_v9 = vmul.f32 0.5, %v5458_v58  ;;  %v5456_v6 = vadd.f32 1.0, %v7371_v38  ;;  %7384 = vtanh.f32 %v5434_v4  ;;  %v5374_v33 = vmul.f32 %v11171_v20, %v11171_v20 }
 0xfa2   :  { %v5432_v56 = vmul.f32 0.7978846, %v5416_v39  ;;  %v5403_v47 = vmul.f32 0.044715, %v5387_v44  ;;  %v5421_v42 = vadd.f32 %v5405_v17, %v11155_v25  ;;  %v11177_v0 = vadd.f32 %v11072_v21, %v5347_v62 }
 0xfa3   :  { %v7373_v53 = vpop.eup %7372  ;;  %v5472_v52 = vmul.f32 0.5, %v5456_v6  ;;  %v5490_v27 = vmul.f32 %v5474_v9, %v11086_v26  ;;  %v5487_v54 = vmul.f32 %v5471_v40, %v11080_v28  ;;  %v5390_v37 = vmul.f32 %v5374_v33, %v11171_v20 }
 0xfa4   :  { %7386 = vtanh.f32 %v5432_v56  ;;  %v5419_v57 = vadd.f32 %v5403_v47, %v11162_v13  ;;  %v5372_v58 = vmul.f32 %v11177_v0, %v11177_v0  ;;  %v5489_v38 = vmul.f32 %v5473_v1, %v11075_v41 }
 0xfa5   :  { %v7375_v63 = vpop.eup %7374  ;;  %v5488_v61 = vmul.f32 %v5472_v52, %v11092_v24  ;;  %v5461_v4 = vadd.f32 1.0, %v7373_v53  ;;  %v5437_v26 = vmul.f32 0.7978846, %v5421_v42  ;;  %v5406_v44 = vmul.f32 0.044715, %v5390_v37 }
 0xfa6   :  { %v5459_v21 = vadd.f32 1.0, %v7375_v63  ;;  %v5435_v39 = vmul.f32 0.7978846, %v5419_v57  ;;  %v5388_v62 = vmul.f32 %v5372_v58, %v11177_v0  ;;  %v5504_v28 = vpack.c.bf16 %v5490_v27, %v5489_v38 }
 0xfa7   :  { %v7377_v17 = vpop.eup %7376  ;;  %v5503_v9 = vpack.c.bf16 %v5488_v61, %v5487_v54  ;;  %v5422_v47 = vadd.f32 %v5406_v44, %v11171_v20  ;;  %v5477_v1 = vmul.f32 0.5, %v5461_v4 }
 0xfa8   :  { %v7379_v6 = vpop.eup %7378  ;;  %v5462_v40 = vadd.f32 1.0, %v7377_v17  ;;  %v5475_v24 = vmul.f32 0.5, %v5459_v21  ;;  %v5404_v52 = vmul.f32 0.044715, %v5388_v62  ;;  %7388 = vtanh.f32 %v5435_v39 }
 0xfa9   :  { %v5460_v56 = vadd.f32 1.0, %v7379_v6  ;;  %6721 = vmatprep.mubr.msk.bf16.mxu1 %vm2659_vm5, %v5503_v9  ;;  %7390 = vtanh.f32 %v5437_v26  ;;  %v5438_v33 = vmul.f32 0.7978846, %v5422_v47  ;;  %v5493_v37 = vmul.f32 %v5477_v1, %v11099_v12 }
 0xfaa   :  { %v7381_v41 = vpop.eup %7380  ;;  %v5478_v53 = vmul.f32 0.5, %v5462_v40  ;;  %6722 = vmatmul.mubr.msk.bf16.vlgmr.msra.gmra.mxu1 %vm2659_vm5, %v5504_v28  ;;  %v5420_v57 = vadd.f32 %v5404_v52, %v11177_v0  ;;  %v5491_v54 = vmul.f32 %v5475_v24, %v11106_v32 }
 0xfab   :  { %v5476_v42 = vmul.f32 0.5, %v5460_v56  ;;  %7392 = vtanh.f32 %v5438_v33  ;;  %v5465_v21 = vadd.f32 1.0, %v7381_v41 }
 0xfac   :  { %v7383_v27 = vpop.eup %7382  ;;  %v5494_v63 = vmul.f32 %v5478_v53, %v11113_v55  ;;  %v5436_v38 = vmul.f32 0.7978846, %v5420_v57 }
 0xfad   :  { %v5492_v61 = vmul.f32 %v5476_v42, %v11117_v49  ;;  %v5463_v58 = vadd.f32 1.0, %v7383_v27  ;;  %v5481_v32 = vmul.f32 0.5, %v5465_v21 }
 0xfae   :  { %v7385_v4 = vpop.eup %7384  ;;  %v5506_v17 = vpack.c.bf16 %v5494_v63, %v5493_v37  ;;  %7394 = vtanh.f32 %v5436_v38 }
 0xfaf   :  { %v5505_v39 = vpack.c.bf16 %v5492_v61, %v5491_v54  ;;  %v5466_v26 = vadd.f32 1.0, %v7385_v4  ;;  %v5479_v62 = vmul.f32 0.5, %v5463_v58  ;;  %v5497_v24 = vmul.f32 %v5481_v32, %v11125_v34 }
 0xfb1   :  { %v7387_v44 = vpop.eup %7386  ;;  %6725 = vmatprep.mubr.msk.bf16.mxu1 %vm2659_vm5, %v5505_v39  ;;  %v5482_v55 = vmul.f32 0.5, %v5466_v26  ;;  %v5495_v6 = vmul.f32 %v5479_v62, %v11133_v30 }
 0xfb2   :  { %v5464_v9 = vadd.f32 1.0, %v7387_v44  ;;  %6726 = vmatmul.mubr.msk.bf16.gmra.mxu1 %vm2659_vm5, %v5506_v17 }
 0xfb3   :  { %v5498_v12 = vmul.f32 %v5482_v55, %v11140_v59 }
 0xfb4   :  { %v5480_v49 = vmul.f32 0.5, %v5464_v9 }
 0xfb5   :  { %v7389_v40 = vpop.eup %7388  ;;  %v5508_v52 = vpack.c.bf16 %v5498_v12, %v5497_v24 }
 0xfb6   :  { %v5496_v28 = vmul.f32 %v5480_v49, %v11148_v50  ;;  %v7391_v56 = vpop.eup %7390  ;;  %v5467_v1 = vadd.f32 1.0, %v7389_v40 }
 0xfb7   :  { %v5469_v53 = vadd.f32 1.0, %v7391_v56 }
 0xfb8   :  { %v5507_v47 = vpack.c.bf16 %v5496_v28, %v5495_v6  ;;  %v7393_v41 = vpop.eup %7392  ;;  %v5483_v57 = vmul.f32 0.5, %v5467_v1  ;;  %v7426_v28 = vld [vmem:[%s11273_s14] ss:$0 sm:$0xff] }
 0xfb9   :  { %v5470_v42 = vadd.f32 1.0, %v7393_v41  ;;  %v5485_v27 = vmul.f32 0.5, %v5469_v53 }
 0xfba   :  { %6729 = vmatprep.mubr.msk.bf16.mxu1 %vm2659_vm5, %v5507_v47  ;;  %v5499_v34 = vmul.f32 %v5483_v57, %v11162_v13 }
 0xfbb   :  { %6730 = vmatmul.mubr.msk.bf16.gmra.mxu1 %vm2659_vm5, %v5508_v52  ;;  %v7395_v33 = vpop.eup %7394  ;;  %v5486_v59 = vmul.f32 0.5, %v5470_v42  ;;  %v5501_v61 = vmul.f32 %v5485_v27, %v11155_v25 }
 0xfbc   :  { %v5468_v30 = vadd.f32 1.0, %v7395_v33 }
 0xfbd   :  { %v5502_v63 = vmul.f32 %v5486_v59, %v11171_v20 }
 0xfbe   :  { %v5484_v50 = vmul.f32 0.5, %v5468_v30 }
 0xfbf   :  { %v5510_v58 = vpack.c.bf16 %v5502_v63, %v5501_v61 }
 0xfc0   :  { %v5500_v54 = vmul.f32 %v5484_v50, %v11177_v0 }
 0xfc2   :  { %v5509_v37 = vpack.c.bf16 %v5500_v54, %v5499_v34 }
 0xfc4   :  { %6733 = vmatprep.mubr.msk.bf16.mxu1 %vm2659_vm5, %v5509_v37 }
 0xfc5   :  { %6734 = vmatmul.mubr.msk.bf16.gmra.mxu1 %vm2659_vm5, %v5510_v58 }
0x106a   :  { %v6723_v38 = vpop.f32.mrf.mxu1 }
0x106c   :  { %v5569_v4 = vpop.f32.mrf.mxu1 }
0x106e   :  { %v6724_v21 = vpop.f32.mrf.mxu1 }
0x1070   :  { %v5572_v39 = vpop.f32.mrf.mxu1 }
0x1072   :  { %v6727_v17 = vpop.f32.mrf.mxu1 }
0x1074   :  { %v5585_v26 = vpop.f32.mrf.mxu1 }
0x1076   :  { %v6728_v44 = vpop.f32.mrf.mxu1 }
0x1078   :  { %v5588_v20 = vpop.f32.mrf.mxu1 }
0x107b   :  { %v6731_v62 = vpop.f32.mrf.mxu1 }
0x107d   :  { %v5601_v13 = vpop.f32.mrf.mxu1 }
0x107f   :  { %v6732_v55 = vpop.f32.mrf.mxu1 }
0x1080   :  { %v5643_v52 = vadd.f32 %v6732_v55, %v11032_v31  ;;  %v5639_v31 = vadd.f32 %v6728_v44, %v11014_v3  ;;  %v5635_v3 = vadd.f32 %v6724_v21, %v10996_v22 }
0x1081   :  { %v5604_v0 = vpop.f32.mrf.mxu1 }
0x1082   :  { %v5641_v42 = vadd.f32 %v5604_v0, %v11038_v18  ;;  %v5655_v27 = vadd.f32 %v7426_v28, %v5639_v31  ;;  %v5637_v18 = vadd.f32 %v5588_v20, %v11020_v60  ;;  %v5651_v37 = vadd.f32 %v7426_v28, %v5635_v3 }
0x1083   :  { %v5633_v60 = vadd.f32 %v5572_v39, %v11002_v35  ;;  %v5673_v35 = vpop.xlane.xlu1 %5672 }
0x1084   :  { %v5657_v57 = vadd.f32 %v7426_v28, %v5641_v42  ;;  %v5653_v54 = vadd.f32 %v7426_v28, %v5637_v18 }
0x1085   :  { %v6735_v9 = vpop.f32.mrf.mxu1  ;;  %v5649_v22 = vadd.f32 %v7426_v28, %v5633_v60 }
0x1086   :  { %v5646_v32 = vadd.f32 %v6735_v9, %v11059_v23  ;;  %v5642_v23 = vadd.f32 %v6731_v62, %v11041_v46  ;;  %v5638_v46 = vadd.f32 %v6727_v17, %v11023_v16  ;;  %v5634_v16 = vadd.f32 %v6723_v38, %v11005_v14  ;;  %v7427_v9 = vld [vmem:[%s11275_s16] ss:$0 sm:$0xff]  ;;  %s7586_s16 = smov 16  }
0x1087   :  { %v5617_v25 = vpop.f32.mrf.mxu1  ;;  %v5676_v38 = vpack.c.bf16 %v11787_v45, %v10953_v51 }
0x1088   :  { %v5662_v40 = vadd.f32 %v7426_v28, %v5646_v32  ;;  %v5644_v24 = vadd.f32 %v5617_v25, %v11053_v7  ;;  %v5658_v59 = vadd.f32 %v7426_v28, %v5642_v23  ;;  %v5640_v7 = vadd.f32 %v5601_v13, %v11035_v36 }
0x1089   :  { %v6736_v49 = vpop.f32.mrf.mxu1  ;;  %v5654_v63 = vadd.f32 %v7426_v28, %v5638_v46  ;;  %v5636_v36 = vadd.f32 %v5585_v26, %v11017_v2  ;;  %v5650_v17 = vadd.f32 %v7426_v28, %v5634_v16  ;;  %v5632_v2 = vadd.f32 %v5569_v4, %v10999_v43  ;;  %v5675_v43 = vpop.xlane.xlu0 %5674 }
0x108a   :  { %v5647_v12 = vadd.f32 %v6736_v49, %v11050_v48  ;;  %v5660_v53 = vadd.f32 %v7426_v28, %v5644_v24  ;;  %v5659_v48 = vadd.f32 %v7426_v28, %v5643_v52  ;;  %v5656_v30 = vadd.f32 %v7426_v28, %v5640_v7 }
0x108b   :  { %v5620_v6 = vpop.f32.mrf.mxu1  ;;  %v5680_v34 = vpack.c.bf16 %v5655_v27, %v5654_v63  ;;  %v5652_v61 = vadd.f32 %v7426_v28, %v5636_v36  ;;  %v5678_v26 = vpack.c.bf16 %v5651_v37, %v5650_v17  ;;  %v5648_v21 = vadd.f32 %v7426_v28, %v5632_v2 }
0x108c   :  { %v5663_v56 = vadd.f32 %v7426_v28, %v5647_v12  ;;  %v5645_v47 = vadd.f32 %v5620_v6, %v11056_v8  ;;  %v5682_v8 = vpack.c.bf16 %v5659_v48, %v5658_v59  ;;  %v5681_v50 = vpack.c.bf16 %v5657_v57, %v5656_v30  ;;  %v2971_v30 = vpop.permute.xlu1 %2970 }
0x108d   :  { %v5679_v58 = vpack.c.bf16 %v5653_v54, %v5652_v61  ;;  %v5677_v14 = vpack.c.bf16 %v5649_v22, %v5648_v21  ;;  %v5726_v4 = vadd.f32 1e-09, %v5673_v35  ;;  %v5727_v39 = vadd.f32 1e-09, %v5675_v43 }
0x108e   :  { %v5684_v41 = vpack.c.bf16 %v5663_v56, %v5662_v40  ;;  %v5661_v1 = vadd.f32 %v7426_v28, %v5645_v47  ;;  %v2976_v27 = vrot.slane %v2971_v30, %v11785_v19 }
0x108f   :  { %7396 = vrcp.f32 %v5726_v4 }
0x1090   :  { %6738 = vmatpush3.bf16.msra.mxu0 %v5684_v41  ;;  %v5683_v33 = vpack.c.bf16 %v5661_v1, %v5660_v53  ;;  %7398 = vrcp.f32 %v5727_v39 }
0x1091   :  { %6739 = vmatprep.subr.bf16.mxu0 %v11751_v5 }
0x1094   :  { %6740 = vmatpush3.bf16.msra.mxu0 %v5683_v33 }
0x1095   :  { %6741 = vmatprep.subr.bf16.mxu0 %v11751_v5 }
0x1098   :  { %6742 = vmatpush3.bf16.msra.mxu0 %v5682_v8 }
0x1099   :  { %6743 = vmatprep.subr.bf16.mxu0 %v11751_v5 }
0x109c   :  { %6744 = vmatpush3.bf16.msra.mxu0 %v5681_v50  ;;  %v7397_v45 = vpop.eup %7396 }
0x109d   :  { %6745 = vmatprep.subr.bf16.mxu0 %v11751_v5  ;;  %v7399_v44 = vpop.eup %7398 }
0x10a0   :  { %6746 = vmatpush3.bf16.msra.mxu0 %v5680_v34  ;;  %v3018_v34 = vadd.f32 %v10755_v10, %v2976_v27 }
0x10a1   :  { %6747 = vmatprep.subr.bf16.mxu0 %v11751_v5 }
0x10a4   :  { %6748 = vmatpush3.bf16.msra.mxu0 %v5679_v58 }
0x10a5   :  { %6749 = vmatprep.subr.bf16.mxu0 %v11751_v5 }
0x10a8   :  { %6750 = vmatpush3.bf16.msra.mxu0 %v5678_v26 }
0x10a9   :  { %6751 = vmatprep.subr.bf16.mxu0 %v11751_v5 }
0x10ac   :  { %6752 = vmatpush3.bf16.msra.mxu0 %v5677_v14 }
0x10ad   :  { %6757 = vmatprep.subr.bf16.mxu0 %v11751_v5 }
0x10af   :  { %6754 = vmatmul.mubr.bf16.vlgmr.msra.gmra.mxu0 %v5676_v38 }
0x10b0   :  { %6758 = vmatpush3.bf16.msra.mxu0 %v10668_v15  ;;  %6761 = vmatprep.mubr.msk.bf16.mxu0 %vm7585_vm6, %v11751_v5 }
0x10b1   :  { %6759 = vmatprep.subr.bf16.mxu0 %v11751_v5 }
0x10b4   :  { %6760 = vmatpush3.bf16.msra.mxu0 %v10678_v29 }
0x10b5   :  { %6765 = vmatprep.subr.bf16.mxu0 %v11751_v5 }
0x116f   :  { %v5719_v51 = vpop.f32.mrf.mxu0 }
0x1170   :  { %v5729_v62 = vmul.f32 %v7397_v45, %v5719_v51 }
0x1171   :  { %v6755_v20 = vpop.f32.mrf.mxu0 }
0x1173   :  { %v5722_v15 = vpop.f32.mrf.mxu0 }
0x1174   :  { %v5731_v13 = vmul.f32 %v7399_v44, %v5722_v15 }
0x1175   :  { %v6756_v55 = vpop.f32.mrf.mxu0 }
0x1176   :  { %v5732_v0 = vpack.c.bf16 %v5731_v13, %v5729_v62 }
0x1178   :  { %6762 = vmatmul.mubr.msk.bf16.vlgmr.msra.gmra.mxu0 %vm1416_vm0, %v5732_v0 }
0x1179   :  { %6767 = vmatprep.mubr.msk.bf16.mxu0 %vm7585_vm6, %v11751_v5 }
0x1238   :  { %v5770_v29 = vpop.f32.mrf.mxu0 }
0x1239   :  { %v5771_v25 = vadd.f32 %v7427_v9, %v5770_v29 }
0x123a   :  { %v6763_v32 = vpop.f32.mrf.mxu0 }
0x123b   :  { %v5777_v49 = vmul.f32 %v5771_v25, %v5771_v25 }
0x123c   :  { %v5773_v12 = vpop.f32.mrf.mxu0 }
0x123d   :  { %v5779_v6 = vmul.f32 %v5777_v49, %v5771_v25  ;;  %v5774_v28 = vadd.f32 %v7427_v9, %v5773_v12 }
0x123e   :  { %v6764_v40 = vpop.f32.mrf.mxu0 }
0x123f   :  { %v5781_v24 = vmul.f32 0.044715, %v5779_v6  ;;  %v5778_v56 = vmul.f32 %v5774_v28, %v5774_v28 }
0x1241   :  { %v5783_v47 = vadd.f32 %v5781_v24, %v5771_v25  ;;  %v5780_v52 = vmul.f32 %v5778_v56, %v5774_v28 }
0x1243   :  { %v5785_v41 = vmul.f32 0.7978846, %v5783_v47  ;;  %v5782_v1 = vmul.f32 0.044715, %v5780_v52 }
0x1245   :  { %7400 = vtanh.f32 %v5785_v41  ;;  %v5784_v5 = vadd.f32 %v5782_v1, %v5774_v28 }
0x1247   :  { %v5786_v23 = vmul.f32 0.7978846, %v5784_v5 }
0x1249   :  { %7402 = vtanh.f32 %v5786_v23 }
0x1252   :  { %v7401_v53 = vpop.eup %7400 }
0x1253   :  { %v5789_v48 = vadd.f32 1.0, %v7401_v53 }
0x1255   :  { %v5791_v59 = vmul.f32 0.5, %v5789_v48 }
0x1256   :  { %v7403_v42 = vpop.eup %7402 }
0x1257   :  { %v5790_v33 = vadd.f32 1.0, %v7403_v42  ;;  %v5793_v31 = vmul.f32 %v5791_v59, %v5771_v25 }
0x1259   :  { %v5792_v7 = vmul.f32 0.5, %v5790_v33 }
0x125b   :  { %v5794_v8 = vmul.f32 %v5792_v7, %v5774_v28 }
0x125d   :  { %v5795_v57 = vpack.c.bf16 %v5794_v8, %v5793_v31 }
0x125f   :  { %v5797_v46 = vsel %vm1416_vm0, %v5795_v57, 0 }
0x1260   :  { %6766 = vmatpush3.bf16.xpose.msra.mxu0 %v5797_v46 }
0x1267   :  { %6768 = vmatmul.mubr.msk.bf16.vlgmr.msra.gmra.mxu0 %vm1416_vm0, %v10712_v11 }
0x1327   :  { %v5833_v18 = vpop.f32.mrf.mxu0 }
0x1328   :  { %v5834_v50 = vadd.f32 %v5833_v18, %v2976_v27 }
0x1329   :  { %v6769_v63 = vpop.f32.mrf.mxu0 }
0x132a   :  { %5840 = vrot.lane.b32.xlu0 %v5834_v50, %s7586_s16 }
0x132b   :  { %v5836_v36 = vpop.f32.mrf.mxu0 }
0x132d   :  { %v6770_v3 = vpop.f32.mrf.mxu0 }
0x139c   :  { %v5841_v54 = vpop.permute.xlu0 %5840 }
0x139d   :  { %v5844_v16 = vsel %vm5843_vm7, %v3018_v34, %v5841_v54 }
0x139e   :  { %5846 = vst.msk [vmem:[#allocation3] sm:$0x1] %vm5845_vm8, %v5844_v16 }
0x139f   :  { %7568 = shalt.err (!%p7565_p4)
}
0x13a0   :  { %5856 = dma.vmem_to_hbm [thread:$0]  %s5854_s5, 16, %s11278_s19, [#allocation4]  }
0x13a1   :  { %7577 = dma.done.wait [#allocation4], 16  }
0x13a2   :  { %7578 = vsyncadd [#allocation4], 4294967280 }
0x13a3   :  { %5860 = vsyncpa [#allocation4], 1 }

</bundles_post_ra>
